<compile_context>
chip_gen: v7x
topology: tpu7x:2x2x1
jax: 0.10.0
libtpu: 0.0.40
codegen_flags: <defaults>
</compile_context>

<pallas_src>
import math

import jax
import jax.numpy as jnp
from jax import lax
from jax.experimental import pallas as pl
from jax.experimental.pallas import tpu as pltpu

FEATS = 256
NUM_CLASSES = 1041
NUM_CLASSES_PAD = 1152          # next multiple of 128 -> lane-dense FC output
KT = 1024                       # K tile for the ragged 13-head reduction weights
EPS = 1e-5

HEADS = ("p1", "p2", "p2_c1", "p2_c2", "p2_s1", "p2_s2",
         "p3", "p3_c1", "p3_c2", "p3_c3", "p3_s1", "p3_s2", "p3_s3")

_RED_CIN = {
    "p1": 2048, "p2": 2048, "p2_c1": 1024, "p2_c2": 1024,
    "p2_s1": 2048, "p2_s2": 2048, "p3": 2048, "p3_c1": 683,
    "p3_c2": 683, "p3_c3": 682, "p3_s1": 2048, "p3_s2": 2048, "p3_s3": 2048,
}
_KTILES = {n: -(-c // KT) for n, c in _RED_CIN.items()}     # 2 for K=2048, else 1

# Static step schedule for the fused 13-head kernel: one step per (head, k-tile).
_HEAD_OF_STEP, _KBLK_OF_STEP, _LAST_OF_STEP = [], [], []
for _g, _name in enumerate(HEADS):
    for _t in range(_KTILES[_name]):
        _HEAD_OF_STEP.append(_g)
        _KBLK_OF_STEP.append(_t)
        _LAST_OF_STEP.append(1 if _t == _KTILES[_name] - 1 else 0)
NUM_STEPS = len(_HEAD_OF_STEP)                               # 8*2 + 5*1 = 21


# ------------------------------ stem kernel ---------------------------------

def _stem_kernel(x_ref, w_ref, o_ref):
    y = jnp.dot(x_ref[...], w_ref[...], preferred_element_type=jnp.float32)
    o_ref[...] = jnp.maximum(y, 0.0).astype(o_ref.dtype)


def stem_matmul_relu(x_bf16, w_bf16):
    """relu(x @ w), bf16 in/out, f32 accumulation, tiled over M for pipelining."""
    M, K = x_bf16.shape
    _, Nout = w_bf16.shape
    tm = M if M <= 512 else 512                # full block for small M, else 512-row tiles
    return pl.pallas_call(
        _stem_kernel,
        out_shape=jax.ShapeDtypeStruct((M, Nout), jnp.bfloat16),
        grid=(pl.cdiv(M, tm),),
        in_specs=[pl.BlockSpec((tm, K), lambda i: (i, 0)),
                  pl.BlockSpec((K, Nout), lambda i: (0, 0))],     # resident weight
        out_specs=pl.BlockSpec((tm, Nout), lambda i: (i, 0)),
        compiler_params=pltpu.CompilerParams(dimension_semantics=("parallel",)),
    )(x_bf16, w_bf16)


# ------------------------- branch conv + pool kernel -------------------------

def _adaptive_bins(size, out):
    # Exact PyTorch AdaptiveMaxPool2d bin boundaries: [floor(i*S/o), ceil((i+1)*S/o))
    return [((i * size) // out, -((-(i + 1) * size) // out)) for i in range(out)]


def _make_branch_pool_kernel(h, w):
    hw = h * w
    # 6 pooled rows per image: [global, h2_0, h2_1, h3_0, h3_1, h3_2]
    bins = [(0, h)] + _adaptive_bins(h, 2) + _adaptive_bins(h, 3)

    def kernel(feat_ref, w_ref, pool_ref):
        # one (branch, image) per grid step; rows ordered (h, w) row-major
        y = jnp.dot(feat_ref[0], w_ref[0], preferred_element_type=jnp.float32)
        y = jnp.maximum(y, 0.0).astype(jnp.bfloat16)          # (hw, 2048) bf16
        row = lax.broadcasted_iota(jnp.int32, (hw, 1), 0)
        maxes = []
        for (s, e) in bins:
            # masked max (fill 0 is safe: all values >= 0 after ReLU, bins non-empty)
            m = jnp.where((row >= s * w) & (row < e * w), y, 0.0)
            maxes.append(jnp.max(m, axis=0, keepdims=True))
        slab = jnp.concatenate(maxes, axis=0)                 # (6, 2048) bf16, lane dense
        pool_ref[...] = slab[None, None]

    return kernel


def branch_matmul_pools(feat_nhw, wb_bf16, h, w):
    """Fused per-branch 1x1 conv + ReLU + AdaptiveMaxPool2d (1,1)/(2,1)/(3,1).
    feat_nhw: [N, h*w, 1024] bf16.  Returns pool [3, N, 6, 2048] bf16."""
    N, hw, K = feat_nhw.shape
    B, _, C = wb_bf16.shape
    kernel = _make_branch_pool_kernel(h, w)
    return pl.pallas_call(
        kernel,
        out_shape=jax.ShapeDtypeStruct((B, N, 6, C), jnp.bfloat16),
        grid=(B, N),
        in_specs=[pl.BlockSpec((1, hw, K), lambda b, n: (n, 0, 0)),
                  pl.BlockSpec((1, K, C), lambda b, n: (b, 0, 0))],   # fetched once/branch
        out_specs=pl.BlockSpec((1, 1, 6, C), lambda b, n: (b, n, 0, 0)),
        compiler_params=pltpu.CompilerParams(
            dimension_semantics=("parallel", "parallel"),
            vmem_limit_bytes=32 * 1024 * 1024),   # double-buffered 4 MiB weight on v5e
    )(feat_nhw, wb_bf16)


# ----------------- fused 13-head reduction + BN + FC kernel ------------------

def _fused_head_kernel(hd_ref, kb_ref, lf_ref,
                       z_ref, rw_ref, rs_ref, rb_ref, fw_ref, fb_ref,
                       feat_ref, logit_ref, acc_ref):
    s = pl.program_id(0)

    @pl.when(kb_ref[s] == 0)
    def _():
        acc_ref[...] = jnp.zeros_like(acc_ref)

    acc_ref[...] += jnp.dot(z_ref[0], rw_ref[0], preferred_element_type=jnp.float32)

    @pl.when(lf_ref[s] == 1)
    def _():
        f = acc_ref[...] * rs_ref[0] + rb_ref[0]              # BN (eval) folded affine
        feat_ref[...] = f[None]
        logit_ref[...] = (jnp.dot(f.astype(jnp.bfloat16), fw_ref[0],
                                  preferred_element_type=jnp.float32)
                          + fb_ref[0])[None]


def fused_heads(z, rw, rs, rb, fw, fb, head_of_step, kblk_of_step, last_of_step):
    """All 13 heads (reduction conv + BN affine + FC) in one pallas_call.
    Grid iterates the 21 ragged K-tiles; per-head feature lives in VMEM scratch."""
    G, Np, _ = z.shape                 # [13, N_pad, 2048]
    S = NUM_STEPS
    grid_spec = pltpu.PrefetchScalarGridSpec(
        num_scalar_prefetch=3,
        grid=(S,),
        in_specs=[
            pl.BlockSpec((1, Np, KT), lambda s, hd, kb, lf: (hd[s], 0, kb[s])),
            pl.BlockSpec((1, KT, FEATS), lambda s, hd, kb, lf: (s, 0, 0)),       # ragged w
            pl.BlockSpec((1, 1, FEATS), lambda s, hd, kb, lf: (hd[s], 0, 0)),
            pl.BlockSpec((1, 1, FEATS), lambda s, hd, kb, lf: (hd[s], 0, 0)),
            pl.BlockSpec((1, FEATS, NUM_CLASSES_PAD), lambda s, hd, kb, lf: (hd[s], 0, 0)),
            pl.BlockSpec((1, 1, NUM_CLASSES_PAD), lambda s, hd, kb, lf: (hd[s], 0, 0)),
        ],
        out_specs=(
            pl.BlockSpec((1, Np, FEATS), lambda s, hd, kb, lf: (hd[s], 0, 0)),
            pl.BlockSpec((1, Np, NUM_CLASSES_PAD), lambda s, hd, kb, lf: (hd[s], 0, 0)),
        ),
        scratch_shapes=[pltpu.VMEM((Np, FEATS), jnp.float32)],
    )
    return pl.pallas_call(
        _fused_head_kernel,
        grid_spec=grid_spec,
        out_shape=(jax.ShapeDtypeStruct((G, Np, FEATS), jnp.float32),
                   jax.ShapeDtypeStruct((G, Np, NUM_CLASSES_PAD), jnp.float32)),
        compiler_params=pltpu.CompilerParams(dimension_semantics=("arbitrary",)),
    )(head_of_step, kblk_of_step, last_of_step, z, rw, rs, rb, fw, fb)


# ------------------------------ parameters ----------------------------------

def _kaiming(key, shape, fan):
    return math.sqrt(2.0 / fan) * jax.random.normal(key, shape, jnp.float32)


def init_params(key):
    params = {}
    ks = iter(jax.random.split(key, 64))
    # TODO(synk): resnet50_ibn_a / Bottleneck definitions are not in the provided
    # source; the backbone is a 16x16 patchify-conv stand-in (total stride 16,
    # 1024 channels) and each p1/p2/p3 branch a 1x1 conv 1024->2048 + ReLU.
    params["stem_w"] = _kaiming(next(ks), (3 * 16 * 16, 1024),
                                3 * 16 * 16).astype(jnp.bfloat16)
    params["branch_w"] = jnp.stack(
        [_kaiming(next(ks), (1024, 2048), 1024) for _ in range(3)], axis=0
    ).astype(jnp.bfloat16)                                        # [3, 1024, 2048]

    rw_tiles, red_s, red_b, fc_w, fc_b = [], [], [], [], []
    for name in HEADS:
        cin = _RED_CIN[name]
        kt = _KTILES[name]
        # reduction = Conv2d(cin, 256, 1, bias=False) + BatchNorm2d(256) (eval mode)
        w = _kaiming(next(ks), (cin, FEATS), cin)
        w = jnp.pad(w, ((0, kt * KT - cin), (0, 0)))       # pad only to this head's tiles
        for t in range(kt):
            rw_tiles.append(w[t * KT:(t + 1) * KT])
        gamma = 1.0 + 0.02 * jax.random.normal(next(ks), (FEATS,), jnp.float32)
        beta = jnp.zeros((FEATS,), jnp.float32)
        run_mean = jnp.zeros((FEATS,), jnp.float32)
        run_var = jnp.ones((FEATS,), jnp.float32)
        scale = gamma / jnp.sqrt(run_var + EPS)
        red_s.append(scale.reshape(1, FEATS))
        red_b.append((beta - run_mean * scale).reshape(1, FEATS))
        # fc = Linear(256, 1041), kaiming fan_out, bias 0; classes zero-padded to 1152
        fwm = _kaiming(next(ks), (FEATS, NUM_CLASSES), NUM_CLASSES)
        fc_w.append(jnp.pad(fwm, ((0, 0), (0, NUM_CLASSES_PAD - NUM_CLASSES))))
        fc_b.append(jnp.zeros((1, NUM_CLASSES_PAD), jnp.float32))

    params["red_w"] = jnp.stack(rw_tiles, 0).astype(jnp.bfloat16)   # [21, 1024, 256] ragged
    params["red_scale"] = jnp.stack(red_s, 0)                       # [13, 1, 256] f32
    params["red_bias"] = jnp.stack(red_b, 0)                        # [13, 1, 256] f32
    params["fc_w"] = jnp.stack(fc_w, 0).astype(jnp.bfloat16)        # [13, 256, 1152]
    params["fc_b"] = jnp.stack(fc_b, 0)                             # [13, 1, 1152] f32
    return params


# -------------------------------- forward ------------------------------------

def forward(params, x):
    # x: [N, 3, Himg, Wimg] NCHW
    N, Cimg, Himg, Wimg = x.shape
    P = 16
    h, w = Himg // P, Wimg // P
    hw = h * w

    # Stand-in backbone stem: 16x16 patchify -> matmul + ReLU -> [N*h*w, 1024] bf16
    patches = x.reshape(N, Cimg, h, P, w, P).transpose(0, 2, 4, 1, 3, 5)
    patches = patches.reshape(N * hw, Cimg * P * P).astype(jnp.bfloat16)
    feat = stem_matmul_relu(patches, params["stem_w"]).reshape(N, hw, 1024)

    # Fused branch conv + ReLU + adaptive max pools -> [3, N, 6, 2048] bf16
    pool = branch_matmul_pools(feat, params["branch_w"], h, w)
    zg = pool[:, :, 0, :]               # [3, N, 2048]  global (1,1) pool per branch
    z2 = pool[1, :, 1:3, :]             # p2 (2,1) pool -> [N, 2, 2048]
    z3 = pool[2, :, 3:6, :]             # p3 (3,1) pool -> [N, 3, 2048]
    zg_p1, zg_p2, zg_p3 = zg[0], zg[1], zg[2]

    def pad_k(zz):                      # pad channel splits up to the 2048-wide storage
        return jnp.pad(zz, ((0, 0), (0, 2 * KT - zz.shape[1])))

    head_in = {
        "p1": zg_p1, "p2": zg_p2,
        "p2_c1": pad_k(zg_p2[:, :1024]), "p2_c2": pad_k(zg_p2[:, 1024:2048]),
        "p2_s1": z2[:, 0, :], "p2_s2": z2[:, 1, :],
        "p3": zg_p3,
        "p3_c1": pad_k(zg_p3[:, :683]), "p3_c2": pad_k(zg_p3[:, 683:1366]),
        "p3_c3": pad_k(zg_p3[:, 1366:2048]),
        "p3_s1": z3[:, 0, :], "p3_s2": z3[:, 1, :], "p3_s3": z3[:, 2, :],
    }
    z_stack = jnp.stack([head_in[n] for n in HEADS], axis=0)        # [13, N, 2048] bf16

    # pad batch to a sublane-friendly multiple of 8 (avoid degenerate 2-row tiles)
    N_pad = max(8, -(-N // 8) * 8)
    if N_pad != N:
        z_stack = jnp.pad(z_stack, ((0, 0), (0, N_pad - N), (0, 0)))

    hd = jnp.asarray(_HEAD_OF_STEP, jnp.int32)
    kb = jnp.asarray(_KBLK_OF_STEP, jnp.int32)
    lf = jnp.asarray(_LAST_OF_STEP, jnp.int32)

    feats, logits = fused_heads(z_stack, params["red_w"], params["red_scale"],
                                params["red_bias"], params["fc_w"], params["fc_b"],
                                hd, kb, lf)
    feats = feats[:, :N, :]                                          # [13, N, 256]  f32
    logits = logits[:, :N, :NUM_CLASSES]                             # [13, N, 1041] f32

    f = {n: feats[i] for i, n in enumerate(HEADS)}
    l = {n: logits[i] for i, n in enumerate(HEADS)}

    predict = jnp.concatenate(
        [f["p1"], f["p2"], f["p3"], f["p2_c1"], f["p2_c2"], f["p2_s1"], f["p2_s2"],
         f["p3_c1"], f["p3_c2"], f["p3_c3"], f["p3_s1"], f["p3_s2"], f["p3_s3"]], axis=1)

    return (predict, f["p1"], f["p2"], f["p3"], l["p1"], l["p2"], l["p3"],
            l["p2_c1"], l["p2_c2"], l["p2_s1"], l["p2_s2"],
            l["p3_c1"], l["p3_c2"], l["p3_c3"], l["p3_s1"], l["p3_s2"], l["p3_s3"])


# --------------------------------- main --------------------------------------

if __name__ == "__main__":
    key = jax.random.PRNGKey(0)
    kx, kp = jax.random.split(key)
    # small image consistent with the model (stride-16 backbone -> 6x2 feature map)
    x = jax.random.normal(kx, (2, 3, 96, 32), jnp.float32)
    params = init_params(kp)

    fwd = jax.jit(forward)
    outs = jax.block_until_ready(fwd(params, x))

    assert outs[0].shape == (2, 13 * FEATS)      # predict
    assert outs[1].shape == (2, FEATS)           # f_p1
    assert outs[4].shape == (2, NUM_CLASSES)     # l_p1
    assert len(outs) == 17
    print("KERNEL_OK")
</pallas_src>

<mosaic_0001>
module attributes {stable_mosaic.version = 11 : i64} {
  func.func @_stem_kernel(%arg0: i32, %arg1: memref<24x768xbf16, #tpu.memory_space<vmem>>, %arg2: memref<768x1024xbf16, #tpu.memory_space<vmem>>, %arg3: memref<24x1024xbf16, #tpu.memory_space<vmem>>) attributes {dimension_semantics = [#tpu.dimension_semantics<parallel>], iteration_bounds = array<i64: 1>, scalar_prefetch = 0 : i64, scratch_operands = 0 : i64, tpu.core_type = #tpu.core_type<tc>, window_params = [{transform_indices = @transform_0, window_bounds = array<i64: 24, 768>}, {pipeline_mode = #tpu.pipeline_mode<synchronous>, transform_indices = @transform_1, window_bounds = array<i64: 768, 1024>}, {transform_indices = @transform_2, window_bounds = array<i64: 24, 1024>}]} {
    %c0 = arith.constant 0 : index
    %c0_0 = arith.constant 0 : index
    %0 = vector.load %arg1[%c0, %c0_0] : memref<24x768xbf16, #tpu.memory_space<vmem>>, vector<24x768xbf16>
    %c0_1 = arith.constant 0 : index
    %c0_2 = arith.constant 0 : index
    %1 = vector.load %arg2[%c0_1, %c0_2] : memref<768x1024xbf16, #tpu.memory_space<vmem>>, vector<768x1024xbf16>
    %cst = arith.constant dense<0.000000e+00> : vector<24x1024xf32>
    %2 = tpu.matmul %0, %1, %cst {dimension_numbers = #tpu.dot_dimension_numbers<[1], [0], [0], [1], [0, 0, 1, 1], [], []>} : vector<24x768xbf16>, vector<768x1024xbf16>, vector<24x1024xf32> -> vector<24x1024xf32>
    %cst_3 = arith.constant 0.000000e+00 : f32
    %3 = vector.broadcast %cst_3 : f32 to vector<24x1024xf32>
    %4 = arith.maximumf %2, %3 : vector<24x1024xf32>
    %5 = arith.truncf %4 : vector<24x1024xf32> to vector<24x1024xbf16>
    %c0_4 = arith.constant 0 : index
    %c0_5 = arith.constant 0 : index
    %6 = vector.load %arg3[%c0_4, %c0_5] : memref<24x1024xbf16, #tpu.memory_space<vmem>>, vector<24x1024xbf16>
    tpu.vector_store %arg3[%c0_4, %c0_5], %5 {strides = array<i32>} : memref<24x1024xbf16, #tpu.memory_space<vmem>>, vector<24x1024xbf16>,
    return
  }
  func.func @transform_0(%arg0: i32) -> (i32, i32) {
    %c0_i32 = arith.constant 0 : i32
    %c0_i32_0 = arith.constant 0 : i32
    return %arg0, %c0_i32 : i32, i32
  }
  func.func @transform_1(%arg0: i32) -> (i32, i32) {
    %c0_i32 = arith.constant 0 : i32
    %c0_i32_0 = arith.constant 0 : i32
    %c0_i32_1 = arith.constant 0 : i32
    return %c0_i32, %c0_i32_0 : i32, i32
  }
  func.func @transform_2(%arg0: i32) -> (i32, i32) {
    %c0_i32 = arith.constant 0 : i32
    %c0_i32_0 = arith.constant 0 : i32
    return %arg0, %c0_i32 : i32, i32
  }
}

module attributes {stable_mosaic.version = 11 : i64} {
  func.func @kernel(%arg0: i32, %arg1: i32, %arg2: memref<1x12x1024xbf16, #tpu.memory_space<vmem>>, %arg3: memref<1x1024x2048xbf16, #tpu.memory_space<vmem>>, %arg4: memref<1x1x6x2048xbf16, #tpu.memory_space<vmem>>) attributes {dimension_semantics = [#tpu.dimension_semantics<parallel>, #tpu.dimension_semantics<parallel>], iteration_bounds = array<i64: 3, 2>, scalar_prefetch = 0 : i64, scratch_operands = 0 : i64, tpu.core_type = #tpu.core_type<tc>, window_params = [{transform_indices = @transform_0, window_bounds = array<i64: 1, 12, 1024>}, {transform_indices = @transform_1, window_bounds = array<i64: 1, 1024, 2048>}, {transform_indices = @transform_2, window_bounds = array<i64: 1, 1, 6, 2048>}]} {
    %c0 = arith.constant 0 : index
    %c0_0 = arith.constant 0 : index
    %c0_1 = arith.constant 0 : index
    %0 = vector.load %arg2[%c0, %c0_0, %c0_1] : memref<1x12x1024xbf16, #tpu.memory_space<vmem>>, vector<1x12x1024xbf16>
    %1 = vector.shape_cast %0 : vector<1x12x1024xbf16> to vector<12x1024xbf16>
    %c0_2 = arith.constant 0 : index
    %c0_3 = arith.constant 0 : index
    %c0_4 = arith.constant 0 : index
    %2 = vector.load %arg3[%c0_2, %c0_3, %c0_4] : memref<1x1024x2048xbf16, #tpu.memory_space<vmem>>, vector<1x1024x2048xbf16>
    %3 = vector.shape_cast %2 : vector<1x1024x2048xbf16> to vector<1024x2048xbf16>
    %cst = arith.constant dense<0.000000e+00> : vector<12x2048xf32>
    %4 = tpu.matmul %1, %3, %cst {dimension_numbers = #tpu.dot_dimension_numbers<[1], [0], [0], [1], [0, 0, 1, 1], [], []>} : vector<12x1024xbf16>, vector<1024x2048xbf16>, vector<12x2048xf32> -> vector<12x2048xf32>
    %cst_5 = arith.constant 0.000000e+00 : f32
    %5 = vector.broadcast %cst_5 : f32 to vector<12x2048xf32>
    %6 = arith.maximumf %4, %5 : vector<12x2048xf32>
    %7 = arith.truncf %6 : vector<12x2048xf32> to vector<12x2048xbf16>
    %8 = tpu.iota {dimensions = array<i32: 0>} : vector<12x1xi32>
    %c0_i32 = arith.constant 0 : i32
    %9 = vector.broadcast %c0_i32 : i32 to vector<12x1xi32>
    %10 = arith.cmpi sge, %8, %9 : vector<12x1xi32>
    %c12_i32 = arith.constant 12 : i32
    %11 = vector.broadcast %c12_i32 : i32 to vector<12x1xi32>
    %12 = arith.cmpi slt, %8, %11 : vector<12x1xi32>
    %13 = arith.andi %10, %12 : vector<12x1xi1>
    %cst_6 = arith.constant 0.000000e+00 : f32
    %14 = arith.truncf %cst_6 : f32 to bf16
    %15 = vector.shape_cast %13 : vector<12x1xi1> to vector<12x1xi1>
    %16 = vector.broadcast %15 : vector<12x1xi1> to vector<12x2048xi1>
    %17 = vector.broadcast %14 : bf16 to vector<12x2048xbf16>
    %18 = arith.select %16, %7, %17 : vector<12x2048xi1>, vector<12x2048xbf16>
    %cst_7 = arith.constant dense<0xFF80> : vector<2048xbf16>
    %19 = vector.multi_reduction <maximumf>, %18, %cst_7 [0] : vector<12x2048xbf16> to vector<2048xbf16>
    %20 = vector.shape_cast %19 : vector<2048xbf16> to vector<1x2048xbf16>
    %c0_i32_8 = arith.constant 0 : i32
    %21 = vector.broadcast %c0_i32_8 : i32 to vector<12x1xi32>
    %22 = arith.cmpi sge, %8, %21 : vector<12x1xi32>
    %c6_i32 = arith.constant 6 : i32
    %23 = vector.broadcast %c6_i32 : i32 to vector<12x1xi32>
    %24 = arith.cmpi slt, %8, %23 : vector<12x1xi32>
    %25 = arith.andi %22, %24 : vector<12x1xi1>
    %cst_9 = arith.constant 0.000000e+00 : f32
    %26 = arith.truncf %cst_9 : f32 to bf16
    %27 = vector.shape_cast %25 : vector<12x1xi1> to vector<12x1xi1>
    %28 = vector.broadcast %27 : vector<12x1xi1> to vector<12x2048xi1>
    %29 = vector.broadcast %26 : bf16 to vector<12x2048xbf16>
    %30 = arith.select %28, %7, %29 : vector<12x2048xi1>, vector<12x2048xbf16>
    %cst_10 = arith.constant dense<0xFF80> : vector<2048xbf16>
    %31 = vector.multi_reduction <maximumf>, %30, %cst_10 [0] : vector<12x2048xbf16> to vector<2048xbf16>
    %32 = vector.shape_cast %31 : vector<2048xbf16> to vector<1x2048xbf16>
    %c6_i32_11 = arith.constant 6 : i32
    %33 = vector.broadcast %c6_i32_11 : i32 to vector<12x1xi32>
    %34 = arith.cmpi sge, %8, %33 : vector<12x1xi32>
    %c12_i32_12 = arith.constant 12 : i32
    %35 = vector.broadcast %c12_i32_12 : i32 to vector<12x1xi32>
    %36 = arith.cmpi slt, %8, %35 : vector<12x1xi32>
    %37 = arith.andi %34, %36 : vector<12x1xi1>
    %cst_13 = arith.constant 0.000000e+00 : f32
    %38 = arith.truncf %cst_13 : f32 to bf16
    %39 = vector.shape_cast %37 : vector<12x1xi1> to vector<12x1xi1>
    %40 = vector.broadcast %39 : vector<12x1xi1> to vector<12x2048xi1>
    %41 = vector.broadcast %38 : bf16 to vector<12x2048xbf16>
    %42 = arith.select %40, %7, %41 : vector<12x2048xi1>, vector<12x2048xbf16>
    %cst_14 = arith.constant dense<0xFF80> : vector<2048xbf16>
    %43 = vector.multi_reduction <maximumf>, %42, %cst_14 [0] : vector<12x2048xbf16> to vector<2048xbf16>
    %44 = vector.shape_cast %43 : vector<2048xbf16> to vector<1x2048xbf16>
    %c0_i32_15 = arith.constant 0 : i32
    %45 = vector.broadcast %c0_i32_15 : i32 to vector<12x1xi32>
    %46 = arith.cmpi sge, %8, %45 : vector<12x1xi32>
    %c4_i32 = arith.constant 4 : i32
    %47 = vector.broadcast %c4_i32 : i32 to vector<12x1xi32>
    %48 = arith.cmpi slt, %8, %47 : vector<12x1xi32>
    %49 = arith.andi %46, %48 : vector<12x1xi1>
    %cst_16 = arith.constant 0.000000e+00 : f32
    %50 = arith.truncf %cst_16 : f32 to bf16
    %51 = vector.shape_cast %49 : vector<12x1xi1> to vector<12x1xi1>
    %52 = vector.broadcast %51 : vector<12x1xi1> to vector<12x2048xi1>
    %53 = vector.broadcast %50 : bf16 to vector<12x2048xbf16>
    %54 = arith.select %52, %7, %53 : vector<12x2048xi1>, vector<12x2048xbf16>
    %cst_17 = arith.constant dense<0xFF80> : vector<2048xbf16>
    %55 = vector.multi_reduction <maximumf>, %54, %cst_17 [0] : vector<12x2048xbf16> to vector<2048xbf16>
    %56 = vector.shape_cast %55 : vector<2048xbf16> to vector<1x2048xbf16>
    %c4_i32_18 = arith.constant 4 : i32
    %57 = vector.broadcast %c4_i32_18 : i32 to vector<12x1xi32>
    %58 = arith.cmpi sge, %8, %57 : vector<12x1xi32>
    %c8_i32 = arith.constant 8 : i32
    %59 = vector.broadcast %c8_i32 : i32 to vector<12x1xi32>
    %60 = arith.cmpi slt, %8, %59 : vector<12x1xi32>
    %61 = arith.andi %58, %60 : vector<12x1xi1>
    %cst_19 = arith.constant 0.000000e+00 : f32
    %62 = arith.truncf %cst_19 : f32 to bf16
    %63 = vector.shape_cast %61 : vector<12x1xi1> to vector<12x1xi1>
    %64 = vector.broadcast %63 : vector<12x1xi1> to vector<12x2048xi1>
    %65 = vector.broadcast %62 : bf16 to vector<12x2048xbf16>
    %66 = arith.select %64, %7, %65 : vector<12x2048xi1>, vector<12x2048xbf16>
    %cst_20 = arith.constant dense<0xFF80> : vector<2048xbf16>
    %67 = vector.multi_reduction <maximumf>, %66, %cst_20 [0] : vector<12x2048xbf16> to vector<2048xbf16>
    %68 = vector.shape_cast %67 : vector<2048xbf16> to vector<1x2048xbf16>
    %c8_i32_21 = arith.constant 8 : i32
    %69 = vector.broadcast %c8_i32_21 : i32 to vector<12x1xi32>
    %70 = arith.cmpi sge, %8, %69 : vector<12x1xi32>
    %c12_i32_22 = arith.constant 12 : i32
    %71 = vector.broadcast %c12_i32_22 : i32 to vector<12x1xi32>
    %72 = arith.cmpi slt, %8, %71 : vector<12x1xi32>
    %73 = arith.andi %70, %72 : vector<12x1xi1>
    %cst_23 = arith.constant 0.000000e+00 : f32
    %74 = arith.truncf %cst_23 : f32 to bf16
    %75 = vector.shape_cast %73 : vector<12x1xi1> to vector<12x1xi1>
    %76 = vector.broadcast %75 : vector<12x1xi1> to vector<12x2048xi1>
    %77 = vector.broadcast %74 : bf16 to vector<12x2048xbf16>
    %78 = arith.select %76, %7, %77 : vector<12x2048xi1>, vector<12x2048xbf16>
    %cst_24 = arith.constant dense<0xFF80> : vector<2048xbf16>
    %79 = vector.multi_reduction <maximumf>, %78, %cst_24 [0] : vector<12x2048xbf16> to vector<2048xbf16>
    %80 = vector.shape_cast %79 : vector<2048xbf16> to vector<1x2048xbf16>
    %81 = tpu.concatenate %20, %32, %44, %56, %68, %80 in 0 : vector<1x2048xbf16>, vector<1x2048xbf16>, vector<1x2048xbf16>, vector<1x2048xbf16>, vector<1x2048xbf16>, vector<1x2048xbf16> -> vector<6x2048xbf16>
    %82 = vector.shape_cast %81 : vector<6x2048xbf16> to vector<1x1x6x2048xbf16>
    %c0_25 = arith.constant 0 : index
    %c0_26 = arith.constant 0 : index
    %c0_27 = arith.constant 0 : index
    %c0_28 = arith.constant 0 : index
    %83 = vector.load %arg4[%c0_25, %c0_26, %c0_27, %c0_28] : memref<1x1x6x2048xbf16, #tpu.memory_space<vmem>>, vector<1x1x6x2048xbf16>
    tpu.vector_store %arg4[%c0_25, %c0_26, %c0_27, %c0_28], %82 {strides = array<i32>} : memref<1x1x6x2048xbf16, #tpu.memory_space<vmem>>, vector<1x1x6x2048xbf16>,
    return
  }
  func.func @transform_0(%arg0: i32, %arg1: i32) -> (i32, i32, i32) {
    %c0_i32 = arith.constant 0 : i32
    %c0_i32_0 = arith.constant 0 : i32
    %c0_i32_1 = arith.constant 0 : i32
    return %arg1, %c0_i32, %c0_i32_0 : i32, i32, i32
  }
  func.func @transform_1(%arg0: i32, %arg1: i32) -> (i32, i32, i32) {
    %c0_i32 = arith.constant 0 : i32
    %c0_i32_0 = arith.constant 0 : i32
    %c0_i32_1 = arith.constant 0 : i32
    return %arg0, %c0_i32, %c0_i32_0 : i32, i32, i32
  }
  func.func @transform_2(%arg0: i32, %arg1: i32) -> (i32, i32, i32, i32) {
    %c0_i32 = arith.constant 0 : i32
    %c0_i32_0 = arith.constant 0 : i32
    %c0_i32_1 = arith.constant 0 : i32
    return %arg0, %arg1, %c0_i32, %c0_i32_0 : i32, i32, i32, i32
  }
}

module attributes {stable_mosaic.version = 11 : i64} {
  func.func @_fused_head_kernel(%arg0: i32, %arg1: memref<21xi32, #tpu.memory_space<smem>>, %arg2: memref<21xi32, #tpu.memory_space<smem>>, %arg3: memref<21xi32, #tpu.memory_space<smem>>, %arg4: memref<1x8x1024xbf16, #tpu.memory_space<vmem>>, %arg5: memref<1x1024x256xbf16, #tpu.memory_space<vmem>>, %arg6: memref<1x1x256xf32, #tpu.memory_space<vmem>>, %arg7: memref<1x1x256xf32, #tpu.memory_space<vmem>>, %arg8: memref<1x256x1152xbf16, #tpu.memory_space<vmem>>, %arg9: memref<1x1x1152xf32, #tpu.memory_space<vmem>>, %arg10: memref<1x8x256xf32, #tpu.memory_space<vmem>>, %arg11: memref<1x8x1152xf32, #tpu.memory_space<vmem>>, %arg12: memref<8x256xf32, #tpu.memory_space<vmem>>) attributes {dimension_semantics = [#tpu.dimension_semantics<arbitrary>], iteration_bounds = array<i64: 21>, scalar_prefetch = 3 : i64, scratch_operands = 1 : i64, tpu.core_type = #tpu.core_type<tc>, window_params = [{transform_indices = @transform_0, window_bounds = array<i64: 1, 8, 1024>}, {transform_indices = @transform_1, window_bounds = array<i64: 1, 1024, 256>}, {transform_indices = @transform_2, window_bounds = array<i64: 1, 1, 256>}, {transform_indices = @transform_3, window_bounds = array<i64: 1, 1, 256>}, {transform_indices = @transform_4, window_bounds = array<i64: 1, 256, 1152>}, {transform_indices = @transform_5, window_bounds = array<i64: 1, 1, 1152>}, {transform_indices = @transform_6, window_bounds = array<i64: 1, 8, 256>}, {transform_indices = @transform_7, window_bounds = array<i64: 1, 8, 1152>}]} {
    %0 = arith.index_cast %arg0 : i32 to index
    %1 = memref.load %arg2[%0] : memref<21xi32, #tpu.memory_space<smem>>
    %c0_i32 = arith.constant 0 : i32
    %2 = arith.cmpi eq, %1, %c0_i32 : i32
    %3 = arith.extui %2 : i1 to i32
    %c0_i32_0 = arith.constant 0 : i32
    %4 = arith.cmpi ne, %3, %c0_i32_0 : i32
    scf.if %4 {
      %cst_11 = arith.constant 0.000000e+00 : f32
      %18 = vector.broadcast %cst_11 : f32 to vector<8x256xf32>
      %c0_12 = arith.constant 0 : index
      %c0_13 = arith.constant 0 : index
      %19 = vector.load %arg12[%c0_12, %c0_13] : memref<8x256xf32, #tpu.memory_space<vmem>>, vector<8x256xf32>
      tpu.vector_store %arg12[%c0_12, %c0_13], %18 {strides = array<i32>} : memref<8x256xf32, #tpu.memory_space<vmem>>, vector<8x256xf32>,
    } else {
    }
    %c0 = arith.constant 0 : index
    %c0_1 = arith.constant 0 : index
    %5 = vector.load %arg12[%c0, %c0_1] : memref<8x256xf32, #tpu.memory_space<vmem>>, vector<8x256xf32>
    %c0_2 = arith.constant 0 : index
    %c0_3 = arith.constant 0 : index
    %c0_4 = arith.constant 0 : index
    %6 = vector.load %arg4[%c0_2, %c0_3, %c0_4] : memref<1x8x1024xbf16, #tpu.memory_space<vmem>>, vector<1x8x1024xbf16>
    %7 = vector.shape_cast %6 : vector<1x8x1024xbf16> to vector<8x1024xbf16>
    %c0_5 = arith.constant 0 : index
    %c0_6 = arith.constant 0 : index
    %c0_7 = arith.constant 0 : index
    %8 = vector.load %arg5[%c0_5, %c0_6, %c0_7] : memref<1x1024x256xbf16, #tpu.memory_space<vmem>>, vector<1x1024x256xbf16>
    %9 = vector.shape_cast %8 : vector<1x1024x256xbf16> to vector<1024x256xbf16>
    %cst = arith.constant dense<0.000000e+00> : vector<8x256xf32>
    %10 = tpu.matmul %7, %9, %cst {dimension_numbers = #tpu.dot_dimension_numbers<[1], [0], [0], [1], [0, 0, 1, 1], [], []>} : vector<8x1024xbf16>, vector<1024x256xbf16>, vector<8x256xf32> -> vector<8x256xf32>
    %11 = arith.addf %5, %10 : vector<8x256xf32>
    %c0_8 = arith.constant 0 : index
    %c0_9 = arith.constant 0 : index
    %12 = vector.load %arg12[%c0_8, %c0_9] : memref<8x256xf32, #tpu.memory_space<vmem>>, vector<8x256xf32>
    tpu.vector_store %arg12[%c0_8, %c0_9], %11 {strides = array<i32>} : memref<8x256xf32, #tpu.memory_space<vmem>>, vector<8x256xf32>,
    %13 = arith.index_cast %arg0 : i32 to index
    %14 = memref.load %arg3[%13] : memref<21xi32, #tpu.memory_space<smem>>
    %c1_i32 = arith.constant 1 : i32
    %15 = arith.cmpi eq, %14, %c1_i32 : i32
    %16 = arith.extui %15 : i1 to i32
    %c0_i32_10 = arith.constant 0 : i32
    %17 = arith.cmpi ne, %16, %c0_i32_10 : i32
    scf.if %17 {
      %c0_11 = arith.constant 0 : index
      %c0_12 = arith.constant 0 : index
      %18 = vector.load %arg12[%c0_11, %c0_12] : memref<8x256xf32, #tpu.memory_space<vmem>>, vector<8x256xf32>
      %c0_13 = arith.constant 0 : index
      %c0_14 = arith.constant 0 : index
      %c0_15 = arith.constant 0 : index
      %19 = vector.load %arg6[%c0_13, %c0_14, %c0_15] : memref<1x1x256xf32, #tpu.memory_space<vmem>>, vector<1x1x256xf32>
      %20 = vector.shape_cast %19 : vector<1x1x256xf32> to vector<1x256xf32>
      %21 = vector.broadcast %20 : vector<1x256xf32> to vector<8x256xf32>
      %22 = arith.mulf %18, %21 : vector<8x256xf32>
      %c0_16 = arith.constant 0 : index
      %c0_17 = arith.constant 0 : index
      %c0_18 = arith.constant 0 : index
      %23 = vector.load %arg7[%c0_16, %c0_17, %c0_18] : memref<1x1x256xf32, #tpu.memory_space<vmem>>, vector<1x1x256xf32>
      %24 = vector.shape_cast %23 : vector<1x1x256xf32> to vector<1x256xf32>
      %25 = vector.broadcast %24 : vector<1x256xf32> to vector<8x256xf32>
      %26 = arith.addf %22, %25 : vector<8x256xf32>
      %27 = vector.shape_cast %26 : vector<8x256xf32> to vector<1x8x256xf32>
      %c0_19 = arith.constant 0 : index
      %c0_20 = arith.constant 0 : index
      %c0_21 = arith.constant 0 : index
      %28 = vector.load %arg10[%c0_19, %c0_20, %c0_21] : memref<1x8x256xf32, #tpu.memory_space<vmem>>, vector<1x8x256xf32>
      tpu.vector_store %arg10[%c0_19, %c0_20, %c0_21], %27 {strides = array<i32>} : memref<1x8x256xf32, #tpu.memory_space<vmem>>, vector<1x8x256xf32>,
      %29 = arith.truncf %26 : vector<8x256xf32> to vector<8x256xbf16>
      %c0_22 = arith.constant 0 : index
      %c0_23 = arith.constant 0 : index
      %c0_24 = arith.constant 0 : index
      %30 = vector.load %arg8[%c0_22, %c0_23, %c0_24] : memref<1x256x1152xbf16, #tpu.memory_space<vmem>>, vector<1x256x1152xbf16>
      %31 = vector.shape_cast %30 : vector<1x256x1152xbf16> to vector<256x1152xbf16>
      %cst_25 = arith.constant dense<0.000000e+00> : vector<8x1152xf32>
      %32 = tpu.matmul %29, %31, %cst_25 {dimension_numbers = #tpu.dot_dimension_numbers<[1], [0], [0], [1], [0, 0, 1, 1], [], []>} : vector<8x256xbf16>, vector<256x1152xbf16>, vector<8x1152xf32> -> vector<8x1152xf32>
      %c0_26 = arith.constant 0 : index
      %c0_27 = arith.constant 0 : index
      %c0_28 = arith.constant 0 : index
      %33 = vector.load %arg9[%c0_26, %c0_27, %c0_28] : memref<1x1x1152xf32, #tpu.memory_space<vmem>>, vector<1x1x1152xf32>
      %34 = vector.shape_cast %33 : vector<1x1x1152xf32> to vector<1x1152xf32>
      %35 = vector.broadcast %34 : vector<1x1152xf32> to vector<8x1152xf32>
      %36 = arith.addf %32, %35 : vector<8x1152xf32>
      %37 = vector.shape_cast %36 : vector<8x1152xf32> to vector<1x8x1152xf32>
      %c0_29 = arith.constant 0 : index
      %c0_30 = arith.constant 0 : index
      %c0_31 = arith.constant 0 : index
      %38 = vector.load %arg11[%c0_29, %c0_30, %c0_31] : memref<1x8x1152xf32, #tpu.memory_space<vmem>>, vector<1x8x1152xf32>
      tpu.vector_store %arg11[%c0_29, %c0_30, %c0_31], %37 {strides = array<i32>} : memref<1x8x1152xf32, #tpu.memory_space<vmem>>, vector<1x8x1152xf32>,
    } else {
    }
    return
  }
  func.func @transform_0(%arg0: i32, %arg1: memref<21xi32, #tpu.memory_space<smem>>, %arg2: memref<21xi32, #tpu.memory_space<smem>>, %arg3: memref<21xi32, #tpu.memory_space<smem>>) -> (i32, i32, i32) {
    %0 = arith.index_cast %arg0 : i32 to index
    %1 = memref.load %arg1[%0] : memref<21xi32, #tpu.memory_space<smem>>
    %2 = arith.index_cast %arg0 : i32 to index
    %3 = memref.load %arg2[%2] : memref<21xi32, #tpu.memory_space<smem>>
    %c0_i32 = arith.constant 0 : i32
    %c0_i32_0 = arith.constant 0 : i32
    return %1, %c0_i32, %3 : i32, i32, i32
  }
  func.func @transform_1(%arg0: i32, %arg1: memref<21xi32, #tpu.memory_space<smem>>, %arg2: memref<21xi32, #tpu.memory_space<smem>>, %arg3: memref<21xi32, #tpu.memory_space<smem>>) -> (i32, i32, i32) {
    %c0_i32 = arith.constant 0 : i32
    %c0_i32_0 = arith.constant 0 : i32
    %c0_i32_1 = arith.constant 0 : i32
    return %arg0, %c0_i32, %c0_i32_0 : i32, i32, i32
  }
  func.func @transform_2(%arg0: i32, %arg1: memref<21xi32, #tpu.memory_space<smem>>, %arg2: memref<21xi32, #tpu.memory_space<smem>>, %arg3: memref<21xi32, #tpu.memory_space<smem>>) -> (i32, i32, i32) {
    %0 = arith.index_cast %arg0 : i32 to index
    %1 = memref.load %arg1[%0] : memref<21xi32, #tpu.memory_space<smem>>
    %c0_i32 = arith.constant 0 : i32
    %c0_i32_0 = arith.constant 0 : i32
    %c0_i32_1 = arith.constant 0 : i32
    return %1, %c0_i32, %c0_i32_0 : i32, i32, i32
  }
  func.func @transform_3(%arg0: i32, %arg1: memref<21xi32, #tpu.memory_space<smem>>, %arg2: memref<21xi32, #tpu.memory_space<smem>>, %arg3: memref<21xi32, #tpu.memory_space<smem>>) -> (i32, i32, i32) {
    %0 = arith.index_cast %arg0 : i32 to index
    %1 = memref.load %arg1[%0] : memref<21xi32, #tpu.memory_space<smem>>
    %c0_i32 = arith.constant 0 : i32
    %c0_i32_0 = arith.constant 0 : i32
    %c0_i32_1 = arith.constant 0 : i32
    return %1, %c0_i32, %c0_i32_0 : i32, i32, i32
  }
  func.func @transform_4(%arg0: i32, %arg1: memref<21xi32, #tpu.memory_space<smem>>, %arg2: memref<21xi32, #tpu.memory_space<smem>>, %arg3: memref<21xi32, #tpu.memory_space<smem>>) -> (i32, i32, i32) {
    %0 = arith.index_cast %arg0 : i32 to index
    %1 = memref.load %arg1[%0] : memref<21xi32, #tpu.memory_space<smem>>
    %c0_i32 = arith.constant 0 : i32
    %c0_i32_0 = arith.constant 0 : i32
    %c0_i32_1 = arith.constant 0 : i32
    return %1, %c0_i32, %c0_i32_0 : i32, i32, i32
  }
  func.func @transform_5(%arg0: i32, %arg1: memref<21xi32, #tpu.memory_space<smem>>, %arg2: memref<21xi32, #tpu.memory_space<smem>>, %arg3: memref<21xi32, #tpu.memory_space<smem>>) -> (i32, i32, i32) {
    %0 = arith.index_cast %arg0 : i32 to index
    %1 = memref.load %arg1[%0] : memref<21xi32, #tpu.memory_space<smem>>
    %c0_i32 = arith.constant 0 : i32
    %c0_i32_0 = arith.constant 0 : i32
    %c0_i32_1 = arith.constant 0 : i32
    return %1, %c0_i32, %c0_i32_0 : i32, i32, i32
  }
  func.func @transform_6(%arg0: i32, %arg1: memref<21xi32, #tpu.memory_space<smem>>, %arg2: memref<21xi32, #tpu.memory_space<smem>>, %arg3: memref<21xi32, #tpu.memory_space<smem>>) -> (i32, i32, i32) {
    %0 = arith.index_cast %arg0 : i32 to index
    %1 = memref.load %arg1[%0] : memref<21xi32, #tpu.memory_space<smem>>
    %c0_i32 = arith.constant 0 : i32
    %c0_i32_0 = arith.constant 0 : i32
    %c0_i32_1 = arith.constant 0 : i32
    return %1, %c0_i32, %c0_i32_0 : i32, i32, i32
  }
  func.func @transform_7(%arg0: i32, %arg1: memref<21xi32, #tpu.memory_space<smem>>, %arg2: memref<21xi32, #tpu.memory_space<smem>>, %arg3: memref<21xi32, #tpu.memory_space<smem>>) -> (i32, i32, i32) {
    %0 = arith.index_cast %arg0 : i32 to index
    %1 = memref.load %arg1[%0] : memref<21xi32, #tpu.memory_space<smem>>
    %c0_i32 = arith.constant 0 : i32
    %c0_i32_0 = arith.constant 0 : i32
    %c0_i32_1 = arith.constant 0 : i32
    return %1, %c0_i32, %c0_i32_0 : i32, i32, i32
  }
}

</mosaic_0001>

<bundles_post_ra>
// kernel: forward.3
= control target key start
LH: loop header
LB: loop body
LE: loop exit
PB: predicated region body
PF: predicated region fallthrough
CT: control target
= control target key end

     0   :  { %7 = vsyncpa [#allocation3], 0  ;;  %s3654_s9 = smov [#allocation2]   ;;  %s3801_s0 = inlined_call_operand.vmem [shape: bf16[24,768], index: 0, kind: input, shape index: {}]   ;;  %s3802_s1 = inlined_call_operand.hbm [shape: bf16[768,1024], index: 1, kind: input, shape index: {}]   ;;  %s3803_s2 = inlined_call_operand.vmem [shape: bf16[24,1024], index: 2, kind: output, shape index: {}]  }
   0x1   :  { %s15_s10 = sshll.u32 %s3654_s9, 4  ;;  %s3630_s13 = scalar_lea.hbm %s3802_s1, 49152  ;;  %s16_s10 = int_to_ptr.vmem [resolvable:$true] %s15_s10 }
   0x2   :  { %p3631_p0 = scmp.ne.s32.totalorder %s3802_s1, %s3630_s13  ;;  %p3634_p1 = scmp.lt.u32.totalorder %s3630_s13, %s3802_s1 }
   0x4   :  { %p3636_p2 = pnand %p3634_p1, %p3631_p0 }
   0x6   :  { %3639 = shalt.err (!%p3636_p2)
}
   0x7   :  { %s3640_s18 = scalar_lea.vmem %s16_s10, 49152  ;;  %p3645_p4 = scmp.lt.s32.totalorder %s16_s10, %s16_s10 }
   0x8   :  { %p3641_p3 = scmp.ne.s32.totalorder %s16_s10, %s3640_s18  ;;  %p3646_p5 = scmp.lt.s32.totalorder %s3640_s18, %s3640_s18 }
   0xa   :  { %p3647_p6 = por %p3646_p5, %p3645_p4 }
   0xc   :  { %p3648_p7 = pnand %p3647_p6, %p3641_p3 }
   0xe   :  { %3651 = shalt.err (!%p3648_p7)
}
   0xf   :  { %s3655_s19 = smov 512   ;;  %s3656_s20 = smov 32  }
  0x10   :  { %21 = dma.hbm_to_vmem [thread:$0]  %s3802_s1, 49152, %s16_s10, [#allocation3], %s3655_s19, %s3655_s19, %s3656_s20  }
  0x11   :  { %3652 = dma.done.wait [#allocation3], 49152  }
  0x12   :  { %3653 = vsyncadd [#allocation3], 4294918144  ;;  %v34_v0 = vld [vmem:[#allocation2] sm:$0xff]  ;;  %v35_v2 = vld [vmem:[#allocation2 + $0x8] sm:$0xff] }
  0x13   :  { %v38_v1 = vld [vmem:[#allocation2 + $0x20] sm:$0xff]  ;;  %v39_v4 = vld [vmem:[#allocation2 + $0x28] sm:$0xff] }
  0x14   :  { %v3135_v3 = vcombine.high %v34_v0, %v38_v1  ;;  %v3134_v5 = vcombine.low %v34_v0, %v38_v1  ;;  %v42_v6 = vld [vmem:[#allocation2 + $0x40] sm:$0xff]  ;;  %v3137_v8 = vcombine.high %v35_v2, %v39_v4  ;;  %v3136_v9 = vcombine.low %v35_v2, %v39_v4  ;;  %v43_v11 = vld [vmem:[#allocation2 + $0x48] sm:$0xff] }
  0x15   :  { %v46_v7 = vld [vmem:[#allocation2 + $0x60] sm:$0xff]  ;;  %v47_v12 = vld [vmem:[#allocation2 + $0x68] sm:$0xff] }
  0x16   :  { %v3143_v10 = vcombine.high %v42_v6, %v46_v7  ;;  %v50_v13 = vld [vmem:[#allocation2 + $0x80] sm:$0xff]  ;;  %2389 = vmatprep.subr.bf16.mxu0 %v3135_v3  ;;  %v3145_v14 = vcombine.high %v43_v11, %v47_v12  ;;  %v51_v16 = vld [vmem:[#allocation2 + $0x88] sm:$0xff]  ;;  %2542 = vmatprep.subr.bf16.mxu1 %v3137_v8  ;;  %v3142_v18 = vcombine.low %v42_v6, %v46_v7 }
  0x17   :  { %v54_v15 = vld [vmem:[#allocation2 + $0xa0] sm:$0xff]  ;;  %v55_v17 = vld [vmem:[#allocation2 + $0xa8] sm:$0xff]  ;;  %2390 = vmatpush1.bf16.msra.mxu0 %v3134_v5  ;;  %2543 = vmatpush1.bf16.msra.mxu1 %v3136_v9  ;;  %v3144_v19 = vcombine.low %v43_v11, %v47_v12 }
  0x18   :  { %2391 = vmatprep.subr.bf16.mxu0 %v3143_v10  ;;  %v3151_v20 = vcombine.high %v50_v13, %v54_v15  ;;  %2544 = vmatprep.subr.bf16.mxu1 %v3145_v14  ;;  %v3153_v21 = vcombine.high %v51_v16, %v55_v17  ;;  %v58_v22 = vld [vmem:[#allocation2 + $0xc0] sm:$0xff]  ;;  %v59_v24 = vld [vmem:[#allocation2 + $0xc8] sm:$0xff]  ;;  %v3150_v26 = vcombine.low %v50_v13, %v54_v15 }
  0x19   :  { %v62_v23 = vld [vmem:[#allocation2 + $0xe0] sm:$0xff]  ;;  %v63_v25 = vld [vmem:[#allocation2 + $0xe8] sm:$0xff]  ;;  %v3152_v27 = vcombine.low %v51_v16, %v55_v17 }
  0x1a   :  { %v3159_v28 = vcombine.high %v58_v22, %v62_v23  ;;  %v3161_v29 = vcombine.high %v59_v24, %v63_v25  ;;  %v66_v30 = vld [vmem:[#allocation2 + $0x100] sm:$0xff]  ;;  %v67_v32 = vld [vmem:[#allocation2 + $0x108] sm:$0xff]  ;;  %v3158_v34 = vcombine.low %v58_v22, %v62_v23  ;;  %v3160_v35 = vcombine.low %v59_v24, %v63_v25 }
  0x1b   :  { %2392 = vmatpush1.bf16.msra.mxu0 %v3142_v18  ;;  %2545 = vmatpush1.bf16.msra.mxu1 %v3144_v19  ;;  %v70_v31 = vld [vmem:[#allocation2 + $0x120] sm:$0xff]  ;;  %v71_v33 = vld [vmem:[#allocation2 + $0x128] sm:$0xff] }
  0x1c   :  { %2393 = vmatprep.subr.bf16.mxu0 %v3151_v20  ;;  %2546 = vmatprep.subr.bf16.mxu1 %v3153_v21  ;;  %v3167_v36 = vcombine.high %v66_v30, %v70_v31  ;;  %v3169_v37 = vcombine.high %v67_v32, %v71_v33  ;;  %v74_v38 = vld [vmem:[#allocation2 + $0x140] sm:$0xff]  ;;  %v75_v40 = vld [vmem:[#allocation2 + $0x148] sm:$0xff]  ;;  %v3166_v42 = vcombine.low %v66_v30, %v70_v31 }
  0x1d   :  { %v78_v39 = vld [vmem:[#allocation2 + $0x160] sm:$0xff]  ;;  %v79_v41 = vld [vmem:[#allocation2 + $0x168] sm:$0xff]  ;;  %v3168_v43 = vcombine.low %v67_v32, %v71_v33 }
  0x1e   :  { %v3175_v44 = vcombine.high %v74_v38, %v78_v39  ;;  %v3177_v45 = vcombine.high %v75_v40, %v79_v41  ;;  %v82_v46 = vld [vmem:[#allocation2 + $0x180] sm:$0xff]  ;;  %v83_v48 = vld [vmem:[#allocation2 + $0x188] sm:$0xff]  ;;  %v3174_v50 = vcombine.low %v74_v38, %v78_v39  ;;  %v3176_v51 = vcombine.low %v75_v40, %v79_v41 }
  0x1f   :  { %2394 = vmatpush1.bf16.msra.mxu0 %v3150_v26  ;;  %2547 = vmatpush1.bf16.msra.mxu1 %v3152_v27  ;;  %v86_v47 = vld [vmem:[#allocation2 + $0x1a0] sm:$0xff]  ;;  %v87_v49 = vld [vmem:[#allocation2 + $0x1a8] sm:$0xff] }
  0x20   :  { %2395 = vmatprep.subr.bf16.mxu0 %v3159_v28  ;;  %2548 = vmatprep.subr.bf16.mxu1 %v3161_v29  ;;  %v3183_v52 = vcombine.high %v82_v46, %v86_v47  ;;  %v3185_v53 = vcombine.high %v83_v48, %v87_v49  ;;  %v90_v54 = vld [vmem:[#allocation2 + $0x1c0] sm:$0xff]  ;;  %v91_v57 = vld [vmem:[#allocation2 + $0x1c8] sm:$0xff]  ;;  %v3182_v59 = vcombine.low %v82_v46, %v86_v47 }
  0x21   :  { %v94_v55 = vld [vmem:[#allocation2 + $0x1e0] sm:$0xff]  ;;  %v95_v58 = vld [vmem:[#allocation2 + $0x1e8] sm:$0xff]  ;;  %v3184_v60 = vcombine.low %v83_v48, %v87_v49 }
  0x22   :  { %v3609_v56 = vld [vmem:[%s3801_s0 + $0x4] ss:$24 sps:$4 sm:$0xff]   ;;  %v3191_v61 = vcombine.high %v90_v54, %v94_v55  ;;  %v3193_v62 = vcombine.high %v91_v57, %v95_v58  ;;  %v99_v1 = vld [vmem:[#allocation2 + $0x208] sm:$0xff]  ;;  %v3190_v3 = vcombine.low %v90_v54, %v94_v55  ;;  %v3192_v4 = vcombine.low %v91_v57, %v95_v58 }
  0x23   :  { %2396 = vmatpush1.bf16.msra.mxu0 %v3158_v34  ;;  %2549 = vmatpush1.bf16.msra.mxu1 %v3160_v35  ;;  %v98_v63 = vld [vmem:[#allocation2 + $0x200] sm:$0xff]  ;;  %v103_v2 = vld [vmem:[#allocation2 + $0x228] sm:$0xff] }
  0x24   :  { %2397 = vmatprep.subr.bf16.mxu0 %v3167_v36  ;;  %2550 = vmatprep.subr.bf16.mxu1 %v3169_v37  ;;  %v102_v0 = vld [vmem:[#allocation2 + $0x220] sm:$0xff]  ;;  %v3201_v6 = vcombine.high %v99_v1, %v103_v2  ;;  %v107_v9 = vld [vmem:[#allocation2 + $0x248] sm:$0xff]  ;;  %v3200_v12 = vcombine.low %v99_v1, %v103_v2 }
  0x25   :  { %2421 = vmatprep.mubr.bf16.mxu0 %v3609_v56  ;;  %2574 = vmatprep.mubr.bf16.mxu1 %v3609_v56  ;;  %v3199_v5 = vcombine.high %v98_v63, %v102_v0  ;;  %v106_v7 = vld [vmem:[#allocation2 + $0x240] sm:$0xff]  ;;  %v111_v10 = vld [vmem:[#allocation2 + $0x268] sm:$0xff]  ;;  %v3198_v11 = vcombine.low %v98_v63, %v102_v0 }
  0x26   :  { %v110_v8 = vld [vmem:[#allocation2 + $0x260] sm:$0xff]  ;;  %v3209_v14 = vcombine.high %v107_v9, %v111_v10  ;;  %v115_v17 = vld [vmem:[#allocation2 + $0x288] sm:$0xff]  ;;  %v3208_v20 = vcombine.low %v107_v9, %v111_v10 }
  0x27   :  { %2398 = vmatpush1.bf16.msra.mxu0 %v3166_v42  ;;  %2551 = vmatpush1.bf16.msra.mxu1 %v3168_v43  ;;  %v3207_v13 = vcombine.high %v106_v7, %v110_v8  ;;  %v114_v15 = vld [vmem:[#allocation2 + $0x280] sm:$0xff]  ;;  %v119_v18 = vld [vmem:[#allocation2 + $0x2a8] sm:$0xff]  ;;  %v3206_v19 = vcombine.low %v106_v7, %v110_v8 }
  0x28   :  { %2399 = vmatprep.subr.bf16.mxu0 %v3175_v44  ;;  %2552 = vmatprep.subr.bf16.mxu1 %v3177_v45  ;;  %v118_v16 = vld [vmem:[#allocation2 + $0x2a0] sm:$0xff]  ;;  %v3217_v22 = vcombine.high %v115_v17, %v119_v18  ;;  %v123_v25 = vld [vmem:[#allocation2 + $0x2c8] sm:$0xff]  ;;  %v3216_v28 = vcombine.low %v115_v17, %v119_v18 }
  0x29   :  { %v3215_v21 = vcombine.high %v114_v15, %v118_v16  ;;  %v122_v23 = vld [vmem:[#allocation2 + $0x2c0] sm:$0xff]  ;;  %v127_v26 = vld [vmem:[#allocation2 + $0x2e8] sm:$0xff]  ;;  %v3214_v27 = vcombine.low %v114_v15, %v118_v16 }
  0x2a   :  { %v126_v24 = vld [vmem:[#allocation2 + $0x2e0] sm:$0xff]  ;;  %v3225_v30 = vcombine.high %v123_v25, %v127_v26  ;;  %v131_v33 = vld [vmem:[#allocation2 + $0x308] sm:$0xff]  ;;  %v3224_v36 = vcombine.low %v123_v25, %v127_v26 }
  0x2b   :  { %2400 = vmatpush1.bf16.msra.mxu0 %v3174_v50  ;;  %2553 = vmatpush1.bf16.msra.mxu1 %v3176_v51  ;;  %v3223_v29 = vcombine.high %v122_v23, %v126_v24  ;;  %v130_v31 = vld [vmem:[#allocation2 + $0x300] sm:$0xff]  ;;  %v135_v34 = vld [vmem:[#allocation2 + $0x328] sm:$0xff]  ;;  %v3222_v35 = vcombine.low %v122_v23, %v126_v24 }
  0x2c   :  { %2401 = vmatprep.subr.bf16.mxu0 %v3183_v52  ;;  %2554 = vmatprep.subr.bf16.mxu1 %v3185_v53  ;;  %v134_v32 = vld [vmem:[#allocation2 + $0x320] sm:$0xff]  ;;  %v3233_v38 = vcombine.high %v131_v33, %v135_v34  ;;  %v139_v41 = vld [vmem:[#allocation2 + $0x348] sm:$0xff]  ;;  %v3232_v44 = vcombine.low %v131_v33, %v135_v34 }
  0x2d   :  { %v3231_v37 = vcombine.high %v130_v31, %v134_v32  ;;  %v138_v39 = vld [vmem:[#allocation2 + $0x340] sm:$0xff]  ;;  %v143_v42 = vld [vmem:[#allocation2 + $0x368] sm:$0xff]  ;;  %v3230_v43 = vcombine.low %v130_v31, %v134_v32 }
  0x2e   :  { %v142_v40 = vld [vmem:[#allocation2 + $0x360] sm:$0xff]  ;;  %v3241_v46 = vcombine.high %v139_v41, %v143_v42  ;;  %v147_v49 = vld [vmem:[#allocation2 + $0x388] sm:$0xff]  ;;  %v3240_v52 = vcombine.low %v139_v41, %v143_v42 }
  0x2f   :  { %2402 = vmatpush1.bf16.msra.mxu0 %v3182_v59  ;;  %2555 = vmatpush1.bf16.msra.mxu1 %v3184_v60  ;;  %v3239_v45 = vcombine.high %v138_v39, %v142_v40  ;;  %v146_v47 = vld [vmem:[#allocation2 + $0x380] sm:$0xff]  ;;  %v151_v50 = vld [vmem:[#allocation2 + $0x3a8] sm:$0xff]  ;;  %v3238_v51 = vcombine.low %v138_v39, %v142_v40 }
  0x30   :  { %2403 = vmatprep.subr.bf16.mxu0 %v3191_v61  ;;  %2556 = vmatprep.subr.bf16.mxu1 %v3193_v62  ;;  %v150_v48 = vld [vmem:[#allocation2 + $0x3a0] sm:$0xff]  ;;  %v3249_v54 = vcombine.high %v147_v49, %v151_v50  ;;  %v155_v57 = vld [vmem:[#allocation2 + $0x3c8] sm:$0xff]  ;;  %v3248_v60 = vcombine.low %v147_v49, %v151_v50 }
  0x31   :  { %v3247_v53 = vcombine.high %v146_v47, %v150_v48  ;;  %v154_v55 = vld [vmem:[#allocation2 + $0x3c0] sm:$0xff]  ;;  %v159_v58 = vld [vmem:[#allocation2 + $0x3e8] sm:$0xff]  ;;  %v3246_v59 = vcombine.low %v146_v47, %v150_v48 }
  0x32   :  { %v158_v56 = vld [vmem:[#allocation2 + $0x3e0] sm:$0xff]  ;;  %v3257_v62 = vcombine.high %v155_v57, %v159_v58  ;;  %v163_v1 = vld [vmem:[#allocation2 + $0x408] sm:$0xff] }
  0x33   :  { %2404 = vmatpush1.bf16.msra.mxu0 %v3190_v3  ;;  %2557 = vmatpush1.bf16.msra.mxu1 %v3192_v4  ;;  %v3255_v61 = vcombine.high %v154_v55, %v158_v56  ;;  %v162_v63 = vld [vmem:[#allocation2 + $0x400] sm:$0xff]  ;;  %v167_v2 = vld [vmem:[#allocation2 + $0x428] sm:$0xff]  ;;  %v3254_v3 = vcombine.low %v154_v55, %v158_v56  ;;  %v3256_v4 = vcombine.low %v155_v57, %v159_v58 }
  0x34   :  { %2405 = vmatprep.subr.bf16.mxu0 %v3199_v5  ;;  %2558 = vmatprep.subr.bf16.mxu1 %v3201_v6  ;;  %v166_v0 = vld [vmem:[#allocation2 + $0x420] sm:$0xff]  ;;  %v3265_v6 = vcombine.high %v163_v1, %v167_v2  ;;  %v171_v10 = vld [vmem:[#allocation2 + $0x448] sm:$0xff] }
  0x35   :  { %v3263_v5 = vcombine.high %v162_v63, %v166_v0  ;;  %v3611_v7 = vld [vmem:[%s3801_s0] ss:$24 sps:$4 sm:$0xff]   ;;  %v199_v39 = vld [vmem:[#allocation2 + $0x528] sm:$0xff] }
  0x36   :  { %v170_v8 = vld [vmem:[#allocation2 + $0x440] sm:$0xff]  ;;  %v207_v47 = vld [vmem:[#allocation2 + $0x568] sm:$0xff] }
  0x37   :  { %2406 = vmatpush1.bf16.msra.mxu0 %v3198_v11  ;;  %2559 = vmatpush1.bf16.msra.mxu1 %v3200_v12  ;;  %v174_v9 = vld [vmem:[#allocation2 + $0x460] sm:$0xff]  ;;  %v175_v11 = vld [vmem:[#allocation2 + $0x468] sm:$0xff]  ;;  %v31_v12 = vld [vmem:[%s3801_s0 + $0x30] sm:$0xff] }
  0x38   :  { %2407 = vmatprep.subr.bf16.mxu0 %v3207_v13  ;;  %2560 = vmatprep.subr.bf16.mxu1 %v3209_v14  ;;  %v3262_v13 = vcombine.low %v162_v63, %v166_v0  ;;  %v3264_v14 = vcombine.low %v163_v1, %v167_v2  ;;  %v3271_v15 = vcombine.high %v170_v8, %v174_v9  ;;  %v178_v17 = vld [vmem:[#allocation2 + $0x480] sm:$0xff]  ;;  %v215_v55 = vld [vmem:[#allocation2 + $0x5a8] sm:$0xff] }
  0x39   :  { %v3273_v16 = vcombine.high %v171_v10, %v175_v11  ;;  %v182_v18 = vld [vmem:[#allocation2 + $0x4a0] sm:$0xff]  ;;  %v3272_v23 = vcombine.low %v171_v10, %v175_v11  ;;  %v223_v63 = vld [vmem:[#allocation2 + $0x5e8] sm:$0xff] }
  0x3a   :  { %v3279_v24 = vcombine.high %v178_v17, %v182_v18  ;;  %v186_v26 = vld [vmem:[#allocation2 + $0x4c0] sm:$0xff]  ;;  %v3278_v31 = vcombine.low %v178_v17, %v182_v18 }
  0x3b   :  { %2408 = vmatpush1.bf16.msra.mxu0 %v3206_v19  ;;  %2561 = vmatpush1.bf16.msra.mxu1 %v3208_v20  ;;  %v179_v19 = vld [vmem:[#allocation2 + $0x488] sm:$0xff]  ;;  %v3693_v20 = vcombine.high %v31_v12, %v31_v12 }
  0x3c   :  { %2409 = vmatprep.subr.bf16.mxu0 %v3215_v21  ;;  %2562 = vmatprep.subr.bf16.mxu1 %v3217_v22  ;;  %v183_v21 = vld [vmem:[#allocation2 + $0x4a8] sm:$0xff]  ;;  %v3270_v22 = vcombine.low %v170_v8, %v174_v9 }
  0x3d   :  { %v3281_v25 = vcombine.high %v179_v19, %v183_v21  ;;  %v3280_v32 = vcombine.low %v179_v19, %v183_v21  ;;  %v242_v21 = vld [vmem:[#allocation2 + $0x680] sm:$0xff] }
  0x3f   :  { %2410 = vmatpush1.bf16.msra.mxu0 %v3214_v27  ;;  %2563 = vmatpush1.bf16.msra.mxu1 %v3216_v28  ;;  %v190_v27 = vld [vmem:[#allocation2 + $0x4e0] sm:$0xff]  ;;  %v187_v28 = vld [vmem:[#allocation2 + $0x4c8] sm:$0xff] }
  0x40   :  { %2411 = vmatprep.subr.bf16.mxu0 %v3223_v29  ;;  %2564 = vmatprep.subr.bf16.mxu1 %v3225_v30  ;;  %v191_v29 = vld [vmem:[#allocation2 + $0x4e8] sm:$0xff]  ;;  %v3697_v30 = vcombine.low %v31_v12, %v31_v12  ;;  %v3287_v33 = vcombine.high %v186_v26, %v190_v27  ;;  %v3286_v40 = vcombine.low %v186_v26, %v190_v27  ;;  %v234_v12 = vld [vmem:[#allocation2 + $0x640] sm:$0xff] }
  0x41   :  { %v3289_v34 = vcombine.high %v187_v28, %v191_v29  ;;  %v3288_v41 = vcombine.low %v187_v28, %v191_v29  ;;  %v250_v29 = vld [vmem:[#allocation2 + $0x6c0] sm:$0xff] }
  0x43   :  { %2412 = vmatpush1.bf16.msra.mxu0 %v3222_v35  ;;  %2565 = vmatpush1.bf16.msra.mxu1 %v3224_v36  ;;  %v194_v35 = vld [vmem:[#allocation2 + $0x500] sm:$0xff] }
  0x44   :  { %2413 = vmatprep.subr.bf16.mxu0 %v3231_v37  ;;  %2566 = vmatprep.subr.bf16.mxu1 %v3233_v38  ;;  %v198_v36 = vld [vmem:[#allocation2 + $0x520] sm:$0xff]  ;;  %v195_v38 = vld [vmem:[#allocation2 + $0x508] sm:$0xff] }
  0x45   :  { %v3616_v37 = vld [vmem:[%s3801_s0 + $0xc] ss:$24 sps:$4 sm:$0xff]   ;;  %v3295_v42 = vcombine.high %v194_v35, %v198_v36  ;;  %v3294_v48 = vcombine.low %v194_v35, %v198_v36  ;;  %v3296_v49 = vcombine.low %v195_v38, %v199_v39 }
  0x47   :  { %2414 = vmatpush1.bf16.msra.mxu0 %v3230_v43  ;;  %2567 = vmatpush1.bf16.msra.mxu1 %v3232_v44  ;;  %v3297_v43 = vcombine.high %v195_v38, %v199_v39  ;;  %v202_v44 = vld [vmem:[#allocation2 + $0x540] sm:$0xff] }
  0x48   :  { %2415 = vmatprep.subr.bf16.mxu0 %v3239_v45  ;;  %2568 = vmatprep.subr.bf16.mxu1 %v3241_v46  ;;  %v206_v45 = vld [vmem:[#allocation2 + $0x560] sm:$0xff]  ;;  %v203_v46 = vld [vmem:[#allocation2 + $0x548] sm:$0xff] }
  0x49   :  { %v3303_v50 = vcombine.high %v202_v44, %v206_v45  ;;  %v3302_v56 = vcombine.low %v202_v44, %v206_v45  ;;  %v3304_v57 = vcombine.low %v203_v46, %v207_v47  ;;  %v258_v38 = vld [vmem:[#allocation2 + $0x700] sm:$0xff] }
  0x4a   :  { %v262_v39 = vld [vmem:[#allocation2 + $0x720] sm:$0xff] }
  0x4b   :  { %2416 = vmatpush1.bf16.msra.mxu0 %v3238_v51  ;;  %2569 = vmatpush1.bf16.msra.mxu1 %v3240_v52  ;;  %v3305_v51 = vcombine.high %v203_v46, %v207_v47  ;;  %v210_v52 = vld [vmem:[#allocation2 + $0x580] sm:$0xff]  ;;  %v3359_v44 = vcombine.high %v258_v38, %v262_v39 }
  0x4c   :  { %2417 = vmatprep.subr.bf16.mxu0 %v3247_v53  ;;  %2570 = vmatprep.subr.bf16.mxu1 %v3249_v54  ;;  %v214_v53 = vld [vmem:[#allocation2 + $0x5a0] sm:$0xff]  ;;  %v211_v54 = vld [vmem:[#allocation2 + $0x588] sm:$0xff] }
  0x4d   :  { %v3311_v58 = vcombine.high %v210_v52, %v214_v53  ;;  %v3310_v0 = vcombine.low %v210_v52, %v214_v53  ;;  %v3312_v1 = vcombine.low %v211_v54, %v215_v55  ;;  %v266_v46 = vld [vmem:[#allocation2 + $0x740] sm:$0xff] }
  0x4e   :  { %v270_v47 = vld [vmem:[#allocation2 + $0x760] sm:$0xff] }
  0x4f   :  { %2418 = vmatpush1.bf16.msra.mxu0 %v3246_v59  ;;  %2571 = vmatpush1.bf16.msra.mxu1 %v3248_v60  ;;  %v3313_v59 = vcombine.high %v211_v54, %v215_v55  ;;  %v218_v60 = vld [vmem:[#allocation2 + $0x5c0] sm:$0xff]  ;;  %v3367_v52 = vcombine.high %v266_v46, %v270_v47 }
  0x50   :  { %2419 = vmatprep.subr.bf16.mxu0 %v3255_v61  ;;  %2572 = vmatprep.subr.bf16.mxu1 %v3257_v62  ;;  %v222_v61 = vld [vmem:[#allocation2 + $0x5e0] sm:$0xff]  ;;  %v219_v62 = vld [vmem:[#allocation2 + $0x5c8] sm:$0xff] }
  0x51   :  { %v3319_v2 = vcombine.high %v218_v60, %v222_v61  ;;  %v3318_v8 = vcombine.low %v218_v60, %v222_v61  ;;  %v3320_v9 = vcombine.low %v219_v62, %v223_v63  ;;  %v274_v54 = vld [vmem:[#allocation2 + $0x780] sm:$0xff] }
  0x52   :  { %v278_v55 = vld [vmem:[#allocation2 + $0x7a0] sm:$0xff] }
  0x53   :  { %2420 = vmatpush1.bf16.msra.mxu0 %v3254_v3  ;;  %2573 = vmatpush1.bf16.msra.mxu1 %v3256_v4  ;;  %v3321_v3 = vcombine.high %v219_v62, %v223_v63  ;;  %v226_v4 = vld [vmem:[#allocation2 + $0x600] sm:$0xff]  ;;  %v3375_v60 = vcombine.high %v274_v54, %v278_v55 }
  0x54   :  { %2440 = vmatprep.subr.bf16.mxu0 %v3263_v5  ;;  %2593 = vmatprep.subr.bf16.mxu1 %v3265_v6  ;;  %v230_v5 = vld [vmem:[#allocation2 + $0x620] sm:$0xff]  ;;  %v227_v6 = vld [vmem:[#allocation2 + $0x608] sm:$0xff] }
  0x55   :  { %v3327_v10 = vcombine.high %v226_v4, %v230_v5  ;;  %v282_v62 = vld [vmem:[#allocation2 + $0x7c0] sm:$0xff] }
  0x56   :  { %2422 = vmatmul.mubr.bf16.vlgmr.msra.gmra.mrb[0].mxu0 %v3611_v7  ;;  %2575 = vmatmul.mubr.bf16.vlgmr.msra.gmra.mrb[0].mxu1 %v3611_v7  ;;  %v231_v7 = vld [vmem:[#allocation2 + $0x628] sm:$0xff]  ;;  %v286_v63 = vld [vmem:[#allocation2 + $0x7e0] sm:$0xff] }
  0x57   :  { %2441 = vmatpush1.bf16.msra.mxu0 %v3262_v13  ;;  %2594 = vmatpush1.bf16.msra.mxu1 %v3264_v14  ;;  %v3329_v11 = vcombine.high %v227_v6, %v231_v7  ;;  %v238_v13 = vld [vmem:[#allocation2 + $0x660] sm:$0xff]  ;;  %v235_v14 = vld [vmem:[#allocation2 + $0x648] sm:$0xff]  ;;  %v3328_v17 = vcombine.low %v227_v6, %v231_v7 }
  0x58   :  { %2442 = vmatprep.subr.bf16.mxu0 %v3271_v15  ;;  %2595 = vmatprep.subr.bf16.mxu1 %v3273_v16  ;;  %v239_v15 = vld [vmem:[#allocation2 + $0x668] sm:$0xff]  ;;  %v3326_v16 = vcombine.low %v226_v4, %v230_v5  ;;  %v3335_v18 = vcombine.high %v234_v12, %v238_v13  ;;  %v3383_v4 = vcombine.high %v282_v62, %v286_v63  ;;  %v290_v6 = vld [vmem:[#allocation2 + $0x800] sm:$0xff] }
  0x59   :  { %2431 = vmatprep.mubr.bf16.mxu0 %v3693_v20  ;;  %2584 = vmatprep.mubr.bf16.mxu1 %v3693_v20  ;;  %v3337_v19 = vcombine.high %v235_v14, %v239_v15  ;;  %v3336_v26 = vcombine.low %v235_v14, %v239_v15  ;;  %v294_v7 = vld [vmem:[#allocation2 + $0x820] sm:$0xff] }
  0x5a   :  { %v298_v15 = vld [vmem:[#allocation2 + $0x840] sm:$0xff] }
  0x5b   :  { %2443 = vmatpush1.bf16.msra.mxu0 %v3270_v22  ;;  %2596 = vmatpush1.bf16.msra.mxu1 %v3272_v23  ;;  %v246_v22 = vld [vmem:[#allocation2 + $0x6a0] sm:$0xff]  ;;  %v243_v23 = vld [vmem:[#allocation2 + $0x688] sm:$0xff] }
  0x5c   :  { %2444 = vmatprep.subr.bf16.mxu0 %v3279_v24  ;;  %2597 = vmatprep.subr.bf16.mxu1 %v3281_v25  ;;  %v247_v24 = vld [vmem:[#allocation2 + $0x6a8] sm:$0xff]  ;;  %v3334_v25 = vcombine.low %v234_v12, %v238_v13  ;;  %v3343_v27 = vcombine.high %v242_v21, %v246_v22  ;;  %v3391_v12 = vcombine.high %v290_v6, %v294_v7 }
  0x5d   :  { %v3345_v28 = vcombine.high %v243_v23, %v247_v24  ;;  %v3344_v35 = vcombine.low %v243_v23, %v247_v24  ;;  %v3614_v13 = vld [vmem:[%s3801_s0 + $0x8] ss:$24 sps:$4 sm:$0xff]  }
  0x5e   :  { %2432 = vmatmul.mubr.bf16.gmra.mrb[4].mxu0 %v3697_v30  ;;  %2585 = vmatmul.mubr.bf16.gmra.mrb[4].mxu1 %v3697_v30 }
  0x5f   :  { %2445 = vmatpush1.bf16.msra.mxu0 %v3278_v31  ;;  %2598 = vmatpush1.bf16.msra.mxu1 %v3280_v32  ;;  %v254_v31 = vld [vmem:[#allocation2 + $0x6e0] sm:$0xff]  ;;  %v251_v32 = vld [vmem:[#allocation2 + $0x6c8] sm:$0xff] }
  0x60   :  { %2446 = vmatprep.subr.bf16.mxu0 %v3287_v33  ;;  %2599 = vmatprep.subr.bf16.mxu1 %v3289_v34  ;;  %v255_v33 = vld [vmem:[#allocation2 + $0x6e8] sm:$0xff]  ;;  %v3342_v34 = vcombine.low %v242_v21, %v246_v22  ;;  %v3351_v36 = vcombine.high %v250_v29, %v254_v31  ;;  %v3390_v21 = vcombine.low %v290_v6, %v294_v7  ;;  %v350_v6 = vld [vmem:[#allocation2 + $0x9e0] sm:$0xff] }
  0x61   :  { %2472 = vmatprep.mubr.bf16.mxu0 %v3616_v37  ;;  %2625 = vmatprep.mubr.bf16.mxu1 %v3616_v37  ;;  %v3353_v37 = vcombine.high %v251_v32, %v255_v33  ;;  %v347_v7 = vld [vmem:[#allocation2 + $0x9c8] sm:$0xff] }
  0x63   :  { %2447 = vmatpush1.bf16.msra.mxu0 %v3286_v40  ;;  %2600 = vmatpush1.bf16.msra.mxu1 %v3288_v41  ;;  %v259_v40 = vld [vmem:[#allocation2 + $0x708] sm:$0xff] }
  0x64   :  { %2448 = vmatprep.subr.bf16.mxu0 %v3295_v42  ;;  %2601 = vmatprep.subr.bf16.mxu1 %v3297_v43  ;;  %v263_v41 = vld [vmem:[#allocation2 + $0x728] sm:$0xff]  ;;  %v3350_v42 = vcombine.low %v250_v29, %v254_v31  ;;  %v3352_v43 = vcombine.low %v251_v32, %v255_v33 }
  0x65   :  { %v3361_v45 = vcombine.high %v259_v40, %v263_v41  ;;  %v311_v29 = vld [vmem:[#allocation2 + $0x8a8] sm:$0xff] }
  0x67   :  { %2449 = vmatpush1.bf16.msra.mxu0 %v3294_v48  ;;  %2602 = vmatpush1.bf16.msra.mxu1 %v3296_v49  ;;  %v267_v48 = vld [vmem:[#allocation2 + $0x748] sm:$0xff] }
  0x68   :  { %2450 = vmatprep.subr.bf16.mxu0 %v3303_v50  ;;  %2603 = vmatprep.subr.bf16.mxu1 %v3305_v51  ;;  %v271_v49 = vld [vmem:[#allocation2 + $0x768] sm:$0xff]  ;;  %v3358_v50 = vcombine.low %v258_v38, %v262_v39  ;;  %v3360_v51 = vcombine.low %v259_v40, %v263_v41 }
  0x69   :  { %v3369_v53 = vcombine.high %v267_v48, %v271_v49  ;;  %v319_v38 = vld [vmem:[#allocation2 + $0x8e8] sm:$0xff] }
  0x6b   :  { %2451 = vmatpush1.bf16.msra.mxu0 %v3302_v56  ;;  %2604 = vmatpush1.bf16.msra.mxu1 %v3304_v57  ;;  %v275_v56 = vld [vmem:[#allocation2 + $0x788] sm:$0xff] }
  0x6c   :  { %2452 = vmatprep.subr.bf16.mxu0 %v3311_v58  ;;  %2605 = vmatprep.subr.bf16.mxu1 %v3313_v59  ;;  %v279_v57 = vld [vmem:[#allocation2 + $0x7a8] sm:$0xff]  ;;  %v3366_v58 = vcombine.low %v266_v46, %v270_v47  ;;  %v3368_v59 = vcombine.low %v267_v48, %v271_v49 }
  0x6d   :  { %v3377_v61 = vcombine.high %v275_v56, %v279_v57  ;;  %v3621_v46 = vld [vmem:[%s3801_s0 + $0x14] ss:$24 sps:$4 sm:$0xff]  }
  0x6e   :  { %v323_v47 = vld [vmem:[#allocation2 + $0x908] sm:$0xff] }
  0x6f   :  { %2453 = vmatpush1.bf16.msra.mxu0 %v3310_v0  ;;  %2606 = vmatpush1.bf16.msra.mxu1 %v3312_v1  ;;  %v283_v0 = vld [vmem:[#allocation2 + $0x7c8] sm:$0xff] }
  0x70   :  { %2454 = vmatprep.subr.bf16.mxu0 %v3319_v2  ;;  %2607 = vmatprep.subr.bf16.mxu1 %v3321_v3  ;;  %v287_v1 = vld [vmem:[#allocation2 + $0x7e8] sm:$0xff]  ;;  %v3374_v2 = vcombine.low %v274_v54, %v278_v55  ;;  %v3376_v3 = vcombine.low %v275_v56, %v279_v57  ;;  %v334_v54 = vld [vmem:[#allocation2 + $0x960] sm:$0xff] }
  0x71   :  { %v3385_v5 = vcombine.high %v283_v0, %v287_v1  ;;  %v327_v48 = vld [vmem:[#allocation2 + $0x928] sm:$0xff] }
  0x72   :  { %v331_v55 = vld [vmem:[#allocation2 + $0x948] sm:$0xff] }
  0x73   :  { %2455 = vmatpush1.bf16.msra.mxu0 %v3318_v8  ;;  %2608 = vmatpush1.bf16.msra.mxu1 %v3320_v9  ;;  %v291_v8 = vld [vmem:[#allocation2 + $0x808] sm:$0xff] }
  0x74   :  { %2456 = vmatprep.subr.bf16.mxu0 %v3327_v10  ;;  %2609 = vmatprep.subr.bf16.mxu1 %v3329_v11  ;;  %v295_v9 = vld [vmem:[#allocation2 + $0x828] sm:$0xff]  ;;  %v3382_v10 = vcombine.low %v282_v62, %v286_v63  ;;  %v3384_v11 = vcombine.low %v283_v0, %v287_v1  ;;  %v342_v62 = vld [vmem:[#allocation2 + $0x9a0] sm:$0xff] }
  0x75   :  { %v3393_v14 = vcombine.high %v291_v8, %v295_v9  ;;  %v3392_v22 = vcombine.low %v291_v8, %v295_v9  ;;  %v335_v56 = vld [vmem:[#allocation2 + $0x968] sm:$0xff] }
  0x76   :  { %v339_v63 = vld [vmem:[#allocation2 + $0x988] sm:$0xff] }
  0x77   :  { %2457 = vmatpush1.bf16.msra.mxu0 %v3326_v16  ;;  %2610 = vmatpush1.bf16.msra.mxu1 %v3328_v17  ;;  %v302_v16 = vld [vmem:[#allocation2 + $0x860] sm:$0xff]  ;;  %v299_v17 = vld [vmem:[#allocation2 + $0x848] sm:$0xff] }
  0x78   :  { %2458 = vmatprep.subr.bf16.mxu0 %v3335_v18  ;;  %2611 = vmatprep.subr.bf16.mxu1 %v3337_v19  ;;  %v303_v18 = vld [vmem:[#allocation2 + $0x868] sm:$0xff]  ;;  %v32_v19 = vld [vmem:[%s3801_s0 + $0x38] sm:$0xff]  ;;  %v3399_v23 = vcombine.high %v298_v15, %v302_v16  ;;  %v3398_v31 = vcombine.low %v298_v15, %v302_v16 }
  0x79   :  { %v3401_v24 = vcombine.high %v299_v17, %v303_v18  ;;  %v3400_v32 = vcombine.low %v299_v17, %v303_v18  ;;  %v3714_v39 = vcombine.low %v32_v19, %v32_v19  ;;  %v343_v0 = vld [vmem:[#allocation2 + $0x9a8] sm:$0xff] }
  0x7a   :  { %v351_v8 = vld [vmem:[#allocation2 + $0x9e8] sm:$0xff] }
  0x7b   :  { %2459 = vmatpush1.bf16.msra.mxu0 %v3334_v25  ;;  %2612 = vmatpush1.bf16.msra.mxu1 %v3336_v26  ;;  %v306_v25 = vld [vmem:[#allocation2 + $0x880] sm:$0xff]  ;;  %v355_v15 = vld [vmem:[#allocation2 + $0xa08] sm:$0xff]  ;;  %v3448_v18 = vcombine.low %v347_v7, %v351_v8 }
  0x7c   :  { %2460 = vmatprep.subr.bf16.mxu0 %v3343_v27  ;;  %2613 = vmatprep.subr.bf16.mxu1 %v3345_v28  ;;  %v310_v26 = vld [vmem:[#allocation2 + $0x8a0] sm:$0xff]  ;;  %v3710_v27 = vcombine.high %v32_v19, %v32_v19  ;;  %v307_v28 = vld [vmem:[#allocation2 + $0x888] sm:$0xff] }
  0x7d   :  { %v3407_v33 = vcombine.high %v306_v25, %v310_v26  ;;  %v3406_v40 = vcombine.low %v306_v25, %v310_v26  ;;  %v3408_v41 = vcombine.low %v307_v28, %v311_v29  ;;  %v359_v16 = vld [vmem:[#allocation2 + $0xa28] sm:$0xff] }
  0x7e   :  { %v367_v25 = vld [vmem:[#allocation2 + $0xa68] sm:$0xff] }
  0x7f   :  { %2461 = vmatpush1.bf16.msra.mxu0 %v3342_v34  ;;  %2614 = vmatpush1.bf16.msra.mxu1 %v3344_v35  ;;  %v3409_v34 = vcombine.high %v307_v28, %v311_v29  ;;  %v314_v35 = vld [vmem:[#allocation2 + $0x8c0] sm:$0xff]  ;;  %v3456_v28 = vcombine.low %v355_v15, %v359_v16 }
  0x80   :  { %2462 = vmatprep.subr.bf16.mxu0 %v3351_v36  ;;  %2615 = vmatprep.subr.bf16.mxu1 %v3353_v37  ;;  %v318_v36 = vld [vmem:[#allocation2 + $0x8e0] sm:$0xff]  ;;  %v315_v37 = vld [vmem:[#allocation2 + $0x8c8] sm:$0xff] }
  0x81   :  { %v3414_v49 = vcombine.low %v314_v35, %v318_v36 }
  0x83   :  { %2463 = vmatpush1.bf16.msra.mxu0 %v3350_v42  ;;  %2616 = vmatpush1.bf16.msra.mxu1 %v3352_v43  ;;  %v3415_v42 = vcombine.high %v314_v35, %v318_v36  ;;  %v3417_v43 = vcombine.high %v315_v37, %v319_v38  ;;  %v375_v35 = vld [vmem:[#allocation2 + $0xaa8] sm:$0xff] }
  0x84   :  { %2464 = vmatprep.subr.bf16.mxu0 %v3359_v44  ;;  %2617 = vmatprep.subr.bf16.mxu1 %v3361_v45  ;;  %v322_v44 = vld [vmem:[#allocation2 + $0x900] sm:$0xff] }
  0x85   :  { %v326_v45 = vld [vmem:[#allocation2 + $0x920] sm:$0xff] }
  0x86   :  { %v3422_v57 = vcombine.low %v322_v44, %v326_v45 }
  0x87   :  { %2465 = vmatpush1.bf16.msra.mxu0 %v3358_v50  ;;  %2618 = vmatpush1.bf16.msra.mxu1 %v3360_v51  ;;  %v3416_v50 = vcombine.low %v315_v37, %v319_v38  ;;  %v3423_v51 = vcombine.high %v322_v44, %v326_v45  ;;  %v383_v44 = vld [vmem:[#allocation2 + $0xae8] sm:$0xff] }
  0x88   :  { %2466 = vmatprep.subr.bf16.mxu0 %v3367_v52  ;;  %2619 = vmatprep.subr.bf16.mxu1 %v3369_v53  ;;  %v3425_v52 = vcombine.high %v323_v47, %v327_v48  ;;  %v330_v53 = vld [vmem:[#allocation2 + $0x940] sm:$0xff] }
  0x89   :  { %v3430_v1 = vcombine.low %v330_v53, %v334_v54 }
  0x8b   :  { %2467 = vmatpush1.bf16.msra.mxu0 %v3366_v58  ;;  %2620 = vmatpush1.bf16.msra.mxu1 %v3368_v59  ;;  %v3424_v58 = vcombine.low %v323_v47, %v327_v48  ;;  %v3431_v59 = vcombine.high %v330_v53, %v334_v54 }
  0x8c   :  { %2468 = vmatprep.subr.bf16.mxu0 %v3375_v60  ;;  %2621 = vmatprep.subr.bf16.mxu1 %v3377_v61  ;;  %v3433_v60 = vcombine.high %v331_v55, %v335_v56  ;;  %v338_v61 = vld [vmem:[#allocation2 + $0x980] sm:$0xff] }
  0x8d   :  { %v3438_v9 = vcombine.low %v338_v61, %v342_v62 }
  0x8f   :  { %2469 = vmatpush1.bf16.msra.mxu0 %v3374_v2  ;;  %2622 = vmatpush1.bf16.msra.mxu1 %v3376_v3  ;;  %v3432_v2 = vcombine.low %v331_v55, %v335_v56  ;;  %v3439_v3 = vcombine.high %v338_v61, %v342_v62 }
  0x90   :  { %2470 = vmatprep.subr.bf16.mxu0 %v3383_v4  ;;  %2623 = vmatprep.subr.bf16.mxu1 %v3385_v5  ;;  %v3441_v4 = vcombine.high %v339_v63, %v343_v0  ;;  %v346_v5 = vld [vmem:[#allocation2 + $0x9c0] sm:$0xff] }
  0x91   :  { %v3446_v17 = vcombine.low %v346_v5, %v350_v6 }
  0x93   :  { %2471 = vmatpush1.bf16.msra.mxu0 %v3382_v10  ;;  %2624 = vmatpush1.bf16.msra.mxu1 %v3384_v11  ;;  %v3440_v10 = vcombine.low %v339_v63, %v343_v0  ;;  %v3447_v11 = vcombine.high %v346_v5, %v350_v6 }
  0x94   :  { %2491 = vmatprep.subr.bf16.mxu0 %v3391_v12  ;;  %2644 = vmatprep.subr.bf16.mxu1 %v3393_v14  ;;  %v3449_v12 = vcombine.high %v347_v7, %v351_v8  ;;  %v358_v14 = vld [vmem:[#allocation2 + $0xa20] sm:$0xff] }
  0x96   :  { %2473 = vmatmul.mubr.bf16.vlgmr.msra.gmra.mrb[0].mxu0 %v3614_v13  ;;  %2626 = vmatmul.mubr.bf16.vlgmr.msra.gmra.mrb[0].mxu1 %v3614_v13  ;;  %v354_v13 = vld [vmem:[#allocation2 + $0xa00] sm:$0xff] }
  0x97   :  { %2492 = vmatpush1.bf16.msra.mxu0 %v3390_v21  ;;  %2645 = vmatpush1.bf16.msra.mxu1 %v3392_v22  ;;  %v3455_v19 = vcombine.high %v354_v13, %v358_v14  ;;  %v3457_v21 = vcombine.high %v355_v15, %v359_v16  ;;  %v362_v22 = vld [vmem:[#allocation2 + $0xa40] sm:$0xff]  ;;  %v3454_v26 = vcombine.low %v354_v13, %v358_v14 }
  0x98   :  { %2493 = vmatprep.subr.bf16.mxu0 %v3399_v23  ;;  %2646 = vmatprep.subr.bf16.mxu1 %v3401_v24  ;;  %v366_v23 = vld [vmem:[#allocation2 + $0xa60] sm:$0xff]  ;;  %v363_v24 = vld [vmem:[#allocation2 + $0xa48] sm:$0xff] }
  0x99   :  { %2482 = vmatprep.mubr.bf16.mxu0 %v3710_v27  ;;  %2635 = vmatprep.mubr.bf16.mxu1 %v3710_v27  ;;  %v3463_v29 = vcombine.high %v362_v22, %v366_v23  ;;  %v3462_v36 = vcombine.low %v362_v22, %v366_v23  ;;  %v3464_v37 = vcombine.low %v363_v24, %v367_v25 }
  0x9b   :  { %2494 = vmatpush1.bf16.msra.mxu0 %v3398_v31  ;;  %2647 = vmatpush1.bf16.msra.mxu1 %v3400_v32  ;;  %v3465_v31 = vcombine.high %v363_v24, %v367_v25  ;;  %v370_v32 = vld [vmem:[#allocation2 + $0xa80] sm:$0xff]  ;;  %v3619_v25 = vld [vmem:[%s3801_s0 + $0x10] ss:$24 sps:$4 sm:$0xff]  }
  0x9c   :  { %2495 = vmatprep.subr.bf16.mxu0 %v3407_v33  ;;  %2648 = vmatprep.subr.bf16.mxu1 %v3409_v34  ;;  %v374_v33 = vld [vmem:[#allocation2 + $0xaa0] sm:$0xff]  ;;  %v371_v34 = vld [vmem:[#allocation2 + $0xa88] sm:$0xff] }
  0x9d   :  { %v3471_v38 = vcombine.high %v370_v32, %v374_v33  ;;  %v3470_v45 = vcombine.low %v370_v32, %v374_v33  ;;  %v49_v32 = vld [vmem:[#allocation2 + $0x78] sm:$0xff]  ;;  %v33_v33 = vld [vmem:[%s3801_s0 + $0x40] sm:$0xff] }
  0x9e   :  { %2483 = vmatmul.mubr.bf16.gmra.mrb[4].mxu0 %v3714_v39  ;;  %2636 = vmatmul.mubr.bf16.gmra.mrb[4].mxu1 %v3714_v39 }
  0x9f   :  { %2496 = vmatpush1.bf16.msra.mxu0 %v3406_v40  ;;  %2649 = vmatpush1.bf16.msra.mxu1 %v3408_v41  ;;  %v3473_v40 = vcombine.high %v371_v34, %v375_v35  ;;  %v378_v41 = vld [vmem:[#allocation2 + $0xac0] sm:$0xff] }
  0xa0   :  { %2497 = vmatprep.subr.bf16.mxu0 %v3415_v42  ;;  %2650 = vmatprep.subr.bf16.mxu1 %v3417_v43  ;;  %v382_v42 = vld [vmem:[#allocation2 + $0xae0] sm:$0xff]  ;;  %v379_v43 = vld [vmem:[#allocation2 + $0xac8] sm:$0xff] }
  0xa1   :  { %2523 = vmatprep.mubr.bf16.mxu0 %v3621_v46  ;;  %2676 = vmatprep.mubr.bf16.mxu1 %v3621_v46  ;;  %v3472_v46 = vcombine.low %v371_v34, %v375_v35  ;;  %v3479_v47 = vcombine.high %v378_v41, %v382_v42  ;;  %v3481_v48 = vcombine.high %v379_v43, %v383_v44 }
  0xa2   :  { %v3478_v53 = vcombine.low %v378_v41, %v382_v42  ;;  %v3480_v54 = vcombine.low %v379_v43, %v383_v44  ;;  %v56_v41 = vld [vmem:[#allocation2 + $0xb0] sm:$0xff]  ;;  %v53_v42 = vld [vmem:[#allocation2 + $0x98] sm:$0xff] }
  0xa3   :  { %2498 = vmatpush1.bf16.msra.mxu0 %v3414_v49  ;;  %2651 = vmatpush1.bf16.msra.mxu1 %v3416_v50  ;;  %v386_v49 = vld [vmem:[#allocation2 + $0xb00] sm:$0xff]  ;;  %v57_v43 = vld [vmem:[#allocation2 + $0xb8] sm:$0xff] }
  0xa4   :  { %2499 = vmatprep.subr.bf16.mxu0 %v3423_v51  ;;  %2652 = vmatprep.subr.bf16.mxu1 %v3425_v52  ;;  %v390_v50 = vld [vmem:[#allocation2 + $0xb20] sm:$0xff]  ;;  %v387_v51 = vld [vmem:[#allocation2 + $0xb08] sm:$0xff] }
  0xa5   :  { %v391_v52 = vld [vmem:[#allocation2 + $0xb28] sm:$0xff]  ;;  %v3487_v55 = vcombine.high %v386_v49, %v390_v50  ;;  %v3486_v61 = vcombine.low %v386_v49, %v390_v50  ;;  %v64_v49 = vld [vmem:[#allocation2 + $0xf0] sm:$0xff]  ;;  %v3731_v50 = vcombine.low %v33_v33, %v33_v33 }
  0xa6   :  { %v3489_v56 = vcombine.high %v387_v51, %v391_v52  ;;  %v3488_v62 = vcombine.low %v387_v51, %v391_v52  ;;  %v61_v51 = vld [vmem:[#allocation2 + $0xd8] sm:$0xff] }
  0xa7   :  { %2500 = vmatpush1.bf16.msra.mxu0 %v3422_v57  ;;  %2653 = vmatpush1.bf16.msra.mxu1 %v3424_v58  ;;  %v394_v57 = vld [vmem:[#allocation2 + $0xb40] sm:$0xff]  ;;  %v65_v52 = vld [vmem:[#allocation2 + $0xf8] sm:$0xff] }
  0xa8   :  { %2501 = vmatprep.subr.bf16.mxu0 %v3431_v59  ;;  %2654 = vmatprep.subr.bf16.mxu1 %v3433_v60  ;;  %v398_v58 = vld [vmem:[#allocation2 + $0xb60] sm:$0xff]  ;;  %v395_v59 = vld [vmem:[#allocation2 + $0xb48] sm:$0xff] }
  0xa9   :  { %v399_v60 = vld [vmem:[#allocation2 + $0xb68] sm:$0xff]  ;;  %v3495_v63 = vcombine.high %v394_v57, %v398_v58  ;;  %v3494_v5 = vcombine.low %v394_v57, %v398_v58  ;;  %v68_v57 = vld [vmem:[#allocation2 + $0x110] sm:$0xff] }
  0xaa   :  { %v3497_v0 = vcombine.high %v395_v59, %v399_v60  ;;  %v3496_v6 = vcombine.low %v395_v59, %v399_v60  ;;  %v72_v58 = vld [vmem:[#allocation2 + $0x130] sm:$0xff]  ;;  %v69_v59 = vld [vmem:[#allocation2 + $0x118] sm:$0xff] }
  0xab   :  { %2502 = vmatpush1.bf16.msra.mxu0 %v3430_v1  ;;  %2655 = vmatpush1.bf16.msra.mxu1 %v3432_v2  ;;  %v402_v1 = vld [vmem:[#allocation2 + $0xb80] sm:$0xff]  ;;  %v73_v60 = vld [vmem:[#allocation2 + $0x138] sm:$0xff] }
  0xac   :  { %2503 = vmatprep.subr.bf16.mxu0 %v3439_v3  ;;  %2656 = vmatprep.subr.bf16.mxu1 %v3441_v4  ;;  %v406_v2 = vld [vmem:[#allocation2 + $0xba0] sm:$0xff]  ;;  %v403_v3 = vld [vmem:[#allocation2 + $0xb88] sm:$0xff] }
  0xad   :  { %v407_v4 = vld [vmem:[#allocation2 + $0xba8] sm:$0xff]  ;;  %v3503_v7 = vcombine.high %v402_v1, %v406_v2  ;;  %v3502_v13 = vcombine.low %v402_v1, %v406_v2  ;;  %v76_v1 = vld [vmem:[#allocation2 + $0x150] sm:$0xff] }
  0xae   :  { %v3505_v8 = vcombine.high %v403_v3, %v407_v4  ;;  %v3504_v14 = vcombine.low %v403_v3, %v407_v4  ;;  %v80_v2 = vld [vmem:[#allocation2 + $0x170] sm:$0xff]  ;;  %v3624_v3 = vld [vmem:[%s3801_s0 + $0x4] ss:$24 sps:$4 sm:$0xff]  }
  0xaf   :  { %2504 = vmatpush1.bf16.msra.mxu0 %v3438_v9  ;;  %2657 = vmatpush1.bf16.msra.mxu1 %v3440_v10  ;;  %v410_v9 = vld [vmem:[#allocation2 + $0xbc0] sm:$0xff]  ;;  %v77_v4 = vld [vmem:[#allocation2 + $0x158] sm:$0xff] }
  0xb0   :  { %2505 = vmatprep.subr.bf16.mxu0 %v3447_v11  ;;  %2658 = vmatprep.subr.bf16.mxu1 %v3449_v12  ;;  %v414_v10 = vld [vmem:[#allocation2 + $0xbe0] sm:$0xff]  ;;  %v411_v11 = vld [vmem:[#allocation2 + $0xbc8] sm:$0xff] }
  0xb1   :  { %v415_v12 = vld [vmem:[#allocation2 + $0xbe8] sm:$0xff]  ;;  %v3511_v15 = vcombine.high %v410_v9, %v414_v10  ;;  %v3510_v22 = vcombine.low %v410_v9, %v414_v10  ;;  %v84_v10 = vld [vmem:[#allocation2 + $0x190] sm:$0xff] }
  0xb2   :  { %v3513_v16 = vcombine.high %v411_v11, %v415_v12  ;;  %v3512_v23 = vcombine.low %v411_v11, %v415_v12  ;;  %v88_v11 = vld [vmem:[#allocation2 + $0x1b0] sm:$0xff]  ;;  %v85_v12 = vld [vmem:[#allocation2 + $0x198] sm:$0xff] }
  0xb3   :  { %2506 = vmatpush1.bf16.msra.mxu0 %v3446_v17  ;;  %2659 = vmatpush1.bf16.msra.mxu1 %v3448_v18  ;;  %v36_v17 = vld [vmem:[#allocation2 + $0x10] sm:$0xff] }
  0xb4   :  { %2507 = vmatprep.subr.bf16.mxu0 %v3455_v19  ;;  %2660 = vmatprep.subr.bf16.mxu1 %v3457_v21  ;;  %v40_v18 = vld [vmem:[#allocation2 + $0x30] sm:$0xff]  ;;  %v37_v19 = vld [vmem:[#allocation2 + $0x18] sm:$0xff] }
  0xb5   :  { %v41_v21 = vld [vmem:[#allocation2 + $0x38] sm:$0xff]  ;;  %v3139_v24 = vcombine.high %v36_v17, %v40_v18  ;;  %v3138_v34 = vcombine.low %v36_v17, %v40_v18  ;;  %v92_v18 = vld [vmem:[#allocation2 + $0x1d0] sm:$0xff] }
  0xb6   :  { %v3140_v35 = vcombine.low %v37_v19, %v41_v21 }
  0xb7   :  { %2508 = vmatpush1.bf16.msra.mxu0 %v3454_v26  ;;  %2661 = vmatpush1.bf16.msra.mxu1 %v3456_v28  ;;  %v3141_v26 = vcombine.high %v37_v19, %v41_v21  ;;  %v44_v28 = vld [vmem:[#allocation2 + $0x50] sm:$0xff]  ;;  %v93_v21 = vld [vmem:[#allocation2 + $0x1d8] sm:$0xff] }
  0xb8   :  { %2509 = vmatprep.subr.bf16.mxu0 %v3463_v29  ;;  %2662 = vmatprep.subr.bf16.mxu1 %v3465_v31  ;;  %v48_v29 = vld [vmem:[#allocation2 + $0x70] sm:$0xff]  ;;  %v45_v31 = vld [vmem:[#allocation2 + $0x58] sm:$0xff] }
  0xb9   :  { %v3146_v44 = vcombine.low %v44_v28, %v48_v29  ;;  %v96_v19 = vld [vmem:[#allocation2 + $0x1f0] sm:$0xff] }
  0xbb   :  { %2510 = vmatpush1.bf16.msra.mxu0 %v3462_v36  ;;  %2663 = vmatpush1.bf16.msra.mxu1 %v3464_v37  ;;  %v3147_v36 = vcombine.high %v44_v28, %v48_v29  ;;  %v3149_v37 = vcombine.high %v45_v31, %v49_v32  ;;  %v100_v28 = vld [vmem:[#allocation2 + $0x210] sm:$0xff] }
  0xbc   :  { %2511 = vmatprep.subr.bf16.mxu0 %v3471_v38  ;;  %2664 = vmatprep.subr.bf16.mxu1 %v3473_v40  ;;  %v3727_v38 = vcombine.high %v33_v33, %v33_v33  ;;  %v52_v40 = vld [vmem:[#allocation2 + $0x90] sm:$0xff]  ;;  %v3194_v33 = vcombine.low %v92_v18, %v96_v19 }
  0xbd   :  { %v104_v29 = vld [vmem:[#allocation2 + $0x230] sm:$0xff] }
  0xbf   :  { %2512 = vmatpush1.bf16.msra.mxu0 %v3470_v45  ;;  %2665 = vmatpush1.bf16.msra.mxu1 %v3472_v46  ;;  %v3148_v45 = vcombine.low %v45_v31, %v49_v32  ;;  %v3155_v46 = vcombine.high %v52_v40, %v56_v41  ;;  %v101_v31 = vld [vmem:[#allocation2 + $0x218] sm:$0xff] }
  0xc0   :  { %2513 = vmatprep.subr.bf16.mxu0 %v3479_v47  ;;  %2666 = vmatprep.subr.bf16.mxu1 %v3481_v48  ;;  %v3157_v47 = vcombine.high %v53_v42, %v57_v43  ;;  %v60_v48 = vld [vmem:[#allocation2 + $0xd0] sm:$0xff]  ;;  %v105_v32 = vld [vmem:[#allocation2 + $0x238] sm:$0xff] }
  0xc3   :  { %2514 = vmatpush1.bf16.msra.mxu0 %v3478_v53  ;;  %2667 = vmatpush1.bf16.msra.mxu1 %v3480_v54  ;;  %v3154_v53 = vcombine.low %v52_v40, %v56_v41  ;;  %v3156_v54 = vcombine.low %v53_v42, %v57_v43  ;;  %v112_v40 = vld [vmem:[#allocation2 + $0x270] sm:$0xff]  ;;  %v109_v41 = vld [vmem:[#allocation2 + $0x258] sm:$0xff]  ;;  %v3202_v43 = vcombine.low %v100_v28, %v104_v29 }
  0xc4   :  { %2515 = vmatprep.subr.bf16.mxu0 %v3487_v55  ;;  %2668 = vmatprep.subr.bf16.mxu1 %v3489_v56  ;;  %v3163_v55 = vcombine.high %v60_v48, %v64_v49  ;;  %v3165_v56 = vcombine.high %v61_v51, %v65_v52  ;;  %v113_v42 = vld [vmem:[#allocation2 + $0x278] sm:$0xff] }
  0xc7   :  { %2516 = vmatpush1.bf16.msra.mxu0 %v3486_v61  ;;  %2669 = vmatpush1.bf16.msra.mxu1 %v3488_v62  ;;  %v3162_v61 = vcombine.low %v60_v48, %v64_v49  ;;  %v3164_v62 = vcombine.low %v61_v51, %v65_v52  ;;  %v120_v48 = vld [vmem:[#allocation2 + $0x2b0] sm:$0xff]  ;;  %v117_v49 = vld [vmem:[#allocation2 + $0x298] sm:$0xff] }
  0xc8   :  { %2517 = vmatprep.subr.bf16.mxu0 %v3495_v63  ;;  %2670 = vmatprep.subr.bf16.mxu1 %v3497_v0  ;;  %v3171_v63 = vcombine.high %v68_v57, %v72_v58  ;;  %v3173_v0 = vcombine.high %v69_v59, %v73_v60  ;;  %v121_v51 = vld [vmem:[#allocation2 + $0x2b8] sm:$0xff] }
  0xcb   :  { %2518 = vmatpush1.bf16.msra.mxu0 %v3494_v5  ;;  %2671 = vmatpush1.bf16.msra.mxu1 %v3496_v6  ;;  %v81_v5 = vld [vmem:[#allocation2 + $0x178] sm:$0xff]  ;;  %v3170_v6 = vcombine.low %v68_v57, %v72_v58  ;;  %v128_v57 = vld [vmem:[#allocation2 + $0x2f0] sm:$0xff] }
  0xcc   :  { %2519 = vmatprep.subr.bf16.mxu0 %v3503_v7  ;;  %2672 = vmatprep.subr.bf16.mxu1 %v3505_v8  ;;  %v3172_v7 = vcombine.low %v69_v59, %v73_v60  ;;  %v3179_v8 = vcombine.high %v76_v1, %v80_v2  ;;  %v3181_v9 = vcombine.high %v77_v4, %v81_v5  ;;  %v125_v58 = vld [vmem:[#allocation2 + $0x2d8] sm:$0xff] }
  0xcd   :  { %v129_v59 = vld [vmem:[#allocation2 + $0x2f8] sm:$0xff] }
  0xcf   :  { %2520 = vmatpush1.bf16.msra.mxu0 %v3502_v13  ;;  %2673 = vmatpush1.bf16.msra.mxu1 %v3504_v14  ;;  %v89_v13 = vld [vmem:[#allocation2 + $0x1b8] sm:$0xff]  ;;  %v3178_v14 = vcombine.low %v76_v1, %v80_v2  ;;  %v136_v1 = vld [vmem:[#allocation2 + $0x330] sm:$0xff] }
  0xd0   :  { %2521 = vmatprep.subr.bf16.mxu0 %v3511_v15  ;;  %2674 = vmatprep.subr.bf16.mxu1 %v3513_v16  ;;  %v3180_v15 = vcombine.low %v77_v4, %v81_v5  ;;  %v3187_v16 = vcombine.high %v84_v10, %v88_v11  ;;  %v3189_v17 = vcombine.high %v85_v12, %v89_v13  ;;  %v133_v2 = vld [vmem:[#allocation2 + $0x318] sm:$0xff] }
  0xd1   :  { %v3228_v5 = vcombine.low %v125_v58, %v129_v59 }
  0xd3   :  { %2522 = vmatpush1.bf16.msra.mxu0 %v3510_v22  ;;  %2675 = vmatpush1.bf16.msra.mxu1 %v3512_v23  ;;  %v97_v22 = vld [vmem:[#allocation2 + $0x1f8] sm:$0xff]  ;;  %v3186_v23 = vcombine.low %v84_v10, %v88_v11 }
  0xd4   :  { %2695 = vmatprep.subr.bf16.mxu0 %v3139_v24  ;;  %2848 = vmatprep.subr.bf16.mxu1 %v3141_v26  ;;  %v3188_v24 = vcombine.low %v85_v12, %v89_v13  ;;  %v3197_v26 = vcombine.high %v93_v21, %v97_v22  ;;  %v141_v10 = vld [vmem:[#allocation2 + $0x358] sm:$0xff] }
  0xd5   :  { %v145_v11 = vld [vmem:[#allocation2 + $0x378] sm:$0xff] }
  0xd6   :  { %2524 = vmatmul.mubr.bf16.vlgmr.msra.gmra.mrb[0].mxu0 %v3619_v25  ;;  %2677 = vmatmul.mubr.bf16.vlgmr.msra.gmra.mrb[0].mxu1 %v3619_v25  ;;  %v3195_v25 = vcombine.high %v92_v18, %v96_v19  ;;  %v149_v18 = vld [vmem:[#allocation2 + $0x398] sm:$0xff] }
  0xd7   :  { %2696 = vmatpush1.bf16.msra.mxu0 %v3138_v34  ;;  %2849 = vmatpush1.bf16.msra.mxu1 %v3140_v35  ;;  %v3196_v34 = vcombine.low %v93_v21, %v97_v22  ;;  %v3203_v35 = vcombine.high %v100_v28, %v104_v29  ;;  %v153_v19 = vld [vmem:[#allocation2 + $0x3b8] sm:$0xff]  ;;  %v3244_v22 = vcombine.low %v141_v10, %v145_v11 }
  0xd8   :  { %2697 = vmatprep.subr.bf16.mxu0 %v3147_v36  ;;  %2850 = vmatprep.subr.bf16.mxu1 %v3149_v37  ;;  %v3205_v36 = vcombine.high %v101_v31, %v105_v32  ;;  %v108_v37 = vld [vmem:[#allocation2 + $0x250] sm:$0xff]  ;;  %v157_v28 = vld [vmem:[#allocation2 + $0x3d8] sm:$0xff] }
  0xd9   :  { %2533 = vmatprep.mubr.bf16.mxu0 %v3727_v38  ;;  %2686 = vmatprep.mubr.bf16.mxu1 %v3727_v38  ;;  %v3210_v52 = vcombine.low %v108_v37, %v112_v40  ;;  %v161_v29 = vld [vmem:[#allocation2 + $0x3f8] sm:$0xff] }
  0xdb   :  { %2698 = vmatpush1.bf16.msra.mxu0 %v3146_v44  ;;  %2851 = vmatpush1.bf16.msra.mxu1 %v3148_v45  ;;  %v3204_v44 = vcombine.low %v101_v31, %v105_v32  ;;  %v3211_v45 = vcombine.high %v108_v37, %v112_v40  ;;  %v3252_v32 = vcombine.low %v149_v18, %v153_v19  ;;  %v165_v37 = vld [vmem:[#allocation2 + $0x418] sm:$0xff] }
  0xdc   :  { %2699 = vmatprep.subr.bf16.mxu0 %v3155_v46  ;;  %2852 = vmatprep.subr.bf16.mxu1 %v3157_v47  ;;  %v3213_v46 = vcombine.high %v109_v41, %v113_v42  ;;  %v116_v47 = vld [vmem:[#allocation2 + $0x290] sm:$0xff]  ;;  %v169_v40 = vld [vmem:[#allocation2 + $0x438] sm:$0xff] }
  0xdd   :  { %v3218_v60 = vcombine.low %v116_v47, %v120_v48 }
  0xde   :  { %2534 = vmatmul.mubr.bf16.gmra.mrb[4].mxu0 %v3731_v50  ;;  %2687 = vmatmul.mubr.bf16.gmra.mrb[4].mxu1 %v3731_v50 }
  0xdf   :  { %2700 = vmatpush1.bf16.msra.mxu0 %v3154_v53  ;;  %2853 = vmatpush1.bf16.msra.mxu1 %v3156_v54  ;;  %v3212_v53 = vcombine.low %v109_v41, %v113_v42  ;;  %v3219_v54 = vcombine.high %v116_v47, %v120_v48  ;;  %v3260_v42 = vcombine.low %v157_v28, %v161_v29  ;;  %v173_v47 = vld [vmem:[#allocation2 + $0x458] sm:$0xff] }
  0xe0   :  { %2701 = vmatprep.subr.bf16.mxu0 %v3163_v55  ;;  %2854 = vmatprep.subr.bf16.mxu1 %v3165_v56  ;;  %v3221_v55 = vcombine.high %v117_v49, %v121_v51  ;;  %v124_v56 = vld [vmem:[#allocation2 + $0x2d0] sm:$0xff]  ;;  %v177_v48 = vld [vmem:[#allocation2 + $0x478] sm:$0xff] }
  0xe1   :  { %2727 = vmatprep.mubr.bf16.mxu0 %v3624_v3  ;;  %2880 = vmatprep.mubr.bf16.mxu1 %v3624_v3  ;;  %v137_v3 = vld [vmem:[#allocation2 + $0x338] sm:$0xff]  ;;  %v3226_v4 = vcombine.low %v124_v56, %v128_v57 }
  0xe2   :  { %v3236_v13 = vcombine.low %v133_v2, %v137_v3 }
  0xe3   :  { %2702 = vmatpush1.bf16.msra.mxu0 %v3162_v61  ;;  %2855 = vmatpush1.bf16.msra.mxu1 %v3164_v62  ;;  %v3220_v61 = vcombine.low %v117_v49, %v121_v51  ;;  %v3227_v62 = vcombine.high %v124_v56, %v128_v57  ;;  %v3268_v51 = vcombine.low %v165_v37, %v169_v40  ;;  %v3625_v56 = vld [vmem:[%s3801_s0] ss:$24 sps:$4 sm:$0xff]  }
  0xe4   :  { %2703 = vmatprep.subr.bf16.mxu0 %v3171_v63  ;;  %2856 = vmatprep.subr.bf16.mxu1 %v3173_v0  ;;  %v3229_v63 = vcombine.high %v125_v58, %v129_v59  ;;  %v132_v0 = vld [vmem:[#allocation2 + $0x310] sm:$0xff]  ;;  %v181_v57 = vld [vmem:[#allocation2 + $0x498] sm:$0xff] }
  0xe5   :  { %v3234_v12 = vcombine.low %v132_v0, %v136_v1  ;;  %v185_v58 = vld [vmem:[#allocation2 + $0x4b8] sm:$0xff] }
  0xe7   :  { %2704 = vmatpush1.bf16.msra.mxu0 %v3170_v6  ;;  %2857 = vmatpush1.bf16.msra.mxu1 %v3172_v7  ;;  %v3235_v6 = vcombine.high %v132_v0, %v136_v1  ;;  %v3237_v7 = vcombine.high %v133_v2, %v137_v3  ;;  %v192_v0 = vld [vmem:[#allocation2 + $0x4f0] sm:$0xff]  ;;  %v189_v1 = vld [vmem:[#allocation2 + $0x4d8] sm:$0xff] }
  0xe8   :  { %2705 = vmatprep.subr.bf16.mxu0 %v3179_v8  ;;  %2858 = vmatprep.subr.bf16.mxu1 %v3181_v9  ;;  %v140_v8 = vld [vmem:[#allocation2 + $0x350] sm:$0xff]  ;;  %v193_v2 = vld [vmem:[#allocation2 + $0x4f8] sm:$0xff] }
  0xe9   :  { %v144_v9 = vld [vmem:[#allocation2 + $0x370] sm:$0xff] }
  0xea   :  { %v3242_v21 = vcombine.low %v140_v8, %v144_v9 }
  0xeb   :  { %2706 = vmatpush1.bf16.msra.mxu0 %v3178_v14  ;;  %2859 = vmatpush1.bf16.msra.mxu1 %v3180_v15  ;;  %v3243_v14 = vcombine.high %v140_v8, %v144_v9  ;;  %v3245_v15 = vcombine.high %v141_v10, %v145_v11  ;;  %v200_v8 = vld [vmem:[#allocation2 + $0x530] sm:$0xff]  ;;  %v197_v9 = vld [vmem:[#allocation2 + $0x518] sm:$0xff] }
  0xec   :  { %2707 = vmatprep.subr.bf16.mxu0 %v3187_v16  ;;  %2860 = vmatprep.subr.bf16.mxu1 %v3189_v17  ;;  %v148_v16 = vld [vmem:[#allocation2 + $0x390] sm:$0xff]  ;;  %v201_v10 = vld [vmem:[#allocation2 + $0x538] sm:$0xff] }
  0xed   :  { %v152_v17 = vld [vmem:[#allocation2 + $0x3b0] sm:$0xff] }
  0xee   :  { %v3250_v31 = vcombine.low %v148_v16, %v152_v17 }
  0xef   :  { %2708 = vmatpush1.bf16.msra.mxu0 %v3186_v23  ;;  %2861 = vmatpush1.bf16.msra.mxu1 %v3188_v24  ;;  %v3251_v23 = vcombine.high %v148_v16, %v152_v17  ;;  %v3253_v24 = vcombine.high %v149_v18, %v153_v19  ;;  %v3626_v16 = vld [vmem:[%s3801_s0 + $0xc] ss:$24 sps:$4 sm:$0xff]   ;;  %v205_v17 = vld [vmem:[#allocation2 + $0x558] sm:$0xff] }
  0xf0   :  { %2709 = vmatprep.subr.bf16.mxu0 %v3195_v25  ;;  %2862 = vmatprep.subr.bf16.mxu1 %v3197_v26  ;;  %v156_v25 = vld [vmem:[#allocation2 + $0x3d0] sm:$0xff]  ;;  %v209_v18 = vld [vmem:[#allocation2 + $0x578] sm:$0xff] }
  0xf1   :  { %v160_v26 = vld [vmem:[#allocation2 + $0x3f0] sm:$0xff] }
  0xf2   :  { %v3258_v41 = vcombine.low %v156_v25, %v160_v26 }
  0xf3   :  { %2710 = vmatpush1.bf16.msra.mxu0 %v3194_v33  ;;  %2863 = vmatpush1.bf16.msra.mxu1 %v3196_v34  ;;  %v3259_v33 = vcombine.high %v156_v25, %v160_v26  ;;  %v3261_v34 = vcombine.high %v157_v28, %v161_v29  ;;  %v213_v25 = vld [vmem:[#allocation2 + $0x598] sm:$0xff]  ;;  %v3308_v29 = vcombine.low %v205_v17, %v209_v18 }
  0xf4   :  { %2711 = vmatprep.subr.bf16.mxu0 %v3203_v35  ;;  %2864 = vmatprep.subr.bf16.mxu1 %v3205_v36  ;;  %v164_v35 = vld [vmem:[#allocation2 + $0x410] sm:$0xff]  ;;  %v217_v26 = vld [vmem:[#allocation2 + $0x5b8] sm:$0xff] }
  0xf5   :  { %v168_v36 = vld [vmem:[#allocation2 + $0x430] sm:$0xff] }
  0xf6   :  { %v3266_v49 = vcombine.low %v164_v35, %v168_v36 }
  0xf7   :  { %2712 = vmatpush1.bf16.msra.mxu0 %v3202_v43  ;;  %2865 = vmatpush1.bf16.msra.mxu1 %v3204_v44  ;;  %v3267_v43 = vcombine.high %v164_v35, %v168_v36  ;;  %v3269_v44 = vcombine.high %v165_v37, %v169_v40  ;;  %v221_v35 = vld [vmem:[#allocation2 + $0x5d8] sm:$0xff]  ;;  %v3316_v40 = vcombine.low %v213_v25, %v217_v26 }
  0xf8   :  { %2713 = vmatprep.subr.bf16.mxu0 %v3211_v45  ;;  %2866 = vmatprep.subr.bf16.mxu1 %v3213_v46  ;;  %v172_v45 = vld [vmem:[#allocation2 + $0x450] sm:$0xff]  ;;  %v225_v36 = vld [vmem:[#allocation2 + $0x5f8] sm:$0xff] }
  0xf9   :  { %v176_v46 = vld [vmem:[#allocation2 + $0x470] sm:$0xff] }
  0xfa   :  { %v3274_v59 = vcombine.low %v172_v45, %v176_v46 }
  0xfb   :  { %2714 = vmatpush1.bf16.msra.mxu0 %v3210_v52  ;;  %2867 = vmatpush1.bf16.msra.mxu1 %v3212_v53  ;;  %v3275_v52 = vcombine.high %v172_v45, %v176_v46  ;;  %v3277_v53 = vcombine.high %v173_v47, %v177_v48  ;;  %v229_v45 = vld [vmem:[#allocation2 + $0x618] sm:$0xff] }
  0xfc   :  { %2715 = vmatprep.subr.bf16.mxu0 %v3219_v54  ;;  %2868 = vmatprep.subr.bf16.mxu1 %v3221_v55  ;;  %v180_v54 = vld [vmem:[#allocation2 + $0x490] sm:$0xff]  ;;  %v233_v46 = vld [vmem:[#allocation2 + $0x638] sm:$0xff] }
  0xfd   :  { %v184_v55 = vld [vmem:[#allocation2 + $0x4b0] sm:$0xff] }
  0xfe   :  { %v3282_v3 = vcombine.low %v180_v54, %v184_v55 }
  0xff   :  { %2716 = vmatpush1.bf16.msra.mxu0 %v3218_v60  ;;  %2869 = vmatpush1.bf16.msra.mxu1 %v3220_v61  ;;  %v3276_v60 = vcombine.low %v173_v47, %v177_v48  ;;  %v3283_v61 = vcombine.high %v180_v54, %v184_v55  ;;  %v3324_v48 = vcombine.low %v221_v35, %v225_v36  ;;  %v237_v54 = vld [vmem:[#allocation2 + $0x658] sm:$0xff] }
 0x100   :  { %2717 = vmatprep.subr.bf16.mxu0 %v3227_v62  ;;  %2870 = vmatprep.subr.bf16.mxu1 %v3229_v63  ;;  %v3285_v62 = vcombine.high %v181_v57, %v185_v58  ;;  %v188_v63 = vld [vmem:[#allocation2 + $0x4d0] sm:$0xff]  ;;  %v241_v55 = vld [vmem:[#allocation2 + $0x678] sm:$0xff] }
 0x101   :  { %v3290_v11 = vcombine.low %v188_v63, %v192_v0 }
 0x103   :  { %2718 = vmatpush1.bf16.msra.mxu0 %v3226_v4  ;;  %2871 = vmatpush1.bf16.msra.mxu1 %v3228_v5  ;;  %v3284_v4 = vcombine.low %v181_v57, %v185_v58  ;;  %v3291_v5 = vcombine.high %v188_v63, %v192_v0  ;;  %v3332_v57 = vcombine.low %v229_v45, %v233_v46  ;;  %v249_v63 = vld [vmem:[#allocation2 + $0x6b8] sm:$0xff] }
 0x104   :  { %2719 = vmatprep.subr.bf16.mxu0 %v3235_v6  ;;  %2872 = vmatprep.subr.bf16.mxu1 %v3237_v7  ;;  %v3293_v6 = vcombine.high %v189_v1, %v193_v2  ;;  %v196_v7 = vld [vmem:[#allocation2 + $0x510] sm:$0xff] }
 0x105   :  { %v3298_v19 = vcombine.low %v196_v7, %v200_v8 }
 0x107   :  { %2720 = vmatpush1.bf16.msra.mxu0 %v3234_v12  ;;  %2873 = vmatpush1.bf16.msra.mxu1 %v3236_v13  ;;  %v3299_v12 = vcombine.high %v196_v7, %v200_v8  ;;  %v3301_v13 = vcombine.high %v197_v9, %v201_v10  ;;  %v257_v7 = vld [vmem:[#allocation2 + $0x6f8] sm:$0xff] }
 0x108   :  { %2721 = vmatprep.subr.bf16.mxu0 %v3243_v14  ;;  %2874 = vmatprep.subr.bf16.mxu1 %v3245_v15  ;;  %v204_v14 = vld [vmem:[#allocation2 + $0x550] sm:$0xff] }
 0x109   :  { %v208_v15 = vld [vmem:[#allocation2 + $0x570] sm:$0xff] }
 0x10a   :  { %v3306_v28 = vcombine.low %v204_v14, %v208_v15 }
 0x10b   :  { %2722 = vmatpush1.bf16.msra.mxu0 %v3242_v21  ;;  %2875 = vmatpush1.bf16.msra.mxu1 %v3244_v22  ;;  %v3307_v21 = vcombine.high %v204_v14, %v208_v15  ;;  %v3309_v22 = vcombine.high %v205_v17, %v209_v18  ;;  %v265_v14 = vld [vmem:[#allocation2 + $0x738] sm:$0xff] }
 0x10c   :  { %2723 = vmatprep.subr.bf16.mxu0 %v3251_v23  ;;  %2876 = vmatprep.subr.bf16.mxu1 %v3253_v24  ;;  %v212_v23 = vld [vmem:[#allocation2 + $0x590] sm:$0xff] }
 0x10d   :  { %v216_v24 = vld [vmem:[#allocation2 + $0x5b0] sm:$0xff] }
 0x10e   :  { %v3314_v37 = vcombine.low %v212_v23, %v216_v24 }
 0x10f   :  { %2724 = vmatpush1.bf16.msra.mxu0 %v3250_v31  ;;  %2877 = vmatpush1.bf16.msra.mxu1 %v3252_v32  ;;  %v3315_v31 = vcombine.high %v212_v23, %v216_v24  ;;  %v3317_v32 = vcombine.high %v213_v25, %v217_v26 }
 0x110   :  { %2725 = vmatprep.subr.bf16.mxu0 %v3259_v33  ;;  %2878 = vmatprep.subr.bf16.mxu1 %v3261_v34  ;;  %v220_v33 = vld [vmem:[#allocation2 + $0x5d0] sm:$0xff] }
 0x111   :  { %v224_v34 = vld [vmem:[#allocation2 + $0x5f0] sm:$0xff] }
 0x112   :  { %v3322_v47 = vcombine.low %v220_v33, %v224_v34 }
 0x113   :  { %2726 = vmatpush1.bf16.msra.mxu0 %v3258_v41  ;;  %2879 = vmatpush1.bf16.msra.mxu1 %v3260_v42  ;;  %v3323_v41 = vcombine.high %v220_v33, %v224_v34  ;;  %v3325_v42 = vcombine.high %v221_v35, %v225_v36 }
 0x114   :  { %2746 = vmatprep.subr.bf16.mxu0 %v3267_v43  ;;  %2899 = vmatprep.subr.bf16.mxu1 %v3269_v44  ;;  %v228_v43 = vld [vmem:[#allocation2 + $0x610] sm:$0xff] }
 0x115   :  { %v232_v44 = vld [vmem:[#allocation2 + $0x630] sm:$0xff] }
 0x116   :  { %2728 = vmatmul.mubr.bf16.vlgmr.msra.gmra.mrb[8].mxu0 %v3625_v56  ;;  %2881 = vmatmul.mubr.bf16.vlgmr.msra.gmra.mrb[8].mxu1 %v3625_v56  ;;  %v3330_v56 = vcombine.low %v228_v43, %v232_v44 }
 0x117   :  { %2747 = vmatpush1.bf16.msra.mxu0 %v3266_v49  ;;  %2900 = vmatpush1.bf16.msra.mxu1 %v3268_v51  ;;  %v3331_v49 = vcombine.high %v228_v43, %v232_v44  ;;  %v3333_v51 = vcombine.high %v229_v45, %v233_v46 }
 0x118   :  { %2748 = vmatprep.subr.bf16.mxu0 %v3275_v52  ;;  %2901 = vmatprep.subr.bf16.mxu1 %v3277_v53  ;;  %v236_v52 = vld [vmem:[#allocation2 + $0x650] sm:$0xff] }
 0x119   :  { %2737 = vmatprep.mubr.bf16.mxu0 %v3693_v20  ;;  %2890 = vmatprep.mubr.bf16.mxu1 %v3693_v20  ;;  %v3292_v20 = vcombine.low %v189_v1, %v193_v2  ;;  %v240_v53 = vld [vmem:[#allocation2 + $0x670] sm:$0xff]  ;;  %v3340_v1 = vcombine.low %v237_v54, %v241_v55 }
 0x11a   :  { %v3339_v58 = vcombine.high %v236_v52, %v240_v53  ;;  %v3338_v0 = vcombine.low %v236_v52, %v240_v53 }
 0x11b   :  { %2749 = vmatpush1.bf16.msra.mxu0 %v3274_v59  ;;  %2902 = vmatpush1.bf16.msra.mxu1 %v3276_v60  ;;  %v3341_v59 = vcombine.high %v237_v54, %v241_v55  ;;  %v244_v60 = vld [vmem:[#allocation2 + $0x690] sm:$0xff] }
 0x11c   :  { %2750 = vmatprep.subr.bf16.mxu0 %v3283_v61  ;;  %2903 = vmatprep.subr.bf16.mxu1 %v3285_v62  ;;  %v248_v61 = vld [vmem:[#allocation2 + $0x6b0] sm:$0xff]  ;;  %v245_v62 = vld [vmem:[#allocation2 + $0x698] sm:$0xff] }
 0x11d   :  { %v3347_v2 = vcombine.high %v244_v60, %v248_v61  ;;  %v3346_v8 = vcombine.low %v244_v60, %v248_v61 }
 0x11e   :  { %2738 = vmatmul.mubr.bf16.gmra.mrb[12].mxu0 %v3697_v30  ;;  %2891 = vmatmul.mubr.bf16.gmra.mrb[12].mxu1 %v3697_v30  ;;  %v3300_v30 = vcombine.low %v197_v9, %v201_v10  ;;  %v3348_v9 = vcombine.low %v245_v62, %v249_v63 }
 0x11f   :  { %2751 = vmatpush1.bf16.msra.mxu0 %v3282_v3  ;;  %2904 = vmatpush1.bf16.msra.mxu1 %v3284_v4  ;;  %v3349_v3 = vcombine.high %v245_v62, %v249_v63  ;;  %v252_v4 = vld [vmem:[#allocation2 + $0x6d0] sm:$0xff] }
 0x120   :  { %2752 = vmatprep.subr.bf16.mxu0 %v3291_v5  ;;  %2905 = vmatprep.subr.bf16.mxu1 %v3293_v6  ;;  %v256_v5 = vld [vmem:[#allocation2 + $0x6f0] sm:$0xff]  ;;  %v253_v6 = vld [vmem:[#allocation2 + $0x6d8] sm:$0xff] }
 0x121   :  { %2778 = vmatprep.mubr.bf16.mxu0 %v3626_v16  ;;  %2931 = vmatprep.mubr.bf16.mxu1 %v3626_v16  ;;  %v3355_v10 = vcombine.high %v252_v4, %v256_v5  ;;  %v3354_v15 = vcombine.low %v252_v4, %v256_v5  ;;  %v3356_v16 = vcombine.low %v253_v6, %v257_v7  ;;  %v313_v4 = vld [vmem:[#allocation2 + $0x8b8] sm:$0xff] }
 0x123   :  { %2753 = vmatpush1.bf16.msra.mxu0 %v3290_v11  ;;  %2906 = vmatpush1.bf16.msra.mxu1 %v3292_v20  ;;  %v3357_v11 = vcombine.high %v253_v6, %v257_v7  ;;  %v260_v20 = vld [vmem:[#allocation2 + $0x710] sm:$0xff] }
 0x124   :  { %2754 = vmatprep.subr.bf16.mxu0 %v3299_v12  ;;  %2907 = vmatprep.subr.bf16.mxu1 %v3301_v13  ;;  %v264_v12 = vld [vmem:[#allocation2 + $0x730] sm:$0xff]  ;;  %v261_v13 = vld [vmem:[#allocation2 + $0x718] sm:$0xff] }
 0x125   :  { %v3363_v17 = vcombine.high %v260_v20, %v264_v12  ;;  %v3365_v18 = vcombine.high %v261_v13, %v265_v14  ;;  %v3362_v23 = vcombine.low %v260_v20, %v264_v12  ;;  %v3364_v24 = vcombine.low %v261_v13, %v265_v14  ;;  %v321_v20 = vld [vmem:[#allocation2 + $0x8f8] sm:$0xff] }
 0x127   :  { %2755 = vmatpush1.bf16.msra.mxu0 %v3298_v19  ;;  %2908 = vmatpush1.bf16.msra.mxu1 %v3300_v30  ;;  %v268_v19 = vld [vmem:[#allocation2 + $0x750] sm:$0xff] }
 0x128   :  { %2756 = vmatprep.subr.bf16.mxu0 %v3307_v21  ;;  %2909 = vmatprep.subr.bf16.mxu1 %v3309_v22  ;;  %v272_v30 = vld [vmem:[#allocation2 + $0x770] sm:$0xff]  ;;  %v269_v21 = vld [vmem:[#allocation2 + $0x758] sm:$0xff] }
 0x129   :  { %v273_v22 = vld [vmem:[#allocation2 + $0x778] sm:$0xff]  ;;  %v3371_v25 = vcombine.high %v268_v19, %v272_v30  ;;  %v3370_v33 = vcombine.low %v268_v19, %v272_v30 }
 0x12a   :  { %v3373_v26 = vcombine.high %v269_v21, %v273_v22  ;;  %v3372_v34 = vcombine.low %v269_v21, %v273_v22  ;;  %v329_v19 = vld [vmem:[#allocation2 + $0x938] sm:$0xff] }
 0x12b   :  { %2757 = vmatpush1.bf16.msra.mxu0 %v3306_v28  ;;  %2910 = vmatpush1.bf16.msra.mxu1 %v3308_v29  ;;  %v276_v28 = vld [vmem:[#allocation2 + $0x790] sm:$0xff] }
 0x12c   :  { %2758 = vmatprep.subr.bf16.mxu0 %v3315_v31  ;;  %2911 = vmatprep.subr.bf16.mxu1 %v3317_v32  ;;  %v280_v29 = vld [vmem:[#allocation2 + $0x7b0] sm:$0xff]  ;;  %v277_v31 = vld [vmem:[#allocation2 + $0x798] sm:$0xff] }
 0x12d   :  { %v281_v32 = vld [vmem:[#allocation2 + $0x7b8] sm:$0xff]  ;;  %v3379_v35 = vcombine.high %v276_v28, %v280_v29  ;;  %v3378_v43 = vcombine.low %v276_v28, %v280_v29 }
 0x12e   :  { %v3381_v36 = vcombine.high %v277_v31, %v281_v32  ;;  %v3380_v44 = vcombine.low %v277_v31, %v281_v32  ;;  %v337_v28 = vld [vmem:[#allocation2 + $0x978] sm:$0xff] }
 0x12f   :  { %2759 = vmatpush1.bf16.msra.mxu0 %v3314_v37  ;;  %2912 = vmatpush1.bf16.msra.mxu1 %v3316_v40  ;;  %v284_v37 = vld [vmem:[#allocation2 + $0x7d0] sm:$0xff] }
 0x130   :  { %2760 = vmatprep.subr.bf16.mxu0 %v3323_v41  ;;  %2913 = vmatprep.subr.bf16.mxu1 %v3325_v42  ;;  %v288_v40 = vld [vmem:[#allocation2 + $0x7f0] sm:$0xff]  ;;  %v285_v41 = vld [vmem:[#allocation2 + $0x7d8] sm:$0xff] }
 0x131   :  { %v289_v42 = vld [vmem:[#allocation2 + $0x7f8] sm:$0xff]  ;;  %v3387_v45 = vcombine.high %v284_v37, %v288_v40  ;;  %v3386_v52 = vcombine.low %v284_v37, %v288_v40 }
 0x132   :  { %v3389_v46 = vcombine.high %v285_v41, %v289_v42  ;;  %v3388_v53 = vcombine.low %v285_v41, %v289_v42 }
 0x133   :  { %2761 = vmatpush1.bf16.msra.mxu0 %v3322_v47  ;;  %2914 = vmatpush1.bf16.msra.mxu1 %v3324_v48  ;;  %v292_v47 = vld [vmem:[#allocation2 + $0x810] sm:$0xff] }
 0x134   :  { %2762 = vmatprep.subr.bf16.mxu0 %v3331_v49  ;;  %2915 = vmatprep.subr.bf16.mxu1 %v3333_v51  ;;  %v296_v48 = vld [vmem:[#allocation2 + $0x830] sm:$0xff]  ;;  %v293_v49 = vld [vmem:[#allocation2 + $0x818] sm:$0xff] }
 0x135   :  { %v297_v51 = vld [vmem:[#allocation2 + $0x838] sm:$0xff]  ;;  %v3395_v54 = vcombine.high %v292_v47, %v296_v48  ;;  %v3394_v60 = vcombine.low %v292_v47, %v296_v48 }
 0x136   :  { %v3397_v55 = vcombine.high %v293_v49, %v297_v51  ;;  %v3396_v61 = vcombine.low %v293_v49, %v297_v51 }
 0x137   :  { %2763 = vmatpush1.bf16.msra.mxu0 %v3330_v56  ;;  %2916 = vmatpush1.bf16.msra.mxu1 %v3332_v57  ;;  %v300_v56 = vld [vmem:[#allocation2 + $0x850] sm:$0xff] }
 0x138   :  { %2764 = vmatprep.subr.bf16.mxu0 %v3339_v58  ;;  %2917 = vmatprep.subr.bf16.mxu1 %v3341_v59  ;;  %v304_v57 = vld [vmem:[#allocation2 + $0x870] sm:$0xff]  ;;  %v301_v58 = vld [vmem:[#allocation2 + $0x858] sm:$0xff] }
 0x139   :  { %v305_v59 = vld [vmem:[#allocation2 + $0x878] sm:$0xff]  ;;  %v3403_v62 = vcombine.high %v300_v56, %v304_v57  ;;  %v3402_v5 = vcombine.low %v300_v56, %v304_v57 }
 0x13a   :  { %v3405_v63 = vcombine.high %v301_v58, %v305_v59  ;;  %v3404_v6 = vcombine.low %v301_v58, %v305_v59 }
 0x13b   :  { %2765 = vmatpush1.bf16.msra.mxu0 %v3338_v0  ;;  %2918 = vmatpush1.bf16.msra.mxu1 %v3340_v1  ;;  %v308_v0 = vld [vmem:[#allocation2 + $0x890] sm:$0xff] }
 0x13c   :  { %2766 = vmatprep.subr.bf16.mxu0 %v3347_v2  ;;  %2919 = vmatprep.subr.bf16.mxu1 %v3349_v3  ;;  %v312_v1 = vld [vmem:[#allocation2 + $0x8b0] sm:$0xff]  ;;  %v3627_v2 = vld [vmem:[%s3801_s0 + $0x8] ss:$24 sps:$4 sm:$0xff]   ;;  %v309_v3 = vld [vmem:[#allocation2 + $0x898] sm:$0xff] }
 0x13d   :  { %v3411_v7 = vcombine.high %v308_v0, %v312_v1  ;;  %v3410_v12 = vcombine.low %v308_v0, %v312_v1  ;;  %v3412_v13 = vcombine.low %v309_v3, %v313_v4 }
 0x13f   :  { %2767 = vmatpush1.bf16.msra.mxu0 %v3346_v8  ;;  %2920 = vmatpush1.bf16.msra.mxu1 %v3348_v9  ;;  %v3413_v8 = vcombine.high %v309_v3, %v313_v4  ;;  %v316_v9 = vld [vmem:[#allocation2 + $0x8d0] sm:$0xff] }
 0x140   :  { %2768 = vmatprep.subr.bf16.mxu0 %v3355_v10  ;;  %2921 = vmatprep.subr.bf16.mxu1 %v3357_v11  ;;  %v320_v10 = vld [vmem:[#allocation2 + $0x8f0] sm:$0xff]  ;;  %v317_v11 = vld [vmem:[#allocation2 + $0x8d8] sm:$0xff] }
 0x141   :  { %v3419_v14 = vcombine.high %v316_v9, %v320_v10  ;;  %v3418_v30 = vcombine.low %v316_v9, %v320_v10  ;;  %v372_v4 = vld [vmem:[#allocation2 + $0xa90] sm:$0xff] }
 0x143   :  { %2769 = vmatpush1.bf16.msra.mxu0 %v3354_v15  ;;  %2922 = vmatpush1.bf16.msra.mxu1 %v3356_v16  ;;  %v3421_v15 = vcombine.high %v317_v11, %v321_v20  ;;  %v324_v16 = vld [vmem:[#allocation2 + $0x910] sm:$0xff] }
 0x144   :  { %2770 = vmatprep.subr.bf16.mxu0 %v3363_v17  ;;  %2923 = vmatprep.subr.bf16.mxu1 %v3365_v18  ;;  %v328_v17 = vld [vmem:[#allocation2 + $0x930] sm:$0xff]  ;;  %v325_v18 = vld [vmem:[#allocation2 + $0x918] sm:$0xff] }
 0x145   :  { %v3427_v21 = vcombine.high %v324_v16, %v328_v17  ;;  %v3429_v22 = vcombine.high %v325_v18, %v329_v19  ;;  %v3426_v29 = vcombine.low %v324_v16, %v328_v17 }
 0x147   :  { %2771 = vmatpush1.bf16.msra.mxu0 %v3362_v23  ;;  %2924 = vmatpush1.bf16.msra.mxu1 %v3364_v24  ;;  %v332_v23 = vld [vmem:[#allocation2 + $0x950] sm:$0xff] }
 0x148   :  { %2772 = vmatprep.subr.bf16.mxu0 %v3371_v25  ;;  %2925 = vmatprep.subr.bf16.mxu1 %v3373_v26  ;;  %v336_v24 = vld [vmem:[#allocation2 + $0x970] sm:$0xff]  ;;  %v333_v26 = vld [vmem:[#allocation2 + $0x958] sm:$0xff] }
 0x149   :  { %v3628_v25 = vld [vmem:[%s3801_s0 + $0x14] ss:$24 sps:$4 sm:$0xff]   ;;  %v3435_v31 = vcombine.high %v332_v23, %v336_v24  ;;  %v3437_v32 = vcombine.high %v333_v26, %v337_v28  ;;  %v3434_v37 = vcombine.low %v332_v23, %v336_v24  ;;  %v3436_v40 = vcombine.low %v333_v26, %v337_v28 }
 0x14a   :  { %v396_v26 = vld [vmem:[#allocation2 + $0xb50] sm:$0xff] }
 0x14b   :  { %2773 = vmatpush1.bf16.msra.mxu0 %v3370_v33  ;;  %2926 = vmatpush1.bf16.msra.mxu1 %v3372_v34  ;;  %v340_v33 = vld [vmem:[#allocation2 + $0x990] sm:$0xff] }
 0x14c   :  { %2774 = vmatprep.subr.bf16.mxu0 %v3379_v35  ;;  %2927 = vmatprep.subr.bf16.mxu1 %v3381_v36  ;;  %v344_v34 = vld [vmem:[#allocation2 + $0x9b0] sm:$0xff]  ;;  %v341_v35 = vld [vmem:[#allocation2 + $0x998] sm:$0xff] }
 0x14d   :  { %v345_v36 = vld [vmem:[#allocation2 + $0x9b8] sm:$0xff]  ;;  %v3443_v41 = vcombine.high %v340_v33, %v344_v34  ;;  %v3442_v47 = vcombine.low %v340_v33, %v344_v34  ;;  %v400_v28 = vld [vmem:[#allocation2 + $0xb70] sm:$0xff] }
 0x14e   :  { %v3445_v42 = vcombine.high %v341_v35, %v345_v36  ;;  %v3444_v48 = vcombine.low %v341_v35, %v345_v36  ;;  %v3499_v33 = vcombine.high %v396_v26, %v400_v28  ;;  %v404_v35 = vld [vmem:[#allocation2 + $0xb90] sm:$0xff] }
 0x14f   :  { %2775 = vmatpush1.bf16.msra.mxu0 %v3378_v43  ;;  %2928 = vmatpush1.bf16.msra.mxu1 %v3380_v44  ;;  %v348_v43 = vld [vmem:[#allocation2 + $0x9d0] sm:$0xff] }
 0x150   :  { %2776 = vmatprep.subr.bf16.mxu0 %v3387_v45  ;;  %2929 = vmatprep.subr.bf16.mxu1 %v3389_v46  ;;  %v352_v44 = vld [vmem:[#allocation2 + $0x9f0] sm:$0xff]  ;;  %v349_v45 = vld [vmem:[#allocation2 + $0x9d8] sm:$0xff] }
 0x151   :  { %v353_v46 = vld [vmem:[#allocation2 + $0x9f8] sm:$0xff]  ;;  %v3451_v49 = vcombine.high %v348_v43, %v352_v44  ;;  %v3450_v56 = vcombine.low %v348_v43, %v352_v44  ;;  %v408_v36 = vld [vmem:[#allocation2 + $0xbb0] sm:$0xff] }
 0x152   :  { %v3453_v51 = vcombine.high %v349_v45, %v353_v46  ;;  %v3452_v57 = vcombine.low %v349_v45, %v353_v46  ;;  %v3507_v43 = vcombine.high %v404_v35, %v408_v36  ;;  %v412_v45 = vld [vmem:[#allocation2 + $0xbd0] sm:$0xff] }
 0x153   :  { %2777 = vmatpush1.bf16.msra.mxu0 %v3386_v52  ;;  %2930 = vmatpush1.bf16.msra.mxu1 %v3388_v53  ;;  %v356_v52 = vld [vmem:[#allocation2 + $0xa10] sm:$0xff] }
 0x154   :  { %2797 = vmatprep.subr.bf16.mxu0 %v3395_v54  ;;  %2950 = vmatprep.subr.bf16.mxu1 %v3397_v55  ;;  %v360_v53 = vld [vmem:[#allocation2 + $0xa30] sm:$0xff]  ;;  %v357_v54 = vld [vmem:[#allocation2 + $0xa18] sm:$0xff] }
 0x155   :  { %v361_v55 = vld [vmem:[#allocation2 + $0xa38] sm:$0xff]  ;;  %v3459_v58 = vcombine.high %v356_v52, %v360_v53  ;;  %v3458_v0 = vcombine.low %v356_v52, %v360_v53  ;;  %v416_v46 = vld [vmem:[#allocation2 + $0xbf0] sm:$0xff] }
 0x156   :  { %2779 = vmatmul.mubr.bf16.vlgmr.msra.gmra.mrb[8].mxu0 %v3627_v2  ;;  %2932 = vmatmul.mubr.bf16.vlgmr.msra.gmra.mrb[8].mxu1 %v3627_v2  ;;  %v3461_v59 = vcombine.high %v357_v54, %v361_v55  ;;  %v3460_v1 = vcombine.low %v357_v54, %v361_v55  ;;  %v3515_v52 = vcombine.high %v412_v45, %v416_v46 }
 0x157   :  { %2798 = vmatpush1.bf16.msra.mxu0 %v3394_v60  ;;  %2951 = vmatpush1.bf16.msra.mxu1 %v3396_v61  ;;  %v364_v60 = vld [vmem:[#allocation2 + $0xa50] sm:$0xff]  ;;  %v3514_v54 = vcombine.low %v412_v45, %v416_v46 }
 0x158   :  { %2799 = vmatprep.subr.bf16.mxu0 %v3403_v62  ;;  %2952 = vmatprep.subr.bf16.mxu1 %v3405_v63  ;;  %v368_v61 = vld [vmem:[#allocation2 + $0xa70] sm:$0xff]  ;;  %v365_v62 = vld [vmem:[#allocation2 + $0xa58] sm:$0xff] }
 0x159   :  { %2788 = vmatprep.mubr.bf16.mxu0 %v3710_v27  ;;  %2941 = vmatprep.mubr.bf16.mxu1 %v3710_v27  ;;  %v3420_v27 = vcombine.low %v317_v11, %v321_v20  ;;  %v369_v63 = vld [vmem:[#allocation2 + $0xa78] sm:$0xff]  ;;  %v3467_v2 = vcombine.high %v364_v60, %v368_v61  ;;  %v380_v20 = vld [vmem:[#allocation2 + $0xad0] sm:$0xff] }
 0x15a   :  { %v3469_v3 = vcombine.high %v365_v62, %v369_v63  ;;  %v3468_v9 = vcombine.low %v365_v62, %v369_v63 }
 0x15b   :  { %2800 = vmatpush1.bf16.msra.mxu0 %v3402_v5  ;;  %2953 = vmatpush1.bf16.msra.mxu1 %v3404_v6  ;;  %v376_v5 = vld [vmem:[#allocation2 + $0xab0] sm:$0xff]  ;;  %v373_v6 = vld [vmem:[#allocation2 + $0xa98] sm:$0xff] }
 0x15c   :  { %2801 = vmatprep.subr.bf16.mxu0 %v3411_v7  ;;  %2954 = vmatprep.subr.bf16.mxu1 %v3413_v8  ;;  %v377_v7 = vld [vmem:[#allocation2 + $0xab8] sm:$0xff]  ;;  %v3466_v8 = vcombine.low %v364_v60, %v368_v61  ;;  %v3475_v10 = vcombine.high %v372_v4, %v376_v5 }
 0x15d   :  { %v3477_v11 = vcombine.high %v373_v6, %v377_v7  ;;  %v3476_v16 = vcombine.low %v373_v6, %v377_v7 }
 0x15e   :  { %2789 = vmatmul.mubr.bf16.gmra.mrb[12].mxu0 %v3714_v39  ;;  %2942 = vmatmul.mubr.bf16.gmra.mrb[12].mxu1 %v3714_v39  ;;  %v3428_v39 = vcombine.low %v325_v18, %v329_v19  ;;  %v388_v19 = vld [vmem:[#allocation2 + $0xb10] sm:$0xff] }
 0x15f   :  { %2802 = vmatpush1.bf16.msra.mxu0 %v3410_v12  ;;  %2955 = vmatpush1.bf16.msra.mxu1 %v3412_v13  ;;  %v384_v12 = vld [vmem:[#allocation2 + $0xaf0] sm:$0xff]  ;;  %v381_v13 = vld [vmem:[#allocation2 + $0xad8] sm:$0xff] }
 0x160   :  { %2803 = vmatprep.subr.bf16.mxu0 %v3419_v14  ;;  %2956 = vmatprep.subr.bf16.mxu1 %v3421_v15  ;;  %v385_v14 = vld [vmem:[#allocation2 + $0xaf8] sm:$0xff]  ;;  %v3474_v15 = vcombine.low %v372_v4, %v376_v5  ;;  %v3483_v17 = vcombine.high %v380_v20, %v384_v12 }
 0x161   :  { %2829 = vmatprep.mubr.bf16.mxu0 %v3628_v25  ;;  %2982 = vmatprep.mubr.bf16.mxu1 %v3628_v25  ;;  %v3485_v18 = vcombine.high %v381_v13, %v385_v14  ;;  %v3484_v23 = vcombine.low %v381_v13, %v385_v14 }
 0x163   :  { %2804 = vmatpush1.bf16.msra.mxu0 %v3418_v30  ;;  %2957 = vmatpush1.bf16.msra.mxu1 %v3420_v27  ;;  %v392_v30 = vld [vmem:[#allocation2 + $0xb30] sm:$0xff]  ;;  %v389_v27 = vld [vmem:[#allocation2 + $0xb18] sm:$0xff] }
 0x164   :  { %2805 = vmatprep.subr.bf16.mxu0 %v3427_v21  ;;  %2958 = vmatprep.subr.bf16.mxu1 %v3429_v22  ;;  %v393_v21 = vld [vmem:[#allocation2 + $0xb38] sm:$0xff]  ;;  %v3482_v22 = vcombine.low %v380_v20, %v384_v12  ;;  %v3491_v24 = vcombine.high %v388_v19, %v392_v30 }
 0x165   :  { %v3493_v25 = vcombine.high %v389_v27, %v393_v21 }
 0x167   :  { %2806 = vmatpush1.bf16.msra.mxu0 %v3426_v29  ;;  %2959 = vmatpush1.bf16.msra.mxu1 %v3428_v39  ;;  %v397_v29 = vld [vmem:[#allocation2 + $0xb58] sm:$0xff] }
 0x168   :  { %2807 = vmatprep.subr.bf16.mxu0 %v3435_v31  ;;  %2960 = vmatprep.subr.bf16.mxu1 %v3437_v32  ;;  %v401_v39 = vld [vmem:[#allocation2 + $0xb78] sm:$0xff]  ;;  %v3490_v31 = vcombine.low %v388_v19, %v392_v30  ;;  %v3492_v32 = vcombine.low %v389_v27, %v393_v21 }
 0x169   :  { %v3501_v34 = vcombine.high %v397_v29, %v401_v39 }
 0x16b   :  { %2808 = vmatpush1.bf16.msra.mxu0 %v3434_v37  ;;  %2961 = vmatpush1.bf16.msra.mxu1 %v3436_v40  ;;  %v405_v37 = vld [vmem:[#allocation2 + $0xb98] sm:$0xff] }
 0x16c   :  { %2809 = vmatprep.subr.bf16.mxu0 %v3443_v41  ;;  %2962 = vmatprep.subr.bf16.mxu1 %v3445_v42  ;;  %v409_v40 = vld [vmem:[#allocation2 + $0xbb8] sm:$0xff]  ;;  %v3498_v41 = vcombine.low %v396_v26, %v400_v28  ;;  %v3500_v42 = vcombine.low %v397_v29, %v401_v39 }
 0x16d   :  { %v3509_v44 = vcombine.high %v405_v37, %v409_v40 }
 0x16f   :  { %2810 = vmatpush1.bf16.msra.mxu0 %v3442_v47  ;;  %2963 = vmatpush1.bf16.msra.mxu1 %v3444_v48  ;;  %v413_v47 = vld [vmem:[#allocation2 + $0xbd8] sm:$0xff] }
 0x170   :  { %2811 = vmatprep.subr.bf16.mxu0 %v3451_v49  ;;  %2964 = vmatprep.subr.bf16.mxu1 %v3453_v51  ;;  %v417_v48 = vld [vmem:[#allocation2 + $0xbf8] sm:$0xff]  ;;  %v3506_v49 = vcombine.low %v404_v35, %v408_v36  ;;  %v3508_v51 = vcombine.low %v405_v37, %v409_v40 }
 0x171   :  { %v3517_v53 = vcombine.high %v413_v47, %v417_v48  ;;  %v3516_v55 = vcombine.low %v413_v47, %v417_v48 }
 0x173   :  { %2812 = vmatpush1.bf16.msra.mxu0 %v3450_v56  ;;  %2965 = vmatpush1.bf16.msra.mxu1 %v3452_v57  ;;  %v3629_v56 = vld [vmem:[%s3801_s0 + $0x10] ss:$24 sps:$4 sm:$0xff]  }
 0x174   :  { %2813 = vmatprep.subr.bf16.mxu0 %v3459_v58  ;;  %2966 = vmatprep.subr.bf16.mxu1 %v3461_v59 }
 0x177   :  { %2814 = vmatpush1.bf16.msra.mxu0 %v3458_v0  ;;  %2967 = vmatpush1.bf16.msra.mxu1 %v3460_v1 }
 0x178   :  { %2815 = vmatprep.subr.bf16.mxu0 %v3467_v2  ;;  %2968 = vmatprep.subr.bf16.mxu1 %v3469_v3 }
 0x17b   :  { %2816 = vmatpush1.bf16.msra.mxu0 %v3466_v8  ;;  %2969 = vmatpush1.bf16.msra.mxu1 %v3468_v9 }
 0x17c   :  { %2817 = vmatprep.subr.bf16.mxu0 %v3475_v10  ;;  %2970 = vmatprep.subr.bf16.mxu1 %v3477_v11 }
 0x17f   :  { %2818 = vmatpush1.bf16.msra.mxu0 %v3474_v15  ;;  %2971 = vmatpush1.bf16.msra.mxu1 %v3476_v16 }
 0x180   :  { %2819 = vmatprep.subr.bf16.mxu0 %v3483_v17  ;;  %2972 = vmatprep.subr.bf16.mxu1 %v3485_v18 }
 0x183   :  { %2820 = vmatpush1.bf16.msra.mxu0 %v3482_v22  ;;  %2973 = vmatpush1.bf16.msra.mxu1 %v3484_v23 }
 0x184   :  { %2821 = vmatprep.subr.bf16.mxu0 %v3491_v24  ;;  %2974 = vmatprep.subr.bf16.mxu1 %v3493_v25 }
 0x187   :  { %2822 = vmatpush1.bf16.msra.mxu0 %v3490_v31  ;;  %2975 = vmatpush1.bf16.msra.mxu1 %v3492_v32 }
 0x188   :  { %2823 = vmatprep.subr.bf16.mxu0 %v3499_v33  ;;  %2976 = vmatprep.subr.bf16.mxu1 %v3501_v34 }
 0x18b   :  { %2824 = vmatpush1.bf16.msra.mxu0 %v3498_v41  ;;  %2977 = vmatpush1.bf16.msra.mxu1 %v3500_v42 }
 0x18c   :  { %2825 = vmatprep.subr.bf16.mxu0 %v3507_v43  ;;  %2978 = vmatprep.subr.bf16.mxu1 %v3509_v44 }
 0x18f   :  { %2826 = vmatpush1.bf16.msra.mxu0 %v3506_v49  ;;  %2979 = vmatpush1.bf16.msra.mxu1 %v3508_v51 }
 0x190   :  { %2827 = vmatprep.subr.bf16.mxu0 %v3515_v52  ;;  %2980 = vmatprep.subr.bf16.mxu1 %v3517_v53 }
 0x193   :  { %2828 = vmatpush1.bf16.msra.mxu0 %v3514_v54  ;;  %2981 = vmatpush1.bf16.msra.mxu1 %v3516_v55 }
 0x196   :  { %2830 = vmatmul.mubr.bf16.vlgmr.msra.gmra.mrb[8].mxu0 %v3629_v56  ;;  %2983 = vmatmul.mubr.bf16.vlgmr.msra.gmra.mrb[8].mxu1 %v3629_v56 }
 0x197   :  { %2839 = vmatprep.mubr.bf16.mxu0 %v3727_v38  ;;  %2992 = vmatprep.mubr.bf16.mxu1 %v3727_v38 }
 0x19e   :  { %2840 = vmatmul.mubr.bf16.gmra.mrb[12].mxu0 %v3731_v50  ;;  %2993 = vmatmul.mubr.bf16.gmra.mrb[12].mxu1 %v3731_v50 }
 0x1a9   :  { %v2525_v57 = vpop.f32.mrb[0].mxu0  ;;  %v2678_v59 = vpop.f32.mrb[0].mxu1 }
 0x1aa   :  { %v3001_v58 = vmax.f32 %v2525_v57, 0.0  ;;  %v2527_v60 = vpop.f32.mrb[1].mxu0  ;;  %v3003_v61 = vmax.f32 %v2678_v59, 0.0  ;;  %v2680_v63 = vpop.f32.mrb[1].mxu1 }
 0x1ab   :  { %v3002_v62 = vmax.f32 %v2527_v60, 0.0  ;;  %v2529_v0 = vpop.f32.mrb[2].mxu0  ;;  %v3004_v1 = vmax.f32 %v2680_v63, 0.0  ;;  %v2682_v3 = vpop.f32.mrb[2].mxu1 }
 0x1ac   :  { %v3009_v2 = vmax.f32 %v2529_v0, 0.0  ;;  %v2531_v4 = vpop.f32.mrb[3].mxu0  ;;  %v3011_v6 = vmax.f32 %v2682_v3, 0.0  ;;  %v2684_v38 = vpop.f32.mrb[3].mxu1 }
 0x1ad   :  { %v3530_v5 = vpack.c.bf16 %v3002_v62, %v3001_v58  ;;  %v3010_v7 = vmax.f32 %v2531_v4, 0.0  ;;  %v3531_v8 = vpack.c.bf16 %v3004_v1, %v3003_v61  ;;  %v3012_v9 = vmax.f32 %v2684_v38, 0.0 }
 0x1af   :  { %3105 = vst [vmem:[%s3803_s2] sm:$0xff] %v3530_v5  ;;  %v3534_v50 = vpack.c.bf16 %v3010_v7, %v3009_v2  ;;  %3106 = vst [vmem:[%s3803_s2 + $0x8] sm:$0xff] %v3531_v8  ;;  %v3535_v10 = vpack.c.bf16 %v3012_v9, %v3011_v6 }
 0x1b1   :  { %3109 = vst [vmem:[%s3803_s2 + $0x20] sm:$0xff] %v3534_v50  ;;  %v2535_v11 = vpop.f32.mrb[4].mxu0  ;;  %3110 = vst [vmem:[%s3803_s2 + $0x28] sm:$0xff] %v3535_v10  ;;  %v2688_v12 = vpop.f32.mrb[4].mxu1 }
 0x1b2   :  { %v3017_v20 = vmax.f32 %v2535_v11, 0.0  ;;  %v2537_v13 = vpop.f32.mrb[5].mxu0  ;;  %v3019_v14 = vmax.f32 %v2688_v12, 0.0  ;;  %v2690_v16 = vpop.f32.mrb[5].mxu1 }
 0x1b3   :  { %v3018_v15 = vmax.f32 %v2537_v13, 0.0  ;;  %v2539_v17 = vpop.f32.mrb[6].mxu0  ;;  %v3020_v18 = vmax.f32 %v2690_v16, 0.0  ;;  %v2692_v19 = vpop.f32.mrb[6].mxu1 }
 0x1b4   :  { %v2540_v30 = vpop.f32.mrb[7].mxu0  ;;  %v2693_v21 = vpop.f32.mrb[7].mxu1 }
 0x1b5   :  { %v3538_v27 = vpack.c.bf16 %v3018_v15, %v3017_v20  ;;  %v3539_v22 = vpack.c.bf16 %v3020_v18, %v3019_v14 }
 0x1b7   :  { %3113 = vst [vmem:[%s3803_s2 + $0x40] sm:$0xff] %v3538_v27  ;;  %3114 = vst [vmem:[%s3803_s2 + $0x48] sm:$0xff] %v3539_v22 }
 0x269   :  { %v2831_v23 = vpop.f32.mrb[8].mxu0  ;;  %v2984_v25 = vpop.f32.mrb[8].mxu1 }
 0x26a   :  { %v3005_v24 = vmax.f32 %v2831_v23, 0.0  ;;  %v2833_v26 = vpop.f32.mrb[9].mxu0  ;;  %v3007_v28 = vmax.f32 %v2984_v25, 0.0  ;;  %v2986_v39 = vpop.f32.mrb[9].mxu1 }
 0x26b   :  { %v3006_v29 = vmax.f32 %v2833_v26, 0.0  ;;  %v2835_v31 = vpop.f32.mrb[10].mxu0  ;;  %v3008_v32 = vmax.f32 %v2986_v39, 0.0  ;;  %v2988_v34 = vpop.f32.mrb[10].mxu1 }
 0x26c   :  { %v3013_v33 = vmax.f32 %v2835_v31, 0.0  ;;  %v2837_v35 = vpop.f32.mrb[11].mxu0  ;;  %v3015_v37 = vmax.f32 %v2988_v34, 0.0  ;;  %v2990_v41 = vpop.f32.mrb[11].mxu1 }
 0x26d   :  { %v3532_v36 = vpack.c.bf16 %v3006_v29, %v3005_v24  ;;  %v3014_v40 = vmax.f32 %v2837_v35, 0.0  ;;  %v3533_v42 = vpack.c.bf16 %v3008_v32, %v3007_v28  ;;  %v3016_v43 = vmax.f32 %v2990_v41, 0.0 }
 0x26f   :  { %3107 = vst [vmem:[%s3803_s2 + $0x10] sm:$0xff] %v3532_v36  ;;  %v3536_v44 = vpack.c.bf16 %v3014_v40, %v3013_v33  ;;  %3108 = vst [vmem:[%s3803_s2 + $0x18] sm:$0xff] %v3533_v42  ;;  %v3537_v45 = vpack.c.bf16 %v3016_v43, %v3015_v37 }
 0x271   :  { %3111 = vst [vmem:[%s3803_s2 + $0x30] sm:$0xff] %v3536_v44  ;;  %v2841_v46 = vpop.f32.mrb[12].mxu0  ;;  %3112 = vst [vmem:[%s3803_s2 + $0x38] sm:$0xff] %v3537_v45  ;;  %v2994_v48 = vpop.f32.mrb[12].mxu1 }
 0x272   :  { %v3021_v47 = vmax.f32 %v2841_v46, 0.0  ;;  %v2843_v49 = vpop.f32.mrb[13].mxu0  ;;  %v3023_v51 = vmax.f32 %v2994_v48, 0.0  ;;  %v2996_v53 = vpop.f32.mrb[13].mxu1 }
 0x273   :  { %v3022_v52 = vmax.f32 %v2843_v49, 0.0  ;;  %v2845_v54 = vpop.f32.mrb[14].mxu0  ;;  %v3024_v55 = vmax.f32 %v2996_v53, 0.0  ;;  %v2998_v56 = vpop.f32.mrb[14].mxu1 }
 0x274   :  { %v2846_v57 = vpop.f32.mrb[15].mxu0  ;;  %v2999_v59 = vpop.f32.mrb[15].mxu1 }
 0x275   :  { %v3540_v58 = vpack.c.bf16 %v3022_v52, %v3021_v47  ;;  %v3541_v60 = vpack.c.bf16 %v3024_v55, %v3023_v51 }
 0x277   :  { %3115 = vst [vmem:[%s3803_s2 + $0x50] sm:$0xff] %v3540_v58  ;;  %3116 = vst [vmem:[%s3803_s2 + $0x58] sm:$0xff] %v3541_v60 }
 0x278   :  { %3121 = vsyncpa [#allocation3], 1 }

// kernel: forward.5
= control target key start
LH: loop header
LB: loop body
LE: loop exit
PB: predicated region body
PF: predicated region fallthrough
CT: control target
= control target key end

     0   :  { %s4287_s0 = inlined_call_operand.vmem [shape: s32[21], index: 0, kind: input, shape index: {}]   ;;  %s4288_s3 = inlined_call_operand.vmem [shape: bf16[13,8,2048], index: 3, kind: input, shape index: {}]   ;;  %s4289_s4 = inlined_call_operand.vmem [shape: bf16[21,1024,256], index: 4, kind: input, shape index: {}]   ;;  %s4290_s5 = inlined_call_operand.vmem [shape: f32[13,1,256], index: 5, kind: input, shape index: {}]   ;;  %s4291_s6 = inlined_call_operand.vmem [shape: f32[13,1,256], index: 6, kind: input, shape index: {}]   ;;  %s4292_s7 = inlined_call_operand.hbm [shape: bf16[13,256,1152], index: 7, kind: input, shape index: {}]   ;;  %s4293_s8 = inlined_call_operand.vmem [shape: f32[13,1,1152], index: 8, kind: input, shape index: {}]   ;;  %s4294_s9 = inlined_call_operand.vmem [shape: f32[13,8,256], index: 9, kind: output, shape index: {0}]   ;;  %s4295_s10 = inlined_call_operand.vmem [shape: f32[13,8,1152], index: 10, kind: output, shape index: {1}]   ;;  %s4296_s1 = inlined_call_operand.vmem [shape: s32[21], index: 1, kind: input, shape index: {}]   ;;  %s4297_s2 = inlined_call_operand.vmem [shape: s32[21], index: 2, kind: input, shape index: {}]  }
   0x1   :  { %4301 = sst [smem:[#allocation16_spill]] %s4288_s3  ;;  %s16_s15 = sshll.u32 %s4287_s0, 4  ;;  %s17_s15 = int_to_ptr.vmem [resolvable:$true] %s16_s15 }
   0x2   :  { %4302 = sst [smem:[#allocation17_spill]] %s4292_s7  ;;  %s20_s18 = sshll.u32 %s4296_s1, 4  ;;  %s21_s18 = int_to_ptr.vmem [resolvable:$true] %s20_s18 }
   0x3   :  { %s3618_s19 = scalar_lea.vmem %s17_s15, 16  ;;  %p3623_p1 = scmp.lt.s32.totalorder %s17_s15, %s17_s15 }
   0x4   :  { %p3619_p0 = scmp.ne.s32.totalorder %s17_s15, %s3618_s19  ;;  %p3624_p2 = scmp.lt.s32.totalorder %s3618_s19, %s3618_s19 }
   0x6   :  { %p3625_p3 = por %p3624_p2, %p3623_p1 }
   0x8   :  { %p3626_p4 = pnand %p3625_p3, %p3619_p0 }
   0xa   :  { %3629 = shalt.err (!%p3626_p4)  }
   0xb   :  { %s3722_s20 = smov [#allocation4]   ;;  %s3630_s21 = scalar_lea.vmem %s21_s18, 16 }
   0xc   :  { %19 = dma.vmem_to_smem %s17_s15, 16, %s3722_s20, [#allocation3] }
   0xd   :  { %p3631_p5 = scmp.ne.s32.totalorder %s21_s18, %s3630_s21  ;;  %p3635_p6 = scmp.lt.s32.totalorder %s21_s18, %s21_s18 }
   0xe   :  { %p3636_p7 = scmp.lt.s32.totalorder %s3630_s21, %s3630_s21 }
  0x10   :  { %p3637_p8 = por %p3636_p7, %p3635_p6 }
  0x12   :  { %p3638_p9 = pnand %p3637_p8, %p3631_p5 }
  0x14   :  { %3641 = shalt.err (!%p3638_p9)  }
  0x15   :  { %s3723_s0 = smov [#allocation5]   ;;  %s24_s23 = sshll.u32 %s4297_s2, 4  ;;  %s25_s23 = int_to_ptr.vmem [resolvable:$true] %s24_s23 }
  0x16   :  { %23 = dma.vmem_to_smem %s21_s18, 16, %s3723_s0, [#allocation3] }
  0x17   :  { %s3642_s24 = scalar_lea.vmem %s25_s23, 16  ;;  %p3647_p11 = scmp.lt.s32.totalorder %s25_s23, %s25_s23 }
  0x18   :  { %p3643_p10 = scmp.ne.s32.totalorder %s25_s23, %s3642_s24  ;;  %p3648_p12 = scmp.lt.s32.totalorder %s3642_s24, %s3642_s24 }
  0x1a   :  { %p3649_p13 = por %p3648_p12, %p3647_p11 }
  0x1c   :  { %p3650_p0 = pnand %p3649_p13, %p3643_p10 }
  0x1e   :  { %3653 = shalt.err (!%p3650_p0)  }
  0x1f   :  { %s3724_s25 = smov [#allocation6]  }
  0x20   :  { %27 = dma.vmem_to_smem %s25_s23, 16, %s3724_s25, [#allocation3] }
  0x21   :  { %3700 = dma.done.wait [#allocation3], 48 }
  0x22   :  { %3701 = vsyncadd [#allocation3], 4294967248 }
  0x23   :  { %29 = sfence }
  0x24   :  { %30 = vsyncpa [#allocation8], 0 }
  0x25   :  { %32 = vsyncpa [#allocation8 + $0x1], 0  ;;  %s3793_s26 = smov 0   ;;  %s3795_s27 = smov 0  }
  0x26   :  { %s3797_s2 = smov 0   ;;  %s3799_s28 = smov 0  }
  0x27 LB: > { %4303 = sst [smem:[#allocation13_spill]] %s3712_s27  ;;  %s3809_s29 = sadd.s32 4294967295, %s3720_s28   ;;  %s3720_s28 = sphi %s3799_s28, %s4315_s28   ;;  %s3716_s2 = sphi %s3797_s2, %s4314_s2   ;;  %s3712_s27 = sphi %s3795_s27, %s4313_s27   ;;  %s3708_s26 = sphi %s3793_s26, %s4312_s26  }
  0x28   : > { %4304 = sst [smem:[#allocation14_spill]] %s3716_s2  ;;  %s3811_s30 = sadd.s32 1, %s3720_s28  }
  0x29   : > { %s156_s11 = sld [smem:[#allocation4 + %s3720_s28]]  ;;  %p168_p1 = scmp.ne.s32.totalorder %s3716_s2, %s3712_s27 }
  0x2a   : > { %s157_s12 = sld [smem:[#allocation4 + %s3811_s30]]  ;;  %p169_p2 = scmp.eq.s32.totalorder %s3720_s28, 0 }
  0x2b   : > { %p174_p3 = scmp.ne.s32.totalorder %s3712_s27, %s3708_s26  ;;  %p175_p4 = scmp.eq.s32.totalorder %s3809_s29, 0 }
  0x2c   : > { %s161_s13 = sadd.s32 1, %s3716_s2  ;;  %p170_p5 = por %p169_p2, %p168_p1 }
  0x2d   : > { %p3819_p6 = por %p175_p4, %p174_p3  ;;  %s325_s15 = sand.u32 1, %s3716_s2  }
  0x2e   : > { %p3171_p7 = scmp.lt.s32.totalorder %s3720_s28, 21  ;;  %s3156_s17 = smul.u32 1152, %s325_s15 }
  0x2f   : > { %s4305_s14 = scalar_select %p3819_p6, 1, 0 }
  0x30   : > { %s158_s16 = ssub.s32 %s156_s11, %s157_s12  ;;  %p3827_p9 = pnand %p3171_p7, %p170_p5 }
  0x31   : > { %p159_p8 = scmp.eq.s32.totalorder %s158_s16, 0  ;;  %s329_s1 = scalar_lea.vmem [#allocation7], %s3156_s17 }
  0x32   : > { %s3161_s18 = scalar_select %p170_p5, [#allocation4], [#allocation9] }
  0x33   : > { %s3825_s19 = scalar_select %p159_p8, %s3716_s2, %s161_s13  }
  0x34   : > { %s3162_s21 = scalar_select %p170_p5, %s3720_s28, 0 }
  0x35   : > { %4306 = sst [smem:[#allocation15_spill]] %s3825_s19  ;;  %s4317_s18 = smov (!%p3171_p7, %s3161_s18), [#allocation10] }
  0x36   : > { %s4319_s21 = smov (!%p3171_p7, %s3162_s21), 0  ;;  %s337_s22 = sshll.u32 %s329_s1, 4  ;;  %s3835_s22 = int_to_ptr.vmem [resolvable:$true] %s337_s22 }
  0x37   : > { %s330_s0 = sld [smem:[%s4317_s18 + %s4319_s21]]  ;;  %p2836_p10 = scmp.ge.s32.totalorder %s3720_s28, 1 }
  0x38   : > { %p354_p11 = scmp.lt.s32.totalorder %s3720_s28, 22  ;;  %s4309_s7 = sld [smem:[#allocation17_spill]] }
  0x39   : > { %s3842_s12 = scalar_lea.sflag [#allocation8], %s325_s15  ;;  %p3656_p0 = pneg %p3827_p9 }
  0x3a   : > { %p3831_p12 = pnand %p2836_p10, %p354_p11 }
  0x3d   : > { %s3157_s24 = smul.u32 18432, %s330_s0 }
  0x3e   : > { %s3659_s17 = scalar_lea.hbm %s4309_s7, 239616 }
  0x3f   : > { %s3840_s11 = scalar_lea.hbm %s4309_s7, %s3157_s24 }
  0x40   : > { %s3654_s13 = scalar_lea.hbm %s3840_s11, 18432  ;;  %p3660_p3 = scmp.lt.u32.totalorder %s3840_s11, %s4309_s7 }
  0x41   : > { %p3655_p13 = scmp.ne.s32.totalorder %s3840_s11, %s3654_s13  ;;  %p3661_p4 = scmp.lt.u32.totalorder %s3659_s17, %s3654_s13 }
  0x42   : > { %p3663_p7 = scmp.lt.u32.totalorder %s3654_s13, %s3840_s11 }
  0x43   : > { %p3657_p1 = pnand %p3656_p0, %p3655_p13  ;;  %p3662_p5 = por %p3661_p4, %p3660_p3 }
  0x45   : > { %p3658_p2 = pneg %p3657_p1  ;;  %p3664_p8 = por %p3663_p7, %p3662_p5 }
  0x47   : > { %p3665_p10 = pnand %p3664_p8, %p3658_p2 }
  0x49   : > { %3668 = shalt.err (!%p3665_p10)
}
  0x4a   : > { %s3669_s15 = scalar_lea.vmem %s3835_s22, 18432  ;;  %s3725_s0 = smov [#allocation7]  }
  0x4b   : > { %p3670_p11 = scmp.ne.s32.totalorder %s3835_s22, %s3669_s15  ;;  %s3674_s1 = sshll.u32 %s3725_s0, 4  ;;  %s3675_s1 = int_to_ptr.vmem [resolvable:$false] %s3674_s1 }
  0x4c   : > { %s3676_s24 = scalar_lea.vmem %s3675_s1, 36864  ;;  %p3677_p6 = scmp.lt.s32.totalorder %s3835_s22, %s3675_s1 }
  0x4d   : > { %p3672_p13 = pnand %p3670_p11, %p3656_p0  ;;  %p3678_p3 = scmp.lt.s32.totalorder %s3676_s24, %s3669_s15 }
  0x4f   : > { %p3673_p1 = pneg %p3672_p13  ;;  %p3679_p4 = por %p3678_p3, %p3677_p6 }
  0x51   : > { %p3680_p5 = pnand %p3679_p4, %p3673_p1 }
  0x53   : > { %3683 = shalt.err (!%p3680_p5)
}
  0x54   : > { %s3726_s25 = smov 576   ;;  %s3727_s26 = smov 36  }
  0x55   : > { %3170 = dma.hbm_to_vmem [thread:$0]  (!%p3827_p9), %s3840_s11, 18432, %s3835_s22, %s3842_s12, %s3726_s25, %s3726_s25, %s3727_s26  }
  0x56   : > { %358 = sbr.rel (%p3831_p12) target bundleno = 811 (0x32b), region = 44  ;;  %s360_s13 = sand.u32 (!%p3831_p12), 1, %s3712_s27  }
  0x57   : > { %s3158_s28 = smul.u32 (!%p3831_p12), 1152, %s360_s13  ;;  %s361_s16 = scalar_lea.sflag (!%p3831_p12), [#allocation8], %s360_s13 }
  0x58   : > { %p4310_p6 = scmp.ne.s32.totalorder (!%p3831_p12), %s4305_s14, 0 }
  0x59   : > { %s3873_s17 = scalar_lea.vmem (!%p3831_p12), [#allocation7], %s3158_s28 }
  0x5d   : > { %3703 = dma.done.wait (%p4310_p6), %s361_s16, 18432  }
  0x5e   : > { %3705 = vsyncadd (%p4310_p6), %s361_s16, 4294948864  ;;  %s433_s20 = sld [smem:[#allocation4 + %s3809_s29]]  ;;  %p447_p9 = scmp.lt.s32.totalorder %s3809_s29, 20 }
  0x5f   : > { %s434_s22 = sld [smem:[#allocation5 + %s3809_s29]] }
  0x60   : > { %s452_s23 = sld [smem:[#allocation4 + %s3809_s29]] }
  0x61   : > { %s458_s11 = sld [smem:[#allocation4 + %s3809_s29]] }
  0x62   : > { %s465_s12 = sld [smem:[#allocation4 + %s3809_s29]] }
  0x63   : > { %s3886_s18 = sld [smem:[#allocation5 + %s3809_s29]] }
  0x64   : > { %s471_s14 = sld [smem:[#allocation4 + %s3809_s29]]  ;;  %p436_p12 = scmp.lt.s32.totalorder %s433_s20, 12 }
  0x65   : > { %s3890_s21 = sld [smem:[#allocation4 + %s3809_s29]]  ;;  %s2837_s0 = sshll.u32 %s434_s22, 3 }
  0x66   : > { %s448_s15 = scalar_select %p447_p9, %s3809_s29, 20 }
  0x67   : > { %p438_p0 = scmp.lt.s32.totalorder %s2837_s0, 15  ;;  %p453_p2 = scmp.lt.s32.totalorder %s452_s23, 12 }
  0x68   : > { %s4321_s20 = smov (!%p436_p12, %s433_s20), 12  ;;  %p459_p7 = scmp.lt.s32.totalorder %s458_s11, 12 }
  0x69   : > { %s4323_s0 = smov (!%p438_p0, %s2837_s0), 15  ;;  %s2838_s1 = sshll.u32 %s4321_s20, 4 }
  0x6a   : > { %s441_s24 = sadd.s32 %s2838_s1, %s4323_s0  ;;  %p466_p8 = scmp.lt.s32.totalorder %s465_s12, 12 }
  0x6b   : > { %s2839_s25 = sshll.u32 %s441_s24, 2  ;;  %p472_p10 = scmp.lt.s32.totalorder %s471_s14, 12 }
  0x6c   : > { %s4311_s3 = sld [smem:[#allocation16_spill]]  ;;  %p479_p11 = scmp.lt.s32.totalorder %s3890_s21, 12 }
  0x6d   : > { %s4325_s23 = smov (!%p453_p2, %s452_s23), 12  ;;  %s4327_s11 = smov (!%p459_p7, %s458_s11), 12 }
  0x6e   : > { %s2842_s16 = sshll.u32 %s4325_s23, 1  ;;  %s3132_s22 = sshll.u32 %s448_s15, 10 }
  0x6f   : > { %s3902_s20 = scalar_lea.vmem %s4290_s5, %s2842_s16  ;;  %s2843_s0 = sshll.u32 %s4327_s11, 1 }
  0x70   : > { %s3907_s2 = scalar_lea.vmem %s4291_s6, %s2843_s0  ;;  %s3912_s13 = scalar_lea.vmem %s4289_s4, %s3132_s22 }
  0x71   : > { %s4329_s12 = smov (!%p466_p8, %s465_s12), 12  ;;  %s4331_s14 = smov (!%p472_p10, %s471_s14), 12 }
  0x72   : > { %s3896_s28 = scalar_lea.vmem %s4311_s3, %s2839_s25  ;;  %s3159_s23 = smul.u32 9, %s4329_s12 }
  0x73   : > { %s3133_s15 = sshll.u32 %s4331_s14, 4  ;;  %s4333_s21 = smov (!%p479_p11, %s3890_s21), 12 }
  0x74   : > { %s3917_s7 = scalar_lea.vmem %s4293_s8, %s3159_s23  ;;  %s3922_s16 = scalar_lea.vmem %s4294_s9, %s3133_s15 }
  0x75   : > { %s3160_s0 = smul.u32 72, %s4333_s21  ;;  %p2847_p13 = scmp.ne.s32.totalorder %s3886_s18, 0 }
  0x76   : > { %v3728_v0 = vmov (!%p2847_p13), 0.0  }
  0x77   : > { %s3930_s24 = scalar_lea.vmem %s4295_s10, %s3160_s0  ;;  %490 = sbr.rel (%p2847_p13) target bundleno = 126 (0x7e), region = 52  ;;  %491 = vst [vmem:[#allocation2] sm:$0xff] (!%p2847_p13), %v3728_v0  ;;  %492 = vst [vmem:[#allocation2 + $0x8] sm:$0xff] (!%p2847_p13), %v3728_v0 }
  0x7e PF: > { %v3210_v1 = vld [vmem:[%s3912_s13 + $0x4] ss:$8 sps:$4 sm:$0xff]   ;;  %v3214_v3 = vld [vmem:[%s3912_s13] ss:$8 sps:$4 sm:$0xff]   ;;  %v3216_v5 = vld [vmem:[%s3912_s13 + $0x14] ss:$8 sps:$4 sm:$0xff]  }
  0x7f   : > { %v3212_v2 = vld [vmem:[%s3912_s13 + $0x104] ss:$8 sps:$4 sm:$0xff]   ;;  %1295 = vmatprep.subr.bf16.mxu0 %v3210_v1  ;;  %v3215_v4 = vld [vmem:[%s3912_s13 + $0x100] ss:$8 sps:$4 sm:$0xff]   ;;  %v3218_v6 = vld [vmem:[%s3912_s13 + $0x114] ss:$8 sps:$4 sm:$0xff]  }
  0x80   : > { %1336 = vmatprep.subr.bf16.mxu1 %v3212_v2  ;;  %1296 = vmatpush1.bf16.msra.mxu0 %v3214_v3  ;;  %v3220_v7 = vld [vmem:[%s3912_s13 + $0x10] ss:$8 sps:$4 sm:$0xff]   ;;  %v3222_v9 = vld [vmem:[%s3912_s13 + $0x24] ss:$8 sps:$4 sm:$0xff]   ;;  %v3226_v11 = vld [vmem:[%s3912_s13 + $0x20] ss:$8 sps:$4 sm:$0xff]  }
  0x81   : > { %1337 = vmatpush1.bf16.msra.mxu1 %v3215_v4  ;;  %1297 = vmatprep.subr.bf16.mxu0 %v3216_v5  ;;  %v3221_v8 = vld [vmem:[%s3912_s13 + $0x110] ss:$8 sps:$4 sm:$0xff]   ;;  %v3224_v10 = vld [vmem:[%s3912_s13 + $0x124] ss:$8 sps:$4 sm:$0xff]   ;;  %v3227_v12 = vld [vmem:[%s3912_s13 + $0x120] ss:$8 sps:$4 sm:$0xff]  }
  0x82   : > { %1338 = vmatprep.subr.bf16.mxu1 %v3218_v6  ;;  %v3228_v13 = vld [vmem:[%s3912_s13 + $0x34] ss:$8 sps:$4 sm:$0xff]   ;;  %v3232_v15 = vld [vmem:[%s3912_s13 + $0x30] ss:$8 sps:$4 sm:$0xff]   ;;  %v3234_v17 = vld [vmem:[%s3912_s13 + $0x44] ss:$8 sps:$4 sm:$0xff]  }
  0x83   : > { %v3230_v14 = vld [vmem:[%s3912_s13 + $0x134] ss:$8 sps:$4 sm:$0xff]   ;;  %v3233_v16 = vld [vmem:[%s3912_s13 + $0x130] ss:$8 sps:$4 sm:$0xff]   ;;  %v3236_v18 = vld [vmem:[%s3912_s13 + $0x144] ss:$8 sps:$4 sm:$0xff]  }
  0x84   : > { %1298 = vmatpush1.bf16.msra.mxu0 %v3220_v7  ;;  %v3238_v19 = vld [vmem:[%s3912_s13 + $0x40] ss:$8 sps:$4 sm:$0xff]   ;;  %v3240_v21 = vld [vmem:[%s3912_s13 + $0x54] ss:$8 sps:$4 sm:$0xff]   ;;  %v3244_v23 = vld [vmem:[%s3912_s13 + $0x50] ss:$8 sps:$4 sm:$0xff]  }
  0x85   : > { %1339 = vmatpush1.bf16.msra.mxu1 %v3221_v8  ;;  %1299 = vmatprep.subr.bf16.mxu0 %v3222_v9  ;;  %v3239_v20 = vld [vmem:[%s3912_s13 + $0x140] ss:$8 sps:$4 sm:$0xff]   ;;  %v3242_v22 = vld [vmem:[%s3912_s13 + $0x154] ss:$8 sps:$4 sm:$0xff]   ;;  %v3245_v24 = vld [vmem:[%s3912_s13 + $0x150] ss:$8 sps:$4 sm:$0xff]  }
  0x86   : > { %1340 = vmatprep.subr.bf16.mxu1 %v3224_v10  ;;  %v3246_v25 = vld [vmem:[%s3912_s13 + $0x64] ss:$8 sps:$4 sm:$0xff]   ;;  %v3250_v27 = vld [vmem:[%s3912_s13 + $0x60] ss:$8 sps:$4 sm:$0xff]   ;;  %v3252_v29 = vld [vmem:[%s3912_s13 + $0x74] ss:$8 sps:$4 sm:$0xff]  }
  0x87   : > { %v3248_v26 = vld [vmem:[%s3912_s13 + $0x164] ss:$8 sps:$4 sm:$0xff]   ;;  %v3251_v28 = vld [vmem:[%s3912_s13 + $0x160] ss:$8 sps:$4 sm:$0xff]   ;;  %v3254_v30 = vld [vmem:[%s3912_s13 + $0x174] ss:$8 sps:$4 sm:$0xff]  }
  0x88   : > { %1300 = vmatpush1.bf16.msra.mxu0 %v3226_v11  ;;  %v3256_v31 = vld [vmem:[%s3912_s13 + $0x70] ss:$8 sps:$4 sm:$0xff]   ;;  %v3258_v33 = vld [vmem:[%s3912_s13 + $0x84] ss:$8 sps:$4 sm:$0xff]   ;;  %v3262_v35 = vld [vmem:[%s3912_s13 + $0x80] ss:$8 sps:$4 sm:$0xff]  }
  0x89   : > { %1341 = vmatpush1.bf16.msra.mxu1 %v3227_v12  ;;  %1301 = vmatprep.subr.bf16.mxu0 %v3228_v13  ;;  %v3257_v32 = vld [vmem:[%s3912_s13 + $0x170] ss:$8 sps:$4 sm:$0xff]   ;;  %v3260_v34 = vld [vmem:[%s3912_s13 + $0x184] ss:$8 sps:$4 sm:$0xff]   ;;  %v3263_v36 = vld [vmem:[%s3912_s13 + $0x180] ss:$8 sps:$4 sm:$0xff]  }
  0x8a   : > { %1342 = vmatprep.subr.bf16.mxu1 %v3230_v14  ;;  %v3264_v37 = vld [vmem:[%s3912_s13 + $0x94] ss:$8 sps:$4 sm:$0xff]   ;;  %v3268_v39 = vld [vmem:[%s3912_s13 + $0x90] ss:$8 sps:$4 sm:$0xff]   ;;  %v3270_v41 = vld [vmem:[%s3912_s13 + $0xa4] ss:$8 sps:$4 sm:$0xff]  }
  0x8b   : > { %v3266_v38 = vld [vmem:[%s3912_s13 + $0x194] ss:$8 sps:$4 sm:$0xff]   ;;  %v3269_v40 = vld [vmem:[%s3912_s13 + $0x190] ss:$8 sps:$4 sm:$0xff]   ;;  %v3272_v42 = vld [vmem:[%s3912_s13 + $0x1a4] ss:$8 sps:$4 sm:$0xff]  }
  0x8c   : > { %1302 = vmatpush1.bf16.msra.mxu0 %v3232_v15  ;;  %v3274_v43 = vld [vmem:[%s3912_s13 + $0xa0] ss:$8 sps:$4 sm:$0xff]   ;;  %v3276_v45 = vld [vmem:[%s3912_s13 + $0xb4] ss:$8 sps:$4 sm:$0xff]   ;;  %v3280_v50 = vld [vmem:[%s3912_s13 + $0xb0] ss:$8 sps:$4 sm:$0xff]  }
  0x8d   : > { %1343 = vmatpush1.bf16.msra.mxu1 %v3233_v16  ;;  %1303 = vmatprep.subr.bf16.mxu0 %v3234_v17  ;;  %v3275_v44 = vld [vmem:[%s3912_s13 + $0x1a0] ss:$8 sps:$4 sm:$0xff]   ;;  %v3278_v46 = vld [vmem:[%s3912_s13 + $0x1b4] ss:$8 sps:$4 sm:$0xff]   ;;  %v3281_v51 = vld [vmem:[%s3912_s13 + $0x1b0] ss:$8 sps:$4 sm:$0xff]  }
  0x8e   : > { %1344 = vmatprep.subr.bf16.mxu1 %v3236_v18  ;;  %v495_v47 = vld [vmem:[%s3896_s28] sm:$0xff]  ;;  %v496_v49 = vld [vmem:[%s3896_s28 + $0x8] sm:$0xff]  ;;  %v3288_v57 = vld [vmem:[%s3912_s13 + $0xd4] ss:$8 sps:$4 sm:$0xff]   ;;  %s4078_s3 = sld [smem:[#allocation6 + %s3809_s29]] }
  0x8f   : > { %v2849_v48 = vcombine.high %v495_v47, %v495_v47  ;;  %v2851_v52 = vcombine.high %v496_v49, %v496_v49  ;;  %v3282_v53 = vld [vmem:[%s3912_s13 + $0xc4] ss:$8 sps:$4 sm:$0xff]   ;;  %v3286_v55 = vld [vmem:[%s3912_s13 + $0xc0] ss:$8 sps:$4 sm:$0xff]   ;;  %v3290_v58 = vld [vmem:[%s3912_s13 + $0x1d4] ss:$8 sps:$4 sm:$0xff]   ;;  %v2848_v7 = vcombine.low %v495_v47, %v495_v47  ;;  %v2850_v8 = vcombine.low %v496_v49, %v496_v49 }
  0x90   : > { %1304 = vmatpush1.bf16.msra.mxu0 %v3238_v19  ;;  %v3284_v54 = vld [vmem:[%s3912_s13 + $0x1c4] ss:$8 sps:$4 sm:$0xff]   ;;  %v3287_v56 = vld [vmem:[%s3912_s13 + $0x1c0] ss:$8 sps:$4 sm:$0xff]   ;;  %v3292_v59 = vld [vmem:[%s3912_s13 + $0xd0] ss:$8 sps:$4 sm:$0xff]  }
  0x91   : > { %1345 = vmatpush1.bf16.msra.mxu1 %v3239_v20  ;;  %1305 = vmatprep.subr.bf16.mxu0 %v3240_v21  ;;  %v3293_v60 = vld [vmem:[%s3912_s13 + $0x1d0] ss:$8 sps:$4 sm:$0xff]   ;;  %v3294_v61 = vld [vmem:[%s3912_s13 + $0xe4] ss:$8 sps:$4 sm:$0xff]   ;;  %v3298_v63 = vld [vmem:[%s3912_s13 + $0xe0] ss:$8 sps:$4 sm:$0xff]  }
  0x92   : > { %1346 = vmatprep.subr.bf16.mxu1 %v3242_v22  ;;  %1327 = vmatprep.mubr.bf16.mxu0 %v2849_v48  ;;  %v3296_v62 = vld [vmem:[%s3912_s13 + $0x1e4] ss:$8 sps:$4 sm:$0xff]   ;;  %v3299_v0 = vld [vmem:[%s3912_s13 + $0x1e0] ss:$8 sps:$4 sm:$0xff]   ;;  %v3300_v1 = vld [vmem:[%s3912_s13 + $0xf4] ss:$8 sps:$4 sm:$0xff]  }
  0x93   : > { %1368 = vmatprep.mubr.bf16.mxu1 %v2851_v52  ;;  %v3302_v2 = vld [vmem:[%s3912_s13 + $0x1f4] ss:$8 sps:$4 sm:$0xff]   ;;  %v3304_v3 = vld [vmem:[%s3912_s13 + $0xf0] ss:$8 sps:$4 sm:$0xff]   ;;  %v3312_v5 = vld [vmem:[%s3912_s13 + $0x204] ss:$8 sps:$4 sm:$0xff]  }
  0x94   : > { %1306 = vmatpush1.bf16.msra.mxu0 %v3244_v23  ;;  %v3305_v4 = vld [vmem:[%s3912_s13 + $0x1f0] ss:$8 sps:$4 sm:$0xff]   ;;  %v3315_v6 = vld [vmem:[%s3912_s13 + $0x304] ss:$8 sps:$4 sm:$0xff]   ;;  %v3310_v9 = vld [vmem:[%s3912_s13 + $0x200] ss:$8 sps:$4 sm:$0xff]  }
  0x95   : > { %1347 = vmatpush1.bf16.msra.mxu1 %v3245_v24  ;;  %1307 = vmatprep.subr.bf16.mxu0 %v3246_v25  ;;  %v3313_v10 = vld [vmem:[%s3912_s13 + $0x300] ss:$8 sps:$4 sm:$0xff]   ;;  %v3318_v11 = vld [vmem:[%s3912_s13 + $0x214] ss:$8 sps:$4 sm:$0xff]   ;;  %v3316_v13 = vld [vmem:[%s3912_s13 + $0x210] ss:$8 sps:$4 sm:$0xff]  }
  0x96   : > { %1348 = vmatprep.subr.bf16.mxu1 %v3248_v26  ;;  %v3321_v12 = vld [vmem:[%s3912_s13 + $0x314] ss:$8 sps:$4 sm:$0xff]   ;;  %v3319_v14 = vld [vmem:[%s3912_s13 + $0x310] ss:$8 sps:$4 sm:$0xff]   ;;  %v3324_v15 = vld [vmem:[%s3912_s13 + $0x224] ss:$8 sps:$4 sm:$0xff]  }
  0x97   : > { %v3327_v16 = vld [vmem:[%s3912_s13 + $0x324] ss:$8 sps:$4 sm:$0xff]   ;;  %v3322_v17 = vld [vmem:[%s3912_s13 + $0x220] ss:$8 sps:$4 sm:$0xff]   ;;  %v3330_v19 = vld [vmem:[%s3912_s13 + $0x234] ss:$8 sps:$4 sm:$0xff]  }
  0x98   : > { %1308 = vmatpush1.bf16.msra.mxu0 %v3250_v27  ;;  %v3325_v18 = vld [vmem:[%s3912_s13 + $0x320] ss:$8 sps:$4 sm:$0xff]   ;;  %v3333_v20 = vld [vmem:[%s3912_s13 + $0x334] ss:$8 sps:$4 sm:$0xff]   ;;  %v3328_v21 = vld [vmem:[%s3912_s13 + $0x230] ss:$8 sps:$4 sm:$0xff]  }
  0x99   : > { %1349 = vmatpush1.bf16.msra.mxu1 %v3251_v28  ;;  %1309 = vmatprep.subr.bf16.mxu0 %v3252_v29  ;;  %v3331_v22 = vld [vmem:[%s3912_s13 + $0x330] ss:$8 sps:$4 sm:$0xff]   ;;  %v3336_v23 = vld [vmem:[%s3912_s13 + $0x244] ss:$8 sps:$4 sm:$0xff]   ;;  %v3334_v25 = vld [vmem:[%s3912_s13 + $0x240] ss:$8 sps:$4 sm:$0xff]  }
  0x9a   : > { %1350 = vmatprep.subr.bf16.mxu1 %v3254_v30  ;;  %v3339_v24 = vld [vmem:[%s3912_s13 + $0x344] ss:$8 sps:$4 sm:$0xff]   ;;  %v3337_v26 = vld [vmem:[%s3912_s13 + $0x340] ss:$8 sps:$4 sm:$0xff]   ;;  %v3342_v27 = vld [vmem:[%s3912_s13 + $0x254] ss:$8 sps:$4 sm:$0xff]  }
  0x9b   : > { %v3345_v28 = vld [vmem:[%s3912_s13 + $0x354] ss:$8 sps:$4 sm:$0xff]   ;;  %v3340_v29 = vld [vmem:[%s3912_s13 + $0x250] ss:$8 sps:$4 sm:$0xff]   ;;  %v3375_v52 = vld [vmem:[%s3912_s13 + $0x3a4] ss:$8 sps:$4 sm:$0xff]  }
  0x9c   : > { %1310 = vmatpush1.bf16.msra.mxu0 %v3256_v31  ;;  %v3343_v30 = vld [vmem:[%s3912_s13 + $0x350] ss:$8 sps:$4 sm:$0xff]   ;;  %v3348_v31 = vld [vmem:[%s3912_s13 + $0x264] ss:$8 sps:$4 sm:$0xff]   ;;  %v3366_v47 = vld [vmem:[%s3912_s13 + $0x294] ss:$8 sps:$4 sm:$0xff]  }
  0x9d   : > { %1351 = vmatpush1.bf16.msra.mxu1 %v3257_v32  ;;  %1311 = vmatprep.subr.bf16.mxu0 %v3258_v33  ;;  %v3351_v32 = vld [vmem:[%s3912_s13 + $0x364] ss:$8 sps:$4 sm:$0xff]   ;;  %v4026_v33 = vld [vmem:[%s3896_s28 + $0x10] sm:$0xff]  ;;  %p2984_p1 = scmp.ne.s32.totalorder %s4078_s3, 1 }
  0x9e   : > { %1352 = vmatprep.subr.bf16.mxu1 %v3260_v34  ;;  %v4029_v34 = vld [vmem:[%s3896_s28 + $0x18] sm:$0xff] }
  0x9f   : > { %v3369_v48 = vld [vmem:[%s3912_s13 + $0x394] ss:$8 sps:$4 sm:$0xff]   ;;  %v3364_v49 = vld [vmem:[%s3912_s13 + $0x290] ss:$8 sps:$4 sm:$0xff]  }
  0xa0   : > { %1312 = vmatpush1.bf16.msra.mxu0 %v3262_v35  ;;  %v2853_v35 = vcombine.high %v4026_v33, %v4026_v33 }
  0xa1   : > { %1353 = vmatpush1.bf16.msra.mxu1 %v3263_v36  ;;  %1313 = vmatprep.subr.bf16.mxu0 %v3264_v37  ;;  %v2855_v36 = vcombine.high %v4029_v34, %v4029_v34  ;;  %v3346_v37 = vld [vmem:[%s3912_s13 + $0x260] ss:$8 sps:$4 sm:$0xff]  }
  0xa2   : > { %1354 = vmatprep.subr.bf16.mxu1 %v3266_v38  ;;  %v3349_v38 = vld [vmem:[%s3912_s13 + $0x360] ss:$8 sps:$4 sm:$0xff]  }
  0xa4   : > { %1314 = vmatpush1.bf16.msra.mxu0 %v3268_v39  ;;  %v3354_v39 = vld [vmem:[%s3912_s13 + $0x274] ss:$8 sps:$4 sm:$0xff]  }
  0xa5   : > { %1355 = vmatpush1.bf16.msra.mxu1 %v3269_v40  ;;  %1315 = vmatprep.subr.bf16.mxu0 %v3270_v41  ;;  %v3357_v40 = vld [vmem:[%s3912_s13 + $0x374] ss:$8 sps:$4 sm:$0xff]   ;;  %v3352_v41 = vld [vmem:[%s3912_s13 + $0x270] ss:$8 sps:$4 sm:$0xff]  }
  0xa6   : > { %1356 = vmatprep.subr.bf16.mxu1 %v3272_v42  ;;  %v3355_v42 = vld [vmem:[%s3912_s13 + $0x370] ss:$8 sps:$4 sm:$0xff]  }
  0xa8   : > { %1316 = vmatpush1.bf16.msra.mxu0 %v3274_v43  ;;  %v3360_v43 = vld [vmem:[%s3912_s13 + $0x284] ss:$8 sps:$4 sm:$0xff]  }
  0xa9   : > { %1357 = vmatpush1.bf16.msra.mxu1 %v3275_v44  ;;  %1317 = vmatprep.subr.bf16.mxu0 %v3276_v45  ;;  %v3363_v44 = vld [vmem:[%s3912_s13 + $0x384] ss:$8 sps:$4 sm:$0xff]   ;;  %v3358_v45 = vld [vmem:[%s3912_s13 + $0x280] ss:$8 sps:$4 sm:$0xff]  }
  0xaa   : > { %1358 = vmatprep.subr.bf16.mxu1 %v3278_v46  ;;  %v3361_v46 = vld [vmem:[%s3912_s13 + $0x380] ss:$8 sps:$4 sm:$0xff]  }
  0xac   : > { %1318 = vmatpush1.bf16.msra.mxu0 %v3280_v50  ;;  %v3367_v50 = vld [vmem:[%s3912_s13 + $0x390] ss:$8 sps:$4 sm:$0xff]  }
  0xad   : > { %1359 = vmatpush1.bf16.msra.mxu1 %v3281_v51  ;;  %1319 = vmatprep.subr.bf16.mxu0 %v3282_v53  ;;  %v3372_v51 = vld [vmem:[%s3912_s13 + $0x2a4] ss:$8 sps:$4 sm:$0xff]   ;;  %v3370_v53 = vld [vmem:[%s3912_s13 + $0x2a0] ss:$8 sps:$4 sm:$0xff]  }
  0xae   : > { %1360 = vmatprep.subr.bf16.mxu1 %v3284_v54  ;;  %v3373_v54 = vld [vmem:[%s3912_s13 + $0x3a0] ss:$8 sps:$4 sm:$0xff]  }
  0xb0   : > { %1320 = vmatpush1.bf16.msra.mxu0 %v3286_v55  ;;  %v3378_v55 = vld [vmem:[%s3912_s13 + $0x2b4] ss:$8 sps:$4 sm:$0xff]  }
  0xb1   : > { %1361 = vmatpush1.bf16.msra.mxu1 %v3287_v56  ;;  %1321 = vmatprep.subr.bf16.mxu0 %v3288_v57  ;;  %v3381_v56 = vld [vmem:[%s3912_s13 + $0x3b4] ss:$8 sps:$4 sm:$0xff]   ;;  %v3376_v57 = vld [vmem:[%s3912_s13 + $0x2b0] ss:$8 sps:$4 sm:$0xff]  }
  0xb2   : > { %1362 = vmatprep.subr.bf16.mxu1 %v3290_v58  ;;  %v3379_v58 = vld [vmem:[%s3912_s13 + $0x3b0] ss:$8 sps:$4 sm:$0xff]  }
  0xb4   : > { %1322 = vmatpush1.bf16.msra.mxu0 %v3292_v59  ;;  %v3384_v59 = vld [vmem:[%s3912_s13 + $0x2c4] ss:$8 sps:$4 sm:$0xff]  }
  0xb5   : > { %1363 = vmatpush1.bf16.msra.mxu1 %v3293_v60  ;;  %1323 = vmatprep.subr.bf16.mxu0 %v3294_v61  ;;  %v3387_v60 = vld [vmem:[%s3912_s13 + $0x3c4] ss:$8 sps:$4 sm:$0xff]   ;;  %v3382_v61 = vld [vmem:[%s3912_s13 + $0x2c0] ss:$8 sps:$4 sm:$0xff]  }
  0xb6   : > { %1364 = vmatprep.subr.bf16.mxu1 %v3296_v62  ;;  %v3385_v62 = vld [vmem:[%s3912_s13 + $0x3c0] ss:$8 sps:$4 sm:$0xff]  }
  0xb8   : > { %1324 = vmatpush1.bf16.msra.mxu0 %v3298_v63  ;;  %v3390_v63 = vld [vmem:[%s3912_s13 + $0x2d4] ss:$8 sps:$4 sm:$0xff]  }
  0xb9   : > { %1365 = vmatpush1.bf16.msra.mxu1 %v3299_v0  ;;  %1325 = vmatprep.subr.bf16.mxu0 %v3300_v1  ;;  %v3393_v0 = vld [vmem:[%s3912_s13 + $0x3d4] ss:$8 sps:$4 sm:$0xff]   ;;  %v3388_v1 = vld [vmem:[%s3912_s13 + $0x2d0] ss:$8 sps:$4 sm:$0xff]  }
  0xba   : > { %1366 = vmatprep.subr.bf16.mxu1 %v3302_v2  ;;  %v3391_v2 = vld [vmem:[%s3912_s13 + $0x3d0] ss:$8 sps:$4 sm:$0xff]  }
  0xbc   : > { %1326 = vmatpush1.bf16.msra.mxu0 %v3304_v3  ;;  %v3396_v3 = vld [vmem:[%s3912_s13 + $0x2e4] ss:$8 sps:$4 sm:$0xff]  }
  0xbd   : > { %1367 = vmatpush1.bf16.msra.mxu1 %v3305_v4  ;;  %1377 = vmatprep.subr.bf16.mxu0 %v3312_v5  ;;  %v3399_v4 = vld [vmem:[%s3912_s13 + $0x3e4] ss:$8 sps:$4 sm:$0xff]   ;;  %v3394_v5 = vld [vmem:[%s3912_s13 + $0x2e0] ss:$8 sps:$4 sm:$0xff]  }
  0xbe   : > { %1418 = vmatprep.subr.bf16.mxu1 %v3315_v6  ;;  %v3397_v6 = vld [vmem:[%s3912_s13 + $0x3e0] ss:$8 sps:$4 sm:$0xff]  }
  0xbf   : > { %1328 = vmatmul.mubr.bf16.vlgmr.msra.gmra.mrb[0].mxu0 %v2848_v7  ;;  %v3402_v7 = vld [vmem:[%s3912_s13 + $0x2f4] ss:$8 sps:$4 sm:$0xff]  }
  0xc0   : > { %1369 = vmatmul.mubr.bf16.vlgmr.msra.gmra.mrb[0].mxu1 %v2850_v8  ;;  %1378 = vmatpush1.bf16.msra.mxu0 %v3310_v9  ;;  %v3405_v8 = vld [vmem:[%s3912_s13 + $0x3f4] ss:$8 sps:$4 sm:$0xff]   ;;  %v3400_v9 = vld [vmem:[%s3912_s13 + $0x2f0] ss:$8 sps:$4 sm:$0xff]  }
  0xc1   : > { %1419 = vmatpush1.bf16.msra.mxu1 %v3313_v10  ;;  %1379 = vmatprep.subr.bf16.mxu0 %v3318_v11  ;;  %v3403_v10 = vld [vmem:[%s3912_s13 + $0x3f0] ss:$8 sps:$4 sm:$0xff]   ;;  %v2852_v11 = vcombine.low %v4026_v33, %v4026_v33  ;;  %v494_v33 = vld [vmem:[#allocation2 + $0x8] sm:$0xff] }
  0xc2   : > { %1420 = vmatprep.subr.bf16.mxu1 %v3321_v12  ;;  %1409 = vmatprep.mubr.bf16.mxu0 %v2853_v35  ;;  %v2854_v12 = vcombine.low %v4029_v34, %v4029_v34 }
  0xc3   : > { %1450 = vmatprep.mubr.bf16.mxu1 %v2855_v36 }
  0xc4   : > { %1380 = vmatpush1.bf16.msra.mxu0 %v3316_v13 }
  0xc5   : > { %1421 = vmatpush1.bf16.msra.mxu1 %v3319_v14  ;;  %1381 = vmatprep.subr.bf16.mxu0 %v3324_v15 }
  0xc6   : > { %1422 = vmatprep.subr.bf16.mxu1 %v3327_v16 }
  0xc8   : > { %1382 = vmatpush1.bf16.msra.mxu0 %v3322_v17 }
  0xc9   : > { %1423 = vmatpush1.bf16.msra.mxu1 %v3325_v18  ;;  %1383 = vmatprep.subr.bf16.mxu0 %v3330_v19 }
  0xca   : > { %1424 = vmatprep.subr.bf16.mxu1 %v3333_v20 }
  0xcc   : > { %1384 = vmatpush1.bf16.msra.mxu0 %v3328_v21 }
  0xcd   : > { %1425 = vmatpush1.bf16.msra.mxu1 %v3331_v22  ;;  %1385 = vmatprep.subr.bf16.mxu0 %v3336_v23 }
  0xce   : > { %1426 = vmatprep.subr.bf16.mxu1 %v3339_v24 }
  0xd0   : > { %1386 = vmatpush1.bf16.msra.mxu0 %v3334_v25 }
  0xd1   : > { %1427 = vmatpush1.bf16.msra.mxu1 %v3337_v26  ;;  %1387 = vmatprep.subr.bf16.mxu0 %v3342_v27 }
  0xd2   : > { %1428 = vmatprep.subr.bf16.mxu1 %v3345_v28  ;;  %v493_v28 = vld [vmem:[#allocation2] sm:$0xff] }
  0xd4   : > { %1388 = vmatpush1.bf16.msra.mxu0 %v3340_v29 }
  0xd5   : > { %1429 = vmatpush1.bf16.msra.mxu1 %v3343_v30  ;;  %1389 = vmatprep.subr.bf16.mxu0 %v3348_v31 }
  0xd6   : > { %1430 = vmatprep.subr.bf16.mxu1 %v3351_v32 }
  0xd8   : > { %1390 = vmatpush1.bf16.msra.mxu0 %v3346_v37 }
  0xd9   : > { %1431 = vmatpush1.bf16.msra.mxu1 %v3349_v38  ;;  %1391 = vmatprep.subr.bf16.mxu0 %v3354_v39  ;;  %v3410_v39 = vld [vmem:[%s3873_s17 + $0x4] ss:$36 sps:$4 sm:$0xff] (!%p2984_p1)  }
  0xda   : > { %1432 = vmatprep.subr.bf16.mxu1 %v3357_v40  ;;  %v3412_v40 = vld [vmem:[%s3873_s17] ss:$36 sps:$4 sm:$0xff] (!%p2984_p1)  }
  0xdc   : > { %1392 = vmatpush1.bf16.msra.mxu0 %v3352_v41  ;;  %v3413_v41 = vld [vmem:[%s3873_s17 + $0x4c] ss:$36 sps:$4 sm:$0xff] (!%p2984_p1)  }
  0xdd   : > { %1433 = vmatpush1.bf16.msra.mxu1 %v3355_v42  ;;  %1393 = vmatprep.subr.bf16.mxu0 %v3360_v43  ;;  %v3415_v42 = vld [vmem:[%s3873_s17 + $0x48] ss:$36 sps:$4 sm:$0xff] (!%p2984_p1)   ;;  %v3416_v43 = vld [vmem:[%s3873_s17 + $0x94] ss:$36 sps:$4 sm:$0xff] (!%p2984_p1)  }
  0xde   : > { %1434 = vmatprep.subr.bf16.mxu1 %v3363_v44  ;;  %v3418_v44 = vld [vmem:[%s3873_s17 + $0x90] ss:$36 sps:$4 sm:$0xff] (!%p2984_p1)  }
  0xe0   : > { %1394 = vmatpush1.bf16.msra.mxu0 %v3358_v45  ;;  %v3419_v45 = vld [vmem:[%s3873_s17 + $0xdc] ss:$36 sps:$4 sm:$0xff] (!%p2984_p1)  }
  0xe1   : > { %1435 = vmatpush1.bf16.msra.mxu1 %v3361_v46  ;;  %1395 = vmatprep.subr.bf16.mxu0 %v3366_v47  ;;  %v3421_v46 = vld [vmem:[%s3873_s17 + $0xd8] ss:$36 sps:$4 sm:$0xff] (!%p2984_p1)   ;;  %v3434_v47 = vld [vmem:[%s3873_s17 + $0xc] ss:$36 sps:$4 sm:$0xff] (!%p2984_p1)  }
  0xe2   : > { %1436 = vmatprep.subr.bf16.mxu1 %v3369_v48  ;;  %v3422_v48 = vld [vmem:[%s3873_s17 + $0x124] ss:$36 sps:$4 sm:$0xff] (!%p2984_p1)  }
  0xe4   : > { %1396 = vmatpush1.bf16.msra.mxu0 %v3364_v49  ;;  %v3438_v49 = vld [vmem:[%s3873_s17 + $0x8] ss:$36 sps:$4 sm:$0xff] (!%p2984_p1)  }
  0xe5   : > { %1437 = vmatpush1.bf16.msra.mxu1 %v3367_v50  ;;  %1397 = vmatprep.subr.bf16.mxu0 %v3372_v51  ;;  %v3440_v50 = vld [vmem:[%s3873_s17 + $0x54] ss:$36 sps:$4 sm:$0xff] (!%p2984_p1)   ;;  %v3424_v51 = vld [vmem:[%s3873_s17 + $0x120] ss:$36 sps:$4 sm:$0xff] (!%p2984_p1)  }
  0xe6   : > { %1438 = vmatprep.subr.bf16.mxu1 %v3375_v52  ;;  %v3425_v52 = vld [vmem:[%s3873_s17 + $0x16c] ss:$36 sps:$4 sm:$0xff] (!%p2984_p1)  }
  0xe8   : > { %1398 = vmatpush1.bf16.msra.mxu0 %v3370_v53  ;;  %v3444_v53 = vld [vmem:[%s3873_s17 + $0x50] ss:$36 sps:$4 sm:$0xff] (!%p2984_p1)  }
  0xe9   : > { %1439 = vmatpush1.bf16.msra.mxu1 %v3373_v54  ;;  %1399 = vmatprep.subr.bf16.mxu0 %v3378_v55  ;;  %v3446_v54 = vld [vmem:[%s3873_s17 + $0x9c] ss:$36 sps:$4 sm:$0xff] (!%p2984_p1)   ;;  %v3427_v55 = vld [vmem:[%s3873_s17 + $0x168] ss:$36 sps:$4 sm:$0xff] (!%p2984_p1)  }
  0xea   : > { %1440 = vmatprep.subr.bf16.mxu1 %v3381_v56  ;;  %v3450_v56 = vld [vmem:[%s3873_s17 + $0x98] ss:$36 sps:$4 sm:$0xff] (!%p2984_p1)  }
  0xec   : > { %1400 = vmatpush1.bf16.msra.mxu0 %v3376_v57  ;;  %v3452_v57 = vld [vmem:[%s3873_s17 + $0xe4] ss:$36 sps:$4 sm:$0xff] (!%p2984_p1)  }
  0xed   : > { %1441 = vmatpush1.bf16.msra.mxu1 %v3379_v58  ;;  %1401 = vmatprep.subr.bf16.mxu0 %v3384_v59  ;;  %v3428_v58 = vld [vmem:[%s3873_s17 + $0x1b4] ss:$36 sps:$4 sm:$0xff] (!%p2984_p1)   ;;  %v1472_v59 = vlaneseq (!%p2984_p1) }
  0xee   : > { %1442 = vmatprep.subr.bf16.mxu1 %v3387_v60  ;;  %v3456_v60 = vld [vmem:[%s3873_s17 + $0xe0] ss:$36 sps:$4 sm:$0xff] (!%p2984_p1)  }
  0xf0   : > { %1402 = vmatpush1.bf16.msra.mxu0 %v3382_v61  ;;  %v3430_v61 = vld [vmem:[%s3873_s17 + $0x1b0] ss:$36 sps:$4 sm:$0xff] (!%p2984_p1)  }
  0xf1   : > { %1443 = vmatpush1.bf16.msra.mxu1 %v3385_v62  ;;  %1403 = vmatprep.subr.bf16.mxu0 %v3390_v63  ;;  %v3458_v62 = vld [vmem:[%s3873_s17 + $0x12c] ss:$36 sps:$4 sm:$0xff] (!%p2984_p1)   ;;  %v3431_v63 = vld [vmem:[%s3873_s17 + $0x1fc] ss:$36 sps:$4 sm:$0xff] (!%p2984_p1)  }
  0xf2   : > { %1444 = vmatprep.subr.bf16.mxu1 %v3393_v0  ;;  %v4105_v0 = vshrl.u32 (!%p2984_p1), %v1472_v59, 7  ;;  %v3524_v59 = vld [vmem:[%s3873_s17 + $0x444] ss:$36 sps:$4 sm:$0xff] (!%p2984_p1)  }
  0xf4   : > { %1404 = vmatpush1.bf16.msra.mxu0 %v3388_v1  ;;  %v3433_v1 = vld [vmem:[%s3873_s17 + $0x1f8] ss:$36 sps:$4 sm:$0xff] (!%p2984_p1)  }
  0xf5   : > { %1445 = vmatpush1.bf16.msra.mxu1 %v3391_v2  ;;  %1405 = vmatprep.subr.bf16.mxu0 %v3396_v3  ;;  %v3462_v2 = vld [vmem:[%s3873_s17 + $0x128] ss:$36 sps:$4 sm:$0xff] (!%p2984_p1)   ;;  %v3464_v3 = vld [vmem:[%s3873_s17 + $0x174] ss:$36 sps:$4 sm:$0xff] (!%p2984_p1)  }
  0xf6   : > { %1446 = vmatprep.subr.bf16.mxu1 %v3399_v4  ;;  %v3436_v4 = vld [vmem:[%s3873_s17 + $0x244] ss:$36 sps:$4 sm:$0xff] (!%p2984_p1)  }
  0xf8   : > { %1406 = vmatpush1.bf16.msra.mxu0 %v3394_v5  ;;  %v4112_v5 = vsub.s32 (!%p2984_p1), 1, %v4105_v0 }
  0xf9   : > { %1447 = vmatpush1.bf16.msra.mxu1 %v3397_v6  ;;  %1407 = vmatprep.subr.bf16.mxu0 %v3402_v7  ;;  %v4115_v6 = vsub.s32 (!%p2984_p1), 0, %v4105_v0  ;;  %v3468_v7 = vld [vmem:[%s3873_s17 + $0x170] ss:$36 sps:$4 sm:$0xff] (!%p2984_p1)  }
  0xfa   : > { %1448 = vmatprep.subr.bf16.mxu1 %v3405_v8  ;;  %v3439_v8 = vld [vmem:[%s3873_s17 + $0x240] ss:$36 sps:$4 sm:$0xff] (!%p2984_p1)  }
  0xfc   : > { %1408 = vmatpush1.bf16.msra.mxu0 %v3400_v9  ;;  %v3442_v9 = vld [vmem:[%s3873_s17 + $0x28c] ss:$36 sps:$4 sm:$0xff] (!%p2984_p1)  }
  0xfd   : > { %1449 = vmatpush1.bf16.msra.mxu1 %v3403_v10  ;;  %2447 = vmatprep.subr.bf16.mxu0 (!%p2984_p1), %v3410_v39  ;;  %v3470_v10 = vld [vmem:[%s3873_s17 + $0x1bc] ss:$36 sps:$4 sm:$0xff] (!%p2984_p1)   ;;  %v3466_v39 = vld [vmem:[%s3873_s17 + $0x3ac] ss:$36 sps:$4 sm:$0xff] (!%p2984_p1)  }
  0xfe   : > { %2488 = vmatprep.subr.bf16.mxu1 (!%p2984_p1), %v3434_v47  ;;  %v3478_v47 = vld [vmem:[%s3873_s17 + $0x43c] ss:$36 sps:$4 sm:$0xff] (!%p2984_p1)  }
  0xff   : > { %1410 = vmatmul.mubr.bf16.vlgmr.msra.gmra.mrb[4].mxu0 %v2852_v11 }
 0x100   : > { %1451 = vmatmul.mubr.bf16.vlgmr.msra.gmra.mrb[4].mxu1 %v2854_v12  ;;  %2448 = vmatpush1.bf16.msra.mxu0 (!%p2984_p1), %v3412_v40  ;;  %v1470_v12 = vld [vmem:[%s3902_s20] sm:$0x3] (!%p2984_p1)  ;;  %v3496_v40 = vld [vmem:[%s3873_s17 + $0x2d8] ss:$36 sps:$4 sm:$0xff] (!%p2984_p1)  }
 0x101   : > { %2449 = vmatprep.subr.bf16.mxu0 (!%p2984_p1), %v3413_v41  ;;  %2489 = vmatpush1.bf16.msra.mxu1 (!%p2984_p1), %v3438_v49  ;;  %v3469_v41 = vld [vmem:[%s3873_s17 + $0x3a8] ss:$36 sps:$4 sm:$0xff] (!%p2984_p1)   ;;  %v3481_v49 = vld [vmem:[%s3873_s17 + $0x438] ss:$36 sps:$4 sm:$0xff] (!%p2984_p1)  }
 0x102   : > { %2490 = vmatprep.subr.bf16.mxu1 (!%p2984_p1), %v3440_v50  ;;  %v3512_v50 = vld [vmem:[%s3873_s17 + $0x3b4] ss:$36 sps:$4 sm:$0xff] (!%p2984_p1)  }
 0x104   : > { %2450 = vmatpush1.bf16.msra.mxu0 (!%p2984_p1), %v3415_v42  ;;  %v3500_v42 = vld [vmem:[%s3873_s17 + $0x324] ss:$36 sps:$4 sm:$0xff] (!%p2984_p1)  }
 0x105   : > { %2451 = vmatprep.subr.bf16.mxu0 (!%p2984_p1), %v3416_v43  ;;  %2491 = vmatpush1.bf16.msra.mxu1 (!%p2984_p1), %v3444_v53  ;;  %v3472_v43 = vld [vmem:[%s3873_s17 + $0x3f4] ss:$36 sps:$4 sm:$0xff] (!%p2984_p1)  }
 0x106   : > { %2492 = vmatprep.subr.bf16.mxu1 (!%p2984_p1), %v3446_v54  ;;  %v3514_v53 = vld [vmem:[%s3873_s17 + $0x3b0] ss:$36 sps:$4 sm:$0xff] (!%p2984_p1)  }
 0x107   : > { %v3485_v54 = vld [vmem:[%s3873_s17 + $0x10] ss:$36 sps:$4 sm:$0xff] (!%p2984_p1)  }
 0x108   : > { %2452 = vmatpush1.bf16.msra.mxu0 (!%p2984_p1), %v3418_v44  ;;  %v3502_v44 = vld [vmem:[%s3873_s17 + $0x320] ss:$36 sps:$4 sm:$0xff] (!%p2984_p1)  }
 0x109   : > { %2453 = vmatprep.subr.bf16.mxu0 (!%p2984_p1), %v3419_v45  ;;  %2493 = vmatpush1.bf16.msra.mxu1 (!%p2984_p1), %v3450_v56  ;;  %v3475_v45 = vld [vmem:[%s3873_s17 + $0x3f0] ss:$36 sps:$4 sm:$0xff] (!%p2984_p1)   ;;  %v3493_v56 = vld [vmem:[%s3873_s17 + $0x5c] ss:$36 sps:$4 sm:$0xff] (!%p2984_p1)  }
 0x10a   : > { %2494 = vmatprep.subr.bf16.mxu1 (!%p2984_p1), %v3452_v57  ;;  %v3520_v57 = vld [vmem:[%s3873_s17 + $0x3f8] ss:$36 sps:$4 sm:$0xff] (!%p2984_p1)  }
 0x10c   : > { %2454 = vmatpush1.bf16.msra.mxu0 (!%p2984_p1), %v3421_v46  ;;  %v3506_v46 = vld [vmem:[%s3873_s17 + $0x36c] ss:$36 sps:$4 sm:$0xff] (!%p2984_p1)  }
 0x10d   : > { %2455 = vmatprep.subr.bf16.mxu0 (!%p2984_p1), %v3422_v48  ;;  %2495 = vmatpush1.bf16.msra.mxu1 (!%p2984_p1), %v3456_v60  ;;  %v3508_v48 = vld [vmem:[%s3873_s17 + $0x368] ss:$36 sps:$4 sm:$0xff] (!%p2984_p1)  }
 0x10e   : > { %2496 = vmatprep.subr.bf16.mxu1 (!%p2984_p1), %v3458_v62  ;;  %v3499_v60 = vld [vmem:[%s3873_s17 + $0xa4] ss:$36 sps:$4 sm:$0xff] (!%p2984_p1)  }
 0x10f   : > { %v3497_v62 = vld [vmem:[%s3873_s17 + $0xa0] ss:$36 sps:$4 sm:$0xff] (!%p2984_p1)  }
 0x110   : > { %2456 = vmatpush1.bf16.msra.mxu0 (!%p2984_p1), %v3424_v51  ;;  %v3487_v51 = vld [vmem:[%s3873_s17 + $0x14] ss:$36 sps:$4 sm:$0xff] (!%p2984_p1)  }
 0x111   : > { %2457 = vmatprep.subr.bf16.mxu0 (!%p2984_p1), %v3425_v52  ;;  %2497 = vmatpush1.bf16.msra.mxu1 (!%p2984_p1), %v3462_v2  ;;  %v3530_v2 = vld [vmem:[%s3873_s17 + $0x18] ss:$36 sps:$4 sm:$0xff] (!%p2984_p1)  }
 0x112   : > { %2498 = vmatprep.subr.bf16.mxu1 (!%p2984_p1), %v3464_v3  ;;  %v3503_v3 = vld [vmem:[%s3873_s17 + $0xe8] ss:$36 sps:$4 sm:$0xff] (!%p2984_p1)  }
 0x114   : > { %2458 = vmatpush1.bf16.msra.mxu0 (!%p2984_p1), %v3427_v55  ;;  %v3518_v55 = vld [vmem:[%s3873_s17 + $0x3fc] ss:$36 sps:$4 sm:$0xff] (!%p2984_p1)  }
 0x115   : > { %2459 = vmatprep.subr.bf16.mxu0 (!%p2984_p1), %v3428_v58  ;;  %2499 = vmatpush1.bf16.msra.mxu1 (!%p2984_p1), %v3468_v7  ;;  %v3491_v58 = vld [vmem:[%s3873_s17 + $0x58] ss:$36 sps:$4 sm:$0xff] (!%p2984_p1)  }
 0x116   : > { %2500 = vmatprep.subr.bf16.mxu1 (!%p2984_p1), %v3470_v10  ;;  %v3511_v7 = vld [vmem:[%s3873_s17 + $0x134] ss:$36 sps:$4 sm:$0xff] (!%p2984_p1)   ;;  %v3544_v10 = vld [vmem:[%s3873_s17 + $0xac] ss:$36 sps:$4 sm:$0xff] (!%p2984_p1)  }
 0x118   : > { %2460 = vmatpush1.bf16.msra.mxu0 (!%p2984_p1), %v3430_v61  ;;  %v3526_v61 = vld [vmem:[%s3873_s17 + $0x440] ss:$36 sps:$4 sm:$0xff] (!%p2984_p1)  }
 0x119   : > { %2461 = vmatprep.subr.bf16.mxu0 (!%p2984_p1), %v3431_v63  ;;  %v3532_v63 = vld [vmem:[%s3873_s17 + $0x1c] ss:$36 sps:$4 sm:$0xff] (!%p2984_p1)  }
 0x11c   : > { %2462 = vmatpush1.bf16.msra.mxu0 (!%p2984_p1), %v3433_v1  ;;  %v3505_v1 = vld [vmem:[%s3873_s17 + $0xec] ss:$36 sps:$4 sm:$0xff] (!%p2984_p1)  }
 0x11d   : > { %2463 = vmatprep.subr.bf16.mxu0 (!%p2984_p1), %v3436_v4  ;;  %v3538_v4 = vld [vmem:[%s3873_s17 + $0x64] ss:$36 sps:$4 sm:$0xff] (!%p2984_p1)  }
 0x120   : > { %2464 = vmatpush1.bf16.msra.mxu0 (!%p2984_p1), %v3439_v8  ;;  %v3509_v8 = vld [vmem:[%s3873_s17 + $0x130] ss:$36 sps:$4 sm:$0xff] (!%p2984_p1)  }
 0x121   : > { %2465 = vmatprep.subr.bf16.mxu0 (!%p2984_p1), %v3442_v9  ;;  %v3536_v9 = vld [vmem:[%s3873_s17 + $0x60] ss:$36 sps:$4 sm:$0xff] (!%p2984_p1)  }
 0x192   : > { %v1329_v13 = vpop.f32.mrb[0].mxu0 }
 0x193   : > { %v1370_v14 = vpop.f32.mrb[0].mxu1  ;;  %v1331_v16 = vpop.f32.mrb[1].mxu0 }
 0x194   : > { %v1371_v15 = vadd.f32 %v1370_v14, %v1329_v13  ;;  %v1372_v17 = vpop.f32.mrb[1].mxu1  ;;  %v1333_v19 = vpop.f32.mrb[2].mxu0  ;;  %v1484_v13 = vld [vmem:[%s3907_s2] sm:$0x3] (!%p2984_p1)  ;;  %v1479_v14 = vrot.slane (!%p2984_p1), %v1470_v12, %v4112_v5 }
 0x195   : > { %v1373_v18 = vadd.f32 %v1372_v17, %v1331_v16  ;;  %v1374_v20 = vpop.f32.mrb[2].mxu1  ;;  %v1334_v21 = vpop.f32.mrb[3].mxu0  ;;  %v1475_v16 = vrot.slane (!%p2984_p1), %v1470_v12, %v4115_v6  ;;  %v1489_v17 = vrot.slane (!%p2984_p1), %v1484_v13, %v4115_v6  ;;  %v3542_v12 = vld [vmem:[%s3873_s17 + $0xa8] ss:$36 sps:$4 sm:$0xff] (!%p2984_p1)  }
 0x196   : > { %v1375_v22 = vpop.f32.mrb[3].mxu1  ;;  %v3445_v20 = vld [vmem:[%s3873_s17 + $0x288] ss:$36 sps:$4 sm:$0xff] (!%p2984_p1)  }
 0x197   : > { %v3476_v21 = vld [vmem:[%s3873_s17 + $0x204] ss:$36 sps:$4 sm:$0xff] (!%p2984_p1)   ;;  %2466 = vmatpush1.bf16.msra.mxu0 (!%p2984_p1), %v3445_v20 }
 0x198   : > { %v3527_v20 = vld [vmem:[%s3873_s17 + $0x208] ss:$36 sps:$4 sm:$0xff] (!%p2984_p1)  }
 0x1d2   : > { %v1411_v23 = vpop.f32.mrb[4].mxu0 }
 0x1d3   : > { %v1452_v24 = vpop.f32.mrb[4].mxu1  ;;  %v1412_v25 = vadd.f32 %v1411_v23, %v1371_v15  ;;  %v1413_v26 = vpop.f32.mrb[5].mxu0  ;;  %v1493_v15 = vrot.slane (!%p2984_p1), %v1484_v13, %v4112_v5  ;;  %v3515_v13 = vld [vmem:[%s3873_s17 + $0x178] ss:$36 sps:$4 sm:$0xff] (!%p2984_p1)  }
 0x1d4   : > { %v1454_v27 = vpop.f32.mrb[5].mxu1  ;;  %v1414_v29 = vadd.f32 %v1413_v26, %v1373_v18  ;;  %v1415_v30 = vpop.f32.mrb[6].mxu0  ;;  %1467 = sbr.rel (%p2984_p1) target bundleno = 811 (0x32b), region = 56  ;;  %v3474_v18 = vld [vmem:[%s3873_s17 + $0x1b8] ss:$36 sps:$4 sm:$0xff] (!%p2984_p1)  }
 0x1d5   : > { %v1456_v31 = vpop.f32.mrb[6].mxu1  ;;  %v1453_v32 = vadd.f32 %v1452_v24, %v1412_v25  ;;  %v1416_v34 = vpop.f32.mrb[7].mxu0  ;;  %v3448_v24 = vld [vmem:[%s3873_s17 + $0x2d4] ss:$36 sps:$4 sm:$0xff] (!%p2984_p1)   ;;  %2501 = vmatpush1.bf16.msra.mxu1 (!%p2984_p1), %v3474_v18  ;;  %v3482_v30 = vld [vmem:[%s3873_s17 + $0x24c] ss:$36 sps:$4 sm:$0xff] (!%p2984_p1)  }
 0x1d6   : > { %v1457_v35 = vpop.f32.mrb[7].mxu1  ;;  %v1455_v36 = vadd.f32 %v1454_v27, %v1414_v29  ;;  %v3480_v27 = vld [vmem:[%s3873_s17 + $0x200] ss:$36 sps:$4 sm:$0xff] (!%p2984_p1)   ;;  %2502 = vmatprep.subr.bf16.mxu1 (!%p2984_p1), %v3476_v21  ;;  %2467 = vmatprep.subr.bf16.mxu0 (!%p2984_p1), %v3448_v24  ;;  %v3488_v34 = vld [vmem:[%s3873_s17 + $0x294] ss:$36 sps:$4 sm:$0xff] (!%p2984_p1)  }
 0x1d7   : > { %v1459_v37 = vadd.f32 %v1453_v32, %v493_v28  ;;  %v3451_v28 = vld [vmem:[%s3873_s17 + $0x2d0] ss:$36 sps:$4 sm:$0xff] (!%p2984_p1)   ;;  %v3454_v31 = vld [vmem:[%s3873_s17 + $0x31c] ss:$36 sps:$4 sm:$0xff] (!%p2984_p1)   ;;  %v3484_v32 = vld [vmem:[%s3873_s17 + $0x248] ss:$36 sps:$4 sm:$0xff] (!%p2984_p1)  }
 0x1d8   : > { %v1460_v38 = vadd.f32 %v1455_v36, %v494_v33  ;;  %2468 = vmatpush1.bf16.msra.mxu0 (!%p2984_p1), %v3451_v28  ;;  %v3457_v33 = vld [vmem:[%s3873_s17 + $0x318] ss:$36 sps:$4 sm:$0xff] (!%p2984_p1)   ;;  %v3460_v35 = vld [vmem:[%s3873_s17 + $0x364] ss:$36 sps:$4 sm:$0xff] (!%p2984_p1)   ;;  %v3490_v36 = vld [vmem:[%s3873_s17 + $0x290] ss:$36 sps:$4 sm:$0xff] (!%p2984_p1)  }
 0x1d9   : > { %1461 = vst [vmem:[#allocation2] sm:$0xff] %v1459_v37  ;;  %2503 = vmatpush1.bf16.msra.mxu1 (!%p2984_p1), %v3480_v27  ;;  %2469 = vmatprep.subr.bf16.mxu0 (!%p2984_p1), %v3454_v31  ;;  %v3463_v37 = vld [vmem:[%s3873_s17 + $0x360] ss:$36 sps:$4 sm:$0xff] (!%p2984_p1)   ;;  %v3554_v21 = vld [vmem:[%s3873_s17 + $0x138] ss:$36 sps:$4 sm:$0xff] (!%p2984_p1)  }
 0x1da   : > { %1462 = vst [vmem:[#allocation2 + $0x8] sm:$0xff] %v1460_v38  ;;  %2504 = vmatprep.subr.bf16.mxu1 (!%p2984_p1), %v3482_v30  ;;  %v3494_v38 = vld [vmem:[%s3873_s17 + $0x2dc] ss:$36 sps:$4 sm:$0xff] (!%p2984_p1)   ;;  %v3533_v24 = vld [vmem:[%s3873_s17 + $0x250] ss:$36 sps:$4 sm:$0xff] (!%p2984_p1)  }
 0x1db   : > { %v3556_v18 = vld [vmem:[%s3873_s17 + $0x13c] ss:$36 sps:$4 sm:$0xff]   ;;  %v3566_v30 = vld [vmem:[%s3873_s17 + $0x1c8] ss:$36 sps:$4 sm:$0xff]   ;;  %v3574_v31 = vld [vmem:[%s3873_s17 + $0x214] ss:$36 sps:$4 sm:$0xff]  }
 0x1dc   : > { %2470 = vmatpush1.bf16.msra.mxu0 %v3457_v33  ;;  %v3541_v27 = vld [vmem:[%s3873_s17 + $0x29c] ss:$36 sps:$4 sm:$0xff]   ;;  %v3572_v33 = vld [vmem:[%s3873_s17 + $0x210] ss:$36 sps:$4 sm:$0xff]  }
 0x1dd   : > { %2505 = vmatpush1.bf16.msra.mxu1 %v3484_v32  ;;  %2471 = vmatprep.subr.bf16.mxu0 %v3460_v35  ;;  %v3539_v28 = vld [vmem:[%s3873_s17 + $0x298] ss:$36 sps:$4 sm:$0xff]   ;;  %v3547_v32 = vld [vmem:[%s3873_s17 + $0x2e4] ss:$36 sps:$4 sm:$0xff]  }
 0x1de   : > { %2506 = vmatprep.subr.bf16.mxu1 %v3488_v34  ;;  %v3545_v34 = vld [vmem:[%s3873_s17 + $0x2e0] ss:$36 sps:$4 sm:$0xff]  }
 0x1df   : > { %v3580_v35 = vld [vmem:[%s3873_s17 + $0x25c] ss:$36 sps:$4 sm:$0xff]  }
 0x1e0   : > { %v1468_v19 = vld [vmem:[#allocation2] sm:$0xff]  ;;  %2472 = vmatpush1.bf16.msra.mxu0 %v3463_v37  ;;  %v3578_v37 = vld [vmem:[%s3873_s17 + $0x258] ss:$36 sps:$4 sm:$0xff]  }
 0x1e1   : > { %v1469_v11 = vld [vmem:[#allocation2 + $0x8] sm:$0xff]  ;;  %v1482_v23 = vmul.f32 %v1475_v16, %v1468_v19  ;;  %2507 = vmatpush1.bf16.msra.mxu1 %v3490_v36  ;;  %2473 = vmatprep.subr.bf16.mxu0 %v3466_v39  ;;  %v3521_v16 = vld [vmem:[%s3873_s17 + $0x1c0] ss:$36 sps:$4 sm:$0xff]   ;;  %v3529_v19 = vld [vmem:[%s3873_s17 + $0x20c] ss:$36 sps:$4 sm:$0xff]  }
 0x1e2   : > { %v1483_v22 = vmul.f32 %v1479_v14, %v1469_v11  ;;  %2508 = vmatprep.subr.bf16.mxu1 %v3494_v38  ;;  %v3517_v11 = vld [vmem:[%s3873_s17 + $0x17c] ss:$36 sps:$4 sm:$0xff]   ;;  %v3550_v14 = vld [vmem:[%s3873_s17 + $0xf4] ss:$36 sps:$4 sm:$0xff]   ;;  %v3553_v36 = vld [vmem:[%s3873_s17 + $0x32c] ss:$36 sps:$4 sm:$0xff]  }
 0x1e3   : > { %v1496_v26 = vadd.f32 %v1489_v17, %v1482_v23  ;;  %v3548_v17 = vld [vmem:[%s3873_s17 + $0xf0] ss:$36 sps:$4 sm:$0xff]   ;;  %v3551_v38 = vld [vmem:[%s3873_s17 + $0x328] ss:$36 sps:$4 sm:$0xff]  }
 0x1e4   : > { %v1497_v25 = vadd.f32 %v1493_v15, %v1483_v22  ;;  %2474 = vmatpush1.bf16.msra.mxu0 %v3469_v41  ;;  %v3523_v15 = vld [vmem:[%s3873_s17 + $0x1c4] ss:$36 sps:$4 sm:$0xff]   ;;  %v3535_v23 = vld [vmem:[%s3873_s17 + $0x254] ss:$36 sps:$4 sm:$0xff]  }
 0x1e5   : > { %1498 = vst [vmem:[%s3922_s16] sm:$0xff] %v1496_v26  ;;  %2509 = vmatpush1.bf16.msra.mxu1 %v3496_v40  ;;  %2475 = vmatprep.subr.bf16.mxu0 %v3472_v43  ;;  %v4161_v52 = vpack.c.bf16 %v1496_v26, %v1496_v26  ;;  %v3562_v22 = vld [vmem:[%s3873_s17 + $0x184] ss:$36 sps:$4 sm:$0xff]   ;;  %v3568_v26 = vld [vmem:[%s3873_s17 + $0x1cc] ss:$36 sps:$4 sm:$0xff]   ;;  %v3559_v40 = vld [vmem:[%s3873_s17 + $0x374] ss:$36 sps:$4 sm:$0xff]  }
 0x1e6   : > { %1499 = vst [vmem:[%s3922_s16 + $0x8] sm:$0xff] %v1497_v25  ;;  %v4134_v29 = vpack.c.bf16 %v1497_v25, %v1497_v25  ;;  %2510 = vmatprep.subr.bf16.mxu1 %v3500_v42  ;;  %v3560_v25 = vld [vmem:[%s3873_s17 + $0x180] ss:$36 sps:$4 sm:$0xff]   ;;  %v3557_v42 = vld [vmem:[%s3873_s17 + $0x370] ss:$36 sps:$4 sm:$0xff]  }
 0x1e7   : > { %v3585_v39 = vld [vmem:[%s3873_s17 + $0x2a4] ss:$36 sps:$4 sm:$0xff]   ;;  %v3590_v43 = vld [vmem:[%s3873_s17 + $0x2ec] ss:$36 sps:$4 sm:$0xff]  }
 0x1e8   : > { %2479 = vmatprep.mubr.bf16.mxu0 %v4134_v29  ;;  %2520 = vmatprep.mubr.bf16.mxu1 %v4134_v29  ;;  %v3583_v41 = vld [vmem:[%s3873_s17 + $0x2a0] ss:$36 sps:$4 sm:$0xff]  }
 0x1e9   : > { %2511 = vmatpush1.bf16.msra.mxu1 %v3502_v44  ;;  %2476 = vmatpush1.bf16.msra.mxu0 %v3475_v45  ;;  %v3565_v44 = vld [vmem:[%s3873_s17 + $0x3bc] ss:$36 sps:$4 sm:$0xff]   ;;  %v3588_v45 = vld [vmem:[%s3873_s17 + $0x2e8] ss:$36 sps:$4 sm:$0xff]  }
 0x1ea   : > { %2512 = vmatprep.subr.bf16.mxu1 %v3506_v46  ;;  %2477 = vmatprep.subr.bf16.mxu0 %v3478_v47  ;;  %v3563_v46 = vld [vmem:[%s3873_s17 + $0x3b8] ss:$36 sps:$4 sm:$0xff]  }
 0x1eb   : > { %v3595_v47 = vld [vmem:[%s3873_s17 + $0x334] ss:$36 sps:$4 sm:$0xff]  }
 0x1ed   : > { %2513 = vmatpush1.bf16.msra.mxu1 %v3508_v48  ;;  %2478 = vmatpush1.bf16.msra.mxu0 %v3481_v49  ;;  %v3571_v48 = vld [vmem:[%s3873_s17 + $0x404] ss:$36 sps:$4 sm:$0xff]   ;;  %v3593_v49 = vld [vmem:[%s3873_s17 + $0x330] ss:$36 sps:$4 sm:$0xff]  }
 0x1ee   : > { %2514 = vmatprep.subr.bf16.mxu1 %v3512_v50  ;;  %2529 = vmatprep.subr.bf16.mxu0 %v3487_v51  ;;  %v3569_v50 = vld [vmem:[%s3873_s17 + $0x400] ss:$36 sps:$4 sm:$0xff]  }
 0x1ef   : > { %v3600_v51 = vld [vmem:[%s3873_s17 + $0x37c] ss:$36 sps:$4 sm:$0xff]  }
 0x1f0   : > { %2480 = vmatmul.mubr.bf16.vlgmr.msra.gmra.mrb[0].mxu0 %v4161_v52 }
 0x1f1   : > { %2515 = vmatpush1.bf16.msra.mxu1 %v3514_v53  ;;  %2530 = vmatpush1.bf16.msra.mxu0 %v3485_v54  ;;  %v3577_v53 = vld [vmem:[%s3873_s17 + $0x44c] ss:$36 sps:$4 sm:$0xff]   ;;  %v3598_v54 = vld [vmem:[%s3873_s17 + $0x378] ss:$36 sps:$4 sm:$0xff]  }
 0x1f2   : > { %2516 = vmatprep.subr.bf16.mxu1 %v3518_v55  ;;  %2531 = vmatprep.subr.bf16.mxu0 %v3493_v56  ;;  %v3575_v55 = vld [vmem:[%s3873_s17 + $0x448] ss:$36 sps:$4 sm:$0xff]  }
 0x1f3   : > { %2561 = vmatprep.mubr.bf16.mxu0 %v4134_v29  ;;  %v3605_v56 = vld [vmem:[%s3873_s17 + $0x3c4] ss:$36 sps:$4 sm:$0xff]  }
 0x1f5   : > { %2517 = vmatpush1.bf16.msra.mxu1 %v3520_v57  ;;  %2532 = vmatpush1.bf16.msra.mxu0 %v3491_v58  ;;  %v3581_v57 = vld [vmem:[%s3873_s17 + $0x260] ss:$36 sps:$4 sm:$0xff]  }
 0x1f6   : > { %2518 = vmatprep.subr.bf16.mxu1 %v3524_v59  ;;  %2533 = vmatprep.subr.bf16.mxu0 %v3499_v60  ;;  %v3603_v58 = vld [vmem:[%s3873_s17 + $0x3c0] ss:$36 sps:$4 sm:$0xff]   ;;  %v3610_v60 = vld [vmem:[%s3873_s17 + $0x40c] ss:$36 sps:$4 sm:$0xff]  }
 0x1f7   : > { %v3582_v59 = vld [vmem:[%s3873_s17 + $0x20] ss:$36 sps:$4 sm:$0xff]  }
 0x1f9   : > { %2519 = vmatpush1.bf16.msra.mxu1 %v3526_v61  ;;  %2534 = vmatpush1.bf16.msra.mxu0 %v3497_v62  ;;  %v3586_v61 = vld [vmem:[%s3873_s17 + $0x2a8] ss:$36 sps:$4 sm:$0xff]  }
 0x1fa   : > { %2570 = vmatprep.subr.bf16.mxu1 %v3532_v63  ;;  %2535 = vmatprep.subr.bf16.mxu0 %v3505_v1  ;;  %v3608_v62 = vld [vmem:[%s3873_s17 + $0x408] ss:$36 sps:$4 sm:$0xff]   ;;  %v3615_v1 = vld [vmem:[%s3873_s17 + $0x454] ss:$36 sps:$4 sm:$0xff]  }
 0x1fb   : > { %v3587_v63 = vld [vmem:[%s3873_s17 + $0x68] ss:$36 sps:$4 sm:$0xff]  }
 0x1fc   : > { %2521 = vmatmul.mubr.bf16.vlgmr.msra.gmra.mrb[0].mxu1 %v4161_v52 }
 0x1fd   : > { %2571 = vmatpush1.bf16.msra.mxu1 %v3530_v2  ;;  %2602 = vmatprep.mubr.bf16.mxu1 %v4134_v29  ;;  %v3591_v2 = vld [vmem:[%s3873_s17 + $0x2f0] ss:$36 sps:$4 sm:$0xff]  }
 0x1fe   : > { %2536 = vmatpush1.bf16.msra.mxu0 %v3503_v3  ;;  %2572 = vmatprep.subr.bf16.mxu1 %v3538_v4  ;;  %v3613_v3 = vld [vmem:[%s3873_s17 + $0x450] ss:$36 sps:$4 sm:$0xff]  }
 0x1ff   : > { %2537 = vmatprep.subr.bf16.mxu0 %v3511_v7  ;;  %v3592_v4 = vld [vmem:[%s3873_s17 + $0xb0] ss:$36 sps:$4 sm:$0xff]   ;;  %v3596_v7 = vld [vmem:[%s3873_s17 + $0x338] ss:$36 sps:$4 sm:$0xff]  }
 0x201   : > { %2573 = vmatpush1.bf16.msra.mxu1 %v3536_v9  ;;  %v3601_v9 = vld [vmem:[%s3873_s17 + $0x380] ss:$36 sps:$4 sm:$0xff]  }
 0x202   : > { %2538 = vmatpush1.bf16.msra.mxu0 %v3509_v8  ;;  %2574 = vmatprep.subr.bf16.mxu1 %v3544_v10  ;;  %v3597_v8 = vld [vmem:[%s3873_s17 + $0xf8] ss:$36 sps:$4 sm:$0xff]   ;;  %v3606_v10 = vld [vmem:[%s3873_s17 + $0x3c8] ss:$36 sps:$4 sm:$0xff]  }
 0x203   : > { %2539 = vmatprep.subr.bf16.mxu0 %v3517_v11  ;;  %v3607_v11 = vld [vmem:[%s3873_s17 + $0x188] ss:$36 sps:$4 sm:$0xff]  }
 0x205   : > { %2575 = vmatpush1.bf16.msra.mxu1 %v3542_v12  ;;  %v3611_v12 = vld [vmem:[%s3873_s17 + $0x410] ss:$36 sps:$4 sm:$0xff]  }
 0x206   : > { %2540 = vmatpush1.bf16.msra.mxu0 %v3515_v13  ;;  %2576 = vmatprep.subr.bf16.mxu1 %v3550_v14  ;;  %v3612_v13 = vld [vmem:[%s3873_s17 + $0x1d0] ss:$36 sps:$4 sm:$0xff]   ;;  %v3616_v14 = vld [vmem:[%s3873_s17 + $0x458] ss:$36 sps:$4 sm:$0xff]  }
 0x207   : > { %2541 = vmatprep.subr.bf16.mxu0 %v3523_v15  ;;  %v3617_v15 = vld [vmem:[%s3873_s17 + $0x218] ss:$36 sps:$4 sm:$0xff]  }
 0x209   : > { %2577 = vmatpush1.bf16.msra.mxu1 %v3548_v17 }
 0x20a   : > { %2542 = vmatpush1.bf16.msra.mxu0 %v3521_v16  ;;  %2578 = vmatprep.subr.bf16.mxu1 %v3556_v18  ;;  %v1662_v16 = vld [vmem:[%s3917_s7] sm:$0xff] }
 0x20b   : > { %2543 = vmatprep.subr.bf16.mxu0 %v3529_v19  ;;  %v1669_v17 = vrot.slane %v1662_v16, %v4115_v6  ;;  %v1673_v18 = vrot.slane %v1662_v16, %v4112_v5 }
 0x20d   : > { %2579 = vmatpush1.bf16.msra.mxu1 %v3554_v21 }
 0x20e   : > { %2544 = vmatpush1.bf16.msra.mxu0 %v3527_v20  ;;  %2580 = vmatprep.subr.bf16.mxu1 %v3562_v22 }
 0x20f   : > { %2545 = vmatprep.subr.bf16.mxu0 %v3535_v23 }
 0x211   : > { %2581 = vmatpush1.bf16.msra.mxu1 %v3560_v25  ;;  %v1676_v25 = vsub.s32 2, %v4105_v0 }
 0x212   : > { %2546 = vmatpush1.bf16.msra.mxu0 %v3533_v24  ;;  %2582 = vmatprep.subr.bf16.mxu1 %v3568_v26  ;;  %v1680_v26 = vsub.s32 3, %v4105_v0 }
 0x213   : > { %2547 = vmatprep.subr.bf16.mxu0 %v3541_v27 }
 0x214   : > { %v1681_v27 = vrot.slane %v1662_v16, %v1680_v26 }
 0x215   : > { %2583 = vmatpush1.bf16.msra.mxu1 %v3566_v30 }
 0x216   : > { %2548 = vmatpush1.bf16.msra.mxu0 %v3539_v28  ;;  %2584 = vmatprep.subr.bf16.mxu1 %v3574_v31 }
 0x217   : > { %2549 = vmatprep.subr.bf16.mxu0 %v3547_v32 }
 0x219   : > { %2585 = vmatpush1.bf16.msra.mxu1 %v3572_v33  ;;  %v1684_v33 = vsub.s32 4, %v4105_v0 }
 0x21a   : > { %2550 = vmatpush1.bf16.msra.mxu0 %v3545_v34  ;;  %2586 = vmatprep.subr.bf16.mxu1 %v3580_v35  ;;  %v1688_v34 = vsub.s32 5, %v4105_v0 }
 0x21b   : > { %2551 = vmatprep.subr.bf16.mxu0 %v3553_v36  ;;  %v1685_v35 = vrot.slane %v1662_v16, %v1684_v33 }
 0x21c   : > { %v1689_v36 = vrot.slane %v1662_v16, %v1688_v34 }
 0x21d   : > { %2587 = vmatpush1.bf16.msra.mxu1 %v3578_v37 }
 0x21e   : > { %2552 = vmatpush1.bf16.msra.mxu0 %v3551_v38  ;;  %2588 = vmatprep.subr.bf16.mxu1 %v3585_v39 }
 0x21f   : > { %2553 = vmatprep.subr.bf16.mxu0 %v3559_v40 }
 0x221   : > { %2589 = vmatpush1.bf16.msra.mxu1 %v3583_v41 }
 0x222   : > { %2554 = vmatpush1.bf16.msra.mxu0 %v3557_v42  ;;  %2590 = vmatprep.subr.bf16.mxu1 %v3590_v43  ;;  %v1692_v43 = vsub.s32 6, %v4105_v0 }
 0x223   : > { %2555 = vmatprep.subr.bf16.mxu0 %v3565_v44  ;;  %v1696_v44 = vsub.s32 7, %v4105_v0 }
 0x225   : > { %2591 = vmatpush1.bf16.msra.mxu1 %v3588_v45  ;;  %v1693_v45 = vrot.slane %v1662_v16, %v1692_v43 }
 0x226   : > { %2556 = vmatpush1.bf16.msra.mxu0 %v3563_v46  ;;  %2592 = vmatprep.subr.bf16.mxu1 %v3595_v47  ;;  %v1697_v46 = vrot.slane %v1662_v16, %v1696_v44 }
 0x227   : > { %2557 = vmatprep.subr.bf16.mxu0 %v3571_v48 }
 0x229   : > { %2593 = vmatpush1.bf16.msra.mxu1 %v3593_v49 }
 0x22a   : > { %2558 = vmatpush1.bf16.msra.mxu0 %v3569_v50  ;;  %2594 = vmatprep.subr.bf16.mxu1 %v3600_v51 }
 0x22b   : > { %2559 = vmatprep.subr.bf16.mxu0 %v3577_v53 }
 0x22d   : > { %2595 = vmatpush1.bf16.msra.mxu1 %v3598_v54 }
 0x22e   : > { %2560 = vmatpush1.bf16.msra.mxu0 %v3575_v55  ;;  %2596 = vmatprep.subr.bf16.mxu1 %v3605_v56  ;;  %v2985_v55 = vld [vmem:[%s3917_s7 + $0x8] ss:$0 sm:$0xff] }
 0x22f   : > { %3134 = vmatprep.subr.bf16.mxu0 %v3581_v57 }
 0x231   : > { %2562 = vmatmul.mubr.bf16.vlgmr.msra.gmra.mrb[4].mxu0 %v4161_v52  ;;  %2597 = vmatpush1.bf16.msra.mxu1 %v3603_v58 }
 0x232   : > { %3135 = vmatpush3.bf16.msra.mxu0 %v3582_v59  ;;  %2598 = vmatprep.subr.bf16.mxu1 %v3610_v60 }
 0x233   : > { %3136 = vmatprep.subr.bf16.mxu0 %v3586_v61  ;;  %2643 = vmatprep.mubr.bf16.mxu0 %v4134_v29  ;;  %v3602_v29 = vld [vmem:[%s3873_s17 + $0x140] ss:$36 sps:$4 sm:$0xff]  }
 0x235   : > { %2599 = vmatpush1.bf16.msra.mxu1 %v3608_v62 }
 0x236   : > { %3137 = vmatpush3.bf16.msra.mxu0 %v3587_v63  ;;  %2600 = vmatprep.subr.bf16.mxu1 %v3615_v1 }
 0x237   : > { %3138 = vmatprep.subr.bf16.mxu0 %v3591_v2 }
 0x239   : > { %2601 = vmatpush1.bf16.msra.mxu1 %v3613_v3 }
 0x23a   : > { %3139 = vmatpush3.bf16.msra.mxu0 %v3592_v4 }
 0x23b   : > { %3140 = vmatprep.subr.bf16.mxu0 %v3596_v7 }
 0x23c   : > { %2603 = vmatmul.mubr.bf16.vlgmr.msra.gmra.mrb[4].mxu1 %v4161_v52 }
 0x23e   : > { %3141 = vmatpush3.bf16.msra.mxu0 %v3597_v8 }
 0x23f   : > { %3142 = vmatprep.subr.bf16.mxu0 %v3601_v9 }
 0x242   : > { %3143 = vmatpush3.bf16.msra.mxu0 %v3602_v29 }
 0x243   : > { %3144 = vmatprep.subr.bf16.mxu0 %v3606_v10 }
 0x246   : > { %3145 = vmatpush3.bf16.msra.mxu0 %v3607_v11 }
 0x247   : > { %3146 = vmatprep.subr.bf16.mxu0 %v3611_v12 }
 0x24a   : > { %3147 = vmatpush3.bf16.msra.mxu0 %v3612_v13 }
 0x24b   : > { %3148 = vmatprep.subr.bf16.mxu0 %v3616_v14 }
 0x24e   : > { %3149 = vmatpush3.bf16.msra.mxu0 %v3617_v15 }
 0x251   : > { %2644 = vmatmul.mubr.bf16.vlgmr.msra.gmra.mrb[8].mxu0 %v4161_v52  ;;  %v1677_v52 = vrot.slane %v1662_v16, %v1676_v25 }
 0x2c3   : > { %v2481_v19 = vpop.f32.mrb[0].mxu0 }
 0x2c4   : > { %v2482_v20 = vadd.f32 %v2481_v19, %v1669_v17  ;;  %v2483_v21 = vpop.f32.mrb[1].mxu0 }
 0x2c5   : > { %v2484_v22 = vadd.f32 %v2483_v21, %v1673_v18  ;;  %v2485_v23 = vpop.f32.mrb[2].mxu0 }
 0x2c6   : > { %2651 = vst [vmem:[%s3930_s24] sm:$0xff] %v2482_v20  ;;  %v2486_v24 = vpop.f32.mrb[3].mxu0 }
 0x2c7   : > { %2652 = vst [vmem:[%s3930_s24 + $0x8] sm:$0xff] %v2484_v22 }
 0x2cf   : > { %v2522_v28 = vpop.f32.mrb[0].mxu1 }
 0x2d0   : > { %v2523_v6 = vadd.f32 %v2522_v28, %v1677_v52  ;;  %v2524_v5 = vpop.f32.mrb[1].mxu1 }
 0x2d1   : > { %v2525_v30 = vadd.f32 %v2524_v5, %v1681_v27  ;;  %v2526_v31 = vpop.f32.mrb[2].mxu1 }
 0x2d2   : > { %2653 = vst [vmem:[%s3930_s24 + $0x10] sm:$0xff] %v2523_v6  ;;  %v2527_v32 = vpop.f32.mrb[3].mxu1 }
 0x2d3   : > { %2654 = vst [vmem:[%s3930_s24 + $0x18] sm:$0xff] %v2525_v30 }
 0x304   : > { %v2563_v37 = vpop.f32.mrb[4].mxu0 }
 0x305   : > { %v2564_v38 = vadd.f32 %v2563_v37, %v1685_v35  ;;  %v2565_v39 = vpop.f32.mrb[5].mxu0 }
 0x306   : > { %v2566_v40 = vadd.f32 %v2565_v39, %v1689_v36  ;;  %v2567_v41 = vpop.f32.mrb[6].mxu0 }
 0x307   : > { %2655 = vst [vmem:[%s3930_s24 + $0x20] sm:$0xff] %v2564_v38  ;;  %v2568_v42 = vpop.f32.mrb[7].mxu0 }
 0x308   : > { %2656 = vst [vmem:[%s3930_s24 + $0x28] sm:$0xff] %v2566_v40 }
 0x30f   : > { %v2604_v47 = vpop.f32.mrb[4].mxu1 }
 0x310   : > { %v2605_v48 = vadd.f32 %v2604_v47, %v1693_v45  ;;  %v2606_v49 = vpop.f32.mrb[5].mxu1 }
 0x311   : > { %v2607_v50 = vadd.f32 %v2606_v49, %v1697_v46  ;;  %v2608_v51 = vpop.f32.mrb[6].mxu1 }
 0x312   : > { %2657 = vst [vmem:[%s3930_s24 + $0x30] sm:$0xff] %v2605_v48  ;;  %v2609_v53 = vpop.f32.mrb[7].mxu1 }
 0x313   : > { %2658 = vst [vmem:[%s3930_s24 + $0x38] sm:$0xff] %v2607_v50 }
 0x324   : > { %v3150_v54 = vpop.f32.mrb[8].mxu0 }
 0x325   : > { %v3151_v56 = vpop.f32.mrb[9].mxu0 }
 0x326   : > { %v3152_v57 = vadd.f32 %v3151_v56, %v3150_v54  ;;  %v3153_v58 = vpop.f32.mrb[10].mxu0 }
 0x327   : > { %v3154_v59 = vpop.f32.mrb[11].mxu0 }
 0x328   : > { %v2646_v60 = vadd.f32 %v3152_v57, %v2985_v55 }
 0x32a   : > { %2659 = vst [vmem:[%s3930_s24 + $0x40] sm:$0xff] %v2646_v60 }
 0x32b PF: > { %s4312_s26 = sld [smem:[#allocation13_spill]]  ;;  %s4313_s27 = sld [smem:[#allocation14_spill]] }
 0x32c   : > { %s4314_s2 = sld [smem:[#allocation15_spill]]  ;;  %p35_p3 = scmp.ge.s32.totalorder %s3811_s30, 23  }
 0x32d   : > { %s4315_s28 = smov %s3811_s30 }
 0x32e   :  { %37 = sbr.rel (!%p35_p3) target bundleno = 39 (0x27), region = 119 }
 0x335   :  { %2703 = vsyncpa [#allocation8], 1 }
 0x336   :  { %2705 = vsyncpa [#allocation8 + $0x1], 1 }

// kernel: forward.4
= control target key start
LH: loop header
LB: loop body
LE: loop exit
PB: predicated region body
PF: predicated region fallthrough
CT: control target
= control target key end

     0   :  { %7 = vsyncpa [#allocation3], 0  ;;  %s14772_s0 = inlined_call_operand.vmem [shape: bf16[2,12,1024], index: 0, kind: input, shape index: {}]   ;;  %s14773_s1 = inlined_call_operand.hbm [shape: bf16[3,1024,2048], index: 1, kind: input, shape index: {}]   ;;  %s14774_s2 = inlined_call_operand.vmem [shape: bf16[3,2,6,2048], index: 2, kind: output, shape index: {}]  }
   0x1   :  { %9 = vsyncpa [#allocation3 + $0x1], 0  ;;  %s10983_s9 = smov 0   ;;  %s10985_s10 = smov 0  }
   0x2   :  { %s10987_s11 = smov 0   ;;  %s10989_s12 = smov 0  }
   0x3   :  { %s10991_s13 = smov 0   ;;  %s10993_s14 = smov 0  }
   0x4   :  { %s10995_s15 = smov 0   ;;  %s10997_s16 = smov 0  }
   0x5 LB: > { %s9628_s17 = sadd.s32 4294967295, %s10960_s16   ;;  %s24_s18 = sadd.s32 1, %s10952_s14  ;;  %s10960_s16 = sphi %s10997_s16, %s15_s16   ;;  %s10956_s15 = sphi %s10995_s15, %s15362_s15   ;;  %s10952_s14 = sphi %s10993_s14, %s15361_s14   ;;  %s10948_s13 = sphi %s10991_s13, %s15360_s13   ;;  %s10944_s12 = sphi %s10989_s12, %s15359_s12   ;;  %s10940_s11 = sphi %s10987_s11, %s15358_s11   ;;  %s10936_s10 = sphi %s10985_s10, %s15357_s10   ;;  %s10932_s9 = sphi %s10983_s9, %s15356_s9  }
   0x6   : > { %p25_p0 = scmp.ge.s32.totalorder %s24_s18, 2  ;;  %s27_s19 = sadd.s32 1, %s10956_s15 }
   0x7   : > { %s60_s20 = sadd.s32 1, %s10940_s11  ;;  %p67_p1 = scmp.ne.s32.totalorder %s10940_s11, %s10936_s10 }
   0x8   : > { %s15364_s18 = smov (%p25_p0, %s24_s18), 0  ;;  %s15366_s19 = smov (!%p25_p0, %s27_s19), %s10956_s15 }
   0x9   : > { %p68_p2 = scmp.eq.s32.totalorder %s10960_s16, 0  ;;  %p73_p3 = scmp.ne.s32.totalorder %s10936_s10, %s10932_s9 }
   0xa   : > { %p29_p4 = scmp.ge.s32.totalorder %s15366_s19, 3  ;;  %p74_p5 = scmp.eq.s32.totalorder %s9628_s17, 0 }
   0xb   : > { %p11032_p6 = por %p68_p2, %p67_p1  ;;  %p10794_p8 = scmp.lt.s32.totalorder %s10960_s16, 6 }
   0xc   : > { %s15368_s19 = smov (%p29_p4, %s15366_s19), 0  ;;  %p11038_p7 = por %p74_p5, %p73_p3 }
   0xd   : > { %s57_s23 = ssub.s32 %s10956_s15, %s15368_s19  ;;  %s133_s24 = sand.u32 1, %s10940_s11  }
   0xe   : > { %p58_p9 = scmp.eq.s32.totalorder %s57_s23, 0  ;;  %s9632_s25 = sshll.u32 %s133_s24, 13 }
   0xf   : > { %s10690_s26 = sshll.u32 %s10956_s15, 17  ;;  %s137_s3 = scalar_lea.vmem [#allocation2], %s9632_s25 }
  0x10   : > { %s11048_s27 = scalar_select %p58_p9, %s10940_s11, %s60_s20  }
  0x11   : > { %s11053_s30 = scalar_lea.hbm %s14773_s1, %s10690_s26  ;;  %s144_s4 = sshll.u32 %s137_s3, 4  ;;  %s11061_s4 = int_to_ptr.vmem [resolvable:$true] %s144_s4 }
  0x12   : > { %p11057_p10 = pnand %p10794_p8, %p11032_p6  ;;  %s11063_s6 = scalar_lea.sflag [#allocation3], %s133_s24 }
  0x13   : > { %s10864_s7 = scalar_lea.hbm %s11053_s30, 131072  ;;  %s10869_s17 = scalar_lea.hbm %s14773_s1, 393216 }
  0x14   : > { %p10865_p11 = scmp.ne.s32.totalorder %s11053_s30, %s10864_s7  ;;  %p10866_p12 = pneg %p11057_p10 }
  0x15   : > { %p10870_p1 = scmp.lt.u32.totalorder %s11053_s30, %s14773_s1  ;;  %p10871_p2 = scmp.lt.u32.totalorder %s10869_s17, %s10864_s7 }
  0x16   : > { %p10867_p13 = pnand %p10866_p12, %p10865_p11  ;;  %p10873_p4 = scmp.lt.u32.totalorder %s10864_s7, %s11053_s30 }
  0x17   : > { %p10872_p3 = por %p10871_p2, %p10870_p1 }
  0x18   : > { %p10868_p0 = pneg %p10867_p13 }
  0x19   : > { %p10874_p5 = por %p10873_p4, %p10872_p3 }
  0x1b   : > { %p10875_p6 = pnand %p10874_p5, %p10868_p0 }
  0x1d   : > { %10878 = shalt.err (!%p10875_p6)
}
  0x1e   : > { %s10879_s23 = scalar_lea.vmem %s11061_s4, 131072  ;;  %s10962_s24 = smov [#allocation2]  }
  0x1f   : > { %p10880_p8 = scmp.ne.s32.totalorder %s11061_s4, %s10879_s23  ;;  %s10884_s25 = sshll.u32 %s10962_s24, 4  ;;  %s10885_s25 = int_to_ptr.vmem [resolvable:$false] %s10884_s25 }
  0x20   : > { %s10886_s26 = scalar_lea.vmem %s10885_s25, 262144  ;;  %p10887_p13 = scmp.lt.s32.totalorder %s11061_s4, %s10885_s25 }
  0x21   : > { %p10882_p9 = pnand %p10880_p8, %p10866_p12  ;;  %p10888_p1 = scmp.lt.s32.totalorder %s10886_s26, %s10879_s23 }
  0x23   : > { %p10883_p11 = pneg %p10882_p9  ;;  %p10889_p2 = por %p10888_p1, %p10887_p13 }
  0x25   : > { %p10890_p3 = pnand %p10889_p2, %p10883_p11 }
  0x27   : > { %10893 = shalt.err (!%p10890_p3)
}
  0x28   : > { %s10963_s28 = smov 1024   ;;  %s10964_s29 = smov 64  }
  0x29   : > { %10793 = dma.hbm_to_vmem [thread:$0]  (!%p11057_p10), %s11053_s30, 131072, %s11061_s4, %s11063_s6, %s10963_s28, %s10963_s28, %s10964_s29  }
  0x2a   : > { %p9635_p12 = scmp.ge.s32.totalorder %s10960_s16, 1  ;;  %p152_p0 = scmp.lt.s32.totalorder %s10960_s16, 7 }
  0x2c   : > { %p153_p4 = pnand %p9635_p12, %p152_p0 }
  0x2e   : > { %156 = sbr.rel (%p153_p4) target bundleno = 1426 (0x592), region = 28 }
  0x35   : > { %s158_s3 = sand.u32 1, %s10936_s10  }
  0x36   : > { %s9636_s7 = sshll.u32 %s158_s3, 13  ;;  %s159_s8 = scalar_lea.sflag [#allocation3], %s158_s3 }
  0x37   : > { %s11094_s9 = scalar_lea.vmem [#allocation2], %s9636_s7 }
  0x38   : > { %10927 = dma.done.wait (%p11038_p7), %s159_s8, 131072  }
  0x39   : > { %10929 = vsyncadd (%p11038_p7), %s159_s8, 4294836224  ;;  %v218_v0 = vld [vmem:[%s11094_s9] sm:$0xff]  ;;  %v219_v2 = vld [vmem:[%s11094_s9 + $0x8] sm:$0xff]  ;;  %p192_p7 = scmp.lt.s32.totalorder %s10944_s12, 1  ;;  %vm10965_vm2 = vmmov 1   ;;  %vm10966_vm8 = vmmov 0  }
  0x3a   : > { %v226_v1 = vld [vmem:[%s11094_s9 + $0x40] sm:$0xff]  ;;  %v227_v4 = vld [vmem:[%s11094_s9 + $0x48] sm:$0xff]  ;;  %vm11677_vm3 = vmpackc.low %vm10965_vm2, %vm10965_vm2  ;;  %vm7863_vm2 = vcmask 1045504   ;;  %p197_p10 = scmp.lt.s32.totalorder %s10948_s13, 2 }
  0x3b   : > { %v9651_v3 = vcombine.high %v218_v0, %v226_v1  ;;  %v9650_v5 = vcombine.low %v218_v0, %v226_v1  ;;  %v234_v6 = vld [vmem:[%s11094_s9 + $0x80] sm:$0xff]  ;;  %v9653_v8 = vcombine.high %v219_v2, %v227_v4  ;;  %v9652_v9 = vcombine.low %v219_v2, %v227_v4  ;;  %v235_v11 = vld [vmem:[%s11094_s9 + $0x88] sm:$0xff]  ;;  %s15370_s12 = smov (!%p192_p7, %s10944_s12), 1  ;;  %vm11726_vm9 = vmpackc.low %vm10966_vm8, %vm10966_vm8 }
  0x3c   : > { %v242_v7 = vld [vmem:[%s11094_s9 + $0xc0] sm:$0xff]  ;;  %v243_v12 = vld [vmem:[%s11094_s9 + $0xc8] sm:$0xff]  ;;  %s10691_s22 = sshll.u32 %s15370_s12, 6  ;;  %vm9360_vm8 = vsmask.f32 1280  ;;  %s15372_s13 = smov (!%p197_p10, %s10948_s13), 2 }
  0x3d   : > { %v9667_v10 = vcombine.high %v234_v6, %v242_v7  ;;  %v250_v13 = vld [vmem:[%s11094_s9 + $0x100] sm:$0xff]  ;;  %6402 = vmatprep.subr.bf16.mxu0 %v9651_v3  ;;  %v9669_v14 = vcombine.high %v235_v11, %v243_v12  ;;  %v251_v16 = vld [vmem:[%s11094_s9 + $0x108] sm:$0xff]  ;;  %6574 = vmatprep.subr.bf16.mxu1 %v9653_v8  ;;  %v9666_v18 = vcombine.low %v234_v6, %v242_v7  ;;  %s11134_s5 = scalar_lea.vmem %s14772_s0, %s10691_s22  ;;  %s9639_s6 = sshll.u32 %s15370_s12, 4 }
  0x3e   : > { %v258_v15 = vld [vmem:[%s11094_s9 + $0x140] sm:$0xff]  ;;  %v259_v17 = vld [vmem:[%s11094_s9 + $0x148] sm:$0xff]  ;;  %6403 = vmatpush1.bf16.msra.mxu0 %v9650_v5  ;;  %6575 = vmatpush1.bf16.msra.mxu1 %v9652_v9  ;;  %v9668_v19 = vcombine.low %v235_v11, %v243_v12  ;;  %s9640_s17 = sshll.u32 %s15372_s13, 5 }
  0x3f   : > { %6404 = vmatprep.subr.bf16.mxu0 %v9667_v10  ;;  %v9683_v20 = vcombine.high %v250_v13, %v258_v15  ;;  %6576 = vmatprep.subr.bf16.mxu1 %v9669_v14  ;;  %v9685_v21 = vcombine.high %v251_v16, %v259_v17  ;;  %v266_v22 = vld [vmem:[%s11094_s9 + $0x180] sm:$0xff]  ;;  %v267_v24 = vld [vmem:[%s11094_s9 + $0x188] sm:$0xff]  ;;  %v9682_v26 = vcombine.low %v250_v13, %v258_v15  ;;  %s12709_s12 = sadd.s32 %s9640_s17, %s9639_s6 }
  0x40   : > { %v274_v23 = vld [vmem:[%s11094_s9 + $0x1c0] sm:$0xff]  ;;  %v275_v25 = vld [vmem:[%s11094_s9 + $0x1c8] sm:$0xff]  ;;  %v9684_v27 = vcombine.low %v251_v16, %v259_v17  ;;  %s9641_s13 = sshll.u32 %s12709_s12, 2 }
  0x41   : > { %v9699_v28 = vcombine.high %v266_v22, %v274_v23  ;;  %v9701_v29 = vcombine.high %v267_v24, %v275_v25  ;;  %v282_v30 = vld [vmem:[%s11094_s9 + $0x200] sm:$0xff]  ;;  %v283_v32 = vld [vmem:[%s11094_s9 + $0x208] sm:$0xff]  ;;  %v9698_v34 = vcombine.low %v266_v22, %v274_v23  ;;  %v9700_v35 = vcombine.low %v267_v24, %v275_v25  ;;  %s12736_s23 = scalar_lea.vmem %s14774_s2, %s9641_s13 }
  0x42   : > { %6405 = vmatpush1.bf16.msra.mxu0 %v9666_v18  ;;  %6577 = vmatpush1.bf16.msra.mxu1 %v9668_v19  ;;  %v290_v31 = vld [vmem:[%s11094_s9 + $0x240] sm:$0xff]  ;;  %v291_v33 = vld [vmem:[%s11094_s9 + $0x248] sm:$0xff] }
  0x43   : > { %6406 = vmatprep.subr.bf16.mxu0 %v9683_v20  ;;  %6578 = vmatprep.subr.bf16.mxu1 %v9685_v21  ;;  %v9715_v36 = vcombine.high %v282_v30, %v290_v31  ;;  %v9717_v37 = vcombine.high %v283_v32, %v291_v33  ;;  %v298_v38 = vld [vmem:[%s11094_s9 + $0x280] sm:$0xff]  ;;  %v299_v40 = vld [vmem:[%s11094_s9 + $0x288] sm:$0xff]  ;;  %v9714_v42 = vcombine.low %v282_v30, %v290_v31 }
  0x44   : > { %v306_v39 = vld [vmem:[%s11094_s9 + $0x2c0] sm:$0xff]  ;;  %v307_v41 = vld [vmem:[%s11094_s9 + $0x2c8] sm:$0xff]  ;;  %v9716_v43 = vcombine.low %v283_v32, %v291_v33 }
  0x45   : > { %v9731_v44 = vcombine.high %v298_v38, %v306_v39  ;;  %v9733_v45 = vcombine.high %v299_v40, %v307_v41  ;;  %v314_v46 = vld [vmem:[%s11094_s9 + $0x300] sm:$0xff]  ;;  %v315_v48 = vld [vmem:[%s11094_s9 + $0x308] sm:$0xff]  ;;  %v9730_v50 = vcombine.low %v298_v38, %v306_v39  ;;  %v9732_v51 = vcombine.low %v299_v40, %v307_v41 }
  0x46   : > { %6407 = vmatpush1.bf16.msra.mxu0 %v9682_v26  ;;  %6579 = vmatpush1.bf16.msra.mxu1 %v9684_v27  ;;  %v322_v47 = vld [vmem:[%s11094_s9 + $0x340] sm:$0xff]  ;;  %v323_v49 = vld [vmem:[%s11094_s9 + $0x348] sm:$0xff] }
  0x47   : > { %6408 = vmatprep.subr.bf16.mxu0 %v9699_v28  ;;  %6580 = vmatprep.subr.bf16.mxu1 %v9701_v29  ;;  %v9747_v52 = vcombine.high %v314_v46, %v322_v47  ;;  %v11139_v53 = vld [vmem:[%s11134_s5] sm:$0xff]  ;;  %v9749_v55 = vcombine.high %v315_v48, %v323_v49  ;;  %v331_v59 = vld [vmem:[%s11094_s9 + $0x388] sm:$0xff]  ;;  %v9746_v61 = vcombine.low %v314_v46, %v322_v47 }
  0x48   : > { %v11142_v54 = vld [vmem:[%s11134_s5 + $0x20] sm:$0x33]  ;;  %v339_v60 = vld [vmem:[%s11094_s9 + $0x3c8] sm:$0xff]  ;;  %v9748_v62 = vcombine.low %v315_v48, %v323_v49 }
  0x49   : > { %v330_v56 = vld [vmem:[%s11094_s9 + $0x380] sm:$0xff]  ;;  %v11148_v58 = vcombine.high %v11139_v53, %v11142_v54  ;;  %v9765_v0 = vcombine.high %v331_v59, %v339_v60  ;;  %v347_v3 = vld [vmem:[%s11094_s9 + $0x408] sm:$0xff]  ;;  %v9764_v6 = vcombine.low %v331_v59, %v339_v60 }
  0x4a   : > { %6409 = vmatpush1.bf16.msra.mxu0 %v9698_v34  ;;  %6581 = vmatpush1.bf16.msra.mxu1 %v9700_v35  ;;  %v338_v57 = vld [vmem:[%s11094_s9 + $0x3c0] sm:$0xff]  ;;  %v355_v4 = vld [vmem:[%s11094_s9 + $0x448] sm:$0xff] }
  0x4b   : > { %6410 = vmatprep.subr.bf16.mxu0 %v9715_v36  ;;  %6582 = vmatprep.subr.bf16.mxu1 %v9717_v37  ;;  %14946 = vst [vmem:[#allocation5_spill] sm:$0xff] %v11148_v58  ;;  %v9763_v63 = vcombine.high %v330_v56, %v338_v57  ;;  %v346_v1 = vld [vmem:[%s11094_s9 + $0x400] sm:$0xff]  ;;  %v9762_v5 = vcombine.low %v330_v56, %v338_v57  ;;  %v363_v11 = vld [vmem:[%s11094_s9 + $0x488] sm:$0xff] }
  0x4c   : > { %6434 = vmatprep.mubr.bf16.mxu0 %v11148_v58  ;;  %v354_v2 = vld [vmem:[%s11094_s9 + $0x440] sm:$0xff]  ;;  %6606 = vmatprep.mubr.bf16.mxu1 %v11148_v58  ;;  %v9781_v8 = vcombine.high %v347_v3, %v355_v4  ;;  %v371_v12 = vld [vmem:[%s11094_s9 + $0x4c8] sm:$0xff]  ;;  %v9780_v14 = vcombine.low %v347_v3, %v355_v4 }
  0x4d   : > { %v9779_v7 = vcombine.high %v346_v1, %v354_v2  ;;  %v362_v9 = vld [vmem:[%s11094_s9 + $0x480] sm:$0xff]  ;;  %v9778_v13 = vcombine.low %v346_v1, %v354_v2  ;;  %v9797_v16 = vcombine.high %v363_v11, %v371_v12  ;;  %v379_v19 = vld [vmem:[%s11094_s9 + $0x508] sm:$0xff]  ;;  %v9796_v22 = vcombine.low %v363_v11, %v371_v12 }
  0x4e   : > { %6411 = vmatpush1.bf16.msra.mxu0 %v9714_v42  ;;  %6583 = vmatpush1.bf16.msra.mxu1 %v9716_v43  ;;  %v370_v10 = vld [vmem:[%s11094_s9 + $0x4c0] sm:$0xff]  ;;  %v387_v20 = vld [vmem:[%s11094_s9 + $0x548] sm:$0xff] }
  0x4f   : > { %6412 = vmatprep.subr.bf16.mxu0 %v9731_v44  ;;  %6584 = vmatprep.subr.bf16.mxu1 %v9733_v45  ;;  %v9795_v15 = vcombine.high %v362_v9, %v370_v10  ;;  %v378_v17 = vld [vmem:[%s11094_s9 + $0x500] sm:$0xff]  ;;  %v9794_v21 = vcombine.low %v362_v9, %v370_v10  ;;  %v9813_v24 = vcombine.high %v379_v19, %v387_v20  ;;  %v395_v27 = vld [vmem:[%s11094_s9 + $0x588] sm:$0xff] }
  0x50   : > { %v386_v18 = vld [vmem:[%s11094_s9 + $0x540] sm:$0xff]  ;;  %v403_v28 = vld [vmem:[%s11094_s9 + $0x5c8] sm:$0xff]  ;;  %v9812_v30 = vcombine.low %v379_v19, %v387_v20 }
  0x51   : > { %v9811_v23 = vcombine.high %v378_v17, %v386_v18  ;;  %v394_v25 = vld [vmem:[%s11094_s9 + $0x580] sm:$0xff]  ;;  %v9810_v29 = vcombine.low %v378_v17, %v386_v18  ;;  %v9829_v32 = vcombine.high %v395_v27, %v403_v28  ;;  %v411_v35 = vld [vmem:[%s11094_s9 + $0x608] sm:$0xff]  ;;  %v9828_v38 = vcombine.low %v395_v27, %v403_v28 }
  0x52   : > { %6413 = vmatpush1.bf16.msra.mxu0 %v9730_v50  ;;  %6585 = vmatpush1.bf16.msra.mxu1 %v9732_v51  ;;  %v402_v26 = vld [vmem:[%s11094_s9 + $0x5c0] sm:$0xff]  ;;  %v419_v36 = vld [vmem:[%s11094_s9 + $0x648] sm:$0xff] }
  0x53   : > { %6414 = vmatprep.subr.bf16.mxu0 %v9747_v52  ;;  %6586 = vmatprep.subr.bf16.mxu1 %v9749_v55  ;;  %v9827_v31 = vcombine.high %v394_v25, %v402_v26  ;;  %v410_v33 = vld [vmem:[%s11094_s9 + $0x600] sm:$0xff]  ;;  %v9826_v37 = vcombine.low %v394_v25, %v402_v26  ;;  %v9845_v40 = vcombine.high %v411_v35, %v419_v36  ;;  %v427_v43 = vld [vmem:[%s11094_s9 + $0x688] sm:$0xff] }
  0x54   : > { %v418_v34 = vld [vmem:[%s11094_s9 + $0x640] sm:$0xff]  ;;  %v435_v44 = vld [vmem:[%s11094_s9 + $0x6c8] sm:$0xff]  ;;  %v9844_v46 = vcombine.low %v411_v35, %v419_v36 }
  0x55   : > { %v9843_v39 = vcombine.high %v410_v33, %v418_v34  ;;  %v426_v41 = vld [vmem:[%s11094_s9 + $0x680] sm:$0xff]  ;;  %v9842_v45 = vcombine.low %v410_v33, %v418_v34  ;;  %v9861_v48 = vcombine.high %v427_v43, %v435_v44  ;;  %v443_v51 = vld [vmem:[%s11094_s9 + $0x708] sm:$0xff]  ;;  %v9860_v56 = vcombine.low %v427_v43, %v435_v44 }
  0x56   : > { %6415 = vmatpush1.bf16.msra.mxu0 %v9746_v61  ;;  %6587 = vmatpush1.bf16.msra.mxu1 %v9748_v62  ;;  %v434_v42 = vld [vmem:[%s11094_s9 + $0x6c0] sm:$0xff]  ;;  %v451_v52 = vld [vmem:[%s11094_s9 + $0x748] sm:$0xff] }
  0x57   : > { %6416 = vmatprep.subr.bf16.mxu0 %v9763_v63  ;;  %6588 = vmatprep.subr.bf16.mxu1 %v9765_v0  ;;  %v9859_v47 = vcombine.high %v426_v41, %v434_v42  ;;  %v442_v49 = vld [vmem:[%s11094_s9 + $0x700] sm:$0xff]  ;;  %v9858_v55 = vcombine.low %v426_v41, %v434_v42  ;;  %v9877_v59 = vcombine.high %v443_v51, %v451_v52  ;;  %v459_v62 = vld [vmem:[%s11094_s9 + $0x788] sm:$0xff] }
  0x58   : > { %v450_v50 = vld [vmem:[%s11094_s9 + $0x740] sm:$0xff]  ;;  %v467_v63 = vld [vmem:[%s11094_s9 + $0x7c8] sm:$0xff]  ;;  %v9876_v1 = vcombine.low %v443_v51, %v451_v52 }
  0x59   : > { %v9875_v57 = vcombine.high %v442_v49, %v450_v50  ;;  %v458_v60 = vld [vmem:[%s11094_s9 + $0x780] sm:$0xff]  ;;  %v9874_v0 = vcombine.low %v442_v49, %v450_v50  ;;  %v9893_v3 = vcombine.high %v459_v62, %v467_v63  ;;  %v9892_v9 = vcombine.low %v459_v62, %v467_v63  ;;  %v11199_v17 = vld [vmem:[%s11134_s5 + $0x8] sm:$0xff] }
  0x5a   : > { %6417 = vmatpush1.bf16.msra.mxu0 %v9762_v5  ;;  %6589 = vmatpush1.bf16.msra.mxu1 %v9764_v6  ;;  %v466_v61 = vld [vmem:[%s11094_s9 + $0x7c0] sm:$0xff]  ;;  %v475_v6 = vld [vmem:[%s11094_s9 + $0x808] sm:$0xff] }
  0x5b   : > { %6418 = vmatprep.subr.bf16.mxu0 %v9779_v7  ;;  %6590 = vmatprep.subr.bf16.mxu1 %v9781_v8  ;;  %v9891_v2 = vcombine.high %v458_v60, %v466_v61  ;;  %v474_v4 = vld [vmem:[%s11094_s9 + $0x800] sm:$0xff]  ;;  %v483_v7 = vld [vmem:[%s11094_s9 + $0x848] sm:$0xff]  ;;  %v9890_v8 = vcombine.low %v458_v60, %v466_v61 }
  0x5c   : > { %v482_v5 = vld [vmem:[%s11094_s9 + $0x840] sm:$0xff]  ;;  %v9909_v11 = vcombine.high %v475_v6, %v483_v7  ;;  %v11202_v18 = vld [vmem:[%s11134_s5 + $0x28] sm:$0x33]  ;;  %v9908_v20 = vcombine.low %v475_v6, %v483_v7 }
  0x5d   : > { %v9907_v10 = vcombine.high %v474_v4, %v482_v5  ;;  %v490_v12 = vld [vmem:[%s11094_s9 + $0x880] sm:$0xff]  ;;  %v9906_v19 = vcombine.low %v474_v4, %v482_v5  ;;  %v515_v25 = vld [vmem:[%s11094_s9 + $0x948] sm:$0xff] }
  0x5e   : > { %6419 = vmatpush1.bf16.msra.mxu0 %v9778_v13  ;;  %6591 = vmatpush1.bf16.msra.mxu1 %v9780_v14  ;;  %v498_v13 = vld [vmem:[%s11094_s9 + $0x8c0] sm:$0xff]  ;;  %v491_v14 = vld [vmem:[%s11094_s9 + $0x888] sm:$0xff] }
  0x5f   : > { %6420 = vmatprep.subr.bf16.mxu0 %v9795_v15  ;;  %6592 = vmatprep.subr.bf16.mxu1 %v9797_v16  ;;  %v11195_v15 = vcombine.low %v11139_v53, %v11142_v54  ;;  %v499_v16 = vld [vmem:[%s11094_s9 + $0x8c8] sm:$0xff]  ;;  %v514_v53 = vld [vmem:[%s11094_s9 + $0x940] sm:$0xff]  ;;  %v11208_v54 = vcombine.high %v11199_v17, %v11202_v18  ;;  %v9922_v26 = vcombine.low %v490_v12, %v498_v13 }
  0x60   : > { %v9924_v27 = vcombine.low %v491_v14, %v499_v16  ;;  %v531_v33 = vld [vmem:[%s11094_s9 + $0x9c8] sm:$0xff] }
  0x61   : > { %14947 = vst [vmem:[#allocation6_spill] sm:$0xff] %v11195_v15  ;;  %14948 = vst [vmem:[#allocation7_spill] sm:$0xff] %v11208_v54  ;;  %v547_v41 = vld [vmem:[%s11094_s9 + $0xa48] sm:$0xff] }
  0x62   : > { %6421 = vmatpush1.bf16.msra.mxu0 %v9794_v21  ;;  %6593 = vmatpush1.bf16.msra.mxu1 %v9796_v22  ;;  %v9923_v21 = vcombine.high %v490_v12, %v498_v13  ;;  %v9925_v22 = vcombine.high %v491_v14, %v499_v16  ;;  %v563_v49 = vld [vmem:[%s11094_s9 + $0xac8] sm:$0xff] }
  0x63   : > { %6422 = vmatprep.subr.bf16.mxu0 %v9811_v23  ;;  %6594 = vmatprep.subr.bf16.mxu1 %v9813_v24  ;;  %v506_v23 = vld [vmem:[%s11094_s9 + $0x900] sm:$0xff]  ;;  %v507_v24 = vld [vmem:[%s11094_s9 + $0x908] sm:$0xff] }
  0x64   : > { %v9939_v28 = vcombine.high %v506_v23, %v514_v53  ;;  %v9938_v34 = vcombine.low %v506_v23, %v514_v53  ;;  %v9940_v35 = vcombine.low %v507_v24, %v515_v25  ;;  %v579_v60 = vld [vmem:[%s11094_s9 + $0xb48] sm:$0xff] }
  0x65   : > { %v595_v4 = vld [vmem:[%s11094_s9 + $0xbc8] sm:$0xff] }
  0x66   : > { %6423 = vmatpush1.bf16.msra.mxu0 %v9810_v29  ;;  %6595 = vmatpush1.bf16.msra.mxu1 %v9812_v30  ;;  %v9941_v29 = vcombine.high %v507_v24, %v515_v25  ;;  %v522_v30 = vld [vmem:[%s11094_s9 + $0x980] sm:$0xff]  ;;  %v611_v12 = vld [vmem:[%s11094_s9 + $0xc48] sm:$0xff] }
  0x67   : > { %6424 = vmatprep.subr.bf16.mxu0 %v9827_v31  ;;  %6596 = vmatprep.subr.bf16.mxu1 %v9829_v32  ;;  %v530_v31 = vld [vmem:[%s11094_s9 + $0x9c0] sm:$0xff]  ;;  %v523_v32 = vld [vmem:[%s11094_s9 + $0x988] sm:$0xff] }
  0x68   : > { %v9955_v36 = vcombine.high %v522_v30, %v530_v31  ;;  %v9954_v42 = vcombine.low %v522_v30, %v530_v31  ;;  %v9956_v43 = vcombine.low %v523_v32, %v531_v33  ;;  %v627_v23 = vld [vmem:[%s11094_s9 + $0xcc8] sm:$0xff] }
  0x69   : > { %v643_v30 = vld [vmem:[%s11094_s9 + $0xd48] sm:$0xff] }
  0x6a   : > { %6425 = vmatpush1.bf16.msra.mxu0 %v9826_v37  ;;  %6597 = vmatpush1.bf16.msra.mxu1 %v9828_v38  ;;  %v9957_v37 = vcombine.high %v523_v32, %v531_v33  ;;  %v538_v38 = vld [vmem:[%s11094_s9 + $0xa00] sm:$0xff] }
  0x6b   : > { %6426 = vmatprep.subr.bf16.mxu0 %v9843_v39  ;;  %6598 = vmatprep.subr.bf16.mxu1 %v9845_v40  ;;  %v546_v39 = vld [vmem:[%s11094_s9 + $0xa40] sm:$0xff]  ;;  %v539_v40 = vld [vmem:[%s11094_s9 + $0xa08] sm:$0xff] }
  0x6c   : > { %v9971_v44 = vcombine.high %v538_v38, %v546_v39  ;;  %v9970_v50 = vcombine.low %v538_v38, %v546_v39  ;;  %v9972_v51 = vcombine.low %v539_v40, %v547_v41  ;;  %v659_v38 = vld [vmem:[%s11094_s9 + $0xdc8] sm:$0xff] }
  0x6e   : > { %6427 = vmatpush1.bf16.msra.mxu0 %v9842_v45  ;;  %6599 = vmatpush1.bf16.msra.mxu1 %v9844_v46  ;;  %v9973_v45 = vcombine.high %v539_v40, %v547_v41  ;;  %v554_v46 = vld [vmem:[%s11094_s9 + $0xa80] sm:$0xff] }
  0x6f   : > { %6428 = vmatprep.subr.bf16.mxu0 %v9859_v47  ;;  %6600 = vmatprep.subr.bf16.mxu1 %v9861_v48  ;;  %v562_v47 = vld [vmem:[%s11094_s9 + $0xac0] sm:$0xff]  ;;  %v555_v48 = vld [vmem:[%s11094_s9 + $0xa88] sm:$0xff] }
  0x70   : > { %v9987_v52 = vcombine.high %v554_v46, %v562_v47  ;;  %v9986_v61 = vcombine.low %v554_v46, %v562_v47  ;;  %v9988_v62 = vcombine.low %v555_v48, %v563_v49  ;;  %v675_v46 = vld [vmem:[%s11094_s9 + $0xe48] sm:$0xff] }
  0x72   : > { %6429 = vmatpush1.bf16.msra.mxu0 %v9858_v55  ;;  %6601 = vmatpush1.bf16.msra.mxu1 %v9860_v56  ;;  %v9989_v55 = vcombine.high %v555_v48, %v563_v49  ;;  %v570_v56 = vld [vmem:[%s11094_s9 + $0xb00] sm:$0xff] }
  0x73   : > { %6430 = vmatprep.subr.bf16.mxu0 %v9875_v57  ;;  %6602 = vmatprep.subr.bf16.mxu1 %v9877_v59  ;;  %v578_v57 = vld [vmem:[%s11094_s9 + $0xb40] sm:$0xff]  ;;  %v571_v59 = vld [vmem:[%s11094_s9 + $0xb08] sm:$0xff] }
  0x74   : > { %v10003_v63 = vcombine.high %v570_v56, %v578_v57  ;;  %v10002_v5 = vcombine.low %v570_v56, %v578_v57  ;;  %v10004_v6 = vcombine.low %v571_v59, %v579_v60  ;;  %v691_v56 = vld [vmem:[%s11094_s9 + $0xec8] sm:$0xff] }
  0x76   : > { %6431 = vmatpush1.bf16.msra.mxu0 %v9874_v0  ;;  %6603 = vmatpush1.bf16.msra.mxu1 %v9876_v1  ;;  %v10005_v0 = vcombine.high %v571_v59, %v579_v60  ;;  %v586_v1 = vld [vmem:[%s11094_s9 + $0xb80] sm:$0xff] }
  0x77   : > { %6432 = vmatprep.subr.bf16.mxu0 %v9891_v2  ;;  %6604 = vmatprep.subr.bf16.mxu1 %v9893_v3  ;;  %v594_v2 = vld [vmem:[%s11094_s9 + $0xbc0] sm:$0xff]  ;;  %v587_v3 = vld [vmem:[%s11094_s9 + $0xb88] sm:$0xff] }
  0x78   : > { %v10019_v7 = vcombine.high %v586_v1, %v594_v2  ;;  %v10018_v13 = vcombine.low %v586_v1, %v594_v2  ;;  %v10020_v14 = vcombine.low %v587_v3, %v595_v4  ;;  %v707_v1 = vld [vmem:[%s11094_s9 + $0xf48] sm:$0xff] }
  0x7a   : > { %6433 = vmatpush1.bf16.msra.mxu0 %v9890_v8  ;;  %6605 = vmatpush1.bf16.msra.mxu1 %v9892_v9  ;;  %v10021_v8 = vcombine.high %v587_v3, %v595_v4  ;;  %v602_v9 = vld [vmem:[%s11094_s9 + $0xc00] sm:$0xff] }
  0x7b   : > { %6445 = vmatprep.subr.bf16.mxu0 %v9907_v10  ;;  %6617 = vmatprep.subr.bf16.mxu1 %v9909_v11  ;;  %v610_v10 = vld [vmem:[%s11094_s9 + $0xc40] sm:$0xff]  ;;  %v603_v11 = vld [vmem:[%s11094_s9 + $0xc08] sm:$0xff] }
  0x7c   : > { %v10035_v16 = vcombine.high %v602_v9, %v610_v10  ;;  %v10034_v53 = vcombine.low %v602_v9, %v610_v10  ;;  %v10036_v24 = vcombine.low %v603_v11, %v611_v12  ;;  %v723_v9 = vld [vmem:[%s11094_s9 + $0xfc8] sm:$0xff] }
  0x7d   : > { %6435 = vmatmul.mubr.bf16.vlgmr.msra.gmra.mrb[0].mxu0 %v11195_v15  ;;  %6607 = vmatmul.mubr.bf16.vlgmr.msra.gmra.mrb[0].mxu1 %v11195_v15 }
  0x7e   : > { %6446 = vmatpush1.bf16.msra.mxu0 %v9906_v19  ;;  %6618 = vmatpush1.bf16.msra.mxu1 %v9908_v20  ;;  %v10037_v19 = vcombine.high %v603_v11, %v611_v12  ;;  %v618_v20 = vld [vmem:[%s11094_s9 + $0xc80] sm:$0xff] }
  0x7f   : > { %6447 = vmatprep.subr.bf16.mxu0 %v9923_v21  ;;  %6619 = vmatprep.subr.bf16.mxu1 %v9925_v22  ;;  %v626_v21 = vld [vmem:[%s11094_s9 + $0xcc0] sm:$0xff]  ;;  %v619_v22 = vld [vmem:[%s11094_s9 + $0xc88] sm:$0xff] }
  0x80   : > { %6477 = vmatprep.mubr.bf16.mxu0 %v11208_v54  ;;  %6649 = vmatprep.mubr.bf16.mxu1 %v11208_v54  ;;  %v10051_v25 = vcombine.high %v618_v20, %v626_v21  ;;  %v10050_v31 = vcombine.low %v618_v20, %v626_v21  ;;  %v10052_v32 = vcombine.low %v619_v22, %v627_v23  ;;  %v739_v20 = vld [vmem:[%s11094_s9 + $0x1048] sm:$0xff] }
  0x82   : > { %6448 = vmatpush1.bf16.msra.mxu0 %v9922_v26  ;;  %6620 = vmatpush1.bf16.msra.mxu1 %v9924_v27  ;;  %v10053_v26 = vcombine.high %v619_v22, %v627_v23  ;;  %v634_v27 = vld [vmem:[%s11094_s9 + $0xd00] sm:$0xff] }
  0x83   : > { %6449 = vmatprep.subr.bf16.mxu0 %v9939_v28  ;;  %6621 = vmatprep.subr.bf16.mxu1 %v9941_v29  ;;  %v642_v28 = vld [vmem:[%s11094_s9 + $0xd40] sm:$0xff]  ;;  %v635_v29 = vld [vmem:[%s11094_s9 + $0xd08] sm:$0xff] }
  0x84   : > { %v10067_v33 = vcombine.high %v634_v27, %v642_v28  ;;  %v10066_v39 = vcombine.low %v634_v27, %v642_v28  ;;  %v10068_v40 = vcombine.low %v635_v29, %v643_v30  ;;  %v11277_v27 = vcombine.low %v11199_v17, %v11202_v18  ;;  %v755_v28 = vld [vmem:[%s11094_s9 + $0x10c8] sm:$0xff]  ;;  %v770_v17 = vld [vmem:[%s11094_s9 + $0x1140] sm:$0xff] }
  0x86   : > { %6450 = vmatpush1.bf16.msra.mxu0 %v9938_v34  ;;  %6622 = vmatpush1.bf16.msra.mxu1 %v9940_v35  ;;  %v10069_v34 = vcombine.high %v635_v29, %v643_v30  ;;  %v650_v35 = vld [vmem:[%s11094_s9 + $0xd80] sm:$0xff]  ;;  %14949 = vst [vmem:[#allocation8_spill] sm:$0xff] %v11277_v27  ;;  %v11281_v29 = vld [vmem:[%s11134_s5 + $0x10] sm:$0xff] }
  0x87   : > { %6451 = vmatprep.subr.bf16.mxu0 %v9955_v36  ;;  %6623 = vmatprep.subr.bf16.mxu1 %v9957_v37  ;;  %v658_v36 = vld [vmem:[%s11094_s9 + $0xdc0] sm:$0xff]  ;;  %v651_v37 = vld [vmem:[%s11094_s9 + $0xd88] sm:$0xff]  ;;  %v11284_v30 = vld [vmem:[%s11134_s5 + $0x30] sm:$0x33] }
  0x88   : > { %v10083_v41 = vcombine.high %v650_v35, %v658_v36  ;;  %v10082_v47 = vcombine.low %v650_v35, %v658_v36  ;;  %v10084_v48 = vcombine.low %v651_v37, %v659_v38  ;;  %v762_v35 = vld [vmem:[%s11094_s9 + $0x1100] sm:$0xff]  ;;  %v11290_v18 = vcombine.high %v11281_v29, %v11284_v30  ;;  %v763_v36 = vld [vmem:[%s11094_s9 + $0x1108] sm:$0xff] }
  0x8a   : > { %6452 = vmatpush1.bf16.msra.mxu0 %v9954_v42  ;;  %6624 = vmatpush1.bf16.msra.mxu1 %v9956_v43  ;;  %v10085_v42 = vcombine.high %v651_v37, %v659_v38  ;;  %v666_v43 = vld [vmem:[%s11094_s9 + $0xe00] sm:$0xff]  ;;  %14950 = vst [vmem:[#allocation9_spill] sm:$0xff] %v11290_v18  ;;  %v771_v37 = vld [vmem:[%s11094_s9 + $0x1148] sm:$0xff] }
  0x8b   : > { %6453 = vmatprep.subr.bf16.mxu0 %v9971_v44  ;;  %6625 = vmatprep.subr.bf16.mxu1 %v9973_v45  ;;  %v674_v44 = vld [vmem:[%s11094_s9 + $0xe40] sm:$0xff]  ;;  %v667_v45 = vld [vmem:[%s11094_s9 + $0xe08] sm:$0xff] }
  0x8c   : > { %v10099_v49 = vcombine.high %v666_v43, %v674_v44  ;;  %v10098_v57 = vcombine.low %v666_v43, %v674_v44  ;;  %v10100_v59 = vcombine.low %v667_v45, %v675_v46  ;;  %v786_v43 = vld [vmem:[%s11094_s9 + $0x11c0] sm:$0xff]  ;;  %v779_v44 = vld [vmem:[%s11094_s9 + $0x1188] sm:$0xff] }
  0x8e   : > { %6454 = vmatpush1.bf16.msra.mxu0 %v9970_v50  ;;  %6626 = vmatpush1.bf16.msra.mxu1 %v9972_v51  ;;  %v10101_v50 = vcombine.high %v667_v45, %v675_v46  ;;  %v682_v51 = vld [vmem:[%s11094_s9 + $0xe80] sm:$0xff]  ;;  %v787_v45 = vld [vmem:[%s11094_s9 + $0x11c8] sm:$0xff]  ;;  %v10194_v46 = vcombine.low %v762_v35, %v770_v17 }
  0x8f   : > { %6455 = vmatprep.subr.bf16.mxu0 %v9987_v52  ;;  %6627 = vmatprep.subr.bf16.mxu1 %v9989_v55  ;;  %v690_v52 = vld [vmem:[%s11094_s9 + $0xec0] sm:$0xff]  ;;  %v683_v55 = vld [vmem:[%s11094_s9 + $0xe88] sm:$0xff] }
  0x90   : > { %v10115_v60 = vcombine.high %v682_v51, %v690_v52  ;;  %v10114_v2 = vcombine.low %v682_v51, %v690_v52  ;;  %v10116_v3 = vcombine.low %v683_v55, %v691_v56  ;;  %v802_v51 = vld [vmem:[%s11094_s9 + $0x1240] sm:$0xff]  ;;  %v795_v52 = vld [vmem:[%s11094_s9 + $0x1208] sm:$0xff] }
  0x92   : > { %6456 = vmatpush1.bf16.msra.mxu0 %v9986_v61  ;;  %6628 = vmatpush1.bf16.msra.mxu1 %v9988_v62  ;;  %v10117_v61 = vcombine.high %v683_v55, %v691_v56  ;;  %v698_v62 = vld [vmem:[%s11094_s9 + $0xf00] sm:$0xff]  ;;  %v803_v55 = vld [vmem:[%s11094_s9 + $0x1248] sm:$0xff] }
  0x93   : > { %6457 = vmatprep.subr.bf16.mxu0 %v10003_v63  ;;  %6629 = vmatprep.subr.bf16.mxu1 %v10005_v0  ;;  %v706_v63 = vld [vmem:[%s11094_s9 + $0xf40] sm:$0xff]  ;;  %v699_v0 = vld [vmem:[%s11094_s9 + $0xf08] sm:$0xff] }
  0x94   : > { %v10131_v4 = vcombine.high %v698_v62, %v706_v63  ;;  %v10130_v10 = vcombine.low %v698_v62, %v706_v63  ;;  %v10132_v11 = vcombine.low %v699_v0, %v707_v1  ;;  %v818_v62 = vld [vmem:[%s11094_s9 + $0x12c0] sm:$0xff]  ;;  %v811_v63 = vld [vmem:[%s11094_s9 + $0x1288] sm:$0xff] }
  0x96   : > { %6458 = vmatpush1.bf16.msra.mxu0 %v10002_v5  ;;  %6630 = vmatpush1.bf16.msra.mxu1 %v10004_v6  ;;  %v10133_v5 = vcombine.high %v699_v0, %v707_v1  ;;  %v714_v6 = vld [vmem:[%s11094_s9 + $0xf80] sm:$0xff]  ;;  %v819_v0 = vld [vmem:[%s11094_s9 + $0x12c8] sm:$0xff] }
  0x97   : > { %6459 = vmatprep.subr.bf16.mxu0 %v10019_v7  ;;  %6631 = vmatprep.subr.bf16.mxu1 %v10021_v8  ;;  %v722_v7 = vld [vmem:[%s11094_s9 + $0xfc0] sm:$0xff]  ;;  %v715_v8 = vld [vmem:[%s11094_s9 + $0xf88] sm:$0xff] }
  0x98   : > { %v10147_v12 = vcombine.high %v714_v6, %v722_v7  ;;  %v10146_v21 = vcombine.low %v714_v6, %v722_v7  ;;  %v10148_v22 = vcombine.low %v715_v8, %v723_v9  ;;  %v834_v6 = vld [vmem:[%s11094_s9 + $0x1340] sm:$0xff]  ;;  %v827_v7 = vld [vmem:[%s11094_s9 + $0x1308] sm:$0xff] }
  0x9a   : > { %6460 = vmatpush1.bf16.msra.mxu0 %v10018_v13  ;;  %6632 = vmatpush1.bf16.msra.mxu1 %v10020_v14  ;;  %v10149_v13 = vcombine.high %v715_v8, %v723_v9  ;;  %v730_v14 = vld [vmem:[%s11094_s9 + $0x1000] sm:$0xff]  ;;  %v835_v8 = vld [vmem:[%s11094_s9 + $0x1348] sm:$0xff] }
  0x9b   : > { %6461 = vmatprep.subr.bf16.mxu0 %v10035_v16  ;;  %6633 = vmatprep.subr.bf16.mxu1 %v10037_v19  ;;  %v738_v16 = vld [vmem:[%s11094_s9 + $0x1040] sm:$0xff]  ;;  %v731_v19 = vld [vmem:[%s11094_s9 + $0x1008] sm:$0xff] }
  0x9c   : > { %v10163_v23 = vcombine.high %v730_v14, %v738_v16 }
  0x9e   : > { %6462 = vmatpush1.bf16.msra.mxu0 %v10034_v53  ;;  %6634 = vmatpush1.bf16.msra.mxu1 %v10036_v24  ;;  %v10165_v53 = vcombine.high %v731_v19, %v739_v20  ;;  %v746_v24 = vld [vmem:[%s11094_s9 + $0x1080] sm:$0xff] }
  0x9f   : > { %6463 = vmatprep.subr.bf16.mxu0 %v10051_v25  ;;  %6635 = vmatprep.subr.bf16.mxu1 %v10053_v26  ;;  %v754_v25 = vld [vmem:[%s11094_s9 + $0x10c0] sm:$0xff]  ;;  %v747_v26 = vld [vmem:[%s11094_s9 + $0x1088] sm:$0xff] }
  0xa0   : > { %v10178_v38 = vcombine.low %v746_v24, %v754_v25 }
  0xa2   : > { %6464 = vmatpush1.bf16.msra.mxu0 %v10050_v31  ;;  %6636 = vmatpush1.bf16.msra.mxu1 %v10052_v32  ;;  %v10162_v31 = vcombine.low %v730_v14, %v738_v16  ;;  %v10164_v32 = vcombine.low %v731_v19, %v739_v20  ;;  %v850_v14 = vld [vmem:[%s11094_s9 + $0x13c0] sm:$0xff]  ;;  %v843_v16 = vld [vmem:[%s11094_s9 + $0x1388] sm:$0xff] }
  0xa3   : > { %6465 = vmatprep.subr.bf16.mxu0 %v10067_v33  ;;  %6637 = vmatprep.subr.bf16.mxu1 %v10069_v34  ;;  %v10179_v33 = vcombine.high %v746_v24, %v754_v25  ;;  %v10181_v34 = vcombine.high %v747_v26, %v755_v28  ;;  %v851_v19 = vld [vmem:[%s11094_s9 + $0x13c8] sm:$0xff]  ;;  %v866_v24 = vld [vmem:[%s11094_s9 + $0x1440] sm:$0xff] }
  0xa4   : > { %v859_v25 = vld [vmem:[%s11094_s9 + $0x1408] sm:$0xff] }
  0xa6   : > { %6466 = vmatpush1.bf16.msra.mxu0 %v10066_v39  ;;  %6638 = vmatpush1.bf16.msra.mxu1 %v10068_v40  ;;  %v10180_v39 = vcombine.low %v747_v26, %v755_v28  ;;  %v10195_v40 = vcombine.high %v762_v35, %v770_v17  ;;  %v867_v26 = vld [vmem:[%s11094_s9 + $0x1448] sm:$0xff]  ;;  %v882_v35 = vld [vmem:[%s11094_s9 + $0x14c0] sm:$0xff] }
  0xa7   : > { %6467 = vmatprep.subr.bf16.mxu0 %v10083_v41  ;;  %6639 = vmatprep.subr.bf16.mxu1 %v10085_v42  ;;  %v10197_v41 = vcombine.high %v763_v36, %v771_v37  ;;  %v778_v42 = vld [vmem:[%s11094_s9 + $0x1180] sm:$0xff]  ;;  %v875_v17 = vld [vmem:[%s11094_s9 + $0x1488] sm:$0xff] }
  0xa8   : > { %v10210_v56 = vcombine.low %v778_v42, %v786_v43 }
  0xaa   : > { %6468 = vmatpush1.bf16.msra.mxu0 %v10082_v47  ;;  %6640 = vmatpush1.bf16.msra.mxu1 %v10084_v48  ;;  %v10196_v47 = vcombine.low %v763_v36, %v771_v37  ;;  %v10211_v48 = vcombine.high %v778_v42, %v786_v43  ;;  %v883_v36 = vld [vmem:[%s11094_s9 + $0x14c8] sm:$0xff]  ;;  %v898_v42 = vld [vmem:[%s11094_s9 + $0x1540] sm:$0xff] }
  0xab   : > { %6469 = vmatprep.subr.bf16.mxu0 %v10099_v49  ;;  %6641 = vmatprep.subr.bf16.mxu1 %v10101_v50  ;;  %v10213_v49 = vcombine.high %v779_v44, %v787_v45  ;;  %v794_v50 = vld [vmem:[%s11094_s9 + $0x1200] sm:$0xff]  ;;  %v891_v43 = vld [vmem:[%s11094_s9 + $0x1508] sm:$0xff] }
  0xac   : > { %v10226_v1 = vcombine.low %v794_v50, %v802_v51 }
  0xae   : > { %6470 = vmatpush1.bf16.msra.mxu0 %v10098_v57  ;;  %6642 = vmatpush1.bf16.msra.mxu1 %v10100_v59  ;;  %v10212_v57 = vcombine.low %v779_v44, %v787_v45  ;;  %v10227_v59 = vcombine.high %v794_v50, %v802_v51  ;;  %v899_v44 = vld [vmem:[%s11094_s9 + $0x1548] sm:$0xff]  ;;  %v914_v50 = vld [vmem:[%s11094_s9 + $0x15c0] sm:$0xff] }
  0xaf   : > { %6471 = vmatprep.subr.bf16.mxu0 %v10115_v60  ;;  %6643 = vmatprep.subr.bf16.mxu1 %v10117_v61  ;;  %v10229_v60 = vcombine.high %v795_v52, %v803_v55  ;;  %v810_v61 = vld [vmem:[%s11094_s9 + $0x1280] sm:$0xff]  ;;  %v907_v51 = vld [vmem:[%s11094_s9 + $0x1588] sm:$0xff] }
  0xb0   : > { %v10242_v9 = vcombine.low %v810_v61, %v818_v62 }
  0xb2   : > { %6472 = vmatpush1.bf16.msra.mxu0 %v10114_v2  ;;  %6644 = vmatpush1.bf16.msra.mxu1 %v10116_v3  ;;  %v10228_v2 = vcombine.low %v795_v52, %v803_v55  ;;  %v10243_v3 = vcombine.high %v810_v61, %v818_v62  ;;  %v915_v52 = vld [vmem:[%s11094_s9 + $0x15c8] sm:$0xff]  ;;  %v930_v61 = vld [vmem:[%s11094_s9 + $0x1640] sm:$0xff] }
  0xb3   : > { %6473 = vmatprep.subr.bf16.mxu0 %v10131_v4  ;;  %6645 = vmatprep.subr.bf16.mxu1 %v10133_v5  ;;  %v10245_v4 = vcombine.high %v811_v63, %v819_v0  ;;  %v826_v5 = vld [vmem:[%s11094_s9 + $0x1300] sm:$0xff]  ;;  %v923_v62 = vld [vmem:[%s11094_s9 + $0x1608] sm:$0xff] }
  0xb4   : > { %v10258_v20 = vcombine.low %v826_v5, %v834_v6 }
  0xb6   : > { %6474 = vmatpush1.bf16.msra.mxu0 %v10130_v10  ;;  %6646 = vmatpush1.bf16.msra.mxu1 %v10132_v11  ;;  %v10244_v10 = vcombine.low %v811_v63, %v819_v0  ;;  %v10259_v11 = vcombine.high %v826_v5, %v834_v6  ;;  %v931_v63 = vld [vmem:[%s11094_s9 + $0x1648] sm:$0xff]  ;;  %v946_v5 = vld [vmem:[%s11094_s9 + $0x16c0] sm:$0xff] }
  0xb7   : > { %6475 = vmatprep.subr.bf16.mxu0 %v10147_v12  ;;  %6647 = vmatprep.subr.bf16.mxu1 %v10149_v13  ;;  %v10261_v12 = vcombine.high %v827_v7, %v835_v8  ;;  %v842_v13 = vld [vmem:[%s11094_s9 + $0x1380] sm:$0xff]  ;;  %v939_v6 = vld [vmem:[%s11094_s9 + $0x1688] sm:$0xff] }
  0xb8   : > { %v10274_v28 = vcombine.low %v842_v13, %v850_v14 }
  0xba   : > { %6476 = vmatpush1.bf16.msra.mxu0 %v10146_v21  ;;  %6648 = vmatpush1.bf16.msra.mxu1 %v10148_v22  ;;  %v10260_v21 = vcombine.low %v827_v7, %v835_v8  ;;  %v10275_v22 = vcombine.high %v842_v13, %v850_v14  ;;  %v947_v7 = vld [vmem:[%s11094_s9 + $0x16c8] sm:$0xff]  ;;  %v962_v13 = vld [vmem:[%s11094_s9 + $0x1740] sm:$0xff] }
  0xbb   : > { %6488 = vmatprep.subr.bf16.mxu0 %v10163_v23  ;;  %6660 = vmatprep.subr.bf16.mxu1 %v10165_v53  ;;  %v10277_v23 = vcombine.high %v843_v16, %v851_v19  ;;  %v858_v53 = vld [vmem:[%s11094_s9 + $0x1400] sm:$0xff]  ;;  %v955_v14 = vld [vmem:[%s11094_s9 + $0x1708] sm:$0xff] }
  0xbc   : > { %v10290_v37 = vcombine.low %v858_v53, %v866_v24 }
  0xbd   : > { %6478 = vmatmul.mubr.bf16.vlgmr.msra.gmra.mrb[0].mxu0 %v11277_v27  ;;  %6650 = vmatmul.mubr.bf16.vlgmr.msra.gmra.mrb[0].mxu1 %v11277_v27 }
  0xbe   : > { %6489 = vmatpush1.bf16.msra.mxu0 %v10162_v31  ;;  %6661 = vmatpush1.bf16.msra.mxu1 %v10164_v32  ;;  %v10276_v31 = vcombine.low %v843_v16, %v851_v19  ;;  %v10291_v32 = vcombine.high %v858_v53, %v866_v24  ;;  %v963_v16 = vld [vmem:[%s11094_s9 + $0x1748] sm:$0xff]  ;;  %v978_v53 = vld [vmem:[%s11094_s9 + $0x17c0] sm:$0xff] }
  0xbf   : > { %6490 = vmatprep.subr.bf16.mxu0 %v10179_v33  ;;  %6662 = vmatprep.subr.bf16.mxu1 %v10181_v34  ;;  %v10293_v33 = vcombine.high %v859_v25, %v867_v26  ;;  %v874_v34 = vld [vmem:[%s11094_s9 + $0x1480] sm:$0xff]  ;;  %v971_v24 = vld [vmem:[%s11094_s9 + $0x1788] sm:$0xff] }
  0xc0   : > { %6520 = vmatprep.mubr.bf16.mxu0 %v11290_v18  ;;  %6692 = vmatprep.mubr.bf16.mxu1 %v11290_v18  ;;  %v10306_v45 = vcombine.low %v874_v34, %v882_v35 }
  0xc2   : > { %6491 = vmatpush1.bf16.msra.mxu0 %v10178_v38  ;;  %6663 = vmatpush1.bf16.msra.mxu1 %v10180_v39  ;;  %v10292_v38 = vcombine.low %v859_v25, %v867_v26  ;;  %v10307_v39 = vcombine.high %v874_v34, %v882_v35  ;;  %v979_v25 = vld [vmem:[%s11094_s9 + $0x17c8] sm:$0xff]  ;;  %v994_v34 = vld [vmem:[%s11094_s9 + $0x1840] sm:$0xff] }
  0xc3   : > { %6492 = vmatprep.subr.bf16.mxu0 %v10195_v40  ;;  %6664 = vmatprep.subr.bf16.mxu1 %v10197_v41  ;;  %v10309_v40 = vcombine.high %v875_v17, %v883_v36  ;;  %v890_v41 = vld [vmem:[%s11094_s9 + $0x1500] sm:$0xff]  ;;  %v987_v35 = vld [vmem:[%s11094_s9 + $0x1808] sm:$0xff] }
  0xc4   : > { %v10322_v55 = vcombine.low %v890_v41, %v898_v42 }
  0xc6   : > { %6493 = vmatpush1.bf16.msra.mxu0 %v10194_v46  ;;  %6665 = vmatpush1.bf16.msra.mxu1 %v10196_v47  ;;  %v10308_v46 = vcombine.low %v875_v17, %v883_v36  ;;  %v10323_v47 = vcombine.high %v890_v41, %v898_v42  ;;  %v995_v17 = vld [vmem:[%s11094_s9 + $0x1848] sm:$0xff]  ;;  %v1010_v41 = vld [vmem:[%s11094_s9 + $0x18c0] sm:$0xff] }
  0xc7   : > { %6494 = vmatprep.subr.bf16.mxu0 %v10211_v48  ;;  %6666 = vmatprep.subr.bf16.mxu1 %v10213_v49  ;;  %v10325_v48 = vcombine.high %v891_v43, %v899_v44  ;;  %v906_v49 = vld [vmem:[%s11094_s9 + $0x1580] sm:$0xff]  ;;  %v1003_v42 = vld [vmem:[%s11094_s9 + $0x1888] sm:$0xff] }
  0xc8   : > { %v10338_v0 = vcombine.low %v906_v49, %v914_v50 }
  0xca   : > { %6495 = vmatpush1.bf16.msra.mxu0 %v10210_v56  ;;  %6667 = vmatpush1.bf16.msra.mxu1 %v10212_v57  ;;  %v10324_v56 = vcombine.low %v891_v43, %v899_v44  ;;  %v10339_v57 = vcombine.high %v906_v49, %v914_v50  ;;  %v11359_v43 = vcombine.low %v11281_v29, %v11284_v30  ;;  %v1011_v44 = vld [vmem:[%s11094_s9 + $0x18c8] sm:$0xff]  ;;  %v1026_v29 = vld [vmem:[%s11094_s9 + $0x1940] sm:$0xff] }
  0xcb   : > { %6496 = vmatprep.subr.bf16.mxu0 %v10227_v59  ;;  %6668 = vmatprep.subr.bf16.mxu1 %v10229_v60  ;;  %v10341_v59 = vcombine.high %v907_v51, %v915_v52  ;;  %v922_v60 = vld [vmem:[%s11094_s9 + $0x1600] sm:$0xff]  ;;  %v10437_v50 = vcombine.high %v1003_v42, %v1011_v44 }
  0xcc   : > { %v10354_v8 = vcombine.low %v922_v60, %v930_v61  ;;  %14951 = vst [vmem:[#allocation10_spill] sm:$0xff] %v11359_v43 }
  0xce   : > { %6497 = vmatpush1.bf16.msra.mxu0 %v10226_v1  ;;  %6669 = vmatpush1.bf16.msra.mxu1 %v10228_v2  ;;  %v10340_v1 = vcombine.low %v907_v51, %v915_v52  ;;  %v10355_v2 = vcombine.high %v922_v60, %v930_v61  ;;  %v1018_v51 = vld [vmem:[%s11094_s9 + $0x1900] sm:$0xff]  ;;  %v1019_v52 = vld [vmem:[%s11094_s9 + $0x1908] sm:$0xff] }
  0xcf   : > { %6498 = vmatprep.subr.bf16.mxu0 %v10243_v3  ;;  %6670 = vmatprep.subr.bf16.mxu1 %v10245_v4  ;;  %v10357_v3 = vcombine.high %v923_v62, %v931_v63  ;;  %v938_v4 = vld [vmem:[%s11094_s9 + $0x1680] sm:$0xff] }
  0xd0   : > { %v10370_v19 = vcombine.low %v938_v4, %v946_v5  ;;  %v1034_v61 = vld [vmem:[%s11094_s9 + $0x1980] sm:$0xff] }
  0xd2   : > { %6499 = vmatpush1.bf16.msra.mxu0 %v10242_v9  ;;  %6671 = vmatpush1.bf16.msra.mxu1 %v10244_v10  ;;  %v10356_v9 = vcombine.low %v923_v62, %v931_v63  ;;  %v10371_v10 = vcombine.high %v938_v4, %v946_v5  ;;  %v1042_v62 = vld [vmem:[%s11094_s9 + $0x19c0] sm:$0xff]  ;;  %v1035_v63 = vld [vmem:[%s11094_s9 + $0x1988] sm:$0xff] }
  0xd3   : > { %6500 = vmatprep.subr.bf16.mxu0 %v10259_v11  ;;  %6672 = vmatprep.subr.bf16.mxu1 %v10261_v12  ;;  %v10373_v11 = vcombine.high %v939_v6, %v947_v7  ;;  %v954_v12 = vld [vmem:[%s11094_s9 + $0x1700] sm:$0xff] }
  0xd4   : > { %v10386_v26 = vcombine.low %v954_v12, %v962_v13  ;;  %v1050_v5 = vld [vmem:[%s11094_s9 + $0x1a00] sm:$0xff] }
  0xd6   : > { %6501 = vmatpush1.bf16.msra.mxu0 %v10258_v20  ;;  %6673 = vmatpush1.bf16.msra.mxu1 %v10260_v21  ;;  %v10372_v20 = vcombine.low %v939_v6, %v947_v7  ;;  %v10387_v21 = vcombine.high %v954_v12, %v962_v13  ;;  %v1058_v6 = vld [vmem:[%s11094_s9 + $0x1a40] sm:$0xff]  ;;  %v1051_v7 = vld [vmem:[%s11094_s9 + $0x1a08] sm:$0xff] }
  0xd7   : > { %6502 = vmatprep.subr.bf16.mxu0 %v10275_v22  ;;  %6674 = vmatprep.subr.bf16.mxu1 %v10277_v23  ;;  %v10389_v22 = vcombine.high %v955_v14, %v963_v16  ;;  %v970_v23 = vld [vmem:[%s11094_s9 + $0x1780] sm:$0xff] }
  0xd8   : > { %v10402_v36 = vcombine.low %v970_v23, %v978_v53  ;;  %v1066_v13 = vld [vmem:[%s11094_s9 + $0x1a80] sm:$0xff] }
  0xda   : > { %6503 = vmatpush1.bf16.msra.mxu0 %v10274_v28  ;;  %6675 = vmatpush1.bf16.msra.mxu1 %v10276_v31  ;;  %v10388_v28 = vcombine.low %v955_v14, %v963_v16  ;;  %v10403_v31 = vcombine.high %v970_v23, %v978_v53  ;;  %v1074_v14 = vld [vmem:[%s11094_s9 + $0x1ac0] sm:$0xff]  ;;  %v1067_v16 = vld [vmem:[%s11094_s9 + $0x1a88] sm:$0xff] }
  0xdb   : > { %6504 = vmatprep.subr.bf16.mxu0 %v10291_v32  ;;  %6676 = vmatprep.subr.bf16.mxu1 %v10293_v33  ;;  %v10405_v32 = vcombine.high %v971_v24, %v979_v25  ;;  %v986_v33 = vld [vmem:[%s11094_s9 + $0x1800] sm:$0xff] }
  0xdc   : > { %v1082_v53 = vld [vmem:[%s11094_s9 + $0x1b00] sm:$0xff] }
  0xde   : > { %6505 = vmatpush1.bf16.msra.mxu0 %v10290_v37  ;;  %6677 = vmatpush1.bf16.msra.mxu1 %v10292_v38  ;;  %v10404_v37 = vcombine.low %v971_v24, %v979_v25  ;;  %v10419_v38 = vcombine.high %v986_v33, %v994_v34  ;;  %v1090_v24 = vld [vmem:[%s11094_s9 + $0x1b40] sm:$0xff]  ;;  %v1083_v25 = vld [vmem:[%s11094_s9 + $0x1b08] sm:$0xff] }
  0xdf   : > { %6506 = vmatprep.subr.bf16.mxu0 %v10307_v39  ;;  %6678 = vmatprep.subr.bf16.mxu1 %v10309_v40  ;;  %v10421_v39 = vcombine.high %v987_v35, %v995_v17  ;;  %v1002_v40 = vld [vmem:[%s11094_s9 + $0x1880] sm:$0xff] }
  0xe0   : > { %v10435_v49 = vcombine.high %v1002_v40, %v1010_v41 }
  0xe2   : > { %6507 = vmatpush1.bf16.msra.mxu0 %v10306_v45  ;;  %6679 = vmatpush1.bf16.msra.mxu1 %v10308_v46  ;;  %v11363_v45 = vld [vmem:[%s11134_s5 + $0x18] sm:$0xff] }
  0xe3   : > { %6508 = vmatprep.subr.bf16.mxu0 %v10323_v47  ;;  %6680 = vmatprep.subr.bf16.mxu1 %v10325_v48  ;;  %v11366_v46 = vld [vmem:[%s11134_s5 + $0x38] sm:$0x33]  ;;  %v10418_v47 = vcombine.low %v986_v33, %v994_v34  ;;  %v10420_v48 = vcombine.low %v987_v35, %v995_v17  ;;  %v1098_v34 = vld [vmem:[%s11094_s9 + $0x1b80] sm:$0xff]  ;;  %v1099_v17 = vld [vmem:[%s11094_s9 + $0x1b88] sm:$0xff] }
  0xe4   : > { %v11372_v30 = vcombine.high %v11363_v45, %v11366_v46  ;;  %v1106_v35 = vld [vmem:[%s11094_s9 + $0x1bc0] sm:$0xff] }
  0xe6   : > { %6509 = vmatpush1.bf16.msra.mxu0 %v10322_v55  ;;  %6681 = vmatpush1.bf16.msra.mxu1 %v10324_v56  ;;  %14952 = vst [vmem:[#allocation11_spill] sm:$0xff] %v11372_v30  ;;  %v1027_v55 = vld [vmem:[%s11094_s9 + $0x1948] sm:$0xff]  ;;  %v10434_v56 = vcombine.low %v1002_v40, %v1010_v41  ;;  %v1114_v41 = vld [vmem:[%s11094_s9 + $0x1c00] sm:$0xff] }
  0xe7   : > { %6510 = vmatprep.subr.bf16.mxu0 %v10339_v57  ;;  %6682 = vmatprep.subr.bf16.mxu1 %v10341_v59  ;;  %v10436_v57 = vcombine.low %v1003_v42, %v1011_v44  ;;  %v10451_v59 = vcombine.high %v1018_v51, %v1026_v29  ;;  %v10453_v60 = vcombine.high %v1019_v52, %v1027_v55  ;;  %v1122_v42 = vld [vmem:[%s11094_s9 + $0x1c40] sm:$0xff]  ;;  %v1115_v44 = vld [vmem:[%s11094_s9 + $0x1c08] sm:$0xff] }
  0xea   : > { %6511 = vmatpush1.bf16.msra.mxu0 %v10338_v0  ;;  %6683 = vmatpush1.bf16.msra.mxu1 %v10340_v1  ;;  %v1043_v0 = vld [vmem:[%s11094_s9 + $0x19c8] sm:$0xff]  ;;  %v10450_v1 = vcombine.low %v1018_v51, %v1026_v29  ;;  %v1130_v29 = vld [vmem:[%s11094_s9 + $0x1c80] sm:$0xff] }
  0xeb   : > { %6512 = vmatprep.subr.bf16.mxu0 %v10355_v2  ;;  %6684 = vmatprep.subr.bf16.mxu1 %v10357_v3  ;;  %v10452_v2 = vcombine.low %v1019_v52, %v1027_v55  ;;  %v10467_v3 = vcombine.high %v1034_v61, %v1042_v62  ;;  %v10469_v4 = vcombine.high %v1035_v63, %v1043_v0  ;;  %v1138_v52 = vld [vmem:[%s11094_s9 + $0x1cc0] sm:$0xff]  ;;  %v1131_v55 = vld [vmem:[%s11094_s9 + $0x1c88] sm:$0xff] }
  0xee   : > { %6513 = vmatpush1.bf16.msra.mxu0 %v10354_v8  ;;  %6685 = vmatpush1.bf16.msra.mxu1 %v10356_v9  ;;  %v1059_v8 = vld [vmem:[%s11094_s9 + $0x1a48] sm:$0xff]  ;;  %v10466_v9 = vcombine.low %v1034_v61, %v1042_v62  ;;  %v1146_v62 = vld [vmem:[%s11094_s9 + $0x1d00] sm:$0xff] }
  0xef   : > { %6514 = vmatprep.subr.bf16.mxu0 %v10371_v10  ;;  %6686 = vmatprep.subr.bf16.mxu1 %v10373_v11  ;;  %v10468_v10 = vcombine.low %v1035_v63, %v1043_v0  ;;  %v10483_v11 = vcombine.high %v1050_v5, %v1058_v6  ;;  %v10485_v12 = vcombine.high %v1051_v7, %v1059_v8  ;;  %v1154_v63 = vld [vmem:[%s11094_s9 + $0x1d40] sm:$0xff]  ;;  %v1147_v0 = vld [vmem:[%s11094_s9 + $0x1d08] sm:$0xff] }
  0xf2   : > { %6515 = vmatpush1.bf16.msra.mxu0 %v10370_v19  ;;  %6687 = vmatpush1.bf16.msra.mxu1 %v10372_v20  ;;  %v1075_v19 = vld [vmem:[%s11094_s9 + $0x1ac8] sm:$0xff]  ;;  %v10482_v20 = vcombine.low %v1050_v5, %v1058_v6  ;;  %v1162_v6 = vld [vmem:[%s11094_s9 + $0x1d80] sm:$0xff] }
  0xf3   : > { %6516 = vmatprep.subr.bf16.mxu0 %v10387_v21  ;;  %6688 = vmatprep.subr.bf16.mxu1 %v10389_v22  ;;  %v10484_v21 = vcombine.low %v1051_v7, %v1059_v8  ;;  %v10499_v22 = vcombine.high %v1066_v13, %v1074_v14  ;;  %v10501_v23 = vcombine.high %v1067_v16, %v1075_v19  ;;  %v1170_v7 = vld [vmem:[%s11094_s9 + $0x1dc0] sm:$0xff]  ;;  %v1163_v8 = vld [vmem:[%s11094_s9 + $0x1d88] sm:$0xff] }
  0xf6   : > { %6517 = vmatpush1.bf16.msra.mxu0 %v10386_v26  ;;  %6689 = vmatpush1.bf16.msra.mxu1 %v10388_v28  ;;  %v1091_v26 = vld [vmem:[%s11094_s9 + $0x1b48] sm:$0xff]  ;;  %v10498_v28 = vcombine.low %v1066_v13, %v1074_v14  ;;  %v1178_v14 = vld [vmem:[%s11094_s9 + $0x1e00] sm:$0xff] }
  0xf7   : > { %6518 = vmatprep.subr.bf16.mxu0 %v10403_v31  ;;  %6690 = vmatprep.subr.bf16.mxu1 %v10405_v32  ;;  %v10500_v31 = vcombine.low %v1067_v16, %v1075_v19  ;;  %v10515_v32 = vcombine.high %v1082_v53, %v1090_v24  ;;  %v10517_v33 = vcombine.high %v1083_v25, %v1091_v26  ;;  %v1186_v16 = vld [vmem:[%s11094_s9 + $0x1e40] sm:$0xff]  ;;  %v1179_v19 = vld [vmem:[%s11094_s9 + $0x1e08] sm:$0xff] }
  0xfa   : > { %6519 = vmatpush1.bf16.msra.mxu0 %v10402_v36  ;;  %6691 = vmatpush1.bf16.msra.mxu1 %v10404_v37  ;;  %v1107_v36 = vld [vmem:[%s11094_s9 + $0x1bc8] sm:$0xff]  ;;  %v10514_v37 = vcombine.low %v1082_v53, %v1090_v24  ;;  %v1194_v24 = vld [vmem:[%s11094_s9 + $0x1e80] sm:$0xff] }
  0xfb   : > { %6531 = vmatprep.subr.bf16.mxu0 %v10419_v38  ;;  %6703 = vmatprep.subr.bf16.mxu1 %v10421_v39  ;;  %v10516_v38 = vcombine.low %v1083_v25, %v1091_v26  ;;  %v10531_v39 = vcombine.high %v1098_v34, %v1106_v35  ;;  %v10533_v40 = vcombine.high %v1099_v17, %v1107_v36  ;;  %v1202_v25 = vld [vmem:[%s11094_s9 + $0x1ec0] sm:$0xff]  ;;  %v1195_v26 = vld [vmem:[%s11094_s9 + $0x1e88] sm:$0xff] }
  0xfd   : > { %6521 = vmatmul.mubr.bf16.vlgmr.msra.gmra.mrb[0].mxu0 %v11359_v43  ;;  %6693 = vmatmul.mubr.bf16.vlgmr.msra.gmra.mrb[0].mxu1 %v11359_v43 }
  0xfe   : > { %6532 = vmatpush1.bf16.msra.mxu0 %v10418_v47  ;;  %6704 = vmatpush1.bf16.msra.mxu1 %v10420_v48  ;;  %v1123_v47 = vld [vmem:[%s11094_s9 + $0x1c48] sm:$0xff]  ;;  %v10530_v48 = vcombine.low %v1098_v34, %v1106_v35  ;;  %v1210_v35 = vld [vmem:[%s11094_s9 + $0x1f00] sm:$0xff] }
  0xff   : > { %6533 = vmatprep.subr.bf16.mxu0 %v10435_v49  ;;  %6705 = vmatprep.subr.bf16.mxu1 %v10437_v50  ;;  %v10532_v49 = vcombine.low %v1099_v17, %v1107_v36  ;;  %v10547_v50 = vcombine.high %v1114_v41, %v1122_v42  ;;  %v10549_v51 = vcombine.high %v1115_v44, %v1123_v47  ;;  %v1218_v17 = vld [vmem:[%s11094_s9 + $0x1f40] sm:$0xff]  ;;  %v1211_v36 = vld [vmem:[%s11094_s9 + $0x1f08] sm:$0xff] }
 0x100   : > { %6563 = vmatprep.mubr.bf16.mxu0 %v11372_v30  ;;  %6735 = vmatprep.mubr.bf16.mxu1 %v11372_v30 }
 0x102   : > { %6534 = vmatpush1.bf16.msra.mxu0 %v10434_v56  ;;  %6706 = vmatpush1.bf16.msra.mxu1 %v10436_v57  ;;  %v1139_v56 = vld [vmem:[%s11094_s9 + $0x1cc8] sm:$0xff]  ;;  %v10546_v57 = vcombine.low %v1114_v41, %v1122_v42  ;;  %v1226_v42 = vld [vmem:[%s11094_s9 + $0x1f80] sm:$0xff] }
 0x103   : > { %6535 = vmatprep.subr.bf16.mxu0 %v10451_v59  ;;  %6707 = vmatprep.subr.bf16.mxu1 %v10453_v60  ;;  %v10548_v59 = vcombine.low %v1115_v44, %v1123_v47  ;;  %v10563_v60 = vcombine.high %v1130_v29, %v1138_v52  ;;  %v10565_v61 = vcombine.high %v1131_v55, %v1139_v56  ;;  %v1234_v44 = vld [vmem:[%s11094_s9 + $0x1fc0] sm:$0xff]  ;;  %v1227_v47 = vld [vmem:[%s11094_s9 + $0x1f88] sm:$0xff] }
 0x106   : > { %6536 = vmatpush1.bf16.msra.mxu0 %v10450_v1  ;;  %6708 = vmatpush1.bf16.msra.mxu1 %v10452_v2  ;;  %v1155_v1 = vld [vmem:[%s11094_s9 + $0x1d48] sm:$0xff]  ;;  %v10562_v2 = vcombine.low %v1130_v29, %v1138_v52  ;;  %v220_v52 = vld [vmem:[%s11094_s9 + $0x10] sm:$0xff] }
 0x107   : > { %6537 = vmatprep.subr.bf16.mxu0 %v10467_v3  ;;  %6709 = vmatprep.subr.bf16.mxu1 %v10469_v4  ;;  %v10564_v3 = vcombine.low %v1131_v55, %v1139_v56  ;;  %v10579_v4 = vcombine.high %v1146_v62, %v1154_v63  ;;  %v10581_v5 = vcombine.high %v1147_v0, %v1155_v1  ;;  %v228_v55 = vld [vmem:[%s11094_s9 + $0x50] sm:$0xff]  ;;  %v221_v56 = vld [vmem:[%s11094_s9 + $0x18] sm:$0xff] }
 0x10a   : > { %6538 = vmatpush1.bf16.msra.mxu0 %v10466_v9  ;;  %6710 = vmatpush1.bf16.msra.mxu1 %v10468_v10  ;;  %v1171_v9 = vld [vmem:[%s11094_s9 + $0x1dc8] sm:$0xff]  ;;  %v10578_v10 = vcombine.low %v1146_v62, %v1154_v63  ;;  %v236_v63 = vld [vmem:[%s11094_s9 + $0x90] sm:$0xff] }
 0x10b   : > { %6539 = vmatprep.subr.bf16.mxu0 %v10483_v11  ;;  %6711 = vmatprep.subr.bf16.mxu1 %v10485_v12  ;;  %v10580_v11 = vcombine.low %v1147_v0, %v1155_v1  ;;  %v10595_v12 = vcombine.high %v1162_v6, %v1170_v7  ;;  %v10597_v13 = vcombine.high %v1163_v8, %v1171_v9  ;;  %v244_v0 = vld [vmem:[%s11094_s9 + $0xd0] sm:$0xff] }
 0x10c   : > { %v11440_v1 = vcombine.low %v11363_v45, %v11366_v46  ;;  %v253_v45 = vld [vmem:[%s11094_s9 + $0x118] sm:$0xff] }
 0x10d   : > { %v261_v46 = vld [vmem:[%s11094_s9 + $0x158] sm:$0xff] }
 0x10e   : > { %6540 = vmatpush1.bf16.msra.mxu0 %v10482_v20  ;;  %6712 = vmatpush1.bf16.msra.mxu1 %v10484_v21  ;;  %v1187_v20 = vld [vmem:[%s11094_s9 + $0x1e48] sm:$0xff]  ;;  %v10594_v21 = vcombine.low %v1162_v6, %v1170_v7  ;;  %14953 = vst [vmem:[#allocation12_spill] sm:$0xff] %v11440_v1  ;;  %v9671_v6 = vcombine.high %v236_v63, %v244_v0 }
 0x10f   : > { %6541 = vmatprep.subr.bf16.mxu0 %v10499_v22  ;;  %6713 = vmatprep.subr.bf16.mxu1 %v10501_v23  ;;  %v10596_v22 = vcombine.low %v1163_v8, %v1171_v9  ;;  %v10611_v23 = vcombine.high %v1178_v14, %v1186_v16  ;;  %v10613_v53 = vcombine.high %v1179_v19, %v1187_v20  ;;  %v252_v8 = vld [vmem:[%s11094_s9 + $0x110] sm:$0xff] }
 0x110   : > { %v260_v9 = vld [vmem:[%s11094_s9 + $0x150] sm:$0xff] }
 0x112   : > { %6542 = vmatpush1.bf16.msra.mxu0 %v10498_v28  ;;  %6714 = vmatpush1.bf16.msra.mxu1 %v10500_v31  ;;  %v1203_v28 = vld [vmem:[%s11094_s9 + $0x1ec8] sm:$0xff]  ;;  %v10610_v31 = vcombine.low %v1178_v14, %v1186_v16  ;;  %v268_v14 = vld [vmem:[%s11094_s9 + $0x190] sm:$0xff] }
 0x113   : > { %6543 = vmatprep.subr.bf16.mxu0 %v10515_v32  ;;  %6715 = vmatprep.subr.bf16.mxu1 %v10517_v33  ;;  %v10612_v32 = vcombine.low %v1179_v19, %v1187_v20  ;;  %v10627_v33 = vcombine.high %v1194_v24, %v1202_v25  ;;  %v10629_v34 = vcombine.high %v1195_v26, %v1203_v28  ;;  %v276_v16 = vld [vmem:[%s11094_s9 + $0x1d0] sm:$0xff]  ;;  %v269_v19 = vld [vmem:[%s11094_s9 + $0x198] sm:$0xff] }
 0x114   : > { %v277_v20 = vld [vmem:[%s11094_s9 + $0x1d8] sm:$0xff] }
 0x116   : > { %6544 = vmatpush1.bf16.msra.mxu0 %v10514_v37  ;;  %6716 = vmatpush1.bf16.msra.mxu1 %v10516_v38  ;;  %v1219_v37 = vld [vmem:[%s11094_s9 + $0x1f48] sm:$0xff]  ;;  %v10626_v38 = vcombine.low %v1194_v24, %v1202_v25  ;;  %v284_v24 = vld [vmem:[%s11094_s9 + $0x210] sm:$0xff] }
 0x117   : > { %6545 = vmatprep.subr.bf16.mxu0 %v10531_v39  ;;  %6717 = vmatprep.subr.bf16.mxu1 %v10533_v40  ;;  %v10628_v39 = vcombine.low %v1195_v26, %v1203_v28  ;;  %v10643_v40 = vcombine.high %v1210_v35, %v1218_v17  ;;  %v10645_v41 = vcombine.high %v1211_v36, %v1219_v37  ;;  %v292_v25 = vld [vmem:[%s11094_s9 + $0x250] sm:$0xff]  ;;  %v285_v26 = vld [vmem:[%s11094_s9 + $0x218] sm:$0xff] }
 0x118   : > { %v293_v28 = vld [vmem:[%s11094_s9 + $0x258] sm:$0xff] }
 0x11a   : > { %6546 = vmatpush1.bf16.msra.mxu0 %v10530_v48  ;;  %6718 = vmatpush1.bf16.msra.mxu1 %v10532_v49  ;;  %v1235_v48 = vld [vmem:[%s11094_s9 + $0x1fc8] sm:$0xff]  ;;  %v10642_v49 = vcombine.low %v1210_v35, %v1218_v17  ;;  %v300_v35 = vld [vmem:[%s11094_s9 + $0x290] sm:$0xff] }
 0x11b   : > { %6547 = vmatprep.subr.bf16.mxu0 %v10547_v50  ;;  %6719 = vmatprep.subr.bf16.mxu1 %v10549_v51  ;;  %v10644_v50 = vcombine.low %v1211_v36, %v1219_v37  ;;  %v10659_v51 = vcombine.high %v1226_v42, %v1234_v44  ;;  %v10661_v29 = vcombine.high %v1227_v47, %v1235_v48  ;;  %v308_v17 = vld [vmem:[%s11094_s9 + $0x2d0] sm:$0xff]  ;;  %v301_v36 = vld [vmem:[%s11094_s9 + $0x298] sm:$0xff] }
 0x11c   : > { %v309_v37 = vld [vmem:[%s11094_s9 + $0x2d8] sm:$0xff] }
 0x11e   : > { %6548 = vmatpush1.bf16.msra.mxu0 %v10546_v57  ;;  %6720 = vmatpush1.bf16.msra.mxu1 %v10548_v59  ;;  %v229_v57 = vld [vmem:[%s11094_s9 + $0x58] sm:$0xff]  ;;  %v10658_v59 = vcombine.low %v1226_v42, %v1234_v44  ;;  %v316_v42 = vld [vmem:[%s11094_s9 + $0x310] sm:$0xff] }
 0x11f   : > { %6549 = vmatprep.subr.bf16.mxu0 %v10563_v60  ;;  %6721 = vmatprep.subr.bf16.mxu1 %v10565_v61  ;;  %v10660_v60 = vcombine.low %v1227_v47, %v1235_v48  ;;  %v9655_v61 = vcombine.high %v220_v52, %v228_v55  ;;  %v9657_v62 = vcombine.high %v221_v56, %v229_v57  ;;  %v324_v44 = vld [vmem:[%s11094_s9 + $0x350] sm:$0xff]  ;;  %v317_v47 = vld [vmem:[%s11094_s9 + $0x318] sm:$0xff] }
 0x120   : > { %v325_v48 = vld [vmem:[%s11094_s9 + $0x358] sm:$0xff] }
 0x122   : > { %6550 = vmatpush1.bf16.msra.mxu0 %v10562_v2  ;;  %6722 = vmatpush1.bf16.msra.mxu1 %v10564_v3  ;;  %v237_v2 = vld [vmem:[%s11094_s9 + $0x98] sm:$0xff] }
 0x123   : > { %6551 = vmatprep.subr.bf16.mxu0 %v10579_v4  ;;  %6723 = vmatprep.subr.bf16.mxu1 %v10581_v5  ;;  %v245_v3 = vld [vmem:[%s11094_s9 + $0xd8] sm:$0xff]  ;;  %v9654_v4 = vcombine.low %v220_v52, %v228_v55  ;;  %v9656_v5 = vcombine.low %v221_v56, %v229_v57  ;;  %v332_v52 = vld [vmem:[%s11094_s9 + $0x390] sm:$0xff] }
 0x124   : > { %v9673_v7 = vcombine.high %v237_v2, %v245_v3  ;;  %v340_v55 = vld [vmem:[%s11094_s9 + $0x3d0] sm:$0xff]  ;;  %v333_v56 = vld [vmem:[%s11094_s9 + $0x398] sm:$0xff] }
 0x125   : > { %v341_v57 = vld [vmem:[%s11094_s9 + $0x3d8] sm:$0xff] }
 0x126   : > { %6552 = vmatpush1.bf16.msra.mxu0 %v10578_v10  ;;  %6724 = vmatpush1.bf16.msra.mxu1 %v10580_v11  ;;  %v9670_v10 = vcombine.low %v236_v63, %v244_v0  ;;  %v9672_v11 = vcombine.low %v237_v2, %v245_v3  ;;  %v348_v63 = vld [vmem:[%s11094_s9 + $0x410] sm:$0xff]  ;;  %v349_v2 = vld [vmem:[%s11094_s9 + $0x418] sm:$0xff] }
 0x127   : > { %6553 = vmatprep.subr.bf16.mxu0 %v10595_v12  ;;  %6725 = vmatprep.subr.bf16.mxu1 %v10597_v13  ;;  %v9687_v12 = vcombine.high %v252_v8, %v260_v9  ;;  %v9689_v13 = vcombine.high %v253_v45, %v261_v46  ;;  %v356_v0 = vld [vmem:[%s11094_s9 + $0x450] sm:$0xff]  ;;  %v357_v3 = vld [vmem:[%s11094_s9 + $0x458] sm:$0xff] }
 0x12a   : > { %6554 = vmatpush1.bf16.msra.mxu0 %v10594_v21  ;;  %6726 = vmatpush1.bf16.msra.mxu1 %v10596_v22  ;;  %v9686_v21 = vcombine.low %v252_v8, %v260_v9  ;;  %v9688_v22 = vcombine.low %v253_v45, %v261_v46  ;;  %v364_v8 = vld [vmem:[%s11094_s9 + $0x490] sm:$0xff]  ;;  %v365_v45 = vld [vmem:[%s11094_s9 + $0x498] sm:$0xff] }
 0x12b   : > { %6555 = vmatprep.subr.bf16.mxu0 %v10611_v23  ;;  %6727 = vmatprep.subr.bf16.mxu1 %v10613_v53  ;;  %v9703_v23 = vcombine.high %v268_v14, %v276_v16  ;;  %v9705_v53 = vcombine.high %v269_v19, %v277_v20  ;;  %v372_v9 = vld [vmem:[%s11094_s9 + $0x4d0] sm:$0xff]  ;;  %v373_v46 = vld [vmem:[%s11094_s9 + $0x4d8] sm:$0xff] }
 0x12e   : > { %6556 = vmatpush1.bf16.msra.mxu0 %v10610_v31  ;;  %6728 = vmatpush1.bf16.msra.mxu1 %v10612_v32  ;;  %v9702_v31 = vcombine.low %v268_v14, %v276_v16  ;;  %v9704_v32 = vcombine.low %v269_v19, %v277_v20  ;;  %v380_v14 = vld [vmem:[%s11094_s9 + $0x510] sm:$0xff]  ;;  %v381_v19 = vld [vmem:[%s11094_s9 + $0x518] sm:$0xff] }
 0x12f   : > { %6557 = vmatprep.subr.bf16.mxu0 %v10627_v33  ;;  %6729 = vmatprep.subr.bf16.mxu1 %v10629_v34  ;;  %v9719_v33 = vcombine.high %v284_v24, %v292_v25  ;;  %v9721_v34 = vcombine.high %v285_v26, %v293_v28  ;;  %v388_v16 = vld [vmem:[%s11094_s9 + $0x550] sm:$0xff]  ;;  %v389_v20 = vld [vmem:[%s11094_s9 + $0x558] sm:$0xff] }
 0x132   : > { %6558 = vmatpush1.bf16.msra.mxu0 %v10626_v38  ;;  %6730 = vmatpush1.bf16.msra.mxu1 %v10628_v39  ;;  %v9718_v38 = vcombine.low %v284_v24, %v292_v25  ;;  %v9720_v39 = vcombine.low %v285_v26, %v293_v28  ;;  %v396_v24 = vld [vmem:[%s11094_s9 + $0x590] sm:$0xff]  ;;  %v397_v26 = vld [vmem:[%s11094_s9 + $0x598] sm:$0xff] }
 0x133   : > { %6559 = vmatprep.subr.bf16.mxu0 %v10643_v40  ;;  %6731 = vmatprep.subr.bf16.mxu1 %v10645_v41  ;;  %v9735_v40 = vcombine.high %v300_v35, %v308_v17  ;;  %v9737_v41 = vcombine.high %v301_v36, %v309_v37  ;;  %v404_v25 = vld [vmem:[%s11094_s9 + $0x5d0] sm:$0xff]  ;;  %v405_v28 = vld [vmem:[%s11094_s9 + $0x5d8] sm:$0xff] }
 0x136   : > { %6560 = vmatpush1.bf16.msra.mxu0 %v10642_v49  ;;  %6732 = vmatpush1.bf16.msra.mxu1 %v10644_v50  ;;  %v9734_v49 = vcombine.low %v300_v35, %v308_v17  ;;  %v9736_v50 = vcombine.low %v301_v36, %v309_v37  ;;  %v412_v35 = vld [vmem:[%s11094_s9 + $0x610] sm:$0xff]  ;;  %v413_v36 = vld [vmem:[%s11094_s9 + $0x618] sm:$0xff] }
 0x137   : > { %6561 = vmatprep.subr.bf16.mxu0 %v10659_v51  ;;  %6733 = vmatprep.subr.bf16.mxu1 %v10661_v29  ;;  %v9751_v51 = vcombine.high %v316_v42, %v324_v44  ;;  %v9753_v29 = vcombine.high %v317_v47, %v325_v48  ;;  %v420_v17 = vld [vmem:[%s11094_s9 + $0x650] sm:$0xff]  ;;  %v421_v37 = vld [vmem:[%s11094_s9 + $0x658] sm:$0xff] }
 0x13a   : > { %6562 = vmatpush1.bf16.msra.mxu0 %v10658_v59  ;;  %6734 = vmatpush1.bf16.msra.mxu1 %v10660_v60  ;;  %v9750_v59 = vcombine.low %v316_v42, %v324_v44  ;;  %v9752_v60 = vcombine.low %v317_v47, %v325_v48  ;;  %v428_v42 = vld [vmem:[%s11094_s9 + $0x690] sm:$0xff]  ;;  %v429_v47 = vld [vmem:[%s11094_s9 + $0x698] sm:$0xff] }
 0x13b   : > { %6746 = vmatprep.subr.bf16.mxu0 %v9655_v61  ;;  %6918 = vmatprep.subr.bf16.mxu1 %v9657_v62  ;;  %v9767_v61 = vcombine.high %v332_v52, %v340_v55  ;;  %v9769_v62 = vcombine.high %v333_v56, %v341_v57  ;;  %v436_v44 = vld [vmem:[%s11094_s9 + $0x6d0] sm:$0xff]  ;;  %v437_v48 = vld [vmem:[%s11094_s9 + $0x6d8] sm:$0xff] }
 0x13d   : > { %6564 = vmatmul.mubr.bf16.vlgmr.msra.gmra.mrb[0].mxu0 %v11440_v1  ;;  %6736 = vmatmul.mubr.bf16.vlgmr.msra.gmra.mrb[0].mxu1 %v11440_v1  ;;  %v12043_v1 = vld [vmem:[%s11094_s9 + $0x1fd8] sm:$0xff] }
 0x13e   : > { %6747 = vmatpush1.bf16.msra.mxu0 %v9654_v4  ;;  %6919 = vmatpush1.bf16.msra.mxu1 %v9656_v5  ;;  %v9766_v4 = vcombine.low %v332_v52, %v340_v55  ;;  %v9768_v5 = vcombine.low %v333_v56, %v341_v57  ;;  %v444_v52 = vld [vmem:[%s11094_s9 + $0x710] sm:$0xff]  ;;  %v445_v56 = vld [vmem:[%s11094_s9 + $0x718] sm:$0xff] }
 0x13f   : > { %6748 = vmatprep.subr.bf16.mxu0 %v9671_v6  ;;  %6920 = vmatprep.subr.bf16.mxu1 %v9673_v7  ;;  %v9783_v6 = vcombine.high %v348_v63, %v356_v0  ;;  %v9785_v7 = vcombine.high %v349_v2, %v357_v3  ;;  %v452_v55 = vld [vmem:[%s11094_s9 + $0x750] sm:$0xff]  ;;  %v453_v57 = vld [vmem:[%s11094_s9 + $0x758] sm:$0xff] }
 0x140   : > { %6778 = vmatprep.mubr.bf16.mxu0 %v11148_v58  ;;  %6950 = vmatprep.mubr.bf16.mxu1 %v11148_v58  ;;  %v12040_v58 = vld [vmem:[%s11094_s9 + $0x1f98] sm:$0xff] }
 0x142   : > { %6749 = vmatpush1.bf16.msra.mxu0 %v9670_v10  ;;  %6921 = vmatpush1.bf16.msra.mxu1 %v9672_v11  ;;  %v9782_v10 = vcombine.low %v348_v63, %v356_v0  ;;  %v9784_v11 = vcombine.low %v349_v2, %v357_v3  ;;  %v460_v63 = vld [vmem:[%s11094_s9 + $0x790] sm:$0xff]  ;;  %v461_v2 = vld [vmem:[%s11094_s9 + $0x798] sm:$0xff] }
 0x143   : > { %6750 = vmatprep.subr.bf16.mxu0 %v9687_v12  ;;  %6922 = vmatprep.subr.bf16.mxu1 %v9689_v13  ;;  %v9799_v12 = vcombine.high %v364_v8, %v372_v9  ;;  %v9801_v13 = vcombine.high %v365_v45, %v373_v46  ;;  %v468_v0 = vld [vmem:[%s11094_s9 + $0x7d0] sm:$0xff]  ;;  %v469_v3 = vld [vmem:[%s11094_s9 + $0x7d8] sm:$0xff] }
 0x146   : > { %6751 = vmatpush1.bf16.msra.mxu0 %v9686_v21  ;;  %6923 = vmatpush1.bf16.msra.mxu1 %v9688_v22  ;;  %v9798_v21 = vcombine.low %v364_v8, %v372_v9  ;;  %v9800_v22 = vcombine.low %v365_v45, %v373_v46  ;;  %v476_v8 = vld [vmem:[%s11094_s9 + $0x810] sm:$0xff]  ;;  %v477_v45 = vld [vmem:[%s11094_s9 + $0x818] sm:$0xff] }
 0x147   : > { %6752 = vmatprep.subr.bf16.mxu0 %v9703_v23  ;;  %6924 = vmatprep.subr.bf16.mxu1 %v9705_v53  ;;  %v9815_v23 = vcombine.high %v380_v14, %v388_v16  ;;  %v9817_v53 = vcombine.high %v381_v19, %v389_v20  ;;  %v484_v9 = vld [vmem:[%s11094_s9 + $0x850] sm:$0xff]  ;;  %v485_v46 = vld [vmem:[%s11094_s9 + $0x858] sm:$0xff] }
 0x14a   : > { %6753 = vmatpush1.bf16.msra.mxu0 %v9702_v31  ;;  %6925 = vmatpush1.bf16.msra.mxu1 %v9704_v32  ;;  %v9814_v31 = vcombine.low %v380_v14, %v388_v16  ;;  %v9816_v32 = vcombine.low %v381_v19, %v389_v20  ;;  %v492_v14 = vld [vmem:[%s11094_s9 + $0x890] sm:$0xff]  ;;  %v493_v19 = vld [vmem:[%s11094_s9 + $0x898] sm:$0xff] }
 0x14b   : > { %6754 = vmatprep.subr.bf16.mxu0 %v9719_v33  ;;  %6926 = vmatprep.subr.bf16.mxu1 %v9721_v34  ;;  %v9831_v33 = vcombine.high %v396_v24, %v404_v25  ;;  %v9833_v34 = vcombine.high %v397_v26, %v405_v28  ;;  %v500_v16 = vld [vmem:[%s11094_s9 + $0x8d0] sm:$0xff]  ;;  %v501_v20 = vld [vmem:[%s11094_s9 + $0x8d8] sm:$0xff] }
 0x14e   : > { %6755 = vmatpush1.bf16.msra.mxu0 %v9718_v38  ;;  %6927 = vmatpush1.bf16.msra.mxu1 %v9720_v39  ;;  %v9830_v38 = vcombine.low %v396_v24, %v404_v25  ;;  %v9832_v39 = vcombine.low %v397_v26, %v405_v28  ;;  %v508_v24 = vld [vmem:[%s11094_s9 + $0x910] sm:$0xff]  ;;  %v509_v26 = vld [vmem:[%s11094_s9 + $0x918] sm:$0xff] }
 0x14f   : > { %6756 = vmatprep.subr.bf16.mxu0 %v9735_v40  ;;  %6928 = vmatprep.subr.bf16.mxu1 %v9737_v41  ;;  %v9847_v40 = vcombine.high %v412_v35, %v420_v17  ;;  %v9849_v41 = vcombine.high %v413_v36, %v421_v37  ;;  %v516_v25 = vld [vmem:[%s11094_s9 + $0x950] sm:$0xff]  ;;  %v517_v28 = vld [vmem:[%s11094_s9 + $0x958] sm:$0xff] }
 0x152   : > { %6757 = vmatpush1.bf16.msra.mxu0 %v9734_v49  ;;  %6929 = vmatpush1.bf16.msra.mxu1 %v9736_v50  ;;  %v9846_v49 = vcombine.low %v412_v35, %v420_v17  ;;  %v9848_v50 = vcombine.low %v413_v36, %v421_v37  ;;  %v524_v35 = vld [vmem:[%s11094_s9 + $0x990] sm:$0xff]  ;;  %v525_v36 = vld [vmem:[%s11094_s9 + $0x998] sm:$0xff] }
 0x153   : > { %6758 = vmatprep.subr.bf16.mxu0 %v9751_v51  ;;  %6930 = vmatprep.subr.bf16.mxu1 %v9753_v29  ;;  %v9863_v51 = vcombine.high %v428_v42, %v436_v44  ;;  %v9865_v29 = vcombine.high %v429_v47, %v437_v48  ;;  %v532_v17 = vld [vmem:[%s11094_s9 + $0x9d0] sm:$0xff]  ;;  %v533_v37 = vld [vmem:[%s11094_s9 + $0x9d8] sm:$0xff] }
 0x156   : > { %6759 = vmatpush1.bf16.msra.mxu0 %v9750_v59  ;;  %6931 = vmatpush1.bf16.msra.mxu1 %v9752_v60  ;;  %v9862_v59 = vcombine.low %v428_v42, %v436_v44  ;;  %v9864_v60 = vcombine.low %v429_v47, %v437_v48  ;;  %v540_v42 = vld [vmem:[%s11094_s9 + $0xa10] sm:$0xff]  ;;  %v541_v47 = vld [vmem:[%s11094_s9 + $0xa18] sm:$0xff] }
 0x157   : > { %6760 = vmatprep.subr.bf16.mxu0 %v9767_v61  ;;  %6932 = vmatprep.subr.bf16.mxu1 %v9769_v62  ;;  %v9879_v61 = vcombine.high %v444_v52, %v452_v55  ;;  %v9881_v62 = vcombine.high %v445_v56, %v453_v57  ;;  %v548_v44 = vld [vmem:[%s11094_s9 + $0xa50] sm:$0xff]  ;;  %v549_v48 = vld [vmem:[%s11094_s9 + $0xa58] sm:$0xff] }
 0x15a   : > { %6761 = vmatpush1.bf16.msra.mxu0 %v9766_v4  ;;  %6933 = vmatpush1.bf16.msra.mxu1 %v9768_v5  ;;  %v9878_v4 = vcombine.low %v444_v52, %v452_v55  ;;  %v9880_v5 = vcombine.low %v445_v56, %v453_v57  ;;  %v556_v52 = vld [vmem:[%s11094_s9 + $0xa90] sm:$0xff]  ;;  %v557_v56 = vld [vmem:[%s11094_s9 + $0xa98] sm:$0xff] }
 0x15b   : > { %6762 = vmatprep.subr.bf16.mxu0 %v9783_v6  ;;  %6934 = vmatprep.subr.bf16.mxu1 %v9785_v7  ;;  %v9895_v6 = vcombine.high %v460_v63, %v468_v0  ;;  %v9897_v7 = vcombine.high %v461_v2, %v469_v3  ;;  %v564_v55 = vld [vmem:[%s11094_s9 + $0xad0] sm:$0xff]  ;;  %v565_v57 = vld [vmem:[%s11094_s9 + $0xad8] sm:$0xff] }
 0x15e   : > { %6763 = vmatpush1.bf16.msra.mxu0 %v9782_v10  ;;  %6935 = vmatpush1.bf16.msra.mxu1 %v9784_v11  ;;  %v9894_v10 = vcombine.low %v460_v63, %v468_v0  ;;  %v9896_v11 = vcombine.low %v461_v2, %v469_v3  ;;  %v572_v63 = vld [vmem:[%s11094_s9 + $0xb10] sm:$0xff]  ;;  %v573_v2 = vld [vmem:[%s11094_s9 + $0xb18] sm:$0xff] }
 0x15f   : > { %6764 = vmatprep.subr.bf16.mxu0 %v9799_v12  ;;  %6936 = vmatprep.subr.bf16.mxu1 %v9801_v13  ;;  %v9911_v12 = vcombine.high %v476_v8, %v484_v9  ;;  %v9913_v13 = vcombine.high %v477_v45, %v485_v46  ;;  %v580_v0 = vld [vmem:[%s11094_s9 + $0xb50] sm:$0xff]  ;;  %v581_v3 = vld [vmem:[%s11094_s9 + $0xb58] sm:$0xff] }
 0x162   : > { %6765 = vmatpush1.bf16.msra.mxu0 %v9798_v21  ;;  %6937 = vmatpush1.bf16.msra.mxu1 %v9800_v22  ;;  %v9910_v21 = vcombine.low %v476_v8, %v484_v9  ;;  %v9912_v22 = vcombine.low %v477_v45, %v485_v46  ;;  %v588_v8 = vld [vmem:[%s11094_s9 + $0xb90] sm:$0xff]  ;;  %v589_v45 = vld [vmem:[%s11094_s9 + $0xb98] sm:$0xff] }
 0x163   : > { %6766 = vmatprep.subr.bf16.mxu0 %v9815_v23  ;;  %6938 = vmatprep.subr.bf16.mxu1 %v9817_v53  ;;  %v9927_v23 = vcombine.high %v492_v14, %v500_v16  ;;  %v9929_v53 = vcombine.high %v493_v19, %v501_v20  ;;  %v596_v9 = vld [vmem:[%s11094_s9 + $0xbd0] sm:$0xff]  ;;  %v597_v46 = vld [vmem:[%s11094_s9 + $0xbd8] sm:$0xff] }
 0x166   : > { %6767 = vmatpush1.bf16.msra.mxu0 %v9814_v31  ;;  %6939 = vmatpush1.bf16.msra.mxu1 %v9816_v32  ;;  %v9926_v31 = vcombine.low %v492_v14, %v500_v16  ;;  %v9928_v32 = vcombine.low %v493_v19, %v501_v20  ;;  %v604_v14 = vld [vmem:[%s11094_s9 + $0xc10] sm:$0xff]  ;;  %v605_v19 = vld [vmem:[%s11094_s9 + $0xc18] sm:$0xff] }
 0x167   : > { %6768 = vmatprep.subr.bf16.mxu0 %v9831_v33  ;;  %6940 = vmatprep.subr.bf16.mxu1 %v9833_v34  ;;  %v9943_v33 = vcombine.high %v508_v24, %v516_v25  ;;  %v9945_v34 = vcombine.high %v509_v26, %v517_v28  ;;  %v612_v16 = vld [vmem:[%s11094_s9 + $0xc50] sm:$0xff]  ;;  %v613_v20 = vld [vmem:[%s11094_s9 + $0xc58] sm:$0xff] }
 0x16a   : > { %6769 = vmatpush1.bf16.msra.mxu0 %v9830_v38  ;;  %6941 = vmatpush1.bf16.msra.mxu1 %v9832_v39  ;;  %v9942_v38 = vcombine.low %v508_v24, %v516_v25  ;;  %v9944_v39 = vcombine.low %v509_v26, %v517_v28  ;;  %v620_v24 = vld [vmem:[%s11094_s9 + $0xc90] sm:$0xff]  ;;  %v621_v26 = vld [vmem:[%s11094_s9 + $0xc98] sm:$0xff] }
 0x16b   : > { %6770 = vmatprep.subr.bf16.mxu0 %v9847_v40  ;;  %6942 = vmatprep.subr.bf16.mxu1 %v9849_v41  ;;  %v9959_v40 = vcombine.high %v524_v35, %v532_v17  ;;  %v9961_v41 = vcombine.high %v525_v36, %v533_v37  ;;  %v628_v25 = vld [vmem:[%s11094_s9 + $0xcd0] sm:$0xff]  ;;  %v629_v28 = vld [vmem:[%s11094_s9 + $0xcd8] sm:$0xff] }
 0x16e   : > { %6771 = vmatpush1.bf16.msra.mxu0 %v9846_v49  ;;  %6943 = vmatpush1.bf16.msra.mxu1 %v9848_v50  ;;  %v9958_v49 = vcombine.low %v524_v35, %v532_v17  ;;  %v9960_v50 = vcombine.low %v525_v36, %v533_v37  ;;  %v636_v35 = vld [vmem:[%s11094_s9 + $0xd10] sm:$0xff]  ;;  %v637_v36 = vld [vmem:[%s11094_s9 + $0xd18] sm:$0xff] }
 0x16f   : > { %6772 = vmatprep.subr.bf16.mxu0 %v9863_v51  ;;  %6944 = vmatprep.subr.bf16.mxu1 %v9865_v29  ;;  %v9975_v51 = vcombine.high %v540_v42, %v548_v44  ;;  %v9977_v29 = vcombine.high %v541_v47, %v549_v48  ;;  %v644_v17 = vld [vmem:[%s11094_s9 + $0xd50] sm:$0xff]  ;;  %v645_v37 = vld [vmem:[%s11094_s9 + $0xd58] sm:$0xff] }
 0x172   : > { %6773 = vmatpush1.bf16.msra.mxu0 %v9862_v59  ;;  %6945 = vmatpush1.bf16.msra.mxu1 %v9864_v60  ;;  %v9974_v59 = vcombine.low %v540_v42, %v548_v44  ;;  %v9976_v60 = vcombine.low %v541_v47, %v549_v48  ;;  %v652_v42 = vld [vmem:[%s11094_s9 + $0xd90] sm:$0xff]  ;;  %v653_v47 = vld [vmem:[%s11094_s9 + $0xd98] sm:$0xff] }
 0x173   : > { %6774 = vmatprep.subr.bf16.mxu0 %v9879_v61  ;;  %6946 = vmatprep.subr.bf16.mxu1 %v9881_v62  ;;  %v9991_v61 = vcombine.high %v556_v52, %v564_v55  ;;  %v9993_v62 = vcombine.high %v557_v56, %v565_v57  ;;  %v660_v44 = vld [vmem:[%s11094_s9 + $0xdd0] sm:$0xff]  ;;  %v661_v48 = vld [vmem:[%s11094_s9 + $0xdd8] sm:$0xff] }
 0x176   : > { %6775 = vmatpush1.bf16.msra.mxu0 %v9878_v4  ;;  %6947 = vmatpush1.bf16.msra.mxu1 %v9880_v5  ;;  %v9990_v4 = vcombine.low %v556_v52, %v564_v55  ;;  %v9992_v5 = vcombine.low %v557_v56, %v565_v57  ;;  %v668_v52 = vld [vmem:[%s11094_s9 + $0xe10] sm:$0xff]  ;;  %v669_v56 = vld [vmem:[%s11094_s9 + $0xe18] sm:$0xff] }
 0x177   : > { %6776 = vmatprep.subr.bf16.mxu0 %v9895_v6  ;;  %6948 = vmatprep.subr.bf16.mxu1 %v9897_v7  ;;  %v10007_v6 = vcombine.high %v572_v63, %v580_v0  ;;  %v10009_v7 = vcombine.high %v573_v2, %v581_v3  ;;  %v676_v55 = vld [vmem:[%s11094_s9 + $0xe50] sm:$0xff]  ;;  %v677_v57 = vld [vmem:[%s11094_s9 + $0xe58] sm:$0xff] }
 0x17a   : > { %6777 = vmatpush1.bf16.msra.mxu0 %v9894_v10  ;;  %6949 = vmatpush1.bf16.msra.mxu1 %v9896_v11  ;;  %v10006_v10 = vcombine.low %v572_v63, %v580_v0  ;;  %v10008_v11 = vcombine.low %v573_v2, %v581_v3  ;;  %v684_v63 = vld [vmem:[%s11094_s9 + $0xe90] sm:$0xff]  ;;  %v685_v2 = vld [vmem:[%s11094_s9 + $0xe98] sm:$0xff] }
 0x17b   : > { %6789 = vmatprep.subr.bf16.mxu0 %v9911_v12  ;;  %6961 = vmatprep.subr.bf16.mxu1 %v9913_v13  ;;  %v10023_v12 = vcombine.high %v588_v8, %v596_v9  ;;  %v10025_v13 = vcombine.high %v589_v45, %v597_v46  ;;  %v692_v0 = vld [vmem:[%s11094_s9 + $0xed0] sm:$0xff]  ;;  %v693_v3 = vld [vmem:[%s11094_s9 + $0xed8] sm:$0xff] }
 0x17d   : > { %6779 = vmatmul.mubr.bf16.vlgmr.msra.gmra.mrb[4].mxu0 %v11195_v15  ;;  %6951 = vmatmul.mubr.bf16.vlgmr.msra.gmra.mrb[4].mxu1 %v11195_v15  ;;  %v12002_v15 = vld [vmem:[%s11094_s9 + $0x1f50] sm:$0xff] }
 0x17e   : > { %6790 = vmatpush1.bf16.msra.mxu0 %v9910_v21  ;;  %6962 = vmatpush1.bf16.msra.mxu1 %v9912_v22  ;;  %v10022_v21 = vcombine.low %v588_v8, %v596_v9  ;;  %v10024_v22 = vcombine.low %v589_v45, %v597_v46  ;;  %v700_v8 = vld [vmem:[%s11094_s9 + $0xf10] sm:$0xff]  ;;  %v701_v45 = vld [vmem:[%s11094_s9 + $0xf18] sm:$0xff]  ;;  %14976 = vst [vmem:[#allocation20_spill] sm:$0xff] %v12002_v15  ;;  %v12146_v15 = vld [vmem:[%s11094_s9 + $0x128] sm:$0xff] }
 0x17f   : > { %6791 = vmatprep.subr.bf16.mxu0 %v9927_v23  ;;  %6963 = vmatprep.subr.bf16.mxu1 %v9929_v53  ;;  %v10039_v23 = vcombine.high %v604_v14, %v612_v16  ;;  %v10041_v53 = vcombine.high %v605_v19, %v613_v20  ;;  %v708_v9 = vld [vmem:[%s11094_s9 + $0xf50] sm:$0xff]  ;;  %v709_v46 = vld [vmem:[%s11094_s9 + $0xf58] sm:$0xff] }
 0x180   : > { %6821 = vmatprep.mubr.bf16.mxu0 %v11208_v54  ;;  %6993 = vmatprep.mubr.bf16.mxu1 %v11208_v54  ;;  %v11999_v54 = vld [vmem:[%s11094_s9 + $0x1f10] sm:$0xff] }
 0x182   : > { %6792 = vmatpush1.bf16.msra.mxu0 %v9926_v31  ;;  %6964 = vmatpush1.bf16.msra.mxu1 %v9928_v32  ;;  %v10038_v31 = vcombine.low %v604_v14, %v612_v16  ;;  %v10040_v32 = vcombine.low %v605_v19, %v613_v20  ;;  %v716_v14 = vld [vmem:[%s11094_s9 + $0xf90] sm:$0xff]  ;;  %v717_v19 = vld [vmem:[%s11094_s9 + $0xf98] sm:$0xff] }
 0x183   : > { %6793 = vmatprep.subr.bf16.mxu0 %v9943_v33  ;;  %6965 = vmatprep.subr.bf16.mxu1 %v9945_v34  ;;  %v10055_v33 = vcombine.high %v620_v24, %v628_v25  ;;  %v10057_v34 = vcombine.high %v621_v26, %v629_v28  ;;  %v724_v16 = vld [vmem:[%s11094_s9 + $0xfd0] sm:$0xff]  ;;  %v725_v20 = vld [vmem:[%s11094_s9 + $0xfd8] sm:$0xff] }
 0x186   : > { %6794 = vmatpush1.bf16.msra.mxu0 %v9942_v38  ;;  %6966 = vmatpush1.bf16.msra.mxu1 %v9944_v39  ;;  %v10054_v38 = vcombine.low %v620_v24, %v628_v25  ;;  %v10056_v39 = vcombine.low %v621_v26, %v629_v28  ;;  %v732_v24 = vld [vmem:[%s11094_s9 + $0x1010] sm:$0xff]  ;;  %v733_v26 = vld [vmem:[%s11094_s9 + $0x1018] sm:$0xff] }
 0x187   : > { %6795 = vmatprep.subr.bf16.mxu0 %v9959_v40  ;;  %6967 = vmatprep.subr.bf16.mxu1 %v9961_v41  ;;  %v10071_v40 = vcombine.high %v636_v35, %v644_v17  ;;  %v10073_v41 = vcombine.high %v637_v36, %v645_v37  ;;  %v740_v25 = vld [vmem:[%s11094_s9 + $0x1050] sm:$0xff]  ;;  %v741_v28 = vld [vmem:[%s11094_s9 + $0x1058] sm:$0xff] }
 0x18a   : > { %6796 = vmatpush1.bf16.msra.mxu0 %v9958_v49  ;;  %6968 = vmatpush1.bf16.msra.mxu1 %v9960_v50  ;;  %v10070_v49 = vcombine.low %v636_v35, %v644_v17  ;;  %v10072_v50 = vcombine.low %v637_v36, %v645_v37  ;;  %v748_v35 = vld [vmem:[%s11094_s9 + $0x1090] sm:$0xff]  ;;  %v749_v36 = vld [vmem:[%s11094_s9 + $0x1098] sm:$0xff] }
 0x18b   : > { %6797 = vmatprep.subr.bf16.mxu0 %v9975_v51  ;;  %6969 = vmatprep.subr.bf16.mxu1 %v9977_v29  ;;  %v10087_v51 = vcombine.high %v652_v42, %v660_v44  ;;  %v10089_v29 = vcombine.high %v653_v47, %v661_v48  ;;  %v756_v17 = vld [vmem:[%s11094_s9 + $0x10d0] sm:$0xff]  ;;  %v757_v37 = vld [vmem:[%s11094_s9 + $0x10d8] sm:$0xff] }
 0x18e   : > { %6798 = vmatpush1.bf16.msra.mxu0 %v9974_v59  ;;  %6970 = vmatpush1.bf16.msra.mxu1 %v9976_v60  ;;  %v10086_v59 = vcombine.low %v652_v42, %v660_v44  ;;  %v10088_v60 = vcombine.low %v653_v47, %v661_v48  ;;  %v764_v42 = vld [vmem:[%s11094_s9 + $0x1110] sm:$0xff]  ;;  %v765_v47 = vld [vmem:[%s11094_s9 + $0x1118] sm:$0xff] }
 0x18f   : > { %6799 = vmatprep.subr.bf16.mxu0 %v9991_v61  ;;  %6971 = vmatprep.subr.bf16.mxu1 %v9993_v62  ;;  %v10103_v61 = vcombine.high %v668_v52, %v676_v55  ;;  %v10105_v62 = vcombine.high %v669_v56, %v677_v57  ;;  %v772_v44 = vld [vmem:[%s11094_s9 + $0x1150] sm:$0xff]  ;;  %v773_v48 = vld [vmem:[%s11094_s9 + $0x1158] sm:$0xff] }
 0x192   : > { %6800 = vmatpush1.bf16.msra.mxu0 %v9990_v4  ;;  %6972 = vmatpush1.bf16.msra.mxu1 %v9992_v5  ;;  %v10102_v4 = vcombine.low %v668_v52, %v676_v55  ;;  %v10104_v5 = vcombine.low %v669_v56, %v677_v57  ;;  %v780_v52 = vld [vmem:[%s11094_s9 + $0x1190] sm:$0xff]  ;;  %v781_v56 = vld [vmem:[%s11094_s9 + $0x1198] sm:$0xff] }
 0x193   : > { %6801 = vmatprep.subr.bf16.mxu0 %v10007_v6  ;;  %6973 = vmatprep.subr.bf16.mxu1 %v10009_v7  ;;  %v10119_v6 = vcombine.high %v684_v63, %v692_v0  ;;  %v10121_v7 = vcombine.high %v685_v2, %v693_v3  ;;  %v788_v55 = vld [vmem:[%s11094_s9 + $0x11d0] sm:$0xff]  ;;  %v789_v57 = vld [vmem:[%s11094_s9 + $0x11d8] sm:$0xff] }
 0x196   : > { %6802 = vmatpush1.bf16.msra.mxu0 %v10006_v10  ;;  %6974 = vmatpush1.bf16.msra.mxu1 %v10008_v11  ;;  %v10118_v10 = vcombine.low %v684_v63, %v692_v0  ;;  %v10120_v11 = vcombine.low %v685_v2, %v693_v3  ;;  %v796_v63 = vld [vmem:[%s11094_s9 + $0x1210] sm:$0xff]  ;;  %v797_v2 = vld [vmem:[%s11094_s9 + $0x1218] sm:$0xff] }
 0x197   : > { %6803 = vmatprep.subr.bf16.mxu0 %v10023_v12  ;;  %6975 = vmatprep.subr.bf16.mxu1 %v10025_v13  ;;  %v10135_v12 = vcombine.high %v700_v8, %v708_v9  ;;  %v10137_v13 = vcombine.high %v701_v45, %v709_v46  ;;  %v804_v0 = vld [vmem:[%s11094_s9 + $0x1250] sm:$0xff]  ;;  %v805_v3 = vld [vmem:[%s11094_s9 + $0x1258] sm:$0xff] }
 0x19a   : > { %6804 = vmatpush1.bf16.msra.mxu0 %v10022_v21  ;;  %6976 = vmatpush1.bf16.msra.mxu1 %v10024_v22  ;;  %v10134_v21 = vcombine.low %v700_v8, %v708_v9  ;;  %v10136_v22 = vcombine.low %v701_v45, %v709_v46  ;;  %v812_v8 = vld [vmem:[%s11094_s9 + $0x1290] sm:$0xff]  ;;  %v813_v45 = vld [vmem:[%s11094_s9 + $0x1298] sm:$0xff] }
 0x19b   : > { %6805 = vmatprep.subr.bf16.mxu0 %v10039_v23  ;;  %6977 = vmatprep.subr.bf16.mxu1 %v10041_v53  ;;  %v10151_v23 = vcombine.high %v716_v14, %v724_v16  ;;  %v10153_v53 = vcombine.high %v717_v19, %v725_v20  ;;  %v820_v9 = vld [vmem:[%s11094_s9 + $0x12d0] sm:$0xff]  ;;  %v821_v46 = vld [vmem:[%s11094_s9 + $0x12d8] sm:$0xff] }
 0x19e   : > { %6806 = vmatpush1.bf16.msra.mxu0 %v10038_v31  ;;  %6978 = vmatpush1.bf16.msra.mxu1 %v10040_v32  ;;  %v10150_v31 = vcombine.low %v716_v14, %v724_v16  ;;  %v10152_v32 = vcombine.low %v717_v19, %v725_v20  ;;  %v828_v14 = vld [vmem:[%s11094_s9 + $0x1310] sm:$0xff]  ;;  %v829_v19 = vld [vmem:[%s11094_s9 + $0x1318] sm:$0xff] }
 0x19f   : > { %6807 = vmatprep.subr.bf16.mxu0 %v10055_v33  ;;  %6979 = vmatprep.subr.bf16.mxu1 %v10057_v34  ;;  %v10167_v33 = vcombine.high %v732_v24, %v740_v25  ;;  %v10169_v34 = vcombine.high %v733_v26, %v741_v28  ;;  %v836_v16 = vld [vmem:[%s11094_s9 + $0x1350] sm:$0xff]  ;;  %v837_v20 = vld [vmem:[%s11094_s9 + $0x1358] sm:$0xff] }
 0x1a2   : > { %6808 = vmatpush1.bf16.msra.mxu0 %v10054_v38  ;;  %6980 = vmatpush1.bf16.msra.mxu1 %v10056_v39  ;;  %v10166_v38 = vcombine.low %v732_v24, %v740_v25  ;;  %v10168_v39 = vcombine.low %v733_v26, %v741_v28  ;;  %v844_v24 = vld [vmem:[%s11094_s9 + $0x1390] sm:$0xff]  ;;  %v845_v26 = vld [vmem:[%s11094_s9 + $0x1398] sm:$0xff] }
 0x1a3   : > { %6809 = vmatprep.subr.bf16.mxu0 %v10071_v40  ;;  %6981 = vmatprep.subr.bf16.mxu1 %v10073_v41  ;;  %v10183_v40 = vcombine.high %v748_v35, %v756_v17  ;;  %v10185_v41 = vcombine.high %v749_v36, %v757_v37  ;;  %v852_v25 = vld [vmem:[%s11094_s9 + $0x13d0] sm:$0xff]  ;;  %v853_v28 = vld [vmem:[%s11094_s9 + $0x13d8] sm:$0xff] }
 0x1a6   : > { %6810 = vmatpush1.bf16.msra.mxu0 %v10070_v49  ;;  %6982 = vmatpush1.bf16.msra.mxu1 %v10072_v50  ;;  %v10182_v49 = vcombine.low %v748_v35, %v756_v17  ;;  %v10184_v50 = vcombine.low %v749_v36, %v757_v37  ;;  %v860_v35 = vld [vmem:[%s11094_s9 + $0x1410] sm:$0xff]  ;;  %v861_v36 = vld [vmem:[%s11094_s9 + $0x1418] sm:$0xff] }
 0x1a7   : > { %6811 = vmatprep.subr.bf16.mxu0 %v10087_v51  ;;  %6983 = vmatprep.subr.bf16.mxu1 %v10089_v29  ;;  %v10199_v51 = vcombine.high %v764_v42, %v772_v44  ;;  %v10201_v29 = vcombine.high %v765_v47, %v773_v48  ;;  %v868_v17 = vld [vmem:[%s11094_s9 + $0x1450] sm:$0xff]  ;;  %v869_v37 = vld [vmem:[%s11094_s9 + $0x1458] sm:$0xff] }
 0x1aa   : > { %6812 = vmatpush1.bf16.msra.mxu0 %v10086_v59  ;;  %6984 = vmatpush1.bf16.msra.mxu1 %v10088_v60  ;;  %v10198_v59 = vcombine.low %v764_v42, %v772_v44  ;;  %v10200_v60 = vcombine.low %v765_v47, %v773_v48  ;;  %v876_v42 = vld [vmem:[%s11094_s9 + $0x1490] sm:$0xff]  ;;  %v877_v47 = vld [vmem:[%s11094_s9 + $0x1498] sm:$0xff] }
 0x1ab   : > { %6813 = vmatprep.subr.bf16.mxu0 %v10103_v61  ;;  %6985 = vmatprep.subr.bf16.mxu1 %v10105_v62  ;;  %v10215_v61 = vcombine.high %v780_v52, %v788_v55  ;;  %v10217_v62 = vcombine.high %v781_v56, %v789_v57  ;;  %v884_v44 = vld [vmem:[%s11094_s9 + $0x14d0] sm:$0xff]  ;;  %v885_v48 = vld [vmem:[%s11094_s9 + $0x14d8] sm:$0xff] }
 0x1ae   : > { %6814 = vmatpush1.bf16.msra.mxu0 %v10102_v4  ;;  %6986 = vmatpush1.bf16.msra.mxu1 %v10104_v5  ;;  %v10214_v4 = vcombine.low %v780_v52, %v788_v55  ;;  %v10216_v5 = vcombine.low %v781_v56, %v789_v57  ;;  %v892_v52 = vld [vmem:[%s11094_s9 + $0x1510] sm:$0xff]  ;;  %v893_v56 = vld [vmem:[%s11094_s9 + $0x1518] sm:$0xff] }
 0x1af   : > { %6815 = vmatprep.subr.bf16.mxu0 %v10119_v6  ;;  %6987 = vmatprep.subr.bf16.mxu1 %v10121_v7  ;;  %v10231_v6 = vcombine.high %v796_v63, %v804_v0  ;;  %v10233_v7 = vcombine.high %v797_v2, %v805_v3  ;;  %v900_v55 = vld [vmem:[%s11094_s9 + $0x1550] sm:$0xff]  ;;  %v901_v57 = vld [vmem:[%s11094_s9 + $0x1558] sm:$0xff] }
 0x1b2   : > { %6816 = vmatpush1.bf16.msra.mxu0 %v10118_v10  ;;  %6988 = vmatpush1.bf16.msra.mxu1 %v10120_v11  ;;  %v10230_v10 = vcombine.low %v796_v63, %v804_v0  ;;  %v10232_v11 = vcombine.low %v797_v2, %v805_v3  ;;  %v908_v63 = vld [vmem:[%s11094_s9 + $0x1590] sm:$0xff]  ;;  %v909_v2 = vld [vmem:[%s11094_s9 + $0x1598] sm:$0xff] }
 0x1b3   : > { %6817 = vmatprep.subr.bf16.mxu0 %v10135_v12  ;;  %6989 = vmatprep.subr.bf16.mxu1 %v10137_v13  ;;  %v10247_v12 = vcombine.high %v812_v8, %v820_v9  ;;  %v10249_v13 = vcombine.high %v813_v45, %v821_v46  ;;  %v916_v0 = vld [vmem:[%s11094_s9 + $0x15d0] sm:$0xff]  ;;  %v917_v3 = vld [vmem:[%s11094_s9 + $0x15d8] sm:$0xff] }
 0x1b6   : > { %6818 = vmatpush1.bf16.msra.mxu0 %v10134_v21  ;;  %6990 = vmatpush1.bf16.msra.mxu1 %v10136_v22  ;;  %v10246_v21 = vcombine.low %v812_v8, %v820_v9  ;;  %v10248_v22 = vcombine.low %v813_v45, %v821_v46  ;;  %v924_v8 = vld [vmem:[%s11094_s9 + $0x1610] sm:$0xff]  ;;  %v925_v45 = vld [vmem:[%s11094_s9 + $0x1618] sm:$0xff] }
 0x1b7   : > { %6819 = vmatprep.subr.bf16.mxu0 %v10151_v23  ;;  %6991 = vmatprep.subr.bf16.mxu1 %v10153_v53  ;;  %v10263_v23 = vcombine.high %v828_v14, %v836_v16  ;;  %v10265_v53 = vcombine.high %v829_v19, %v837_v20  ;;  %v932_v9 = vld [vmem:[%s11094_s9 + $0x1650] sm:$0xff]  ;;  %v933_v46 = vld [vmem:[%s11094_s9 + $0x1658] sm:$0xff] }
 0x1ba   : > { %6820 = vmatpush1.bf16.msra.mxu0 %v10150_v31  ;;  %6992 = vmatpush1.bf16.msra.mxu1 %v10152_v32  ;;  %v10262_v31 = vcombine.low %v828_v14, %v836_v16  ;;  %v10264_v32 = vcombine.low %v829_v19, %v837_v20  ;;  %v940_v14 = vld [vmem:[%s11094_s9 + $0x1690] sm:$0xff]  ;;  %v7826_v19 = vlaneseq  ;;  %v941_v20 = vld [vmem:[%s11094_s9 + $0x1698] sm:$0xff] }
 0x1bb   : > { %6832 = vmatprep.subr.bf16.mxu0 %v10167_v33  ;;  %7004 = vmatprep.subr.bf16.mxu1 %v10169_v34  ;;  %v10279_v33 = vcombine.high %v844_v24, %v852_v25  ;;  %v10281_v34 = vcombine.high %v845_v26, %v853_v28  ;;  %v948_v16 = vld [vmem:[%s11094_s9 + $0x16d0] sm:$0xff] }
 0x1bd   : > { %6822 = vmatmul.mubr.bf16.vlgmr.msra.gmra.mrb[4].mxu0 %v11277_v27  ;;  %6994 = vmatmul.mubr.bf16.vlgmr.msra.gmra.mrb[4].mxu1 %v11277_v27 }
 0x1be   : > { %6833 = vmatpush1.bf16.msra.mxu0 %v10166_v38  ;;  %7005 = vmatpush1.bf16.msra.mxu1 %v10168_v39  ;;  %v10278_v38 = vcombine.low %v844_v24, %v852_v25  ;;  %v10280_v39 = vcombine.low %v845_v26, %v853_v28  ;;  %v956_v25 = vld [vmem:[%s11094_s9 + $0x1710] sm:$0xff]  ;;  %v11634_v28 = vshrl.u32 %v7826_v19, 7 }
 0x1bf   : > { %6834 = vmatprep.subr.bf16.mxu0 %v10183_v40  ;;  %7006 = vmatprep.subr.bf16.mxu1 %v10185_v41  ;;  %v10295_v40 = vcombine.high %v860_v35, %v868_v17  ;;  %v10297_v41 = vcombine.high %v861_v36, %v869_v37  ;;  %v964_v26 = vld [vmem:[%s11094_s9 + $0x1750] sm:$0xff] }
 0x1c0   : > { %6864 = vmatprep.mubr.bf16.mxu0 %v11290_v18  ;;  %7036 = vmatprep.mubr.bf16.mxu1 %v11290_v18  ;;  %vm8073_vm1 = vcmp.lt.s32.totalorder %v11634_v28, 6  ;;  %vm8313_vm5 = vcmp.ge.s32.totalorder %v11634_v28, 6  ;;  %vm8553_vm7 = vcmp.lt.s32.totalorder %v11634_v28, 4  ;;  %vm8793_vm10 = vcmp.ge.s32.totalorder %v11634_v28, 4  ;;  %v11976_v19 = vld [vmem:[%s11094_s9 + $0x1e90] sm:$0xff]  ;;  %v11985_v18 = vld [vmem:[%s11094_s9 + $0x1ed8] sm:$0xff] }
 0x1c1   : > { %vm11709_vm6 = vmpackc.low %vm8073_vm1, %vm8073_vm1 }
 0x1c2   : > { %6835 = vmatpush1.bf16.msra.mxu0 %v10182_v49  ;;  %7007 = vmatpush1.bf16.msra.mxu1 %v10184_v50  ;;  %v10294_v49 = vcombine.low %v860_v35, %v868_v17  ;;  %v10296_v50 = vcombine.low %v861_v36, %v869_v37  ;;  %v10391_v35 = vcombine.high %v956_v25, %v964_v26  ;;  %v972_v36 = vld [vmem:[%s11094_s9 + $0x1790] sm:$0xff]  ;;  %vm11746_vm11 = vmpackc.low %vm8313_vm5, %vm8313_vm5  ;;  %vm9275_vm5 = vcmask 1040384  }
 0x1c3   : > { %6836 = vmatprep.subr.bf16.mxu0 %v10199_v51  ;;  %7008 = vmatprep.subr.bf16.mxu1 %v10201_v29  ;;  %v10311_v51 = vcombine.high %v876_v42, %v884_v44  ;;  %v10313_v29 = vcombine.high %v877_v47, %v885_v48  ;;  %v980_v37 = vld [vmem:[%s11094_s9 + $0x17d0] sm:$0xff]  ;;  %vm11765_vm12 = vmpackc.low %vm8553_vm7, %vm8553_vm7  ;;  %vm9359_vm7 = vcmask 1041408  }
 0x1c4   : > { %vm11786_vm13 = vmpackc.low %vm8793_vm10, %vm8793_vm10  ;;  %vm9443_vm10 = vcmask 1042432  }
 0x1c6   : > { %6837 = vmatpush1.bf16.msra.mxu0 %v10198_v59  ;;  %7009 = vmatpush1.bf16.msra.mxu1 %v10200_v60  ;;  %v10310_v59 = vcombine.low %v876_v42, %v884_v44  ;;  %v10312_v60 = vcombine.low %v877_v47, %v885_v48  ;;  %v10407_v44 = vcombine.high %v972_v36, %v980_v37  ;;  %v11644_v47 = vld [vmem:[%s11094_s9 + $0x1810] sm:$0xff] }
 0x1c7   : > { %6838 = vmatprep.subr.bf16.mxu0 %v10215_v61  ;;  %7010 = vmatprep.subr.bf16.mxu1 %v10217_v62  ;;  %v10327_v61 = vcombine.high %v892_v52, %v900_v55  ;;  %v10329_v62 = vcombine.high %v893_v56, %v901_v57  ;;  %v11647_v48 = vld [vmem:[%s11094_s9 + $0x1850] sm:$0xff] }
 0x1ca   : > { %6839 = vmatpush1.bf16.msra.mxu0 %v10214_v4  ;;  %7011 = vmatpush1.bf16.msra.mxu1 %v10216_v5  ;;  %v10326_v4 = vcombine.low %v892_v52, %v900_v55  ;;  %v10328_v5 = vcombine.low %v893_v56, %v901_v57  ;;  %v11659_v52 = vld [vmem:[%s11094_s9 + $0x18d0] sm:$0xff]  ;;  %v11662_v55 = vld [vmem:[%s11094_s9 + $0x1898] sm:$0xff] }
 0x1cb   : > { %6840 = vmatprep.subr.bf16.mxu0 %v10231_v6  ;;  %7012 = vmatprep.subr.bf16.mxu1 %v10233_v7  ;;  %v10343_v6 = vcombine.high %v908_v63, %v916_v0  ;;  %v10345_v7 = vcombine.high %v909_v2, %v917_v3  ;;  %v11665_v56 = vld [vmem:[%s11094_s9 + $0x18d8] sm:$0xff]  ;;  %v11668_v57 = vld [vmem:[%s11094_s9 + $0x1910] sm:$0xff] }
 0x1ce   : > { %6841 = vmatpush1.bf16.msra.mxu0 %v10230_v10  ;;  %7013 = vmatpush1.bf16.msra.mxu1 %v10232_v11  ;;  %v10342_v10 = vcombine.low %v908_v63, %v916_v0  ;;  %v10344_v11 = vcombine.low %v909_v2, %v917_v3  ;;  %v10423_v0 = vcombine.high %v11644_v47, %v11647_v48  ;;  %v11684_v2 = vld [vmem:[%s11094_s9 + $0x1958] sm:$0xff]  ;;  %v11687_v3 = vld [vmem:[%s11094_s9 + $0x1990] sm:$0xff] }
 0x1cf   : > { %6842 = vmatprep.subr.bf16.mxu0 %v10247_v12  ;;  %7014 = vmatprep.subr.bf16.mxu1 %v10249_v13  ;;  %v10359_v12 = vcombine.high %v924_v8, %v932_v9  ;;  %v10361_v13 = vcombine.high %v925_v45, %v933_v46 }
 0x1d2   : > { %6843 = vmatpush1.bf16.msra.mxu0 %v10246_v21  ;;  %7015 = vmatpush1.bf16.msra.mxu1 %v10248_v22  ;;  %v949_v21 = vld [vmem:[%s11094_s9 + $0x16d8] sm:$0xff]  ;;  %v10358_v22 = vcombine.low %v924_v8, %v932_v9 }
 0x1d3   : > { %6844 = vmatprep.subr.bf16.mxu0 %v10263_v23  ;;  %7016 = vmatprep.subr.bf16.mxu1 %v10265_v53  ;;  %v10360_v23 = vcombine.low %v925_v45, %v933_v46  ;;  %v10375_v53 = vcombine.high %v940_v14, %v948_v16  ;;  %v10377_v24 = vcombine.high %v941_v20, %v949_v21  ;;  %v11704_v8 = vld [vmem:[%s11094_s9 + $0x1998] sm:$0xff] }
 0x1d6   : > { %6845 = vmatpush1.bf16.msra.mxu0 %v10262_v31  ;;  %7017 = vmatpush1.bf16.msra.mxu1 %v10264_v32  ;;  %v957_v31 = vld [vmem:[%s11094_s9 + $0x1718] sm:$0xff] }
 0x1d7   : > { %6846 = vmatprep.subr.bf16.mxu0 %v10279_v33  ;;  %7018 = vmatprep.subr.bf16.mxu1 %v10281_v34  ;;  %v965_v32 = vld [vmem:[%s11094_s9 + $0x1758] sm:$0xff]  ;;  %v10374_v33 = vcombine.low %v940_v14, %v948_v16  ;;  %v10376_v34 = vcombine.low %v941_v20, %v949_v21  ;;  %v10440_v14 = vcombine.low %v11662_v55, %v11665_v56  ;;  %v11738_v20 = vld [vmem:[%s11094_s9 + $0x1a50] sm:$0xff] }
 0x1d8   : > { %v10393_v17 = vcombine.high %v957_v31, %v965_v32  ;;  %v10392_v42 = vcombine.low %v957_v31, %v965_v32  ;;  %v10441_v16 = vcombine.high %v11662_v55, %v11665_v56  ;;  %v11741_v21 = vld [vmem:[%s11094_s9 + $0x1a18] sm:$0xff]  ;;  %v11897_v32 = vld [vmem:[%s11094_s9 + $0x1d10] sm:$0xff] }
 0x1d9   : > { %v11936_v55 = vld [vmem:[%s11094_s9 + $0x1dd0] sm:$0xff]  ;;  %v11939_v56 = vld [vmem:[%s11094_s9 + $0x1d98] sm:$0xff] }
 0x1da   : > { %6847 = vmatpush1.bf16.msra.mxu0 %v10278_v38  ;;  %7019 = vmatpush1.bf16.msra.mxu1 %v10280_v39  ;;  %v7828_v38 = vadd.s32 8, %v11634_v28  ;;  %v973_v39 = vld [vmem:[%s11094_s9 + $0x1798] sm:$0xff]  ;;  %v10967_v28 = vmov 0   ;;  %14968 = vst [vmem:[#allocation13_spill] sm:$0xff] %v11936_v55  ;;  %14969 = vst [vmem:[#allocation14_spill] sm:$0xff] %v11939_v56  ;;  %v11959_v31 = vld [vmem:[%s11094_s9 + $0x1e50] sm:$0xff] }
 0x1db   : > { %6848 = vmatprep.subr.bf16.mxu0 %v10295_v40  ;;  %7020 = vmatprep.subr.bf16.mxu1 %v10297_v41  ;;  %v981_v40 = vld [vmem:[%s11094_s9 + $0x17d8] sm:$0xff]  ;;  %v10390_v41 = vcombine.low %v956_v25, %v964_v26  ;;  %v11760_v26 = vld [vmem:[%s11094_s9 + $0x1a90] sm:$0xff]  ;;  %v11849_v9 = vsel %vm11786_vm13, 65537, %v10967_v28  ;;  %14972 = vst [vmem:[#allocation17_spill] sm:$0xff] %v11959_v31  ;;  %v12060_v56 = vld [vmem:[%s11094_s9 + $0x28] sm:$0xff] }
 0x1dc   : > { %vm7832_vm0 = vcmp.lt.s32.totalorder %v7828_v38, 12  ;;  %v10408_v63 = vcombine.low %v973_v39, %v981_v40  ;;  %v11757_v25 = vld [vmem:[%s11094_s9 + $0x1a58] sm:$0xff]  ;;  %v11876_v38 = vld [vmem:[%s11094_s9 + $0x1c90] sm:$0xff]  ;;  %v12063_v55 = vld [vmem:[%s11094_s9 + $0x68] sm:$0xff] }
 0x1dd   : > { %vm11691_vm4 = vmpackc.low %vm7832_vm0, %vm7832_vm0  ;;  %v12080_v31 = vld [vmem:[%s11094_s9 + $0xe0] sm:$0xff] }
 0x1de   : > { %6849 = vmatpush1.bf16.msra.mxu0 %v10294_v49  ;;  %7021 = vmatpush1.bf16.msra.mxu1 %v10296_v50  ;;  %v11650_v49 = vld [vmem:[%s11094_s9 + $0x1818] sm:$0xff]  ;;  %v10409_v50 = vcombine.high %v973_v39, %v981_v40  ;;  %14987 = vst [vmem:[#allocation27_spill] sm:$0xff] %v12080_v31 }
 0x1df   : > { %6850 = vmatprep.subr.bf16.mxu0 %v10311_v51  ;;  %7022 = vmatprep.subr.bf16.mxu1 %v10313_v29  ;;  %v11653_v51 = vld [vmem:[%s11094_s9 + $0x1858] sm:$0xff]  ;;  %v11656_v29 = vld [vmem:[%s11094_s9 + $0x1890] sm:$0xff] }
 0x1e0   : > { %v10424_v45 = vcombine.low %v11650_v49, %v11653_v51  ;;  %v10438_v46 = vcombine.low %v11656_v29, %v11659_v52  ;;  %v11796_v40 = vld [vmem:[%s11094_s9 + $0x1ad8] sm:$0xff] }
 0x1e1   : > { %v11891_v39 = vld [vmem:[%s11094_s9 + $0x1c98] sm:$0xff] }
 0x1e2   : > { %6851 = vmatpush1.bf16.msra.mxu0 %v10310_v59  ;;  %7023 = vmatpush1.bf16.msra.mxu1 %v10312_v60  ;;  %v10406_v59 = vcombine.low %v972_v36, %v980_v37  ;;  %v11672_v60 = vld [vmem:[%s11094_s9 + $0x1950] sm:$0xff]  ;;  %v11781_v36 = vld [vmem:[%s11094_s9 + $0x1a98] sm:$0xff] }
 0x1e3   : > { %6852 = vmatprep.subr.bf16.mxu0 %v10327_v61  ;;  %7024 = vmatprep.subr.bf16.mxu1 %v10329_v62  ;;  %v11675_v61 = vld [vmem:[%s11094_s9 + $0x1918] sm:$0xff]  ;;  %v14975_v37 = vcombine.low %v11668_v57, %v11672_v60 }
 0x1e4   : > { %v11831_v62 = vld [vmem:[%s11094_s9 + $0x1b58] sm:$0xff] }
 0x1e6   : > { %6853 = vmatpush1.bf16.msra.mxu0 %v10326_v4  ;;  %7025 = vmatpush1.bf16.msra.mxu1 %v10328_v5  ;;  %v10422_v5 = vcombine.low %v11644_v47, %v11647_v48  ;;  %v11810_v47 = vld [vmem:[%s11094_s9 + $0x1b50] sm:$0xff]  ;;  %v11873_v48 = vld [vmem:[%s11094_s9 + $0x1c58] sm:$0xff] }
 0x1e7   : > { %6854 = vmatprep.subr.bf16.mxu0 %v10343_v6  ;;  %7026 = vmatprep.subr.bf16.mxu1 %v10345_v7  ;;  %v10425_v6 = vcombine.high %v11650_v49, %v11653_v51  ;;  %v11701_v7 = vld [vmem:[%s11094_s9 + $0x19d0] sm:$0xff]  ;;  %v11817_v49 = vsel %vm11709_vm6, 65537, %v10967_v28  ;;  %v11825_v51 = vsel %vm11746_vm11, 65537, %v10967_v28  ;;  %vm9276_vm6 = vsmask.f32 256 }
 0x1e8   : > { %v11879_v4 = vld [vmem:[%s11094_s9 + $0x1cd0] sm:$0xff]  ;;  %vm9444_vm11 = vsmask.f32 2304 }
 0x1e9   : > { %vm12568_vm13 = vmand %vm9443_vm10, %vm9444_vm11 }
 0x1ea   : > { %6855 = vmatpush1.bf16.msra.mxu0 %v10342_v10  ;;  %7027 = vmatpush1.bf16.msra.mxu1 %v10344_v11  ;;  %v10439_v10 = vcombine.high %v11656_v29, %v11659_v52  ;;  %v11721_v11 = vld [vmem:[%s11094_s9 + $0x19d8] sm:$0xff] }
 0x1eb   : > { %6856 = vmatprep.subr.bf16.mxu0 %v10359_v12  ;;  %7028 = vmatprep.subr.bf16.mxu1 %v10361_v13  ;;  %v11724_v12 = vld [vmem:[%s11094_s9 + $0x1a10] sm:$0xff]  ;;  %v11852_v13 = vld [vmem:[%s11094_s9 + $0x1b98] sm:$0xff] }
 0x1ec   : > { %v11918_v29 = vld [vmem:[%s11094_s9 + $0x1d58] sm:$0xff] }
 0x1ee   : > { %6857 = vmatpush1.bf16.msra.mxu0 %v10358_v22  ;;  %7029 = vmatpush1.bf16.msra.mxu1 %v10360_v23  ;;  %v10455_v23 = vcombine.high %v11668_v57, %v11672_v60  ;;  %v11861_v22 = vld [vmem:[%s11094_s9 + $0x1c50] sm:$0xff]  ;;  %v12005_v57 = vld [vmem:[%s11094_s9 + $0x1f18] sm:$0xff]  ;;  %v14978_v60 = vcombine.low %v11675_v61, %v11684_v2 }
 0x1ef   : > { %6858 = vmatprep.subr.bf16.mxu0 %v10375_v53  ;;  %7030 = vmatprep.subr.bf16.mxu1 %v10377_v24  ;;  %v10457_v24 = vcombine.high %v11675_v61, %v11684_v2  ;;  %v11962_v53 = vld [vmem:[%s11094_s9 + $0x1e18] sm:$0xff]  ;;  %14977 = vst [vmem:[#allocation21_spill] sm:$0xff] %v12005_v57  ;;  %v12023_v61 = vld [vmem:[%s11094_s9 + $0x1f90] sm:$0xff]  ;;  %v15010_v57 = vcombine.low %v11724_v12, %v11738_v20 }
 0x1f0   : > { %14973 = vst [vmem:[#allocation18_spill] sm:$0xff] %v11962_v53  ;;  %14981 = vst [vmem:[#allocation23_spill] sm:$0xff] %v12023_v61  ;;  %v12026_v2 = vld [vmem:[%s11094_s9 + $0x1fd0] sm:$0xff]  ;;  %v12077_v53 = vld [vmem:[%s11094_s9 + $0xa0] sm:$0xff] }
 0x1f1   : > { %14982 = vst [vmem:[#allocation24_spill] sm:$0xff] %v12026_v2  ;;  %v12163_v2 = vld [vmem:[%s11094_s9 + $0x1e0] sm:$0xff]  ;;  %v12166_v61 = vld [vmem:[%s11094_s9 + $0x1a8] sm:$0xff] }
 0x1f2   : > { %6859 = vmatpush1.bf16.msra.mxu0 %v10374_v33  ;;  %7031 = vmatpush1.bf16.msra.mxu1 %v10376_v34  ;;  %v11894_v34 = vld [vmem:[%s11094_s9 + $0x1cd8] sm:$0xff]  ;;  %15009 = vst [vmem:[#allocation34_spill] sm:$0xff] %v12163_v2 }
 0x1f3   : > { %6860 = vmatprep.subr.bf16.mxu0 %v10391_v35  ;;  %7032 = vmatprep.subr.bf16.mxu1 %v10393_v17  ;;  %v11778_v17 = vld [vmem:[%s11094_s9 + $0x1ad0] sm:$0xff]  ;;  %v11915_v33 = vld [vmem:[%s11094_s9 + $0x1d18] sm:$0xff] }
 0x1f4   : > { %v11912_v35 = vld [vmem:[%s11094_s9 + $0x1d50] sm:$0xff] }
 0x1f6   : > { %6861 = vmatpush1.bf16.msra.mxu0 %v10390_v41  ;;  %7033 = vmatpush1.bf16.msra.mxu1 %v10392_v42  ;;  %v11800_v41 = vsel %vm11677_vm3, 65537, %v10967_v28  ;;  %v11804_v42 = vsel %vm11691_vm4, 65537, %v10967_v28 }
 0x1f7   : > { %6862 = vmatprep.subr.bf16.mxu0 %v10407_v44  ;;  %7034 = vmatprep.subr.bf16.mxu1 %v10409_v50  ;;  %v11807_v44 = vld [vmem:[%s11094_s9 + $0x1b10] sm:$0xff]  ;;  %v11821_v50 = vsel %vm11726_vm9, 65537, %v10967_v28  ;;  %v15001_v27 = vcombine.low %v11825_v51, %v11804_v42  ;;  %vm12470_vm9 = vmand %vm9275_vm5, %vm9276_vm6 }
 0x1f8   : > { %v14998_v52 = vcombine.low %v11817_v49, %v11821_v50  ;;  %v15024_v51 = vcombine.low %v11821_v50, %v11804_v42 }
 0x1f9   : > { %vm12126_vm0 = vcmp.ne.s16.totalorder %v15001_v27, 0  ;;  %v15015_v27 = vcombine.low %v11849_v9, %v11821_v50 }
 0x1fa   : > { %6863 = vmatpush1.bf16.msra.mxu0 %v10406_v59  ;;  %7035 = vmatpush1.bf16.msra.mxu1 %v10408_v63  ;;  %v11828_v59 = vld [vmem:[%s11094_s9 + $0x1b18] sm:$0xff]  ;;  %v11834_v63 = vld [vmem:[%s11094_s9 + $0x1b90] sm:$0xff]  ;;  %vm12119_vm15 = vcmp.ne.s16.totalorder %v14998_v52, 0  ;;  %v12214_v52 = vld [vmem:[%s11094_s9 + $0x2a0] sm:$0xff]  ;;  %vm12239_vm4 = vcmp.ne.s16.totalorder %v15024_v51, 0  ;;  %v15029_v51 = vcombine.high %v11807_v44, %v11810_v47 }
 0x1fb   : > { %6875 = vmatprep.subr.bf16.mxu0 %v10423_v0  ;;  %7047 = vmatprep.subr.bf16.mxu1 %v10425_v6  ;;  %v11837_v0 = vld [vmem:[%s11094_s9 + $0x1bd0] sm:$0xff]  ;;  %v11845_v6 = vsel %vm11765_vm12, 65537, %v10967_v28  ;;  %vm12200_vm3 = vcmp.ne.s16.totalorder %v15015_v27, 0  ;;  %15019 = vst [vmem:[#allocation38_spill] sm:$0xff] %v12214_v52  ;;  %v15021_v27 = vcombine.high %v11781_v36, %v11796_v40  ;;  %vm12524_vm12 = vmand %vm9359_vm7, %vm9360_vm8 }
 0x1fc   : > { %v11956_v28 = vld [vmem:[%s11094_s9 + $0x1e10] sm:$0xff] }
 0x1fd   : > { %6865 = vmatmul.mubr.bf16.vlgmr.msra.gmra.mrb[4].mxu0 %v11359_v43  ;;  %7037 = vmatmul.mubr.bf16.vlgmr.msra.gmra.mrb[4].mxu1 %v11359_v43  ;;  %14971 = vst [vmem:[#allocation16_spill] sm:$0xff] %v11956_v28  ;;  %v11982_v43 = vld [vmem:[%s11094_s9 + $0x1e98] sm:$0xff]  ;;  %v12083_v28 = vld [vmem:[%s11094_s9 + $0xa8] sm:$0xff] }
 0x1fe   : > { %6876 = vmatpush1.bf16.msra.mxu0 %v10422_v5  ;;  %7048 = vmatpush1.bf16.msra.mxu1 %v10424_v45  ;;  %v11855_v45 = vld [vmem:[%s11094_s9 + $0x1bd8] sm:$0xff]  ;;  %14988 = vst [vmem:[#allocation28_spill] sm:$0xff] %v12083_v28 }
 0x1ff   : > { %6877 = vmatprep.subr.bf16.mxu0 %v10439_v10  ;;  %v11858_v10 = vld [vmem:[%s11094_s9 + $0x1c10] sm:$0xff]  ;;  %7049 = vmatprep.subr.bf16.mxu1 %v10441_v16  ;;  %v11870_v5 = vld [vmem:[%s11094_s9 + $0x1c18] sm:$0xff] }
 0x200   : > { %6907 = vmatprep.mubr.bf16.mxu0 %v11372_v30  ;;  %7079 = vmatprep.mubr.bf16.mxu1 %v11372_v30  ;;  %v11933_v16 = vld [vmem:[%s11094_s9 + $0x1d90] sm:$0xff] }
 0x201   : > { %v11979_v30 = vld [vmem:[%s11094_s9 + $0x1ed0] sm:$0xff] }
 0x202   : > { %6878 = vmatpush1.bf16.msra.mxu0 %v10438_v46  ;;  %7050 = vmatpush1.bf16.msra.mxu1 %v10440_v14  ;;  %v11942_v14 = vld [vmem:[%s11094_s9 + $0x1dd8] sm:$0xff] }
 0x203   : > { %6879 = vmatprep.subr.bf16.mxu0 %v10455_v23  ;;  %14970 = vst [vmem:[#allocation15_spill] sm:$0xff] %v11942_v14  ;;  %7051 = vmatprep.subr.bf16.mxu1 %v10457_v24  ;;  %v11965_v24 = vld [vmem:[%s11094_s9 + $0x1e58] sm:$0xff]  ;;  %v12057_v14 = vld [vmem:[%s11094_s9 + $0x60] sm:$0xff] }
 0x204   : > { %14974 = vst [vmem:[#allocation19_spill] sm:$0xff] %v11965_v24  ;;  %v12020_v46 = vld [vmem:[%s11094_s9 + $0x1f58] sm:$0xff]  ;;  %14985 = vst [vmem:[#allocation26_spill] sm:$0xff] %v12057_v14  ;;  %v12098_v24 = vld [vmem:[%s11094_s9 + $0xe8] sm:$0xff] }
 0x205   : > { %14980 = vst [vmem:[#allocation22_spill] sm:$0xff] %v12020_v46  ;;  %14991 = vst [vmem:[#allocation29_spill] sm:$0xff] %v12098_v24  ;;  %v12169_v46 = vld [vmem:[%s11094_s9 + $0x1e8] sm:$0xff]  ;;  %v12183_v14 = vld [vmem:[%s11094_s9 + $0x220] sm:$0xff] }
 0x206   : > { %6880 = vmatpush1.bf16.msra.mxu0 %v14975_v37  ;;  %7052 = vmatpush1.bf16.msra.mxu1 %v14978_v60  ;;  %v14979_v37 = vcombine.high %v11687_v3, %v11701_v7  ;;  %v14983_v60 = vcombine.high %v11704_v8, %v11721_v11  ;;  %v12234_v24 = vld [vmem:[%s11094_s9 + $0x2e8] sm:$0xff] }
 0x207   : > { %15023 = vst [vmem:[#allocation41_spill] sm:$0xff] %v12234_v24 }
 0x208   : > { %6881 = vmatprep.subr.bf16.mxu0 %v14979_v37  ;;  %7053 = vmatprep.subr.bf16.mxu1 %v14983_v60  ;;  %v12046_v60 = vld [vmem:[%s11094_s9 + $0x20] sm:$0xff]  ;;  %v14986_v37 = vcombine.low %v11687_v3, %v11701_v7  ;;  %v14989_v3 = vcombine.low %v11704_v8, %v11721_v11  ;;  %v14990_v7 = vcombine.high %v11724_v12, %v11738_v20  ;;  %v12189_v12 = vld [vmem:[%s11094_s9 + $0x228] sm:$0xff] }
 0x209   : > { %14984 = vst [vmem:[#allocation25_spill] sm:$0xff] %v12046_v60  ;;  %v12101_v8 = vld [vmem:[%s11094_s9 + $0x120] sm:$0xff]  ;;  %15012 = vst [vmem:[#allocation36_spill] sm:$0xff] %v12189_v12  ;;  %v15013_v20 = vcombine.low %v11741_v21, %v11757_v25 }
 0x20a   : > { %6882 = vmatpush1.bf16.msra.mxu0 %v14986_v37  ;;  %7054 = vmatpush1.bf16.msra.mxu1 %v14989_v3  ;;  %14992 = vst [vmem:[#allocation30_spill] sm:$0xff] %v12101_v8  ;;  %v12104_v11 = vld [vmem:[%s11094_s9 + $0x160] sm:$0xff]  ;;  %v14994_v3 = vcombine.high %v11741_v21, %v11757_v25  ;;  %v12231_v8 = vld [vmem:[%s11094_s9 + $0x2a8] sm:$0xff] }
 0x20b   : > { %6883 = vmatprep.subr.bf16.mxu0 %v14990_v7  ;;  %14993 = vst [vmem:[#allocation31_spill] sm:$0xff] %v12104_v11  ;;  %v14995_v7 = vcombine.low %v11800_v41, %v11804_v42  ;;  %v15004_v41 = vcombine.low %v11845_v6, %v11821_v50  ;;  %v12149_v6 = vld [vmem:[%s11094_s9 + $0x168] sm:$0xff]  ;;  %v12186_v60 = vld [vmem:[%s11094_s9 + $0x260] sm:$0xff]  ;;  %15022 = vst [vmem:[#allocation40_spill] sm:$0xff] %v12231_v8  ;;  %v15027_v42 = vcombine.low %v11760_v26, %v11778_v17 }
 0x20c   : > { %7055 = vmatprep.subr.bf16.mxu1 %v14994_v3  ;;  %15007 = vst [vmem:[#allocation32_spill] sm:$0xff] %v12149_v6  ;;  %15011 = vst [vmem:[#allocation35_spill] sm:$0xff] %v12186_v60  ;;  %v12263_v25 = vld [vmem:[%s11094_s9 + $0x320] sm:$0xff]  ;;  %v15028_v60 = vcombine.low %v11781_v36, %v11796_v40 }
 0x20d   : > { %vm12112_vm14 = vcmp.ne.s16.totalorder %v14995_v7, 0  ;;  %vm12133_vm1 = vcmp.ne.s16.totalorder %v15004_v41, 0  ;;  %v12152_v41 = vld [vmem:[%s11094_s9 + $0x1a0] sm:$0xff] }
 0x20e   : > { %15008 = vst [vmem:[#allocation33_spill] sm:$0xff] %v12152_v41  ;;  %6884 = vmatpush1.bf16.msra.mxu0 %v15010_v57  ;;  %7056 = vmatpush1.bf16.msra.mxu1 %v15013_v20  ;;  %v15014_v57 = vcombine.high %v11760_v26, %v11778_v17  ;;  %v12211_v20 = vld [vmem:[%s11094_s9 + $0x268] sm:$0xff]  ;;  %v12266_v11 = vld [vmem:[%s11094_s9 + $0x360] sm:$0xff] }
 0x20f   : > { %15018 = vst [vmem:[#allocation37_spill] sm:$0xff] %v12211_v20  ;;  %7057 = vmatprep.subr.bf16.mxu1 %v15021_v27 }
 0x210   : > { %6885 = vmatprep.subr.bf16.mxu0 %v15014_v57  ;;  %v12217_v57 = vld [vmem:[%s11094_s9 + $0x2e0] sm:$0xff]  ;;  %v6565_v9 = vpop.f32.mrb[0].mxu0  ;;  %v6737_v28 = vpop.f32.mrb[0].mxu1 }
 0x211   : > { %15020 = vst [vmem:[#allocation39_spill] sm:$0xff] %v12217_v57  ;;  %v6567_v27 = vpop.f32.mrb[1].mxu0  ;;  %v6739_v41 = vpop.f32.mrb[1].mxu1  ;;  %v7778_v26 = vmax.f32 %v6565_v9, 0.0  ;;  %v12279_v57 = vld [vmem:[%s11094_s9 + $0x328] sm:$0xff] }
 0x212   : > { %v6569_v6 = vpop.f32.mrb[2].mxu0  ;;  %6886 = vmatpush1.bf16.msra.mxu0 %v15027_v42  ;;  %v6741_v42 = vpop.f32.mrb[2].mxu1  ;;  %7058 = vmatpush1.bf16.msra.mxu1 %v15028_v60  ;;  %v12282_v9 = vld [vmem:[%s11094_s9 + $0x368] sm:$0xff]  ;;  %v7779_v52 = vmax.f32 %v6567_v27, 0.0  ;;  %v15030_v60 = vcombine.high %v11828_v59, %v11831_v62  ;;  %v7781_v24 = vmax.f32 %v6739_v41, 0.0  ;;  %v15031_v27 = vcombine.low %v11807_v44, %v11810_v47 }
 0x213   : > { %v7794_v17 = vmax.f32 %v6569_v6, 0.0  ;;  %v6571_v50 = vpop.f32.mrb[3].mxu0  ;;  %6887 = vmatprep.subr.bf16.mxu0 %v15029_v51  ;;  %v7780_v6 = vmax.f32 %v6737_v28, 0.0  ;;  %v7796_v20 = vmax.f32 %v6741_v42, 0.0  ;;  %v6743_v40 = vpop.f32.mrb[3].mxu1  ;;  %v15033_v44 = vcombine.high %v11834_v63, %v11837_v0 }
 0x214   : > { %v7795_v36 = vmax.f32 %v6571_v50, 0.0  ;;  %7059 = vmatprep.subr.bf16.mxu1 %v15030_v60  ;;  %v7797_v12 = vmax.f32 %v6743_v40, 0.0  ;;  %v15034_v40 = vcombine.high %v11852_v13, %v11855_v45 }
 0x215   : > { %v7810_v51 = vpack.c.bf16 %v7794_v17, %v7778_v26  ;;  %v12291_v8 = vpack.c.bf16 %v7796_v20, %v7780_v6  ;;  %v15032_v20 = vcombine.low %v11828_v59, %v11831_v62 }
 0x216   : > { %v12293_v28 = vpack.c.bf16 %v7795_v36, %v7779_v52  ;;  %6888 = vmatpush1.bf16.msra.mxu0 %v15031_v27  ;;  %v12317_v36 = vpack.c.bf16 %v7797_v12, %v7781_v24 }
 0x217   : > { %v7847_v26 = vsel %vm12112_vm14, %v7810_v51, 0  ;;  %v8089_v17 = vsel %vm12119_vm15, %v7810_v51, 0  ;;  %v8329_v41 = vsel %vm12126_vm0, %v7810_v51, 0  ;;  %v8569_v52 = vsel %vm12133_vm1, %v7810_v51, 0  ;;  %7060 = vmatpush1.bf16.msra.mxu1 %v15032_v20  ;;  %6889 = vmatprep.subr.bf16.mxu0 %v15033_v44 }
 0x218   : > { %v7866_v47 = vsel %vm7863_vm2, %v7847_v26, 4286644096  ;;  %v8106_v42 = vsel %vm7863_vm2, %v8089_v17, 4286644096  ;;  %v8346_v6 = vsel %vm7863_vm2, %v8329_v41, 4286644096  ;;  %7061 = vmatprep.subr.bf16.mxu1 %v15034_v40  ;;  %v15035_v17 = vcombine.low %v11834_v63, %v11837_v0 }
 0x219   : > { %v7868_v60 = vunpack.i.l.bf16 %v7866_v47  ;;  %v7869_v27 = vunpack.i.h.bf16 %v7866_v47  ;;  %v8108_v59 = vunpack.i.l.bf16 %v8106_v42  ;;  %v8109_v62 = vunpack.i.h.bf16 %v8106_v42 }
 0x21a   : > { %v8348_v20 = vunpack.i.l.bf16 %v8346_v6  ;;  %v8349_v50 = vunpack.i.h.bf16 %v8346_v6  ;;  %v8586_v44 = vsel %vm7863_vm2, %v8569_v52, 4286644096  ;;  %v8811_v26 = vsel %vm12200_vm3, %v7810_v51, 0  ;;  %6890 = vmatpush1.bf16.msra.mxu0 %v15035_v17 }
 0x21b   : > { %v7870_v24 = vmax.f32 %v7868_v60, %v7869_v27  ;;  %v8110_v12 = vmax.f32 %v8108_v59, %v8109_v62  ;;  %v8588_v41 = vunpack.i.l.bf16 %v8586_v44  ;;  %v8589_v21 = vunpack.i.h.bf16 %v8586_v44 }
 0x21c   : > { %v15036_v47 = vcombine.low %v11852_v13, %v11855_v45  ;;  %v15037_v42 = vcombine.high %v11858_v10, %v11861_v22  ;;  %v8350_v52 = vmax.f32 %v8348_v20, %v8349_v50  ;;  %v8828_v6 = vsel %vm7863_vm2, %v8811_v26, 4286644096 }
 0x21d   : > { %v9051_v40 = vsel %vm12239_vm4, %v7810_v51, 0  ;;  %v7849_v63 = vsel %vm12112_vm14, %v12291_v8, 0  ;;  %v15038_v0 = vcombine.high %v11870_v5, %v11873_v48  ;;  %v7871_v13 = vrot.slane %v7870_v24, 4 }
 0x21e   : > { %7062 = vmatpush1.bf16.msra.mxu1 %v15036_v47  ;;  %6891 = vmatprep.subr.bf16.mxu0 %v15037_v42  ;;  %v8111_v45 = vrot.slane %v8110_v12, 4  ;;  %v8590_v60 = vmax.f32 %v8588_v41, %v8589_v21  ;;  %v8830_v27 = vunpack.i.l.bf16 %v8828_v6  ;;  %v8351_v59 = vrot.slane %v8350_v52, 4 }
 0x21f   : > { %7063 = vmatprep.subr.bf16.mxu1 %v15038_v0  ;;  %v8831_v62 = vunpack.i.h.bf16 %v8828_v6  ;;  %v9068_v50 = vsel %vm7863_vm2, %v9051_v40, 4286644096  ;;  %v7892_v20 = vsel %vm7863_vm2, %v7849_v63, 4286644096  ;;  %v15039_v51 = vcombine.low %v11858_v10, %v11861_v22 }
 0x220   : > { %v7872_v44 = vmax.f32 %v7870_v24, %v7871_v13  ;;  %v8112_v26 = vmax.f32 %v8110_v12, %v8111_v45  ;;  %v8591_v17 = vrot.slane %v8590_v60, 4  ;;  %v9070_v47 = vunpack.i.l.bf16 %v9068_v50 }
 0x221   : > { %6892 = vmatpush1.bf16.msra.mxu0 %v15039_v51  ;;  %v15040_v42 = vcombine.low %v11870_v5, %v11873_v48  ;;  %v15041_v21 = vcombine.high %v11876_v38, %v11879_v4  ;;  %v8352_v41 = vmax.f32 %v8350_v52, %v8351_v59  ;;  %v8832_v6 = vmax.f32 %v8830_v27, %v8831_v62  ;;  %v12364_v27 = vld [vmem:[%s11094_s9 + $0x3a0] sm:$0xff] }
 0x222   : > { %v9071_v40 = vunpack.i.h.bf16 %v9068_v50  ;;  %v7894_v63 = vunpack.i.l.bf16 %v7892_v20  ;;  %v15042_v10 = vcombine.high %v11891_v39, %v11894_v34  ;;  %v7873_v22 = vrot.slane %v7872_v44, 2  ;;  %v12367_v59 = vld [vmem:[%s11094_s9 + $0x3e0] sm:$0xff] }
 0x223   : > { %7064 = vmatpush1.bf16.msra.mxu1 %v15040_v42  ;;  %6893 = vmatprep.subr.bf16.mxu0 %v15041_v21  ;;  %v8113_v24 = vrot.slane %v8112_v26, 2  ;;  %v8592_v12 = vmax.f32 %v8590_v60, %v8591_v17  ;;  %v7895_v0 = vunpack.i.h.bf16 %v7892_v20  ;;  %v8353_v48 = vrot.slane %v8352_v41, 2  ;;  %v12383_v21 = vld [vmem:[%s11094_s9 + $0x3e8] sm:$0xff] }
 0x224   : > { %7065 = vmatprep.subr.bf16.mxu1 %v15042_v10  ;;  %v8833_v5 = vrot.slane %v8832_v6, 4  ;;  %v9072_v13 = vmax.f32 %v9070_v47, %v9071_v40  ;;  %v8091_v45 = vsel %vm12119_vm15, %v12291_v8, 0  ;;  %v15043_v52 = vcombine.low %v11876_v38, %v11879_v4  ;;  %v12376_v4 = vld [vmem:[%s11094_s9 + $0x3a8] sm:$0xff]  ;;  %15048 = vst [vmem:[#allocation43_spill] sm:$0xff] %v12383_v21 }
 0x225   : > { %v7874_v60 = vmax.f32 %v7872_v44, %v7873_v22  ;;  %v8114_v62 = vmax.f32 %v8112_v26, %v8113_v24  ;;  %v8593_v50 = vrot.slane %v8592_v12, 2  ;;  %v7896_v20 = vmax.f32 %v7894_v63, %v7895_v0  ;;  %15046 = vst [vmem:[#allocation42_spill] sm:$0xff] %v12376_v4 }
 0x226   : > { %6894 = vmatpush1.bf16.msra.mxu0 %v15043_v52  ;;  %v15044_v51 = vcombine.low %v11891_v39, %v11894_v34  ;;  %v15045_v38 = vcombine.high %v11897_v32, %v11912_v35  ;;  %v8354_v17 = vmax.f32 %v8352_v41, %v8353_v48  ;;  %v8834_v47 = vmax.f32 %v8832_v6, %v8833_v5  ;;  %v12386_v34 = vld [vmem:[%s11094_s9 + $0x420] sm:$0xff]  ;;  %v12401_v5 = vld [vmem:[%s11094_s9 + $0x428] sm:$0xff]  ;;  %v15056_v48 = vld [vmem:[#allocation15_spill] sm:$0xff] }
 0x227   : > { %v9073_v44 = vrot.slane %v9072_v13, 4  ;;  %v8132_v26 = vsel %vm7863_vm2, %v8091_v45, 4286644096  ;;  %v15047_v42 = vcombine.high %v11915_v33, %v11918_v29  ;;  %v12389_v39 = vld [vmem:[%s11094_s9 + $0x460] sm:$0xff]  ;;  %v7875_v40 = vrot.slane %v7874_v60, 1  ;;  %v12404_v45 = vld [vmem:[%s11094_s9 + $0x468] sm:$0xff] }
 0x228   : > { %7066 = vmatpush1.bf16.msra.mxu1 %v15044_v51  ;;  %6895 = vmatprep.subr.bf16.mxu0 %v15045_v38  ;;  %15049 = vst [vmem:[#allocation44_spill] sm:$0xff] %v12389_v39  ;;  %v8115_v63 = vrot.slane %v8114_v62, 1  ;;  %v8594_v10 = vmax.f32 %v8592_v12, %v8593_v50  ;;  %v7897_v22 = vrot.slane %v7896_v20, 4  ;;  %v8134_v24 = vunpack.i.l.bf16 %v8132_v26  ;;  %v15052_v12 = vld [vmem:[#allocation13_spill] sm:$0xff] }
 0x229   : > { %7067 = vmatprep.subr.bf16.mxu1 %v15047_v42  ;;  %v15050_v0 = vcombine.low %v11897_v32, %v11912_v35  ;;  %v8355_v52 = vrot.slane %v8354_v17, 1  ;;  %v15051_v51 = vcombine.low %v11915_v33, %v11918_v29  ;;  %v15053_v50 = vcombine.high %v11933_v16, %v15052_v12  ;;  %v12419_v42 = vld [vmem:[%s11094_s9 + $0x4a0] sm:$0xff]  ;;  %v12430_v32 = vld [vmem:[%s11094_s9 + $0x4a8] sm:$0xff] }
 0x22a   : > { %v8835_v6 = vrot.slane %v8834_v47, 2  ;;  %v9074_v33 = vmax.f32 %v9072_v13, %v9073_v44  ;;  %v8135_v29 = vunpack.i.h.bf16 %v8132_v26  ;;  %v12433_v35 = vld [vmem:[%s11094_s9 + $0x4e8] sm:$0xff]  ;;  %v7876_v2 = vmax.f32 %v7874_v60, %v7875_v40  ;;  %v15063_v40 = vld [vmem:[#allocation17_spill] sm:$0xff] }
 0x22b   : > { %6896 = vmatpush1.bf16.msra.mxu0 %v15050_v0  ;;  %v12422_v0 = vld [vmem:[%s11094_s9 + $0x4e0] sm:$0xff]  ;;  %15059 = vst [vmem:[#allocation15_spill] sm:$0xff] %v12433_v35  ;;  %v8116_v38 = vmax.f32 %v8114_v62, %v8115_v63  ;;  %v8595_v44 = vrot.slane %v8594_v10, 1  ;;  %v7898_v26 = vmax.f32 %v7896_v20, %v7897_v22  ;;  %v8356_v39 = vmax.f32 %v8354_v17, %v8355_v52  ;;  %v15062_v20 = vld [vmem:[#allocation16_spill] sm:$0xff] }
 0x22c   : > { %7068 = vmatpush1.bf16.msra.mxu1 %v15051_v51  ;;  %6897 = vmatprep.subr.bf16.mxu0 %v15053_v50  ;;  %15054 = vst [vmem:[#allocation13_spill] sm:$0xff] %v12422_v0  ;;  %v15055_v51 = vld [vmem:[#allocation14_spill] sm:$0xff]  ;;  %v8136_v4 = vmax.f32 %v8134_v24, %v8135_v29  ;;  %v8331_v60 = vsel %vm12126_vm0, %v12291_v8, 0  ;;  %v15064_v63 = vcombine.high %v15062_v20, %v15063_v40  ;;  %v9075_v24 = vrot.slane %v9074_v33, 2  ;;  %v15066_v29 = vld [vmem:[#allocation19_spill] sm:$0xff] }
 0x22d   : > { %v15057_v41 = vcombine.high %v15055_v51, %v15056_v48  ;;  %15058 = vst [vmem:[#allocation14_spill] sm:$0xff] %v12430_v32  ;;  %v15061_v62 = vcombine.low %v15055_v51, %v15056_v48  ;;  %v8836_v22 = vmax.f32 %v8834_v47, %v8835_v6  ;;  %v7877_v51 = vpack.i.bf16 %v7876_v2, %v7876_v2 }
 0x22e   : > { %v8137_v52 = vrot.slane %v8136_v4, 4  ;;  %v8571_v50 = vsel %vm12133_vm1, %v12291_v8, 0  ;;  %v15068_v47 = vmov 0  ;;  %v7899_v6 = vrot.slane %v7898_v26, 2 }
 0x22f   : > { %7069 = vmatprep.subr.bf16.mxu1 %v15057_v41  ;;  %v15060_v41 = vcombine.low %v11933_v16, %v15052_v12  ;;  %v15065_v12 = vld [vmem:[#allocation18_spill] sm:$0xff]  ;;  %v12466_v16 = vmax.f32 %v8594_v10, %v8595_v44  ;;  %v15069_v47 = vsel %vm12470_vm9, 4294967295, %v15068_v47  ;;  %v15071_v2 = vcombine.low %v15062_v20, %v15063_v40 }
 0x230   : > { %7070 = vmatpush1.bf16.msra.mxu1 %v15061_v62  ;;  %v8117_v62 = vpack.i.bf16 %v8116_v38, %v8116_v38  ;;  %15070 = vst [vmem:[#allocation16_spill] sm:$0xff] %v15069_v47  ;;  %v8357_v38 = vpack.i.bf16 %v8356_v39, %v8356_v39  ;;  %v8612_v48 = vsel %vm7863_vm2, %v8571_v50, 4286644096  ;;  %v8813_v10 = vsel %vm12200_vm3, %v12291_v8, 0  ;;  %v13259_v47 = vld [vmem:[%s11094_s9 + $0x70] sm:$0xff] }
 0x231   : > { %6898 = vmatpush1.bf16.msra.mxu0 %v15060_v41  ;;  %v15067_v41 = vcombine.high %v15065_v12, %v15066_v29  ;;  %v15072_v44 = vcombine.low %v15065_v12, %v15066_v29  ;;  %v9076_v21 = vmax.f32 %v9074_v33, %v9075_v24  ;;  %v8614_v40 = vunpack.i.l.bf16 %v8612_v48 }
 0x232   : > { %6899 = vmatprep.subr.bf16.mxu0 %v15064_v63  ;;  %v8372_v63 = vsel %vm7863_vm2, %v8331_v60, 4286644096  ;;  %v15074_v39 = vcombine.high %v11982_v43, %v11985_v18  ;;  %v9278_v50 = vsel %vm12470_vm9, %v7877_v51, %v8117_v62  ;;  %v8854_v12 = vsel %vm7863_vm2, %v8813_v10, 4286644096 }
 0x233   : > { %7071 = vmatprep.subr.bf16.mxu1 %v15067_v41  ;;  %v8138_v41 = vmax.f32 %v8136_v4, %v8137_v52  ;;  %v8374_v17 = vunpack.i.l.bf16 %v8372_v63  ;;  %v8375_v60 = vunpack.i.h.bf16 %v8372_v63  ;;  %v15073_v4 = vcombine.high %v11976_v19, %v11979_v30 }
 0x234   : > { %7072 = vmatpush1.bf16.msra.mxu1 %v15072_v44  ;;  %v8837_v52 = vrot.slane %v8836_v22, 1  ;;  %v7900_v29 = vmax.f32 %v7898_v26, %v7899_v6  ;;  %v8856_v13 = vunpack.i.l.bf16 %v8854_v12  ;;  %v8857_v35 = vunpack.i.h.bf16 %v8854_v12 }
 0x235   : > { %6900 = vmatpush1.bf16.msra.mxu0 %v15071_v2  ;;  %v8139_v20 = vrot.slane %v8138_v41, 2  ;;  %7073 = vmatprep.subr.bf16.mxu1 %v15074_v39  ;;  %v8376_v63 = vmax.f32 %v8374_v17, %v8375_v60  ;;  %v8615_v2 = vunpack.i.h.bf16 %v8612_v48  ;;  %v15075_v33 = vcombine.low %v11976_v19, %v11979_v30  ;;  %v15077_v30 = vld [vmem:[#allocation20_spill] sm:$0xff]  ;;  %v15080_v60 = vld [vmem:[#allocation22_spill] sm:$0xff]  ;;  %v12517_v39 = vld [vmem:[%s11094_s9 + $0x520] sm:$0xff] }
 0x236   : > { %6901 = vmatprep.subr.bf16.mxu0 %v15073_v4  ;;  %v9053_v17 = vsel %vm12239_vm4, %v12291_v8, 0  ;;  %v7848_v26 = vsel %vm12112_vm14, %v12293_v28, 0  ;;  %v15076_v48 = vcombine.low %v11982_v43, %v11985_v18  ;;  %v15078_v19 = vcombine.high %v11999_v54, %v15077_v30 }
 0x237   : > { %v8140_v44 = vmax.f32 %v8138_v41, %v8139_v20  ;;  %v8377_v24 = vrot.slane %v8376_v63, 4  ;;  %v8616_v4 = vmax.f32 %v8614_v40, %v8615_v2  ;;  %v8597_v51 = vpack.i.bf16 %v12466_v16, %v12466_v16  ;;  %v15079_v41 = vld [vmem:[#allocation21_spill] sm:$0xff] }
 0x238   : > { %7074 = vmatpush1.bf16.msra.mxu1 %v15076_v48  ;;  %v8858_v62 = vmax.f32 %v8856_v13, %v8857_v35  ;;  %v9094_v6 = vsel %vm7863_vm2, %v9053_v17, 4286644096  ;;  %v7879_v8 = vsel %vm7863_vm2, %v7848_v26, 4286644096  ;;  %v15081_v10 = vcombine.high %v15079_v41, %v15080_v60  ;;  %v12520_v2 = vld [vmem:[%s11094_s9 + $0x560] sm:$0xff]  ;;  %v15087_v17 = vld [vmem:[#allocation23_spill] sm:$0xff] }
 0x239   : > { %6902 = vmatpush1.bf16.msra.mxu0 %v15075_v33  ;;  %v8838_v20 = vmax.f32 %v8836_v22, %v8837_v52  ;;  %v9077_v40 = vrot.slane %v9076_v21, 1  ;;  %v9297_v18 = vsel %vm9275_vm5, %v9278_v50, %v8357_v38  ;;  %v8378_v43 = vmax.f32 %v8376_v63, %v8377_v24  ;;  %v15088_v26 = vld [vmem:[#allocation24_spill] sm:$0xff] }
 0x23a   : > { %6903 = vmatprep.subr.bf16.mxu0 %v15078_v19  ;;  %7075 = vmatprep.subr.bf16.mxu1 %v15081_v10  ;;  %v15082_v35 = vmov 0  ;;  %v9096_v13 = vunpack.i.l.bf16 %v9094_v6  ;;  %v9097_v16 = vunpack.i.h.bf16 %v9094_v6  ;;  %v7881_v12 = vunpack.i.l.bf16 %v7879_v8 }
 0x23b   : > { %v15083_v35 = vsel %vm12524_vm12, 4294967295, %v15082_v35  ;;  %v7882_v33 = vunpack.i.h.bf16 %v7879_v8  ;;  %v15085_v22 = vcombine.low %v11999_v54, %v15077_v30  ;;  %v7901_v38 = vrot.slane %v7900_v29, 1 }
 0x23c   : > { %15084 = vst [vmem:[#allocation17_spill] sm:$0xff] %v15083_v35  ;;  %v8141_v52 = vrot.slane %v8140_v44, 1  ;;  %v8617_v50 = vrot.slane %v8616_v4, 4  ;;  %v8090_v63 = vsel %vm12119_vm15, %v12293_v28, 0  ;;  %v15086_v24 = vcombine.low %v15079_v41, %v15080_v60  ;;  %v13245_v35 = vld [vmem:[%s11094_s9 + $0x1fe8] sm:$0xff] }
 0x23d   : > { %6904 = vmatpush1.bf16.msra.mxu0 %v15085_v22  ;;  %v15089_v48 = vcombine.high %v15087_v17, %v15088_v26  ;;  %v8859_v19 = vrot.slane %v8858_v62, 4  ;;  %v7883_v6 = vmax.f32 %v7881_v12, %v7882_v33  ;;  %v8119_v54 = vsel %vm7863_vm2, %v8090_v63, 4286644096 }
 0x23e   : > { %7076 = vmatpush1.bf16.msra.mxu1 %v15086_v24  ;;  %v15090_v30 = vcombine.high %v12040_v58, %v12043_v1  ;;  %v9818_v8 = vcombine.low %v12517_v39, %v12520_v2  ;;  %v9078_v10 = vmax.f32 %v9076_v21, %v9077_v40  ;;  %v9362_v41 = vsel %vm12524_vm12, %v9297_v18, %v8597_v51  ;;  %v15093_v40 = vld [vmem:[#allocation25_spill] sm:$0xff] }
 0x23f   : > { %6905 = vmatprep.subr.bf16.mxu0 %v15089_v48  ;;  %v8379_v60 = vrot.slane %v8378_v43, 2  ;;  %v8121_v22 = vunpack.i.l.bf16 %v8119_v54  ;;  %v8839_v24 = vpack.i.bf16 %v8838_v20, %v8838_v20  ;;  %v9098_v32 = vmax.f32 %v9096_v13, %v9097_v16  ;;  %v15094_v20 = vld [vmem:[#allocation26_spill] sm:$0xff] }
 0x240   : > { %7077 = vmatprep.subr.bf16.mxu1 %v15090_v30  ;;  %v7884_v48 = vrot.slane %v7883_v6, 4  ;;  %v8122_v0 = vunpack.i.h.bf16 %v8119_v54  ;;  %v15091_v12 = vcombine.low %v15087_v17, %v15088_v26  ;;  %v7902_v33 = vmax.f32 %v7900_v29, %v7901_v38 }
 0x241   : > { %v8142_v63 = vmax.f32 %v8140_v44, %v8141_v52  ;;  %v8618_v30 = vmax.f32 %v8616_v4, %v8617_v50  ;;  %v8330_v21 = vsel %vm12126_vm0, %v12293_v28, 0  ;;  %v15092_v51 = vcombine.low %v12040_v58, %v12043_v1  ;;  %v15097_v58 = vld [vmem:[#allocation12_spill] sm:$0xff] }
 0x242   : > { %6906 = vmatpush1.bf16.msra.mxu0 %v15091_v12  ;;  %v15095_v18 = vcombine.high %v15093_v40, %v15094_v20  ;;  %v8860_v13 = vmax.f32 %v8858_v62, %v8859_v19  ;;  %v7885_v16 = vmax.f32 %v7883_v6, %v7884_v48  ;;  %v8123_v54 = vmax.f32 %v8121_v22, %v8122_v0  ;;  %v15103_v22 = vld [vmem:[#allocation27_spill] sm:$0xff] }
 0x243   : > { %7078 = vmatpush1.bf16.msra.mxu1 %v15092_v51  ;;  %v8359_v17 = vsel %vm7863_vm2, %v8330_v21, 4286644096  ;;  %v15096_v29 = vcombine.high %v12060_v56, %v12063_v55  ;;  %v9079_v44 = vpack.i.bf16 %v9078_v10, %v9078_v10  ;;  %v9381_v4 = vsel %vm9359_vm7, %v9362_v41, %v8839_v24 }
 0x244   : > { %7090 = vmatprep.subr.bf16.mxu0 %v15095_v18  ;;  %v8380_v38 = vmax.f32 %v8378_v43, %v8379_v60  ;;  %v8361_v52 = vunpack.i.l.bf16 %v8359_v17  ;;  %v15098_v1 = vmov 0  ;;  %v9099_v0 = vrot.slane %v9098_v32, 4 }
 0x245   : > { %7262 = vmatprep.subr.bf16.mxu1 %v15096_v29  ;;  %6908 = vmatmul.mubr.bf16.vlgmr.msra.gmra.mrb[4].mxu0 %v15097_v58  ;;  %v15099_v1 = vsel %vm12568_vm13, 4294967295, %v15098_v1  ;;  %v7886_v62 = vrot.slane %v7885_v16, 2  ;;  %v8124_v50 = vrot.slane %v8123_v54, 4  ;;  %v8362_v26 = vunpack.i.h.bf16 %v8359_v17  ;;  %v15108_v17 = vld [vmem:[#allocation5_spill] sm:$0xff] }
 0x246   : > { %15100 = vst [vmem:[#allocation18_spill] sm:$0xff] %v15099_v1  ;;  %7080 = vmatmul.mubr.bf16.vlgmr.msra.gmra.mrb[4].mxu1 %v15097_v58  ;;  %v15101_v19 = vcombine.low %v15093_v40, %v15094_v20  ;;  %v7903_v43 = vpack.i.bf16 %v7902_v33, %v7902_v33  ;;  %v8143_v6 = vpack.i.bf16 %v8142_v63, %v8142_v63  ;;  %v8619_v10 = vrot.slane %v8618_v30, 2  ;;  %v15105_v40 = vld [vmem:[#allocation28_spill] sm:$0xff]  ;;  %v15106_v33 = vld [vmem:[#allocation29_spill] sm:$0xff]  ;;  %v13242_v58 = vld [vmem:[%s11094_s9 + $0x1fa8] sm:$0xff] }
 0x247   : > { %v8570_v41 = vsel %vm12133_vm1, %v12293_v28, 0  ;;  %v15102_v60 = vcombine.low %v12060_v56, %v12063_v55  ;;  %v15104_v24 = vcombine.high %v12077_v53, %v15103_v22  ;;  %v8861_v48 = vrot.slane %v8860_v13, 2  ;;  %7122 = vmatprep.mubr.bf16.mxu0 %v15108_v17  ;;  %7294 = vmatprep.mubr.bf16.mxu1 %v15108_v17  ;;  %v13201_v17 = vld [vmem:[%s11094_s9 + $0x1f20] sm:$0xff]  ;;  %15181 = vst [vmem:[#allocation29_spill] sm:$0xff] %v13245_v35  ;;  %v13360_v35 = vld [vmem:[%s11094_s9 + $0x270] sm:$0xff] }
 0x248   : > { %7091 = vmatpush1.bf16.msra.mxu0 %v15101_v19  ;;  %v7887_v12 = vmax.f32 %v7885_v16, %v7886_v62  ;;  %v8125_v21 = vmax.f32 %v8123_v54, %v8124_v50  ;;  %v8363_v51 = vmax.f32 %v8361_v52, %v8362_v26  ;;  %v15107_v63 = vcombine.high %v15105_v40, %v15106_v33  ;;  %v13204_v1 = vld [vmem:[%s11094_s9 + $0x1f60] sm:$0xff] }
 0x249   : > { %7263 = vmatpush1.bf16.msra.mxu1 %v15102_v60  ;;  %7092 = vmatprep.subr.bf16.mxu0 %v15104_v24  ;;  %v12590_v20 = vsel %vm12568_vm13, %v9381_v4, %v9079_v44  ;;  %v8381_v18 = vrot.slane %v8380_v38, 1  ;;  %v8599_v55 = vsel %vm7863_vm2, %v8570_v41, 4286644096  ;;  %v9819_v56 = vcombine.high %v12517_v39, %v12520_v2  ;;  %v439_v39 = vld [vmem:[%s11094_s9 + $0x6e8] sm:$0xff]  ;;  %15173 = vst [vmem:[#allocation24_spill] sm:$0xff] %v13201_v17  ;;  %v13323_v17 = vld [vmem:[%s11094_s9 + $0x178] sm:$0xff] }
 0x24a   : > { %7264 = vmatprep.subr.bf16.mxu1 %v15107_v63  ;;  %v12597_v16 = vmax.f32 %v9098_v32, %v9099_v0  ;;  %v7888_v54 = vrot.slane %v7887_v12, 1  ;;  %v8126_v29 = vrot.slane %v8125_v21, 2  ;;  %v8364_v52 = vrot.slane %v8363_v51, 4  ;;  %v15111_v32 = vld [vmem:[#allocation30_spill] sm:$0xff]  ;;  %v15112_v0 = vld [vmem:[#allocation31_spill] sm:$0xff]  ;;  %15174 = vst [vmem:[#allocation25_spill] sm:$0xff] %v13204_v1 }
 0x24b   : > { %v15109_v62 = vcombine.low %v12077_v53, %v15103_v22  ;;  %v12602_v44 = vmax.f32 %v8618_v30, %v8619_v10  ;;  %v12606_v4 = vsel %vm12470_vm9, %v7903_v43, %v8143_v6  ;;  %v8601_v50 = vunpack.i.l.bf16 %v8599_v55  ;;  %v15114_v10 = vld [vmem:[#allocation32_spill] sm:$0xff]  ;;  %15183 = vst [vmem:[#allocation31_spill] sm:$0xff] %v13259_v47 }
 0x24c   : > { %v8602_v26 = vunpack.i.h.bf16 %v8599_v55  ;;  %v15110_v19 = vcombine.low %v15105_v40, %v15106_v33  ;;  %v15113_v41 = vcombine.high %v15111_v32, %v15112_v0  ;;  %v12614_v60 = vmax.f32 %v8860_v13, %v8861_v48  ;;  %v13320_v1 = vld [vmem:[%s11094_s9 + $0x138] sm:$0xff] }
 0x24d   : > { %7093 = vmatpush1.bf16.msra.mxu0 %v15109_v62  ;;  %v7889_v53 = vmax.f32 %v7887_v12, %v7888_v54  ;;  %v8127_v22 = vmax.f32 %v8125_v21, %v8126_v29  ;;  %v8365_v30 = vmax.f32 %v8363_v51, %v8364_v52  ;;  %v15115_v24 = vcombine.high %v12146_v15, %v15114_v10  ;;  %v15119_v29 = vld [vmem:[#allocation34_spill] sm:$0xff] }
 0x24e   : > { %7265 = vmatpush1.bf16.msra.mxu1 %v15110_v19  ;;  %7094 = vmatprep.subr.bf16.mxu0 %v15113_v41  ;;  %v12619_v43 = vmax.f32 %v8380_v38, %v8381_v18  ;;  %v8603_v6 = vmax.f32 %v8601_v50, %v8602_v26  ;;  %v8812_v40 = vsel %vm12200_vm3, %v12293_v28, 0  ;;  %v9052_v33 = vsel %vm12239_vm4, %v12293_v28, 0  ;;  %v15118_v28 = vld [vmem:[#allocation33_spill] sm:$0xff] }
 0x24f   : > { %7266 = vmatprep.subr.bf16.mxu1 %v15115_v24  ;;  %v9101_v13 = vrot.slane %v12597_v16, 2  ;;  %v8128_v48 = vrot.slane %v8127_v22, 1  ;;  %v8366_v12 = vrot.slane %v8365_v30, 2  ;;  %v8841_v21 = vsel %vm7863_vm2, %v8812_v40, 4286644096 }
 0x250   : > { %v15116_v51 = vcombine.low %v15111_v32, %v15112_v0  ;;  %v7890_v38 = vpack.i.bf16 %v7889_v53, %v7889_v53  ;;  %v8604_v63 = vrot.slane %v8603_v6, 4  ;;  %v8843_v18 = vunpack.i.l.bf16 %v8841_v21 }
 0x251   : > { %v8844_v55 = vunpack.i.h.bf16 %v8841_v21  ;;  %v15117_v54 = vcombine.low %v12146_v15, %v15114_v10  ;;  %v15120_v52 = vcombine.high %v15118_v28, %v15119_v29  ;;  %v8129_v62 = vmax.f32 %v8127_v22, %v8128_v48 }
 0x252   : > { %7095 = vmatpush1.bf16.msra.mxu0 %v15116_v51  ;;  %v8367_v50 = vmax.f32 %v8365_v30, %v8366_v12  ;;  %v9081_v26 = vsel %vm7863_vm2, %v9052_v33, 4286644096  ;;  %v7850_v19 = vsel %vm12112_vm14, %v12317_v36, 0  ;;  %v15121_v32 = vcombine.high %v12166_v61, %v12169_v46  ;;  %v15124_v51 = vld [vmem:[#allocation35_spill] sm:$0xff] }
 0x253   : > { %7267 = vmatpush1.bf16.msra.mxu1 %v15117_v54  ;;  %7096 = vmatprep.subr.bf16.mxu0 %v15120_v52  ;;  %v8605_v0 = vmax.f32 %v8603_v6, %v8604_v63  ;;  %v8845_v41 = vmax.f32 %v8843_v18, %v8844_v55  ;;  %v9083_v15 = vunpack.i.l.bf16 %v9081_v26  ;;  %v9084_v53 = vunpack.i.h.bf16 %v9081_v26  ;;  %v15127_v52 = vld [vmem:[#allocation37_spill] sm:$0xff] }
 0x254   : > { %7268 = vmatprep.subr.bf16.mxu1 %v15121_v32  ;;  %v8130_v10 = vpack.i.bf16 %v8129_v62, %v8129_v62  ;;  %v8368_v24 = vrot.slane %v8367_v50, 1  ;;  %v7905_v22 = vsel %vm7863_vm2, %v7850_v19, 4286644096  ;;  %v8092_v30 = vsel %vm12119_vm15, %v12317_v36, 0 }
 0x255   : > { %v15122_v40 = vcombine.low %v15118_v28, %v15119_v29  ;;  %v8606_v33 = vrot.slane %v8605_v0, 2  ;;  %v8846_v6 = vrot.slane %v8845_v41, 4  ;;  %v9085_v48 = vmax.f32 %v9083_v15, %v9084_v53  ;;  %v15126_v29 = vld [vmem:[#allocation36_spill] sm:$0xff] }
 0x256   : > { %v7907_v12 = vunpack.i.l.bf16 %v7905_v22  ;;  %v15123_v21 = vcombine.low %v12166_v61, %v12169_v46  ;;  %v15125_v63 = vcombine.high %v12183_v14, %v15124_v51  ;;  %v8369_v18 = vmax.f32 %v8367_v50, %v8368_v24  ;;  %15192 = vst [vmem:[#allocation36_spill] sm:$0xff] %v13323_v17 }
 0x257   : > { %7097 = vmatpush1.bf16.msra.mxu0 %v15122_v40  ;;  %v9279_v55 = vsel %vm12470_vm9, %v7890_v38, %v8130_v10  ;;  %v7908_v54 = vunpack.i.h.bf16 %v7905_v22  ;;  %v8145_v28 = vsel %vm7863_vm2, %v8092_v30, 4286644096  ;;  %v15128_v62 = vcombine.high %v15126_v29, %v15127_v52  ;;  %v15131_v30 = vld [vmem:[#allocation38_spill] sm:$0xff]  ;;  %v15132_v40 = vld [vmem:[#allocation39_spill] sm:$0xff] }
 0x258   : > { %7269 = vmatpush1.bf16.msra.mxu1 %v15123_v21  ;;  %7098 = vmatprep.subr.bf16.mxu0 %v15125_v63  ;;  %v8607_v26 = vmax.f32 %v8605_v0, %v8606_v33  ;;  %v8847_v19 = vmax.f32 %v8845_v41, %v8846_v6  ;;  %v9086_v32 = vrot.slane %v9085_v48, 4  ;;  %v8147_v46 = vunpack.i.l.bf16 %v8145_v28  ;;  %v15135_v63 = vld [vmem:[#allocation41_spill] sm:$0xff] }
 0x259   : > { %7270 = vmatprep.subr.bf16.mxu1 %v15128_v62  ;;  %v8370_v61 = vpack.i.bf16 %v8369_v18, %v8369_v18  ;;  %v7909_v15 = vmax.f32 %v7907_v12, %v7908_v54  ;;  %v8148_v50 = vunpack.i.h.bf16 %v8145_v28  ;;  %v8332_v38 = vsel %vm12126_vm0, %v12317_v36, 0  ;;  %15198 = vst [vmem:[#allocation41_spill] sm:$0xff] %v13360_v35  ;;  %v13423_v35 = vld [vmem:[%s11094_s9 + $0x330] sm:$0xff] }
 0x25a   : > { %v15129_v53 = vcombine.low %v12183_v14, %v15124_v51  ;;  %v8608_v10 = vrot.slane %v8607_v26, 1  ;;  %v8848_v0 = vrot.slane %v8847_v19, 2  ;;  %v9087_v41 = vmax.f32 %v9085_v48, %v9086_v32  ;;  %v15134_v51 = vld [vmem:[#allocation40_spill] sm:$0xff] }
 0x25b   : > { %v8385_v24 = vsel %vm7863_vm2, %v8332_v38, 4286644096  ;;  %v15130_v22 = vcombine.low %v15126_v29, %v15127_v52  ;;  %v15133_v33 = vcombine.high %v15131_v30, %v15132_v40  ;;  %v9301_v6 = vsel %vm9275_vm5, %v9279_v55, %v8370_v61 }
 0x25c   : > { %7099 = vmatpush1.bf16.msra.mxu0 %v15129_v53  ;;  %v7910_v12 = vrot.slane %v7909_v15, 4  ;;  %v8149_v14 = vmax.f32 %v8147_v46, %v8148_v50  ;;  %v8387_v21 = vunpack.i.l.bf16 %v8385_v24  ;;  %v15136_v18 = vcombine.high %v15134_v51, %v15135_v63 }
 0x25d   : > { %7271 = vmatpush1.bf16.msra.mxu1 %v15130_v22  ;;  %7100 = vmatprep.subr.bf16.mxu0 %v15133_v33  ;;  %v8609_v48 = vmax.f32 %v8607_v26, %v8608_v10  ;;  %v8849_v54 = vmax.f32 %v8847_v19, %v8848_v0  ;;  %v9088_v28 = vrot.slane %v9087_v41, 2  ;;  %v8388_v62 = vunpack.i.h.bf16 %v8385_v24 }
 0x25e   : > { %7272 = vmatprep.subr.bf16.mxu1 %v15136_v18  ;;  %v7911_v29 = vmax.f32 %v7909_v15, %v7910_v12  ;;  %v8150_v52 = vrot.slane %v8149_v14, 4  ;;  %v8572_v32 = vsel %vm12133_vm1, %v12317_v36, 0  ;;  %v8814_v55 = vsel %vm12200_vm3, %v12317_v36, 0 }
 0x25f   : > { %v15137_v46 = vcombine.low %v15131_v30, %v15132_v40  ;;  %v8610_v26 = vpack.i.bf16 %v8609_v48, %v8609_v48  ;;  %v8850_v19 = vrot.slane %v8849_v54, 1  ;;  %v9089_v61 = vmax.f32 %v9087_v41, %v9088_v28 }
 0x260   : > { %v8389_v50 = vmax.f32 %v8387_v21, %v8388_v62  ;;  %v15138_v15 = vcombine.low %v15134_v51, %v15135_v63  ;;  %v15139_v38 = vcombine.high %v12263_v25, %v12266_v11  ;;  %v7912_v53 = vrot.slane %v7911_v29, 2 }
 0x261   : > { %7101 = vmatpush1.bf16.msra.mxu0 %v15137_v46  ;;  %v8151_v10 = vmax.f32 %v8149_v14, %v8150_v52  ;;  %v8625_v0 = vsel %vm7863_vm2, %v8572_v32, 4286644096  ;;  %v8867_v24 = vsel %vm7863_vm2, %v8814_v55, 4286644096  ;;  %v15140_v22 = vcombine.high %v12279_v57, %v12282_v9  ;;  %v15144_v46 = vld [vmem:[#allocation42_spill] sm:$0xff] }
 0x262   : > { %7273 = vmatpush1.bf16.msra.mxu1 %v15138_v15  ;;  %7102 = vmatprep.subr.bf16.mxu0 %v15139_v38  ;;  %v8851_v41 = vmax.f32 %v8849_v54, %v8850_v19  ;;  %v9090_v30 = vrot.slane %v9089_v61, 1  ;;  %v9363_v40 = vsel %vm12524_vm12, %v9301_v6, %v8610_v26  ;;  %v8390_v33 = vrot.slane %v8389_v50, 4 }
 0x263   : > { %7274 = vmatprep.subr.bf16.mxu1 %v15140_v22  ;;  %v7913_v12 = vmax.f32 %v7911_v29, %v7912_v53  ;;  %v8152_v21 = vrot.slane %v8151_v10, 2  ;;  %v8627_v14 = vunpack.i.l.bf16 %v8625_v0  ;;  %v8628_v51 = vunpack.i.h.bf16 %v8625_v0 }
 0x264   : > { %v15141_v63 = vcombine.low %v12263_v25, %v12266_v11  ;;  %v8852_v18 = vpack.i.bf16 %v8851_v41, %v8851_v41  ;;  %v9091_v48 = vmax.f32 %v9089_v61, %v9090_v30  ;;  %v8391_v28 = vmax.f32 %v8389_v50, %v8390_v33  ;;  %v15145_v11 = vld [vmem:[#allocation43_spill] sm:$0xff] }
 0x265   : > { %v8869_v62 = vunpack.i.l.bf16 %v8867_v24  ;;  %v15142_v54 = vcombine.low %v12279_v57, %v12282_v9  ;;  %v15143_v6 = vcombine.high %v12364_v27, %v12367_v59  ;;  %v7914_v29 = vrot.slane %v7913_v12, 1 }
 0x266   : > { %7103 = vmatpush1.bf16.msra.mxu0 %v15141_v63  ;;  %v8153_v52 = vmax.f32 %v8151_v10, %v8152_v21  ;;  %v8629_v32 = vmax.f32 %v8627_v14, %v8628_v51  ;;  %v8870_v55 = vunpack.i.h.bf16 %v8867_v24  ;;  %v15146_v25 = vcombine.high %v15144_v46, %v15145_v11 }
 0x267   : > { %7275 = vmatpush1.bf16.msra.mxu1 %v15142_v54  ;;  %7104 = vmatprep.subr.bf16.mxu0 %v15143_v6  ;;  %v9092_v26 = vpack.i.bf16 %v9091_v48, %v9091_v48  ;;  %v9385_v19 = vsel %vm9359_vm7, %v9363_v40, %v8852_v18  ;;  %v8392_v61 = vrot.slane %v8391_v28, 2  ;;  %v9054_v57 = vsel %vm12239_vm4, %v12317_v36, 0  ;;  %v383_v18 = vld [vmem:[%s11094_s9 + $0x528] sm:$0xff]  ;;  %v398_v6 = vld [vmem:[%s11094_s9 + $0x5a0] sm:$0xff] }
 0x268   : > { %7276 = vmatprep.subr.bf16.mxu1 %v15146_v25  ;;  %v7915_v9 = vmax.f32 %v7913_v12, %v7914_v29  ;;  %v8154_v50 = vrot.slane %v8153_v52, 1  ;;  %v8630_v15 = vrot.slane %v8629_v32, 4  ;;  %v8871_v38 = vmax.f32 %v8869_v62, %v8870_v55  ;;  %v391_v48 = vld [vmem:[%s11094_s9 + $0x568] sm:$0xff]  ;;  %v406_v29 = vld [vmem:[%s11094_s9 + $0x5e0] sm:$0xff] }
 0x269   : > { %v15147_v53 = vcombine.low %v12364_v27, %v12367_v59  ;;  %v8621_v10 = vrot.slane %v12602_v44, 1  ;;  %v9447_v36 = vsel %vm12568_vm13, %v9385_v19, %v9092_v26  ;;  %v8393_v0 = vmax.f32 %v8391_v28, %v8392_v61  ;;  %v15149_v59 = vld [vmem:[#allocation44_spill] sm:$0xff]  ;;  %v15156_v26 = vld [vmem:[#allocation14_spill] sm:$0xff]  ;;  %v15157_v19 = vld [vmem:[#allocation15_spill] sm:$0xff] }
 0x26a   : > { %v9107_v24 = vsel %vm7863_vm2, %v9054_v57, 4286644096  ;;  %v15148_v27 = vcombine.low %v15144_v46, %v15145_v11  ;;  %v15150_v22 = vcombine.high %v12386_v34, %v15149_v59  ;;  %v8383_v41 = vpack.i.bf16 %v12619_v43, %v12619_v43 }
 0x26b   : > { %7105 = vmatpush1.bf16.msra.mxu0 %v15147_v53  ;;  %v10680_v30 = vcombine.low %v12590_v20, %v9447_v36  ;;  %v8155_v40 = vmax.f32 %v8153_v52, %v8154_v50  ;;  %v8631_v33 = vmax.f32 %v8629_v32, %v8630_v15  ;;  %v15151_v12 = vcombine.high %v12401_v5, %v12404_v45  ;;  %v399_v15 = vld [vmem:[%s11094_s9 + $0x5a8] sm:$0xff] }
 0x26c   : > { %7277 = vmatpush1.bf16.msra.mxu1 %v15148_v27  ;;  %7106 = vmatprep.subr.bf16.mxu0 %v15150_v22  ;;  %v8394_v21 = vrot.slane %v8393_v0, 1  ;;  %v8872_v14 = vrot.slane %v8871_v38, 4  ;;  %v9109_v51 = vunpack.i.l.bf16 %v9107_v24  ;;  %v9110_v63 = vunpack.i.h.bf16 %v9107_v24 }
 0x26d   : > { %7278 = vmatprep.subr.bf16.mxu1 %v15151_v12  ;;  %v9102_v43 = vmax.f32 %v12597_v16, %v9101_v13  ;;  %9510 = vst [vmem:[%s12736_s23] sm:$0x77] %v10680_v30  ;;  %v7916_v20 = vpack.i.bf16 %v7915_v9, %v7915_v9  ;;  %v8156_v28 = vpack.i.bf16 %v8155_v40, %v8155_v40  ;;  %v8632_v62 = vrot.slane %v8631_v33, 2  ;;  %v15154_v16 = vld [vmem:[#allocation13_spill] sm:$0xff] }
 0x26e   : > { %v15152_v54 = vcombine.low %v12386_v34, %v15149_v59  ;;  %v8395_v52 = vmax.f32 %v8393_v0, %v8394_v21  ;;  %v8873_v32 = vmax.f32 %v8871_v38, %v8872_v14  ;;  %v9111_v55 = vmax.f32 %v9109_v51, %v9110_v63  ;;  %v407_v38 = vld [vmem:[%s11094_s9 + $0x5e8] sm:$0xff] }
 0x26f   : > { %v15153_v46 = vcombine.low %v12401_v5, %v12404_v45  ;;  %v15155_v13 = vcombine.high %v12419_v42, %v15154_v16  ;;  %v8622_v11 = vmax.f32 %v12602_v44, %v8621_v10  ;;  %v8863_v34 = vrot.slane %v12614_v60, 1  ;;  %v415_v63 = vld [vmem:[%s11094_s9 + $0x628] sm:$0xff] }
 0x270   : > { %7107 = vmatpush1.bf16.msra.mxu0 %v15152_v54  ;;  %v8633_v25 = vmax.f32 %v8631_v33, %v8632_v62  ;;  %v15158_v61 = vcombine.high %v15156_v26, %v15157_v19  ;;  %v9821_v57 = vcombine.high %v383_v18, %v391_v48  ;;  %v8874_v9 = vrot.slane %v8873_v32, 2 }
 0x271   : > { %7279 = vmatpush1.bf16.msra.mxu1 %v15153_v46  ;;  %7108 = vmatprep.subr.bf16.mxu0 %v15155_v13  ;;  %v9112_v50 = vrot.slane %v9111_v55, 4  ;;  %v9820_v5 = vcombine.low %v383_v18, %v391_v48  ;;  %v9835_v45 = vcombine.high %v398_v6, %v406_v29  ;;  %v9103_v53 = vrot.slane %v9102_v43, 1  ;;  %v423_v18 = vld [vmem:[%s11094_s9 + $0x668] sm:$0xff] }
 0x272   : > { %7280 = vmatprep.subr.bf16.mxu1 %v15158_v61  ;;  %v9305_v44 = vsel %vm9275_vm5, %v12606_v4, %v8383_v41  ;;  %v8396_v10 = vpack.i.bf16 %v8395_v52, %v8395_v52  ;;  %v8634_v36 = vrot.slane %v8633_v25, 1  ;;  %v15159_v0 = vcombine.low %v12419_v42, %v15154_v16  ;;  %v414_v4 = vld [vmem:[%s11094_s9 + $0x620] sm:$0xff]  ;;  %v431_v46 = vld [vmem:[%s11094_s9 + $0x6a8] sm:$0xff] }
 0x273   : > { %v8875_v24 = vmax.f32 %v8873_v32, %v8874_v9  ;;  %v9113_v27 = vmax.f32 %v9111_v55, %v9112_v50  ;;  %v9281_v59 = vsel %vm12470_vm9, %v7916_v20, %v8156_v28  ;;  %v15160_v22 = vcombine.low %v15156_v26, %v15157_v19  ;;  %v422_v41 = vld [vmem:[%s11094_s9 + $0x660] sm:$0xff] }
 0x274   : > { %7109 = vmatpush1.bf16.msra.mxu0 %v15159_v0  ;;  %v8623_v30 = vpack.i.bf16 %v8622_v11, %v8622_v11  ;;  %v8864_v42 = vmax.f32 %v12614_v60, %v8863_v34  ;;  %v8635_v40 = vmax.f32 %v8633_v25, %v8634_v36  ;;  %v9837_v33 = vcombine.high %v399_v15, %v407_v38  ;;  %v438_v52 = vld [vmem:[%s11094_s9 + $0x6e0] sm:$0xff] }
 0x275   : > { %7281 = vmatpush1.bf16.msra.mxu1 %v15160_v22  ;;  %7110 = vmatprep.subr.bf16.mxu0 %v9819_v56  ;;  %v8876_v12 = vrot.slane %v8875_v24, 1  ;;  %v9114_v21 = vrot.slane %v9113_v27, 2  ;;  %v9834_v14 = vcombine.low %v398_v6, %v406_v29  ;;  %v9836_v51 = vcombine.low %v399_v15, %v407_v38  ;;  %v430_v29 = vld [vmem:[%s11094_s9 + $0x6a0] sm:$0xff] }
 0x276   : > { %7282 = vmatprep.subr.bf16.mxu1 %v9821_v57  ;;  %v9104_v48 = vmax.f32 %v9102_v43, %v9103_v53  ;;  %v9364_v56 = vsel %vm12524_vm12, %v9305_v44, %v8623_v30  ;;  %v9309_v20 = vsel %vm9275_vm5, %v9281_v59, %v8396_v10  ;;  %v9851_v60 = vcombine.high %v414_v4, %v422_v41  ;;  %v446_v61 = vld [vmem:[%s11094_s9 + $0x720] sm:$0xff]  ;;  %v471_v59 = vld [vmem:[%s11094_s9 + $0x7e8] sm:$0xff] }
 0x277   : > { %v8636_v28 = vpack.i.bf16 %v8635_v40, %v8635_v40  ;;  %v8877_v62 = vmax.f32 %v8875_v24, %v8876_v12  ;;  %v9115_v54 = vmax.f32 %v9113_v27, %v9114_v21  ;;  %v8865_v6 = vpack.i.bf16 %v8864_v42, %v8864_v42  ;;  %v454_v57 = vld [vmem:[%s11094_s9 + $0x760] sm:$0xff]  ;;  %v463_v27 = vld [vmem:[%s11094_s9 + $0x7a8] sm:$0xff] }
 0x278   : > { %7111 = vmatpush1.bf16.msra.mxu0 %v9818_v8  ;;  %v9853_v43 = vcombine.high %v415_v63, %v423_v18  ;;  %v9850_v16 = vcombine.low %v414_v4, %v422_v41  ;;  %v9852_v13 = vcombine.low %v415_v63, %v423_v18  ;;  %v9105_v11 = vpack.i.bf16 %v9104_v48, %v9104_v48  ;;  %v462_v0 = vld [vmem:[%s11094_s9 + $0x7a0] sm:$0xff]  ;;  %v487_v12 = vld [vmem:[%s11094_s9 + $0x868] sm:$0xff] }
 0x279   : > { %7283 = vmatpush1.bf16.msra.mxu1 %v9820_v5  ;;  %7112 = vmatprep.subr.bf16.mxu0 %v9835_v45  ;;  %v9116_v32 = vrot.slane %v9115_v54, 1  ;;  %v9365_v55 = vsel %vm12524_vm12, %v9309_v20, %v8636_v28  ;;  %v9389_v2 = vsel %vm9359_vm7, %v9364_v56, %v8865_v6  ;;  %v8878_v8 = vpack.i.bf16 %v8877_v62, %v8877_v62  ;;  %v447_v5 = vld [vmem:[%s11094_s9 + $0x728] sm:$0xff]  ;;  %v470_v24 = vld [vmem:[%s11094_s9 + $0x7e0] sm:$0xff] }
 0x27a   : > { %7284 = vmatprep.subr.bf16.mxu1 %v9837_v33  ;;  %v9867_v25 = vcombine.high %v430_v29, %v438_v52  ;;  %v9869_v19 = vcombine.high %v431_v46, %v439_v39  ;;  %v9448_v9 = vsel %vm12568_vm13, %v9389_v2, %v9105_v11  ;;  %v455_v45 = vld [vmem:[%s11094_s9 + $0x768] sm:$0xff]  ;;  %v9866_v15 = vcombine.low %v430_v29, %v438_v52  ;;  %v478_v42 = vld [vmem:[%s11094_s9 + $0x820] sm:$0xff] }
 0x27b   : > { %v9117_v34 = vmax.f32 %v9115_v54, %v9116_v32  ;;  %v9393_v26 = vsel %vm9359_vm7, %v9365_v55, %v8878_v8  ;;  %v9868_v53 = vcombine.low %v431_v46, %v439_v39  ;;  %v9883_v44 = vcombine.high %v446_v61, %v454_v57  ;;  %v486_v40 = vld [vmem:[%s11094_s9 + $0x860] sm:$0xff]  ;;  %v479_v33 = vld [vmem:[%s11094_s9 + $0x828] sm:$0xff] }
 0x27c   : > { %7113 = vmatpush1.bf16.msra.mxu0 %v9834_v14  ;;  %v9885_v36 = vcombine.high %v447_v5, %v455_v45  ;;  %v9882_v22 = vcombine.low %v446_v61, %v454_v57  ;;  %v9884_v4 = vcombine.low %v447_v5, %v455_v45  ;;  %v9899_v41 = vcombine.high %v462_v0, %v470_v24  ;;  %v494_v18 = vld [vmem:[%s11094_s9 + $0x8a0] sm:$0xff]  ;;  %v495_v56 = vld [vmem:[%s11094_s9 + $0x8a8] sm:$0xff] }
 0x27d   : > { %7285 = vmatpush1.bf16.msra.mxu1 %v9836_v51  ;;  %7114 = vmatprep.subr.bf16.mxu0 %v9851_v60  ;;  %v9118_v50 = vpack.i.bf16 %v9117_v34, %v9117_v34  ;;  %v9901_v30 = vcombine.high %v463_v27, %v471_v59  ;;  %v9898_v21 = vcombine.low %v462_v0, %v470_v24  ;;  %v502_v48 = vld [vmem:[%s11094_s9 + $0x8e0] sm:$0xff]  ;;  %v503_v20 = vld [vmem:[%s11094_s9 + $0x8e8] sm:$0xff] }
 0x27e   : > { %7286 = vmatprep.subr.bf16.mxu1 %v9853_v43  ;;  %v9900_v14 = vcombine.low %v463_v27, %v471_v59  ;;  %v9915_v51 = vcombine.high %v478_v42, %v486_v40  ;;  %v9917_v63 = vcombine.high %v479_v33, %v487_v12  ;;  %v9914_v60 = vcombine.low %v478_v42, %v486_v40  ;;  %v510_v6 = vld [vmem:[%s11094_s9 + $0x920] sm:$0xff]  ;;  %v15161_v29 = vld [vmem:[#allocation6_spill] sm:$0xff] }
 0x27f   : > { %v9449_v38 = vsel %vm12568_vm13, %v9393_v26, %v9118_v50  ;;  %v9916_v28 = vcombine.low %v479_v33, %v487_v12  ;;  %v9931_v62 = vcombine.high %v494_v18, %v502_v48  ;;  %v9933_v54 = vcombine.high %v495_v56, %v503_v20  ;;  %v518_v43 = vld [vmem:[%s11094_s9 + $0x960] sm:$0xff]  ;;  %v511_v52 = vld [vmem:[%s11094_s9 + $0x928] sm:$0xff] }
 0x280   : > { %7115 = vmatpush1.bf16.msra.mxu0 %v9850_v16  ;;  %v10681_v10 = vcombine.low %v9448_v9, %v9449_v38  ;;  %v519_v32 = vld [vmem:[%s11094_s9 + $0x968] sm:$0xff]  ;;  %v9930_v55 = vcombine.low %v494_v18, %v502_v48  ;;  %v9932_v46 = vcombine.low %v495_v56, %v503_v20  ;;  %v9947_v39 = vcombine.high %v510_v6, %v518_v43  ;;  %v526_v8 = vld [vmem:[%s11094_s9 + $0x9a0] sm:$0xff] }
 0x281   : > { %7287 = vmatpush1.bf16.msra.mxu1 %v9852_v13  ;;  %7116 = vmatprep.subr.bf16.mxu0 %v9867_v25  ;;  %v9949_v2 = vcombine.high %v511_v52, %v519_v32  ;;  %v534_v16 = vld [vmem:[%s11094_s9 + $0x9e0] sm:$0xff]  ;;  %v15162_v13 = vld [vmem:[#allocation7_spill] sm:$0xff]  ;;  %v527_v11 = vld [vmem:[%s11094_s9 + $0x9a8] sm:$0xff]  ;;  %v9946_v25 = vcombine.low %v510_v6, %v518_v43  ;;  %v9948_v26 = vcombine.low %v511_v52, %v519_v32 }
 0x282   : > { %7288 = vmatprep.subr.bf16.mxu1 %v9869_v19  ;;  %9511 = vst [vmem:[%s12736_s23 + $0x8] sm:$0x77] %v10681_v10  ;;  %v535_v34 = vld [vmem:[%s11094_s9 + $0x9e8] sm:$0xff]  ;;  %v9963_v19 = vcombine.high %v526_v8, %v534_v16  ;;  %v542_v57 = vld [vmem:[%s11094_s9 + $0xa20] sm:$0xff]  ;;  %v9962_v45 = vcombine.low %v526_v8, %v534_v16 }
 0x283   : > { %v9965_v61 = vcombine.high %v527_v11, %v535_v34  ;;  %v550_v9 = vld [vmem:[%s11094_s9 + $0xa60] sm:$0xff]  ;;  %v543_v50 = vld [vmem:[%s11094_s9 + $0xa28] sm:$0xff] }
 0x284   : > { %7117 = vmatpush1.bf16.msra.mxu0 %v9866_v15  ;;  %v551_v5 = vld [vmem:[%s11094_s9 + $0xa68] sm:$0xff]  ;;  %v9964_v15 = vcombine.low %v527_v11, %v535_v34  ;;  %v9979_v38 = vcombine.high %v542_v57, %v550_v9  ;;  %v566_v10 = vld [vmem:[%s11094_s9 + $0xae0] sm:$0xff]  ;;  %v9978_v24 = vcombine.low %v542_v57, %v550_v9 }
 0x285   : > { %7289 = vmatpush1.bf16.msra.mxu1 %v9868_v53  ;;  %7118 = vmatprep.subr.bf16.mxu0 %v9883_v44  ;;  %v9981_v53 = vcombine.high %v543_v50, %v551_v5  ;;  %v558_v44 = vld [vmem:[%s11094_s9 + $0xaa0] sm:$0xff]  ;;  %v567_v0 = vld [vmem:[%s11094_s9 + $0xae8] sm:$0xff]  ;;  %v9980_v27 = vcombine.low %v543_v50, %v551_v5 }
 0x286   : > { %7290 = vmatprep.subr.bf16.mxu1 %v9885_v36  ;;  %v559_v36 = vld [vmem:[%s11094_s9 + $0xaa8] sm:$0xff]  ;;  %v9995_v59 = vcombine.high %v558_v44, %v566_v10  ;;  %v9994_v40 = vcombine.low %v558_v44, %v566_v10 }
 0x287   : > { %v583_v42 = vld [vmem:[%s11094_s9 + $0xb68] sm:$0xff]  ;;  %v9996_v33 = vcombine.low %v559_v36, %v567_v0 }
 0x288   : > { %7119 = vmatpush1.bf16.msra.mxu0 %v9882_v22  ;;  %v9997_v22 = vcombine.high %v559_v36, %v567_v0  ;;  %v599_v18 = vld [vmem:[%s11094_s9 + $0xbe8] sm:$0xff] }
 0x289   : > { %7291 = vmatpush1.bf16.msra.mxu1 %v9884_v4  ;;  %7120 = vmatprep.subr.bf16.mxu0 %v9899_v41  ;;  %v574_v4 = vld [vmem:[%s11094_s9 + $0xb20] sm:$0xff]  ;;  %v615_v6 = vld [vmem:[%s11094_s9 + $0xc68] sm:$0xff] }
 0x28a   : > { %7292 = vmatprep.subr.bf16.mxu1 %v9901_v30  ;;  %v582_v41 = vld [vmem:[%s11094_s9 + $0xb60] sm:$0xff]  ;;  %v575_v30 = vld [vmem:[%s11094_s9 + $0xb28] sm:$0xff] }
 0x28b   : > { %v10011_v12 = vcombine.high %v574_v4, %v582_v41  ;;  %v10010_v48 = vcombine.low %v574_v4, %v582_v41  ;;  %v10012_v56 = vcombine.low %v575_v30, %v583_v42  ;;  %v631_v8 = vld [vmem:[%s11094_s9 + $0xce8] sm:$0xff] }
 0x28c   : > { %7121 = vmatpush1.bf16.msra.mxu0 %v9898_v21  ;;  %v10013_v21 = vcombine.high %v575_v30, %v583_v42  ;;  %v647_v57 = vld [vmem:[%s11094_s9 + $0xd68] sm:$0xff] }
 0x28d   : > { %7293 = vmatpush1.bf16.msra.mxu1 %v9900_v14  ;;  %7133 = vmatprep.subr.bf16.mxu0 %v9915_v51  ;;  %v590_v14 = vld [vmem:[%s11094_s9 + $0xba0] sm:$0xff]  ;;  %v663_v44 = vld [vmem:[%s11094_s9 + $0xde8] sm:$0xff] }
 0x28e   : > { %7305 = vmatprep.subr.bf16.mxu1 %v9917_v63  ;;  %v598_v51 = vld [vmem:[%s11094_s9 + $0xbe0] sm:$0xff]  ;;  %v591_v63 = vld [vmem:[%s11094_s9 + $0xba8] sm:$0xff] }
 0x28f   : > { %7123 = vmatmul.mubr.bf16.vlgmr.msra.gmra.mrb[8].mxu0 %v15161_v29  ;;  %v10027_v20 = vcombine.high %v590_v14, %v598_v51  ;;  %v10026_v43 = vcombine.low %v590_v14, %v598_v51  ;;  %v10028_v52 = vcombine.low %v591_v63, %v599_v18  ;;  %v679_v4 = vld [vmem:[%s11094_s9 + $0xe68] sm:$0xff] }
 0x290   : > { %7134 = vmatpush1.bf16.msra.mxu0 %v9914_v60  ;;  %7295 = vmatmul.mubr.bf16.vlgmr.msra.gmra.mrb[8].mxu1 %v15161_v29  ;;  %v10029_v60 = vcombine.high %v591_v63, %v599_v18  ;;  %v695_v14 = vld [vmem:[%s11094_s9 + $0xee8] sm:$0xff]  ;;  %v13300_v29 = vld [vmem:[%s11094_s9 + $0xf8] sm:$0xff] }
 0x291   : > { %7306 = vmatpush1.bf16.msra.mxu1 %v9916_v28  ;;  %7135 = vmatprep.subr.bf16.mxu0 %v9931_v62  ;;  %v606_v28 = vld [vmem:[%s11094_s9 + $0xc20] sm:$0xff]  ;;  %15188 = vst [vmem:[#allocation33_spill] sm:$0xff] %v13300_v29 }
 0x292   : > { %7307 = vmatprep.subr.bf16.mxu1 %v9933_v54  ;;  %7165 = vmatprep.mubr.bf16.mxu0 %v15162_v13  ;;  %v614_v62 = vld [vmem:[%s11094_s9 + $0xc60] sm:$0xff]  ;;  %v607_v54 = vld [vmem:[%s11094_s9 + $0xc28] sm:$0xff] }
 0x293   : > { %7337 = vmatprep.mubr.bf16.mxu1 %v15162_v13  ;;  %v10043_v32 = vcombine.high %v606_v28, %v614_v62  ;;  %v10042_v16 = vcombine.low %v606_v28, %v614_v62  ;;  %v10044_v11 = vcombine.low %v607_v54, %v615_v6  ;;  %v711_v28 = vld [vmem:[%s11094_s9 + $0xf68] sm:$0xff] }
 0x294   : > { %7136 = vmatpush1.bf16.msra.mxu0 %v9930_v55  ;;  %v10045_v55 = vcombine.high %v607_v54, %v615_v6  ;;  %v13187_v13 = vld [vmem:[%s11094_s9 + $0x1ee8] sm:$0xff] }
 0x295   : > { %7308 = vmatpush1.bf16.msra.mxu1 %v9932_v46  ;;  %7137 = vmatprep.subr.bf16.mxu0 %v9947_v39  ;;  %v622_v46 = vld [vmem:[%s11094_s9 + $0xca0] sm:$0xff] }
 0x296   : > { %7309 = vmatprep.subr.bf16.mxu1 %v9949_v2  ;;  %v630_v39 = vld [vmem:[%s11094_s9 + $0xce0] sm:$0xff]  ;;  %v623_v2 = vld [vmem:[%s11094_s9 + $0xca8] sm:$0xff] }
 0x297   : > { %v10059_v34 = vcombine.high %v622_v46, %v630_v39  ;;  %v10058_v9 = vcombine.low %v622_v46, %v630_v39  ;;  %v10060_v50 = vcombine.low %v623_v2, %v631_v8  ;;  %v727_v46 = vld [vmem:[%s11094_s9 + $0xfe8] sm:$0xff] }
 0x298   : > { %7138 = vmatpush1.bf16.msra.mxu0 %v9946_v25  ;;  %v10061_v25 = vcombine.high %v623_v2, %v631_v8 }
 0x299   : > { %7310 = vmatpush1.bf16.msra.mxu1 %v9948_v26  ;;  %7139 = vmatprep.subr.bf16.mxu0 %v9963_v19  ;;  %v638_v26 = vld [vmem:[%s11094_s9 + $0xd20] sm:$0xff] }
 0x29a   : > { %7311 = vmatprep.subr.bf16.mxu1 %v9965_v61  ;;  %v646_v19 = vld [vmem:[%s11094_s9 + $0xd60] sm:$0xff]  ;;  %v639_v61 = vld [vmem:[%s11094_s9 + $0xd28] sm:$0xff] }
 0x29b   : > { %v10075_v5 = vcombine.high %v638_v26, %v646_v19  ;;  %v10074_v10 = vcombine.low %v638_v26, %v646_v19  ;;  %v10076_v36 = vcombine.low %v639_v61, %v647_v57  ;;  %v743_v26 = vld [vmem:[%s11094_s9 + $0x1068] sm:$0xff] }
 0x29c   : > { %7140 = vmatpush1.bf16.msra.mxu0 %v9962_v45  ;;  %v10077_v45 = vcombine.high %v639_v61, %v647_v57 }
 0x29d   : > { %7312 = vmatpush1.bf16.msra.mxu1 %v9964_v15  ;;  %7141 = vmatprep.subr.bf16.mxu0 %v9979_v38  ;;  %v654_v15 = vld [vmem:[%s11094_s9 + $0xda0] sm:$0xff] }
 0x29e   : > { %7313 = vmatprep.subr.bf16.mxu1 %v9981_v53  ;;  %v662_v38 = vld [vmem:[%s11094_s9 + $0xde0] sm:$0xff]  ;;  %v655_v53 = vld [vmem:[%s11094_s9 + $0xda8] sm:$0xff] }
 0x29f   : > { %v10091_v0 = vcombine.high %v654_v15, %v662_v38  ;;  %v10090_v41 = vcombine.low %v654_v15, %v662_v38  ;;  %v10092_v30 = vcombine.low %v655_v53, %v663_v44  ;;  %v759_v15 = vld [vmem:[%s11094_s9 + $0x10e8] sm:$0xff] }
 0x2a0   : > { %7142 = vmatpush1.bf16.msra.mxu0 %v9978_v24  ;;  %v10093_v24 = vcombine.high %v655_v53, %v663_v44 }
 0x2a1   : > { %7314 = vmatpush1.bf16.msra.mxu1 %v9980_v27  ;;  %7143 = vmatprep.subr.bf16.mxu0 %v9995_v59  ;;  %v670_v27 = vld [vmem:[%s11094_s9 + $0xe20] sm:$0xff] }
 0x2a2   : > { %7315 = vmatprep.subr.bf16.mxu1 %v9997_v22  ;;  %v678_v59 = vld [vmem:[%s11094_s9 + $0xe60] sm:$0xff]  ;;  %v671_v22 = vld [vmem:[%s11094_s9 + $0xe28] sm:$0xff] }
 0x2a3   : > { %v10107_v42 = vcombine.high %v670_v27, %v678_v59  ;;  %v10106_v51 = vcombine.low %v670_v27, %v678_v59  ;;  %v10108_v63 = vcombine.low %v671_v22, %v679_v4  ;;  %v767_v27 = vld [vmem:[%s11094_s9 + $0x1128] sm:$0xff] }
 0x2a4   : > { %7144 = vmatpush1.bf16.msra.mxu0 %v9994_v40  ;;  %v10109_v40 = vcombine.high %v671_v22, %v679_v4  ;;  %v775_v59 = vld [vmem:[%s11094_s9 + $0x1168] sm:$0xff] }
 0x2a5   : > { %7316 = vmatpush1.bf16.msra.mxu1 %v9996_v33  ;;  %7145 = vmatprep.subr.bf16.mxu0 %v10011_v12  ;;  %v686_v33 = vld [vmem:[%s11094_s9 + $0xea0] sm:$0xff] }
 0x2a6   : > { %7317 = vmatprep.subr.bf16.mxu1 %v10013_v21  ;;  %v694_v12 = vld [vmem:[%s11094_s9 + $0xee0] sm:$0xff]  ;;  %v687_v21 = vld [vmem:[%s11094_s9 + $0xea8] sm:$0xff] }
 0x2a7   : > { %v10123_v18 = vcombine.high %v686_v33, %v694_v12  ;;  %v10122_v62 = vcombine.low %v686_v33, %v694_v12  ;;  %v10124_v54 = vcombine.low %v687_v21, %v695_v14  ;;  %v15164_v33 = vld [vmem:[#allocation9_spill] sm:$0xff]  ;;  %v783_v12 = vld [vmem:[%s11094_s9 + $0x11a8] sm:$0xff] }
 0x2a8   : > { %7146 = vmatpush1.bf16.msra.mxu0 %v10010_v48  ;;  %v10125_v48 = vcombine.high %v687_v21, %v695_v14  ;;  %v791_v21 = vld [vmem:[%s11094_s9 + $0x11e8] sm:$0xff] }
 0x2a9   : > { %7318 = vmatpush1.bf16.msra.mxu1 %v10012_v56  ;;  %7147 = vmatprep.subr.bf16.mxu0 %v10027_v20  ;;  %v702_v56 = vld [vmem:[%s11094_s9 + $0xf20] sm:$0xff] }
 0x2aa   : > { %7319 = vmatprep.subr.bf16.mxu1 %v10029_v60  ;;  %v710_v20 = vld [vmem:[%s11094_s9 + $0xf60] sm:$0xff]  ;;  %v703_v60 = vld [vmem:[%s11094_s9 + $0xf28] sm:$0xff] }
 0x2ab   : > { %v10139_v6 = vcombine.high %v702_v56, %v710_v20  ;;  %v10138_v39 = vcombine.low %v702_v56, %v710_v20  ;;  %v10140_v2 = vcombine.low %v703_v60, %v711_v28  ;;  %v806_v56 = vld [vmem:[%s11094_s9 + $0x1260] sm:$0xff]  ;;  %v799_v20 = vld [vmem:[%s11094_s9 + $0x1228] sm:$0xff] }
 0x2ac   : > { %7148 = vmatpush1.bf16.msra.mxu0 %v10026_v43  ;;  %v10141_v43 = vcombine.high %v703_v60, %v711_v28  ;;  %v807_v60 = vld [vmem:[%s11094_s9 + $0x1268] sm:$0xff] }
 0x2ad   : > { %7320 = vmatpush1.bf16.msra.mxu1 %v10028_v52  ;;  %7149 = vmatprep.subr.bf16.mxu0 %v10043_v32  ;;  %v718_v52 = vld [vmem:[%s11094_s9 + $0xfa0] sm:$0xff] }
 0x2ae   : > { %7321 = vmatprep.subr.bf16.mxu1 %v10045_v55  ;;  %v726_v32 = vld [vmem:[%s11094_s9 + $0xfe0] sm:$0xff]  ;;  %v719_v55 = vld [vmem:[%s11094_s9 + $0xfa8] sm:$0xff] }
 0x2af   : > { %v10155_v8 = vcombine.high %v718_v52, %v726_v32  ;;  %v10154_v19 = vcombine.low %v718_v52, %v726_v32  ;;  %v10156_v61 = vcombine.low %v719_v55, %v727_v46  ;;  %v822_v52 = vld [vmem:[%s11094_s9 + $0x12e0] sm:$0xff]  ;;  %v815_v32 = vld [vmem:[%s11094_s9 + $0x12a8] sm:$0xff] }
 0x2b0   : > { %7150 = vmatpush1.bf16.msra.mxu0 %v10042_v16  ;;  %v10157_v16 = vcombine.high %v719_v55, %v727_v46  ;;  %v823_v55 = vld [vmem:[%s11094_s9 + $0x12e8] sm:$0xff] }
 0x2b1   : > { %7322 = vmatpush1.bf16.msra.mxu1 %v10044_v11  ;;  %7151 = vmatprep.subr.bf16.mxu0 %v10059_v34  ;;  %v734_v11 = vld [vmem:[%s11094_s9 + $0x1020] sm:$0xff] }
 0x2b2   : > { %7323 = vmatprep.subr.bf16.mxu1 %v10061_v25  ;;  %v742_v34 = vld [vmem:[%s11094_s9 + $0x1060] sm:$0xff]  ;;  %v735_v25 = vld [vmem:[%s11094_s9 + $0x1028] sm:$0xff] }
 0x2b3   : > { %v10171_v57 = vcombine.high %v734_v11, %v742_v34  ;;  %v10170_v38 = vcombine.low %v734_v11, %v742_v34  ;;  %v10172_v53 = vcombine.low %v735_v25, %v743_v26  ;;  %v838_v11 = vld [vmem:[%s11094_s9 + $0x1360] sm:$0xff]  ;;  %v831_v34 = vld [vmem:[%s11094_s9 + $0x1328] sm:$0xff] }
 0x2b4   : > { %7152 = vmatpush1.bf16.msra.mxu0 %v10058_v9  ;;  %v10173_v9 = vcombine.high %v735_v25, %v743_v26  ;;  %v839_v25 = vld [vmem:[%s11094_s9 + $0x1368] sm:$0xff] }
 0x2b5   : > { %7324 = vmatpush1.bf16.msra.mxu1 %v10060_v50  ;;  %7153 = vmatprep.subr.bf16.mxu0 %v10075_v5  ;;  %v750_v50 = vld [vmem:[%s11094_s9 + $0x10a0] sm:$0xff] }
 0x2b6   : > { %7325 = vmatprep.subr.bf16.mxu1 %v10077_v45  ;;  %v758_v5 = vld [vmem:[%s11094_s9 + $0x10e0] sm:$0xff]  ;;  %v751_v45 = vld [vmem:[%s11094_s9 + $0x10a8] sm:$0xff] }
 0x2b7   : > { %v10187_v44 = vcombine.high %v750_v50, %v758_v5  ;;  %v10186_v22 = vcombine.low %v750_v50, %v758_v5  ;;  %v10188_v4 = vcombine.low %v751_v45, %v759_v15  ;;  %v854_v50 = vld [vmem:[%s11094_s9 + $0x13e0] sm:$0xff]  ;;  %v847_v5 = vld [vmem:[%s11094_s9 + $0x13a8] sm:$0xff] }
 0x2b8   : > { %7154 = vmatpush1.bf16.msra.mxu0 %v10074_v10  ;;  %v10189_v10 = vcombine.high %v751_v45, %v759_v15  ;;  %v855_v45 = vld [vmem:[%s11094_s9 + $0x13e8] sm:$0xff] }
 0x2b9   : > { %7326 = vmatpush1.bf16.msra.mxu1 %v10076_v36  ;;  %7155 = vmatprep.subr.bf16.mxu0 %v10091_v0  ;;  %v766_v36 = vld [vmem:[%s11094_s9 + $0x1120] sm:$0xff] }
 0x2ba   : > { %7327 = vmatprep.subr.bf16.mxu1 %v10093_v24  ;;  %v774_v0 = vld [vmem:[%s11094_s9 + $0x1160] sm:$0xff]  ;;  %v15163_v24 = vld [vmem:[#allocation8_spill] sm:$0xff] }
 0x2bb   : > { %v10202_v14 = vcombine.low %v766_v36, %v774_v0 }
 0x2bc   : > { %7156 = vmatpush1.bf16.msra.mxu0 %v10090_v41  ;;  %v10203_v41 = vcombine.high %v766_v36, %v774_v0  ;;  %v870_v36 = vld [vmem:[%s11094_s9 + $0x1460] sm:$0xff]  ;;  %v863_v0 = vld [vmem:[%s11094_s9 + $0x1428] sm:$0xff] }
 0x2bd   : > { %7328 = vmatpush1.bf16.msra.mxu1 %v10092_v30  ;;  %7157 = vmatprep.subr.bf16.mxu0 %v10107_v42  ;;  %v10205_v30 = vcombine.high %v767_v27, %v775_v59  ;;  %v782_v42 = vld [vmem:[%s11094_s9 + $0x11a0] sm:$0xff] }
 0x2be   : > { %7329 = vmatprep.subr.bf16.mxu1 %v10109_v40  ;;  %v790_v40 = vld [vmem:[%s11094_s9 + $0x11e0] sm:$0xff] }
 0x2bf   : > { %v10218_v28 = vcombine.low %v782_v42, %v790_v40 }
 0x2c0   : > { %7158 = vmatpush1.bf16.msra.mxu0 %v10106_v51  ;;  %v10204_v51 = vcombine.low %v767_v27, %v775_v59  ;;  %v871_v27 = vld [vmem:[%s11094_s9 + $0x1468] sm:$0xff] }
 0x2c1   : > { %7330 = vmatpush1.bf16.msra.mxu1 %v10108_v63  ;;  %7159 = vmatprep.subr.bf16.mxu0 %v10123_v18  ;;  %v10219_v63 = vcombine.high %v782_v42, %v790_v40  ;;  %v10221_v18 = vcombine.high %v783_v12, %v791_v21  ;;  %v886_v42 = vld [vmem:[%s11094_s9 + $0x14e0] sm:$0xff]  ;;  %v879_v40 = vld [vmem:[%s11094_s9 + $0x14a8] sm:$0xff] }
 0x2c2   : > { %7331 = vmatprep.subr.bf16.mxu1 %v10125_v48  ;;  %v798_v48 = vld [vmem:[%s11094_s9 + $0x1220] sm:$0xff] }
 0x2c3   : > { %v10234_v46 = vcombine.low %v798_v48, %v806_v56 }
 0x2c4   : > { %7160 = vmatpush1.bf16.msra.mxu0 %v10122_v62  ;;  %v10220_v62 = vcombine.low %v783_v12, %v791_v21  ;;  %v887_v12 = vld [vmem:[%s11094_s9 + $0x14e8] sm:$0xff] }
 0x2c5   : > { %7332 = vmatpush1.bf16.msra.mxu1 %v10124_v54  ;;  %7161 = vmatprep.subr.bf16.mxu0 %v10139_v6  ;;  %v10235_v54 = vcombine.high %v798_v48, %v806_v56  ;;  %v10237_v6 = vcombine.high %v799_v20, %v807_v60  ;;  %v902_v48 = vld [vmem:[%s11094_s9 + $0x1560] sm:$0xff]  ;;  %v895_v56 = vld [vmem:[%s11094_s9 + $0x1528] sm:$0xff] }
 0x2c6   : > { %7333 = vmatprep.subr.bf16.mxu1 %v10141_v43  ;;  %v814_v43 = vld [vmem:[%s11094_s9 + $0x12a0] sm:$0xff] }
 0x2c7   : > { %v10250_v26 = vcombine.low %v814_v43, %v822_v52 }
 0x2c8   : > { %7162 = vmatpush1.bf16.msra.mxu0 %v10138_v39  ;;  %v10236_v39 = vcombine.low %v799_v20, %v807_v60  ;;  %v903_v20 = vld [vmem:[%s11094_s9 + $0x1568] sm:$0xff] }
 0x2c9   : > { %7334 = vmatpush1.bf16.msra.mxu1 %v10140_v2  ;;  %7163 = vmatprep.subr.bf16.mxu0 %v10155_v8  ;;  %v10251_v2 = vcombine.high %v814_v43, %v822_v52  ;;  %v10253_v8 = vcombine.high %v815_v32, %v823_v55  ;;  %v918_v43 = vld [vmem:[%s11094_s9 + $0x15e0] sm:$0xff]  ;;  %v911_v52 = vld [vmem:[%s11094_s9 + $0x15a8] sm:$0xff] }
 0x2ca   : > { %7335 = vmatprep.subr.bf16.mxu1 %v10157_v16  ;;  %v830_v16 = vld [vmem:[%s11094_s9 + $0x1320] sm:$0xff] }
 0x2cb   : > { %v10266_v15 = vcombine.low %v830_v16, %v838_v11 }
 0x2cc   : > { %7164 = vmatpush1.bf16.msra.mxu0 %v10154_v19  ;;  %v10252_v19 = vcombine.low %v815_v32, %v823_v55  ;;  %v919_v32 = vld [vmem:[%s11094_s9 + $0x15e8] sm:$0xff] }
 0x2cd   : > { %7336 = vmatpush1.bf16.msra.mxu1 %v10156_v61  ;;  %7176 = vmatprep.subr.bf16.mxu0 %v10171_v57  ;;  %v10267_v61 = vcombine.high %v830_v16, %v838_v11  ;;  %v10269_v57 = vcombine.high %v831_v34, %v839_v25  ;;  %v934_v16 = vld [vmem:[%s11094_s9 + $0x1660] sm:$0xff]  ;;  %v927_v11 = vld [vmem:[%s11094_s9 + $0x1628] sm:$0xff] }
 0x2ce   : > { %7348 = vmatprep.subr.bf16.mxu1 %v10173_v9  ;;  %v846_v9 = vld [vmem:[%s11094_s9 + $0x13a0] sm:$0xff] }
 0x2cf   : > { %7166 = vmatmul.mubr.bf16.vlgmr.msra.gmra.mrb[8].mxu0 %v15163_v24  ;;  %v10282_v59 = vcombine.low %v846_v9, %v854_v50 }
 0x2d0   : > { %7177 = vmatpush1.bf16.msra.mxu0 %v10170_v38  ;;  %7338 = vmatmul.mubr.bf16.vlgmr.msra.gmra.mrb[8].mxu1 %v15163_v24  ;;  %v10268_v38 = vcombine.low %v831_v34, %v839_v25  ;;  %v935_v34 = vld [vmem:[%s11094_s9 + $0x1668] sm:$0xff] }
 0x2d1   : > { %7349 = vmatpush1.bf16.msra.mxu1 %v10172_v53  ;;  %7178 = vmatprep.subr.bf16.mxu0 %v10187_v44  ;;  %v10283_v53 = vcombine.high %v846_v9, %v854_v50  ;;  %v10285_v44 = vcombine.high %v847_v5, %v855_v45  ;;  %v950_v9 = vld [vmem:[%s11094_s9 + $0x16e0] sm:$0xff]  ;;  %v943_v50 = vld [vmem:[%s11094_s9 + $0x16a8] sm:$0xff] }
 0x2d2   : > { %7350 = vmatprep.subr.bf16.mxu1 %v10189_v10  ;;  %7208 = vmatprep.mubr.bf16.mxu0 %v15164_v33  ;;  %v862_v10 = vld [vmem:[%s11094_s9 + $0x1420] sm:$0xff]  ;;  %v13184_v24 = vld [vmem:[%s11094_s9 + $0x1ea8] sm:$0xff] }
 0x2d3   : > { %7380 = vmatprep.mubr.bf16.mxu1 %v15164_v33  ;;  %v10298_v21 = vcombine.low %v862_v10, %v870_v36  ;;  %v13181_v33 = vld [vmem:[%s11094_s9 + $0x1ee0] sm:$0xff] }
 0x2d4   : > { %7179 = vmatpush1.bf16.msra.mxu0 %v10186_v22  ;;  %v10284_v22 = vcombine.low %v847_v5, %v855_v45  ;;  %v951_v5 = vld [vmem:[%s11094_s9 + $0x16e8] sm:$0xff] }
 0x2d5   : > { %7351 = vmatpush1.bf16.msra.mxu1 %v10188_v4  ;;  %7180 = vmatprep.subr.bf16.mxu0 %v10203_v41  ;;  %v10299_v4 = vcombine.high %v862_v10, %v870_v36  ;;  %v10301_v41 = vcombine.high %v863_v0, %v871_v27  ;;  %v966_v10 = vld [vmem:[%s11094_s9 + $0x1760] sm:$0xff]  ;;  %v959_v36 = vld [vmem:[%s11094_s9 + $0x1728] sm:$0xff] }
 0x2d6   : > { %7352 = vmatprep.subr.bf16.mxu1 %v10205_v30  ;;  %v878_v30 = vld [vmem:[%s11094_s9 + $0x14a0] sm:$0xff] }
 0x2d7   : > { %v10314_v60 = vcombine.low %v878_v30, %v886_v42 }
 0x2d8   : > { %7181 = vmatpush1.bf16.msra.mxu0 %v10202_v14  ;;  %v10300_v14 = vcombine.low %v863_v0, %v871_v27  ;;  %v967_v0 = vld [vmem:[%s11094_s9 + $0x1768] sm:$0xff] }
 0x2d9   : > { %7353 = vmatpush1.bf16.msra.mxu1 %v10204_v51  ;;  %7182 = vmatprep.subr.bf16.mxu0 %v10219_v63  ;;  %v10315_v51 = vcombine.high %v878_v30, %v886_v42  ;;  %v10317_v63 = vcombine.high %v879_v40, %v887_v12  ;;  %v982_v30 = vld [vmem:[%s11094_s9 + $0x17e0] sm:$0xff]  ;;  %v975_v42 = vld [vmem:[%s11094_s9 + $0x17a8] sm:$0xff] }
 0x2da   : > { %7354 = vmatprep.subr.bf16.mxu1 %v10221_v18  ;;  %v894_v18 = vld [vmem:[%s11094_s9 + $0x1520] sm:$0xff] }
 0x2db   : > { %v10330_v55 = vcombine.low %v894_v18, %v902_v48 }
 0x2dc   : > { %7183 = vmatpush1.bf16.msra.mxu0 %v10218_v28  ;;  %v10316_v28 = vcombine.low %v879_v40, %v887_v12  ;;  %v983_v40 = vld [vmem:[%s11094_s9 + $0x17e8] sm:$0xff] }
 0x2dd   : > { %7355 = vmatpush1.bf16.msra.mxu1 %v10220_v62  ;;  %7184 = vmatprep.subr.bf16.mxu0 %v10235_v54  ;;  %v10331_v62 = vcombine.high %v894_v18, %v902_v48  ;;  %v10333_v54 = vcombine.high %v895_v56, %v903_v20  ;;  %v998_v18 = vld [vmem:[%s11094_s9 + $0x1860] sm:$0xff]  ;;  %v991_v48 = vld [vmem:[%s11094_s9 + $0x1828] sm:$0xff] }
 0x2de   : > { %7356 = vmatprep.subr.bf16.mxu1 %v10237_v6  ;;  %v910_v6 = vld [vmem:[%s11094_s9 + $0x15a0] sm:$0xff] }
 0x2df   : > { %v10346_v25 = vcombine.low %v910_v6, %v918_v43 }
 0x2e0   : > { %7185 = vmatpush1.bf16.msra.mxu0 %v10234_v46  ;;  %v10332_v46 = vcombine.low %v895_v56, %v903_v20  ;;  %v999_v56 = vld [vmem:[%s11094_s9 + $0x1868] sm:$0xff] }
 0x2e1   : > { %7357 = vmatpush1.bf16.msra.mxu1 %v10236_v39  ;;  %7186 = vmatprep.subr.bf16.mxu0 %v10251_v2  ;;  %v10347_v39 = vcombine.high %v910_v6, %v918_v43  ;;  %v10349_v2 = vcombine.high %v911_v52, %v919_v32  ;;  %v10429_v6 = vcombine.high %v991_v48, %v999_v56  ;;  %v12970_v43 = vld [vmem:[%s11094_s9 + $0x18a8] sm:$0xff] }
 0x2e2   : > { %7358 = vmatprep.subr.bf16.mxu1 %v10253_v8  ;;  %v926_v8 = vld [vmem:[%s11094_s9 + $0x1620] sm:$0xff] }
 0x2e3   : > { %v10362_v45 = vcombine.low %v926_v8, %v934_v16 }
 0x2e4   : > { %7187 = vmatpush1.bf16.msra.mxu0 %v10250_v26  ;;  %v10348_v26 = vcombine.low %v911_v52, %v919_v32  ;;  %v12973_v52 = vld [vmem:[%s11094_s9 + $0x18e8] sm:$0xff]  ;;  %v12976_v32 = vld [vmem:[%s11094_s9 + $0x1920] sm:$0xff] }
 0x2e5   : > { %7359 = vmatpush1.bf16.msra.mxu1 %v10252_v19  ;;  %7188 = vmatprep.subr.bf16.mxu0 %v10267_v61  ;;  %v10363_v19 = vcombine.high %v926_v8, %v934_v16  ;;  %v10365_v61 = vcombine.high %v927_v11, %v935_v34  ;;  %v12988_v8 = vld [vmem:[%s11094_s9 + $0x19a0] sm:$0xff] }
 0x2e6   : > { %7360 = vmatprep.subr.bf16.mxu1 %v10269_v57  ;;  %v942_v57 = vld [vmem:[%s11094_s9 + $0x16a0] sm:$0xff] }
 0x2e7   : > { %v10378_v27 = vcombine.low %v942_v57, %v950_v9  ;;  %v12991_v16 = vld [vmem:[%s11094_s9 + $0x19e0] sm:$0xff] }
 0x2e8   : > { %7189 = vmatpush1.bf16.msra.mxu0 %v10266_v15  ;;  %v10364_v15 = vcombine.low %v927_v11, %v935_v34  ;;  %v12994_v11 = vld [vmem:[%s11094_s9 + $0x19a8] sm:$0xff]  ;;  %v10428_v34 = vcombine.low %v991_v48, %v999_v56  ;;  %v13075_v48 = vld [vmem:[%s11094_s9 + $0x1c60] sm:$0xff] }
 0x2e9   : > { %7361 = vmatpush1.bf16.msra.mxu1 %v10268_v38  ;;  %7190 = vmatprep.subr.bf16.mxu0 %v10283_v53  ;;  %v10379_v38 = vcombine.high %v942_v57, %v950_v9  ;;  %v10381_v53 = vcombine.high %v943_v50, %v951_v5  ;;  %v10445_v57 = vcombine.high %v12970_v43, %v12973_v52  ;;  %v13010_v9 = vld [vmem:[%s11094_s9 + $0x1a28] sm:$0xff] }
 0x2ea   : > { %7362 = vmatprep.subr.bf16.mxu1 %v10285_v44  ;;  %v958_v44 = vld [vmem:[%s11094_s9 + $0x1720] sm:$0xff]  ;;  %v13129_v56 = vld [vmem:[%s11094_s9 + $0x1d68] sm:$0xff] }
 0x2eb   : > { %v10394_v12 = vcombine.low %v958_v44, %v966_v10 }
 0x2ec   : > { %7191 = vmatpush1.bf16.msra.mxu0 %v10282_v59  ;;  %v10380_v59 = vcombine.low %v943_v50, %v951_v5  ;;  %v13013_v50 = vld [vmem:[%s11094_s9 + $0x1a68] sm:$0xff]  ;;  %v13016_v5 = vld [vmem:[%s11094_s9 + $0x1aa0] sm:$0xff] }
 0x2ed   : > { %7363 = vmatpush1.bf16.msra.mxu1 %v10284_v22  ;;  %7192 = vmatprep.subr.bf16.mxu0 %v10299_v4  ;;  %v10395_v22 = vcombine.high %v958_v44, %v966_v10  ;;  %v10397_v4 = vcombine.high %v959_v36, %v967_v0  ;;  %v13029_v10 = vld [vmem:[%s11094_s9 + $0x1aa8] sm:$0xff]  ;;  %v13161_v44 = vld [vmem:[%s11094_s9 + $0x1e60] sm:$0xff] }
 0x2ee   : > { %7364 = vmatprep.subr.bf16.mxu1 %v10301_v41  ;;  %v974_v41 = vld [vmem:[%s11094_s9 + $0x17a0] sm:$0xff]  ;;  %15169 = vst [vmem:[#allocation21_spill] sm:$0xff] %v13161_v44  ;;  %v13282_v44 = vld [vmem:[%s11094_s9 + $0xf0] sm:$0xff] }
 0x2ef   : > { %v10410_v20 = vcombine.low %v974_v41, %v982_v30  ;;  %15185 = vst [vmem:[#allocation32_spill] sm:$0xff] %v13282_v44  ;;  %v13381_v44 = vld [vmem:[%s11094_s9 + $0x2b0] sm:$0xff] }
 0x2f0   : > { %7193 = vmatpush1.bf16.msra.mxu0 %v10298_v21  ;;  %v10396_v21 = vcombine.low %v959_v36, %v967_v0  ;;  %v13032_v36 = vld [vmem:[%s11094_s9 + $0x1ae8] sm:$0xff]  ;;  %v13035_v0 = vld [vmem:[%s11094_s9 + $0x1b20] sm:$0xff]  ;;  %15203 = vst [vmem:[#allocation44_spill] sm:$0xff] %v13381_v44 }
 0x2f1   : > { %7365 = vmatpush1.bf16.msra.mxu1 %v10300_v14  ;;  %7194 = vmatprep.subr.bf16.mxu0 %v10315_v51  ;;  %v10411_v14 = vcombine.high %v974_v41, %v982_v30  ;;  %v10413_v51 = vcombine.high %v975_v42, %v983_v40  ;;  %v13048_v41 = vld [vmem:[%s11094_s9 + $0x1b28] sm:$0xff] }
 0x2f2   : > { %7366 = vmatprep.subr.bf16.mxu1 %v10317_v63  ;;  %v990_v63 = vld [vmem:[%s11094_s9 + $0x1820] sm:$0xff]  ;;  %v13051_v30 = vld [vmem:[%s11094_s9 + $0x1b68] sm:$0xff] }
 0x2f4   : > { %7195 = vmatpush1.bf16.msra.mxu0 %v10314_v60  ;;  %v10412_v60 = vcombine.low %v975_v42, %v983_v40  ;;  %v13054_v42 = vld [vmem:[%s11094_s9 + $0x1ba0] sm:$0xff] }
 0x2f5   : > { %7367 = vmatpush1.bf16.msra.mxu1 %v10316_v28  ;;  %7196 = vmatprep.subr.bf16.mxu0 %v10331_v62  ;;  %v10427_v28 = vcombine.high %v990_v63, %v998_v18  ;;  %v12964_v62 = vld [vmem:[%s11094_s9 + $0x18a0] sm:$0xff] }
 0x2f6   : > { %7368 = vmatprep.subr.bf16.mxu1 %v10333_v54  ;;  %v12967_v54 = vld [vmem:[%s11094_s9 + $0x18e0] sm:$0xff] }
 0x2f7   : > { %v13057_v40 = vld [vmem:[%s11094_s9 + $0x1be0] sm:$0xff] }
 0x2f8   : > { %7197 = vmatpush1.bf16.msra.mxu0 %v10330_v55  ;;  %v12979_v55 = vld [vmem:[%s11094_s9 + $0x1960] sm:$0xff] }
 0x2f9   : > { %7369 = vmatpush1.bf16.msra.mxu1 %v10332_v46  ;;  %7198 = vmatprep.subr.bf16.mxu0 %v10347_v39  ;;  %v12982_v46 = vld [vmem:[%s11094_s9 + $0x1928] sm:$0xff] }
 0x2fa   : > { %7370 = vmatprep.subr.bf16.mxu1 %v10349_v2  ;;  %v12985_v39 = vld [vmem:[%s11094_s9 + $0x1968] sm:$0xff]  ;;  %v10426_v2 = vcombine.low %v990_v63, %v998_v18  ;;  %v13072_v18 = vld [vmem:[%s11094_s9 + $0x1c20] sm:$0xff] }
 0x2fb   : > { %v13069_v63 = vld [vmem:[%s11094_s9 + $0x1be8] sm:$0xff] }
 0x2fc   : > { %7199 = vmatpush1.bf16.msra.mxu0 %v10346_v25  ;;  %v10443_v25 = vcombine.high %v12964_v62, %v12967_v54 }
 0x2fd   : > { %7371 = vmatpush1.bf16.msra.mxu1 %v10348_v26  ;;  %7200 = vmatprep.subr.bf16.mxu0 %v10363_v19  ;;  %v12999_v26 = vld [vmem:[%s11094_s9 + $0x19e8] sm:$0xff]  ;;  %v13002_v19 = vld [vmem:[%s11094_s9 + $0x1a20] sm:$0xff] }
 0x2fe   : > { %7372 = vmatprep.subr.bf16.mxu1 %v10365_v61  ;;  %v13005_v61 = vld [vmem:[%s11094_s9 + $0x1a60] sm:$0xff] }
 0x300   : > { %7201 = vmatpush1.bf16.msra.mxu0 %v10362_v45  ;;  %v13019_v45 = vld [vmem:[%s11094_s9 + $0x1ae0] sm:$0xff] }
 0x301   : > { %7373 = vmatpush1.bf16.msra.mxu1 %v10364_v15  ;;  %7202 = vmatprep.subr.bf16.mxu0 %v10379_v38  ;;  %v15165_v15 = vld [vmem:[#allocation10_spill] sm:$0xff]  ;;  %v10442_v38 = vcombine.low %v12964_v62, %v12967_v54  ;;  %v13090_v54 = vld [vmem:[%s11094_s9 + $0x1ca0] sm:$0xff]  ;;  %v15208_v17 = vcombine.low %v13016_v5, %v13019_v45 }
 0x302   : > { %7374 = vmatprep.subr.bf16.mxu1 %v10381_v53  ;;  %v10444_v53 = vcombine.low %v12970_v43, %v12973_v52  ;;  %v13087_v62 = vld [vmem:[%s11094_s9 + $0x1c68] sm:$0xff]  ;;  %v15166_v43 = vld [vmem:[#allocation11_spill] sm:$0xff]  ;;  %v13138_v52 = vld [vmem:[%s11094_s9 + $0x1da0] sm:$0xff] }
 0x304   : > { %7203 = vmatpush1.bf16.msra.mxu0 %v10378_v27  ;;  %v13038_v27 = vld [vmem:[%s11094_s9 + $0x1b60] sm:$0xff] }
 0x305   : > { %7375 = vmatpush1.bf16.msra.mxu1 %v10380_v59  ;;  %7204 = vmatprep.subr.bf16.mxu0 %v10395_v22  ;;  %v10459_v59 = vcombine.high %v12976_v32, %v12979_v55  ;;  %v13158_v22 = vld [vmem:[%s11094_s9 + $0x1e20] sm:$0xff]  ;;  %v15210_v47 = vcombine.high %v13035_v0, %v13038_v27 }
 0x306   : > { %7376 = vmatprep.subr.bf16.mxu1 %v10397_v4  ;;  %v10461_v4 = vcombine.high %v12982_v46, %v12985_v39 }
 0x308   : > { %7205 = vmatpush1.bf16.msra.mxu0 %v10394_v12  ;;  %v13126_v12 = vld [vmem:[%s11094_s9 + $0x1d28] sm:$0xff] }
 0x309   : > { %7377 = vmatpush1.bf16.msra.mxu1 %v10396_v21  ;;  %7206 = vmatprep.subr.bf16.mxu0 %v10411_v14  ;;  %v13123_v14 = vld [vmem:[%s11094_s9 + $0x1d60] sm:$0xff]  ;;  %v13144_v21 = vld [vmem:[%s11094_s9 + $0x1da8] sm:$0xff] }
 0x30a   : > { %7378 = vmatprep.subr.bf16.mxu1 %v10413_v51  ;;  %v13066_v51 = vld [vmem:[%s11094_s9 + $0x1ba8] sm:$0xff]  ;;  %15167 = vst [vmem:[#allocation19_spill] sm:$0xff] %v13144_v21  ;;  %v13265_v21 = vld [vmem:[%s11094_s9 + $0x78] sm:$0xff] }
 0x30c   : > { %7207 = vmatpush1.bf16.msra.mxu0 %v10410_v20  ;;  %v13108_v20 = vld [vmem:[%s11094_s9 + $0x1ce8] sm:$0xff] }
 0x30d   : > { %7379 = vmatpush1.bf16.msra.mxu1 %v10412_v60  ;;  %7219 = vmatprep.subr.bf16.mxu0 %v10427_v28  ;;  %v13084_v28 = vld [vmem:[%s11094_s9 + $0x1c28] sm:$0xff]  ;;  %v13111_v60 = vld [vmem:[%s11094_s9 + $0x1d20] sm:$0xff] }
 0x30e   : > { %7391 = vmatprep.subr.bf16.mxu1 %v10429_v6  ;;  %v13093_v6 = vld [vmem:[%s11094_s9 + $0x1ce0] sm:$0xff] }
 0x30f   : > { %7209 = vmatmul.mubr.bf16.vlgmr.msra.gmra.mrb[8].mxu0 %v15165_v15 }
 0x310   : > { %7220 = vmatpush1.bf16.msra.mxu0 %v10426_v2  ;;  %7381 = vmatmul.mubr.bf16.vlgmr.msra.gmra.mrb[8].mxu1 %v15165_v15  ;;  %v13178_v15 = vld [vmem:[%s11094_s9 + $0x1ea0] sm:$0xff] }
 0x311   : > { %7392 = vmatpush1.bf16.msra.mxu1 %v10428_v34  ;;  %7221 = vmatprep.subr.bf16.mxu0 %v10443_v25  ;;  %v13141_v34 = vld [vmem:[%s11094_s9 + $0x1de0] sm:$0xff]  ;;  %v13222_v25 = vld [vmem:[%s11094_s9 + $0x1f68] sm:$0xff] }
 0x312   : > { %7393 = vmatprep.subr.bf16.mxu1 %v10445_v57  ;;  %7251 = vmatprep.mubr.bf16.mxu0 %v15166_v43  ;;  %v13105_v57 = vld [vmem:[%s11094_s9 + $0x1ca8] sm:$0xff]  ;;  %15177 = vst [vmem:[#allocation26_spill] sm:$0xff] %v13222_v25  ;;  %v13343_v25 = vld [vmem:[%s11094_s9 + $0x1f8] sm:$0xff] }
 0x313   : > { %7423 = vmatprep.mubr.bf16.mxu1 %v15166_v43  ;;  %v13164_v43 = vld [vmem:[%s11094_s9 + $0x1e28] sm:$0xff]  ;;  %15195 = vst [vmem:[#allocation39_spill] sm:$0xff] %v13343_v25  ;;  %v15209_v25 = vcombine.low %v13029_v10, %v13032_v36 }
 0x314   : > { %7222 = vmatpush1.bf16.msra.mxu0 %v10442_v38  ;;  %15170 = vst [vmem:[#allocation22_spill] sm:$0xff] %v13164_v43  ;;  %v15172_v38 = vcombine.low %v12976_v32, %v12979_v55  ;;  %v13207_v32 = vld [vmem:[%s11094_s9 + $0x1f28] sm:$0xff]  ;;  %v15175_v55 = vcombine.low %v12982_v46, %v12985_v39  ;;  %v13225_v46 = vld [vmem:[%s11094_s9 + $0x1fa0] sm:$0xff]  ;;  %v13279_v43 = vld [vmem:[%s11094_s9 + $0xb0] sm:$0xff] }
 0x315   : > { %7394 = vmatpush1.bf16.msra.mxu1 %v10444_v53  ;;  %7223 = vmatprep.subr.bf16.mxu0 %v10459_v59  ;;  %v13147_v53 = vld [vmem:[%s11094_s9 + $0x1de8] sm:$0xff]  ;;  %15178 = vst [vmem:[#allocation27_spill] sm:$0xff] %v13225_v46  ;;  %v13228_v39 = vld [vmem:[%s11094_s9 + $0x1fe0] sm:$0xff]  ;;  %v13340_v46 = vld [vmem:[%s11094_s9 + $0x1b8] sm:$0xff] }
 0x316   : > { %15168 = vst [vmem:[#allocation20_spill] sm:$0xff] %v13147_v53  ;;  %7395 = vmatprep.subr.bf16.mxu1 %v10461_v4  ;;  %v13167_v4 = vld [vmem:[%s11094_s9 + $0x1e68] sm:$0xff]  ;;  %15179 = vst [vmem:[#allocation28_spill] sm:$0xff] %v13228_v39  ;;  %v13262_v53 = vld [vmem:[%s11094_s9 + $0x38] sm:$0xff] }
 0x317   : > { %15171 = vst [vmem:[#allocation23_spill] sm:$0xff] %v13167_v4  ;;  %v13337_v39 = vld [vmem:[%s11094_s9 + $0x1f0] sm:$0xff]  ;;  %v13378_v59 = vld [vmem:[%s11094_s9 + $0x278] sm:$0xff] }
 0x318   : > { %7224 = vmatpush1.bf16.msra.mxu0 %v15172_v38  ;;  %v15176_v38 = vcombine.high %v12988_v8, %v12991_v16  ;;  %15194 = vst [vmem:[#allocation38_spill] sm:$0xff] %v13337_v39  ;;  %15202 = vst [vmem:[#allocation43_spill] sm:$0xff] %v13378_v59 }
 0x319   : > { %7396 = vmatpush1.bf16.msra.mxu1 %v15175_v55  ;;  %v15180_v55 = vcombine.high %v12994_v11, %v12999_v26  ;;  %v7081_v29 = vpop.f32.mrb[4].mxu1 }
 0x31a   : > { %7225 = vmatprep.subr.bf16.mxu0 %v15176_v38  ;;  %v15184_v38 = vcombine.low %v12988_v8, %v12991_v16  ;;  %v13285_v8 = vld [vmem:[%s11094_s9 + $0xb8] sm:$0xff]  ;;  %v15186_v16 = vcombine.low %v12994_v11, %v12999_v26  ;;  %v13303_v11 = vld [vmem:[%s11094_s9 + $0x130] sm:$0xff]  ;;  %v7083_v39 = vpop.f32.mrb[5].mxu1 }
 0x31b   : > { %7397 = vmatprep.subr.bf16.mxu1 %v15180_v55  ;;  %v13248_v55 = vld [vmem:[%s11094_s9 + $0x30] sm:$0xff]  ;;  %15189 = vst [vmem:[#allocation34_spill] sm:$0xff] %v13303_v11  ;;  %v13401_v11 = vld [vmem:[%s11094_s9 + $0x2f8] sm:$0xff] }
 0x31c   : > { %15182 = vst [vmem:[#allocation30_spill] sm:$0xff] %v13248_v55  ;;  %7226 = vmatpush1.bf16.msra.mxu0 %v15184_v38  ;;  %v15187_v38 = vcombine.high %v13002_v19, %v13005_v61  ;;  %v13306_v26 = vld [vmem:[%s11094_s9 + $0x170] sm:$0xff]  ;;  %15207 = vst [vmem:[#allocation15_spill] sm:$0xff] %v13401_v11  ;;  %v7785_v11 = vmax.f32 %v7083_v39, 0.0 }
 0x31d   : > { %7398 = vmatpush1.bf16.msra.mxu1 %v15186_v16  ;;  %15190 = vst [vmem:[#allocation35_spill] sm:$0xff] %v13306_v26  ;;  %v15191_v16 = vcombine.high %v13010_v9, %v13013_v50  ;;  %v13357_v55 = vld [vmem:[%s11094_s9 + $0x230] sm:$0xff]  ;;  %v13398_v26 = vld [vmem:[%s11094_s9 + $0x2b8] sm:$0xff] }
 0x31e   : > { %7227 = vmatprep.subr.bf16.mxu0 %v15187_v38  ;;  %v15196_v38 = vcombine.low %v13002_v19, %v13005_v61  ;;  %15197 = vst [vmem:[#allocation40_spill] sm:$0xff] %v13357_v55  ;;  %v13363_v19 = vld [vmem:[%s11094_s9 + $0x238] sm:$0xff]  ;;  %v15200_v61 = vcombine.low %v13010_v9, %v13013_v50  ;;  %v13384_v9 = vld [vmem:[%s11094_s9 + $0x2f0] sm:$0xff]  ;;  %v6909_v50 = vpop.f32.mrb[4].mxu0  ;;  %15206 = vst [vmem:[#allocation14_spill] sm:$0xff] %v13398_v26 }
 0x31f   : > { %7399 = vmatprep.subr.bf16.mxu1 %v15191_v16  ;;  %v13326_v16 = vld [vmem:[%s11094_s9 + $0x1b0] sm:$0xff]  ;;  %15199 = vst [vmem:[#allocation42_spill] sm:$0xff] %v13363_v19  ;;  %15204 = vst [vmem:[#allocation13_spill] sm:$0xff] %v13384_v9  ;;  %v13439_v9 = vld [vmem:[%s11094_s9 + $0x338] sm:$0xff] }
 0x320   : > { %15193 = vst [vmem:[#allocation37_spill] sm:$0xff] %v13326_v16  ;;  %7228 = vmatpush1.bf16.msra.mxu0 %v15196_v38  ;;  %v15201_v38 = vcombine.high %v13016_v5, %v13019_v45  ;;  %v13426_v55 = vld [vmem:[%s11094_s9 + $0x370] sm:$0xff]  ;;  %v7782_v5 = vmax.f32 %v6909_v50, 0.0  ;;  %v13442_v50 = vld [vmem:[%s11094_s9 + $0x378] sm:$0xff] }
 0x321   : > { %7400 = vmatpush1.bf16.msra.mxu1 %v15200_v61  ;;  %v15205_v61 = vcombine.high %v13029_v10, %v13032_v36 }
 0x322   : > { %7229 = vmatprep.subr.bf16.mxu0 %v15201_v38 }
 0x323   : > { %7401 = vmatprep.subr.bf16.mxu1 %v15205_v61  ;;  %v6911_v61 = vpop.f32.mrb[5].mxu0 }
 0x324   : > { %v6913_v16 = vpop.f32.mrb[6].mxu0  ;;  %7230 = vmatpush1.bf16.msra.mxu0 %v15208_v17  ;;  %v7085_v17 = vpop.f32.mrb[6].mxu1  ;;  %v7783_v44 = vmax.f32 %v6911_v61, 0.0 }
 0x325   : > { %v7798_v45 = vmax.f32 %v6913_v16, 0.0  ;;  %7402 = vmatpush1.bf16.msra.mxu1 %v15209_v25  ;;  %v6915_v38 = vpop.f32.mrb[7].mxu0  ;;  %7231 = vmatprep.subr.bf16.mxu0 %v15210_v47  ;;  %v7784_v16 = vmax.f32 %v7081_v29, 0.0  ;;  %v7800_v59 = vmax.f32 %v7085_v17, 0.0  ;;  %v7087_v36 = vpop.f32.mrb[7].mxu1  ;;  %v15211_v25 = vcombine.high %v13048_v41, %v13051_v30 }
 0x326   : > { %v7799_v10 = vmax.f32 %v6915_v38, 0.0  ;;  %v7801_v19 = vmax.f32 %v7087_v36, 0.0  ;;  %v15212_v38 = vcombine.low %v13035_v0, %v13038_v27  ;;  %v15214_v0 = vcombine.high %v13054_v42, %v13057_v40 }
 0x327   : > { %7403 = vmatprep.subr.bf16.mxu1 %v15211_v25  ;;  %v7814_v47 = vpack.c.bf16 %v7798_v45, %v7782_v5  ;;  %v13451_v26 = vpack.c.bf16 %v7800_v59, %v7784_v16  ;;  %v15213_v59 = vcombine.low %v13048_v41, %v13051_v30  ;;  %v15215_v36 = vcombine.high %v13066_v51, %v13069_v63 }
 0x328   : > { %v13453_v29 = vpack.c.bf16 %v7799_v10, %v7783_v44  ;;  %7232 = vmatpush1.bf16.msra.mxu0 %v15212_v38  ;;  %v13477_v10 = vpack.c.bf16 %v7801_v19, %v7785_v11 }
 0x329   : > { %v7851_v5 = vsel %vm12112_vm14, %v7814_v47, 0  ;;  %v8093_v45 = vsel %vm12119_vm15, %v7814_v47, 0  ;;  %v8333_v39 = vsel %vm12126_vm0, %v7814_v47, 0  ;;  %v8573_v44 = vsel %vm12133_vm1, %v7814_v47, 0  ;;  %7404 = vmatpush1.bf16.msra.mxu1 %v15213_v59  ;;  %7233 = vmatprep.subr.bf16.mxu0 %v15214_v0 }
 0x32a   : > { %v7918_v27 = vsel %vm7863_vm2, %v7851_v5, 4286644096  ;;  %v8158_v17 = vsel %vm7863_vm2, %v8093_v45, 4286644096  ;;  %v8398_v16 = vsel %vm7863_vm2, %v8333_v39, 4286644096  ;;  %7405 = vmatprep.subr.bf16.mxu1 %v15215_v36  ;;  %v15216_v45 = vcombine.low %v13054_v42, %v13057_v40 }
 0x32b   : > { %v7920_v25 = vunpack.i.l.bf16 %v7918_v27  ;;  %v7921_v38 = vunpack.i.h.bf16 %v7918_v27  ;;  %v8160_v41 = vunpack.i.l.bf16 %v8158_v17  ;;  %v8161_v30 = vunpack.i.h.bf16 %v8158_v17 }
 0x32c   : > { %v8400_v59 = vunpack.i.l.bf16 %v8398_v16  ;;  %v8401_v61 = vunpack.i.h.bf16 %v8398_v16  ;;  %v8638_v0 = vsel %vm7863_vm2, %v8573_v44, 4286644096  ;;  %v8815_v5 = vsel %vm12200_vm3, %v7814_v47, 0  ;;  %7234 = vmatpush1.bf16.msra.mxu0 %v15216_v45 }
 0x32d   : > { %v7922_v11 = vmax.f32 %v7920_v25, %v7921_v38  ;;  %v8162_v19 = vmax.f32 %v8160_v41, %v8161_v30  ;;  %v8640_v39 = vunpack.i.l.bf16 %v8638_v0  ;;  %v8641_v2 = vunpack.i.h.bf16 %v8638_v0 }
 0x32e   : > { %v15217_v27 = vcombine.low %v13066_v51, %v13069_v63  ;;  %v15218_v17 = vcombine.high %v13072_v18, %v13075_v48  ;;  %v8402_v44 = vmax.f32 %v8400_v59, %v8401_v61  ;;  %v8880_v16 = vsel %vm7863_vm2, %v8815_v5, 4286644096 }
 0x32f   : > { %v9055_v36 = vsel %vm12239_vm4, %v7814_v47, 0  ;;  %v7853_v42 = vsel %vm12112_vm14, %v13451_v26, 0  ;;  %v15219_v40 = vcombine.high %v13084_v28, %v13087_v62  ;;  %v7923_v51 = vrot.slane %v7922_v11, 4 }
 0x330   : > { %7406 = vmatpush1.bf16.msra.mxu1 %v15217_v27  ;;  %7235 = vmatprep.subr.bf16.mxu0 %v15218_v17  ;;  %v8163_v63 = vrot.slane %v8162_v19, 4  ;;  %v8642_v25 = vmax.f32 %v8640_v39, %v8641_v2  ;;  %v8882_v38 = vunpack.i.l.bf16 %v8880_v16  ;;  %v8403_v41 = vrot.slane %v8402_v44, 4 }
 0x331   : > { %7407 = vmatprep.subr.bf16.mxu1 %v15219_v40  ;;  %v8883_v30 = vunpack.i.h.bf16 %v8880_v16  ;;  %v9120_v61 = vsel %vm7863_vm2, %v9055_v36, 4286644096  ;;  %v7944_v59 = vsel %vm7863_vm2, %v7853_v42, 4286644096  ;;  %v15220_v47 = vcombine.low %v13072_v18, %v13075_v48 }
 0x332   : > { %v7924_v0 = vmax.f32 %v7922_v11, %v7923_v51  ;;  %v8164_v5 = vmax.f32 %v8162_v19, %v8163_v63  ;;  %v8643_v45 = vrot.slane %v8642_v25, 4  ;;  %v9122_v27 = vunpack.i.l.bf16 %v9120_v61 }
 0x333   : > { %7236 = vmatpush1.bf16.msra.mxu0 %v15220_v47  ;;  %v15221_v17 = vcombine.low %v13084_v28, %v13087_v62  ;;  %v15222_v2 = vcombine.high %v13090_v54, %v13093_v6  ;;  %v8404_v39 = vmax.f32 %v8402_v44, %v8403_v41  ;;  %v8884_v16 = vmax.f32 %v8882_v38, %v8883_v30  ;;  %v13524_v38 = vld [vmem:[%s11094_s9 + $0x3b0] sm:$0xff] }
 0x334   : > { %v9123_v36 = vunpack.i.h.bf16 %v9120_v61  ;;  %v7946_v42 = vunpack.i.l.bf16 %v7944_v59  ;;  %v15223_v18 = vcombine.high %v13105_v57, %v13108_v20  ;;  %v7925_v48 = vrot.slane %v7924_v0, 2  ;;  %v13527_v41 = vld [vmem:[%s11094_s9 + $0x3f0] sm:$0xff] }
 0x335   : > { %7408 = vmatpush1.bf16.msra.mxu1 %v15221_v17  ;;  %7237 = vmatprep.subr.bf16.mxu0 %v15222_v2  ;;  %v8165_v11 = vrot.slane %v8164_v5, 2  ;;  %v8644_v19 = vmax.f32 %v8642_v25, %v8643_v45  ;;  %v7947_v28 = vunpack.i.h.bf16 %v7944_v59  ;;  %v8405_v62 = vrot.slane %v8404_v39, 2  ;;  %v13543_v2 = vld [vmem:[%s11094_s9 + $0x3f8] sm:$0xff] }
 0x336   : > { %7409 = vmatprep.subr.bf16.mxu1 %v15223_v18  ;;  %v8885_v40 = vrot.slane %v8884_v16, 4  ;;  %v9124_v51 = vmax.f32 %v9122_v27, %v9123_v36  ;;  %v8095_v63 = vsel %vm12119_vm15, %v13451_v26, 0  ;;  %v15224_v44 = vcombine.low %v13090_v54, %v13093_v6  ;;  %v13536_v54 = vld [vmem:[%s11094_s9 + $0x3b8] sm:$0xff]  ;;  %15228 = vst [vmem:[#allocation45_spill] sm:$0xff] %v13543_v2 }
 0x337   : > { %v7926_v25 = vmax.f32 %v7924_v0, %v7925_v48  ;;  %v8166_v30 = vmax.f32 %v8164_v5, %v8165_v11  ;;  %v8645_v61 = vrot.slane %v8644_v19, 2  ;;  %v7948_v59 = vmax.f32 %v7946_v42, %v7947_v28 }
 0x338   : > { %7238 = vmatpush1.bf16.msra.mxu0 %v15224_v44  ;;  %v15225_v47 = vcombine.low %v13105_v57, %v13108_v20  ;;  %v15226_v45 = vcombine.high %v13111_v60, %v13123_v14  ;;  %v8406_v6 = vmax.f32 %v8404_v39, %v8405_v62  ;;  %v8886_v27 = vmax.f32 %v8884_v16, %v8885_v40  ;;  %v13546_v20 = vld [vmem:[%s11094_s9 + $0x430] sm:$0xff]  ;;  %v13561_v40 = vld [vmem:[%s11094_s9 + $0x438] sm:$0xff] }
 0x339   : > { %v9125_v17 = vrot.slane %v9124_v51, 4  ;;  %v8184_v0 = vsel %vm7863_vm2, %v8095_v63, 4286644096  ;;  %v15227_v5 = vcombine.high %v13126_v12, %v13129_v56  ;;  %v13549_v57 = vld [vmem:[%s11094_s9 + $0x470] sm:$0xff]  ;;  %v7927_v36 = vrot.slane %v7926_v25, 1  ;;  %v13564_v63 = vld [vmem:[%s11094_s9 + $0x478] sm:$0xff] }
 0x33a   : > { %7410 = vmatpush1.bf16.msra.mxu1 %v15225_v47  ;;  %7239 = vmatprep.subr.bf16.mxu0 %v15226_v45  ;;  %15229 = vst [vmem:[#allocation46_spill] sm:$0xff] %v13549_v57  ;;  %v8167_v42 = vrot.slane %v8166_v30, 1  ;;  %v8646_v18 = vmax.f32 %v8644_v19, %v8645_v61  ;;  %v7949_v48 = vrot.slane %v7948_v59, 4  ;;  %v8186_v11 = vunpack.i.l.bf16 %v8184_v0  ;;  %v13579_v45 = vld [vmem:[%s11094_s9 + $0x4b0] sm:$0xff]  ;;  %v15235_v16 = vld [vmem:[#allocation20_spill] sm:$0xff] }
 0x33b   : > { %7411 = vmatprep.subr.bf16.mxu1 %v15227_v5  ;;  %v15230_v28 = vcombine.low %v13111_v60, %v13123_v14  ;;  %v8407_v44 = vrot.slane %v8406_v6, 1  ;;  %v15231_v47 = vcombine.low %v13126_v12, %v13129_v56  ;;  %v15232_v19 = vcombine.high %v13138_v52, %v13141_v34  ;;  %v13582_v5 = vld [vmem:[%s11094_s9 + $0x4f0] sm:$0xff]  ;;  %v13590_v14 = vld [vmem:[%s11094_s9 + $0x4b8] sm:$0xff] }
 0x33c   : > { %15233 = vst [vmem:[#allocation47_spill] sm:$0xff] %v13582_v5  ;;  %v9126_v12 = vmax.f32 %v9124_v51, %v9125_v17  ;;  %v8187_v56 = vunpack.i.h.bf16 %v8184_v0  ;;  %v13593_v60 = vld [vmem:[%s11094_s9 + $0x4f8] sm:$0xff]  ;;  %v7928_v39 = vmax.f32 %v7926_v25, %v7927_v36  ;;  %v8168_v61 = vmax.f32 %v8166_v30, %v8167_v42  ;;  %v15241_v36 = vld [vmem:[#allocation21_spill] sm:$0xff] }
 0x33d   : > { %7240 = vmatpush1.bf16.msra.mxu0 %v15230_v28  ;;  %v8887_v28 = vrot.slane %v8886_v27, 2  ;;  %15238 = vst [vmem:[#allocation20_spill] sm:$0xff] %v13593_v60  ;;  %v8647_v17 = vrot.slane %v8646_v18, 1  ;;  %v7950_v0 = vmax.f32 %v7948_v59, %v7949_v48  ;;  %v8408_v57 = vmax.f32 %v8406_v6, %v8407_v44 }
 0x33e   : > { %7412 = vmatpush1.bf16.msra.mxu1 %v15231_v47  ;;  %7241 = vmatprep.subr.bf16.mxu0 %v15232_v19  ;;  %v15234_v47 = vld [vmem:[#allocation19_spill] sm:$0xff]  ;;  %v8188_v2 = vmax.f32 %v8186_v11, %v8187_v56  ;;  %v8335_v25 = vsel %vm12126_vm0, %v13451_v26, 0  ;;  %v15242_v59 = vcombine.high %v13158_v22, %v15241_v36  ;;  %v9127_v6 = vrot.slane %v9126_v12, 2  ;;  %v15243_v11 = vld [vmem:[#allocation22_spill] sm:$0xff] }
 0x33f   : > { %v15236_v62 = vcombine.high %v15234_v47, %v15235_v16  ;;  %15237 = vst [vmem:[#allocation19_spill] sm:$0xff] %v13590_v14  ;;  %v15240_v30 = vcombine.low %v15234_v47, %v15235_v16  ;;  %v8888_v42 = vmax.f32 %v8886_v27, %v8887_v28  ;;  %v15244_v44 = vmov %v13167_v4 }
 0x340   : > { %v8189_v48 = vrot.slane %v8188_v2, 4  ;;  %v15245_v56 = vcombine.high %v15243_v11, %v15244_v44  ;;  %v7929_v47 = vpack.i.bf16 %v7928_v39, %v7928_v39  ;;  %v8648_v19 = vmax.f32 %v8646_v18, %v8647_v17 }
 0x341   : > { %7413 = vmatprep.subr.bf16.mxu1 %v15236_v62  ;;  %v15239_v62 = vcombine.low %v13138_v52, %v13141_v34  ;;  %v7951_v34 = vrot.slane %v7950_v0, 2  ;;  %v15246_v52 = vcombine.low %v13158_v22, %v15241_v36  ;;  %v8817_v39 = vsel %vm12200_vm3, %v13451_v26, 0 }
 0x342   : > { %7414 = vmatpush1.bf16.msra.mxu1 %v15240_v30  ;;  %v8424_v30 = vsel %vm7863_vm2, %v8335_v25, 4286644096  ;;  %v8190_v27 = vmax.f32 %v8188_v2, %v8189_v48  ;;  %v15248_v2 = vcombine.high %v13178_v15, %v13181_v33  ;;  %v8889_v18 = vrot.slane %v8888_v42, 1 }
 0x343   : > { %7242 = vmatpush1.bf16.msra.mxu0 %v15239_v62  ;;  %7415 = vmatprep.subr.bf16.mxu1 %v15245_v56  ;;  %v8169_v62 = vpack.i.bf16 %v8168_v61, %v8168_v61  ;;  %v8426_v28 = vunpack.i.l.bf16 %v8424_v30  ;;  %v8409_v56 = vpack.i.bf16 %v8408_v57, %v8408_v57  ;;  %v8427_v4 = vunpack.i.h.bf16 %v8424_v30 }
 0x344   : > { %7243 = vmatprep.subr.bf16.mxu0 %v15242_v59  ;;  %v8575_v59 = vsel %vm12133_vm1, %v13451_v26, 0  ;;  %v15247_v61 = vcombine.low %v15243_v11, %v15244_v44  ;;  %v9128_v17 = vmax.f32 %v9126_v12, %v9127_v6  ;;  %v8191_v22 = vrot.slane %v8190_v27, 2 }
 0x345   : > { %v8664_v16 = vsel %vm7863_vm2, %v8575_v59, 4286644096  ;;  %v15249_v57 = vcombine.high %v13184_v24, %v13187_v13  ;;  %v8428_v48 = vmax.f32 %v8426_v28, %v8427_v4  ;;  %v8906_v11 = vsel %vm7863_vm2, %v8817_v39, 4286644096 }
 0x346   : > { %7416 = vmatpush1.bf16.msra.mxu1 %v15247_v61  ;;  %v8666_v25 = vunpack.i.l.bf16 %v8664_v16  ;;  %v8667_v30 = vunpack.i.h.bf16 %v8664_v16  ;;  %v7952_v44 = vmax.f32 %v7950_v0, %v7951_v34  ;;  %v8192_v59 = vmax.f32 %v8190_v27, %v8191_v22  ;;  %v15253_v34 = vld [vmem:[#allocation24_spill] sm:$0xff]  ;;  %v15254_v16 = vld [vmem:[#allocation25_spill] sm:$0xff] }
 0x347   : > { %7244 = vmatpush1.bf16.msra.mxu0 %v15246_v52  ;;  %7417 = vmatprep.subr.bf16.mxu1 %v15249_v57  ;;  %v9282_v52 = vsel %vm12470_vm9, %v7929_v47, %v8169_v62  ;;  %v8908_v61 = vunpack.i.l.bf16 %v8906_v11  ;;  %v8909_v51 = vunpack.i.h.bf16 %v8906_v11  ;;  %v15251_v12 = vcombine.low %v13178_v15, %v13181_v33 }
 0x348   : > { %7245 = vmatprep.subr.bf16.mxu0 %v15248_v2  ;;  %v8429_v6 = vrot.slane %v8428_v48, 4  ;;  %v8668_v2 = vmax.f32 %v8666_v25, %v8667_v30  ;;  %v9057_v47 = vsel %vm12239_vm4, %v13451_v26, 0  ;;  %v7852_v4 = vsel %vm12112_vm14, %v13453_v29, 0  ;;  %v15256_v26 = vld [vmem:[#allocation26_spill] sm:$0xff]  ;;  %v13670_v30 = vld [vmem:[%s11094_s9 + $0x570] sm:$0xff] }
 0x349   : > { %v15252_v0 = vcombine.low %v13184_v24, %v13187_v13  ;;  %v15255_v33 = vcombine.high %v15253_v34, %v15254_v16  ;;  %v8649_v15 = vpack.i.bf16 %v8648_v19, %v8648_v19  ;;  %v8910_v62 = vmax.f32 %v8908_v61, %v8909_v51  ;;  %v13667_v24 = vld [vmem:[%s11094_s9 + $0x530] sm:$0xff] }
 0x34a   : > { %v9146_v27 = vsel %vm7863_vm2, %v9057_v47, 4286644096  ;;  %v7931_v28 = vsel %vm7863_vm2, %v7852_v4, 4286644096  ;;  %v15257_v39 = vcombine.high %v13207_v32, %v15256_v26  ;;  %v8890_v22 = vmax.f32 %v8888_v42, %v8889_v18  ;;  %v15260_v18 = vld [vmem:[#allocation27_spill] sm:$0xff] }
 0x34b   : > { %7246 = vmatpush1.bf16.msra.mxu0 %v15251_v12  ;;  %7418 = vmatpush1.bf16.msra.mxu1 %v15252_v0  ;;  %v9129_v25 = vrot.slane %v9128_v17, 1  ;;  %v9313_v57 = vsel %vm9275_vm5, %v9282_v52, %v8409_v56  ;;  %v8430_v13 = vmax.f32 %v8428_v48, %v8429_v6  ;;  %v9148_v11 = vunpack.i.l.bf16 %v9146_v27  ;;  %v15261_v52 = vld [vmem:[#allocation28_spill] sm:$0xff] }
 0x34c   : > { %7247 = vmatprep.subr.bf16.mxu0 %v15255_v33  ;;  %7419 = vmatprep.subr.bf16.mxu1 %v15257_v39  ;;  %v9149_v19 = vunpack.i.h.bf16 %v9146_v27  ;;  %v7933_v51 = vunpack.i.l.bf16 %v7931_v28  ;;  %v7934_v61 = vunpack.i.h.bf16 %v7931_v28  ;;  %v15258_v12 = vcombine.low %v15253_v34, %v15254_v16  ;;  %v15263_v16 = vld [vmem:[#allocation29_spill] sm:$0xff] }
 0x34d   : > { %v7953_v47 = vrot.slane %v7952_v44, 1  ;;  %v8193_v4 = vrot.slane %v8192_v59, 1  ;;  %v8669_v0 = vrot.slane %v8668_v2, 4  ;;  %v8094_v42 = vsel %vm12119_vm15, %v13453_v29, 0 }
 0x34e   : > { %v15259_v56 = vcombine.low %v13207_v32, %v15256_v26  ;;  %v15262_v48 = vcombine.high %v15260_v18, %v15261_v52  ;;  %v8911_v6 = vrot.slane %v8910_v62, 4  ;;  %v7935_v33 = vmax.f32 %v7933_v51, %v7934_v61 }
 0x34f   : > { %7248 = vmatpush1.bf16.msra.mxu0 %v15258_v12  ;;  %v8171_v34 = vsel %vm7863_vm2, %v8094_v42, 4286644096  ;;  %v15264_v27 = vcombine.high %v13242_v58, %v15263_v16  ;;  %v9822_v28 = vcombine.low %v13667_v24, %v13670_v30  ;;  %v9130_v39 = vmax.f32 %v9128_v17, %v9129_v25  ;;  %v15268_v25 = vld [vmem:[#allocation30_spill] sm:$0xff] }
 0x350   : > { %7420 = vmatpush1.bf16.msra.mxu1 %v15259_v56  ;;  %7249 = vmatprep.subr.bf16.mxu0 %v15262_v48  ;;  %v9366_v32 = vsel %vm12524_vm12, %v9313_v57, %v8649_v15  ;;  %v8431_v26 = vrot.slane %v8430_v13, 2  ;;  %v8173_v56 = vunpack.i.l.bf16 %v8171_v34  ;;  %v8891_v60 = vpack.i.bf16 %v8890_v22, %v8890_v22  ;;  %v15269_v22 = vld [vmem:[#allocation31_spill] sm:$0xff] }
 0x351   : > { %7421 = vmatprep.subr.bf16.mxu1 %v15264_v27  ;;  %v9150_v14 = vmax.f32 %v9148_v11, %v9149_v19  ;;  %v7936_v48 = vrot.slane %v7935_v33, 4  ;;  %v8174_v5 = vunpack.i.h.bf16 %v8171_v34  ;;  %v15266_v51 = vcombine.low %v15260_v18, %v15261_v52 }
 0x352   : > { %v7954_v61 = vmax.f32 %v7952_v44, %v7953_v47  ;;  %v8194_v42 = vmax.f32 %v8192_v59, %v8193_v4  ;;  %v8670_v27 = vmax.f32 %v8668_v2, %v8669_v0  ;;  %v8334_v17 = vsel %vm12126_vm0, %v13453_v29, 0 }
 0x353   : > { %7250 = vmatpush1.bf16.msra.mxu0 %v15266_v51  ;;  %v15267_v15 = vcombine.low %v13242_v58, %v15263_v16  ;;  %v15270_v57 = vcombine.high %v15268_v25, %v15269_v22  ;;  %v8912_v11 = vmax.f32 %v8910_v62, %v8911_v6  ;;  %v7937_v19 = vmax.f32 %v7935_v33, %v7936_v48  ;;  %v15272_v58 = vld [vmem:[#allocation12_spill] sm:$0xff] }
 0x354   : > { %v8175_v34 = vmax.f32 %v8173_v56, %v8174_v5  ;;  %v8411_v18 = vsel %vm7863_vm2, %v8334_v17, 4286644096  ;;  %v15271_v44 = vcombine.high %v13262_v53, %v13265_v21  ;;  %v9131_v59 = vpack.i.bf16 %v9130_v39, %v9130_v39  ;;  %v15275_v39 = vld [vmem:[#allocation32_spill] sm:$0xff] }
 0x355   : > { %7422 = vmatpush1.bf16.msra.mxu1 %v15267_v15  ;;  %7434 = vmatprep.subr.bf16.mxu0 %v15270_v57  ;;  %v9397_v2 = vsel %vm9359_vm7, %v9366_v32, %v8891_v60  ;;  %v8432_v47 = vmax.f32 %v8430_v13, %v8431_v26  ;;  %v8413_v4 = vunpack.i.l.bf16 %v8411_v18  ;;  %v9151_v0 = vrot.slane %v9150_v14, 4  ;;  %v15280_v57 = vld [vmem:[#allocation5_spill] sm:$0xff] }
 0x356   : > { %7606 = vmatprep.subr.bf16.mxu1 %v15271_v44  ;;  %7252 = vmatmul.mubr.bf16.vlgmr.msra.gmra.mrb[8].mxu0 %v15272_v58  ;;  %v7938_v52 = vrot.slane %v7937_v19, 2  ;;  %v8176_v16 = vrot.slane %v8175_v34, 4  ;;  %v8414_v51 = vunpack.i.h.bf16 %v8411_v18  ;;  %v15273_v5 = vcombine.low %v15268_v25, %v15269_v22 }
 0x357   : > { %v7955_v62 = vpack.i.bf16 %v7954_v61, %v7954_v61  ;;  %v8195_v6 = vpack.i.bf16 %v8194_v42, %v8194_v42  ;;  %v8671_v33 = vrot.slane %v8670_v27, 2  ;;  %v8574_v60 = vsel %vm12133_vm1, %v13453_v29, 0  ;;  %v15277_v61 = vld [vmem:[#allocation33_spill] sm:$0xff]  ;;  %7466 = vmatprep.mubr.bf16.mxu0 %v15280_v57 }
 0x358   : > { %7424 = vmatmul.mubr.bf16.vlgmr.msra.gmra.mrb[8].mxu1 %v15272_v58  ;;  %7435 = vmatpush1.bf16.msra.mxu0 %v15273_v5  ;;  %v15274_v13 = vcombine.low %v13262_v53, %v13265_v21  ;;  %v15276_v32 = vcombine.high %v13279_v43, %v15275_v39  ;;  %v8913_v26 = vrot.slane %v8912_v11, 2  ;;  %v7939_v56 = vmax.f32 %v7937_v19, %v7938_v52 }
 0x359   : > { %v8177_v48 = vmax.f32 %v8175_v34, %v8176_v16  ;;  %v8415_v17 = vmax.f32 %v8413_v4, %v8414_v51  ;;  %v15278_v42 = vcombine.high %v13285_v8, %v15277_v61  ;;  %v13728_v25 = vsel %vm12568_vm13, %v9397_v2, %v9131_v59  ;;  %7638 = vmatprep.mubr.bf16.mxu1 %v15280_v57  ;;  %v15290_v57 = vld [vmem:[#allocation37_spill] sm:$0xff] }
 0x35a   : > { %7607 = vmatpush1.bf16.msra.mxu1 %v15274_v13  ;;  %7436 = vmatprep.subr.bf16.mxu0 %v15276_v32  ;;  %v8433_v22 = vrot.slane %v8432_v47, 1  ;;  %v8651_v21 = vsel %vm7863_vm2, %v8574_v60, 4286644096  ;;  %v9823_v53 = vcombine.high %v13667_v24, %v13670_v30  ;;  %v13735_v19 = vmax.f32 %v9150_v14, %v9151_v0  ;;  %v15283_v14 = vld [vmem:[#allocation34_spill] sm:$0xff]  ;;  %v15284_v0 = vld [vmem:[#allocation35_spill] sm:$0xff]  ;;  %v441_v24 = vld [vmem:[%s11094_s9 + $0x6f8] sm:$0xff] }
 0x35b   : > { %7608 = vmatprep.subr.bf16.mxu1 %v15278_v42  ;;  %v7940_v34 = vrot.slane %v7939_v56, 1  ;;  %v8178_v18 = vrot.slane %v8177_v48, 2  ;;  %v8416_v44 = vrot.slane %v8415_v17, 4  ;;  %v15281_v4 = vcombine.low %v13279_v43, %v15275_v39 }
 0x35c   : > { %v13740_v59 = vmax.f32 %v8670_v27, %v8671_v33  ;;  %v13744_v2 = vsel %vm12470_vm9, %v7955_v62, %v8195_v6  ;;  %v8653_v52 = vunpack.i.l.bf16 %v8651_v21  ;;  %v8654_v16 = vunpack.i.h.bf16 %v8651_v21  ;;  %v15286_v33 = vld [vmem:[#allocation36_spill] sm:$0xff] }
 0x35d   : > { %7437 = vmatpush1.bf16.msra.mxu0 %v15281_v4  ;;  %v15282_v51 = vcombine.low %v13285_v8, %v15277_v61  ;;  %v15285_v5 = vcombine.high %v15283_v14, %v15284_v0  ;;  %v13752_v60 = vmax.f32 %v8912_v11, %v8913_v26  ;;  %v7941_v43 = vmax.f32 %v7939_v56, %v7940_v34 }
 0x35e   : > { %v8179_v13 = vmax.f32 %v8177_v48, %v8178_v18  ;;  %v8417_v27 = vmax.f32 %v8415_v17, %v8416_v44  ;;  %v15287_v39 = vcombine.high %v13320_v1, %v15286_v33  ;;  %v13757_v62 = vmax.f32 %v8432_v47, %v8433_v22 }
 0x35f   : > { %7609 = vmatpush1.bf16.msra.mxu1 %v15282_v51  ;;  %7438 = vmatprep.subr.bf16.mxu0 %v15285_v5  ;;  %v8655_v6 = vmax.f32 %v8653_v52, %v8654_v16  ;;  %v8816_v8 = vsel %vm12200_vm3, %v13453_v29, 0  ;;  %v9056_v32 = vsel %vm12239_vm4, %v13453_v29, 0  ;;  %v9153_v11 = vrot.slane %v13735_v19, 2  ;;  %v15291_v29 = vld [vmem:[#allocation38_spill] sm:$0xff]  ;;  %v15293_v16 = vld [vmem:[#allocation39_spill] sm:$0xff] }
 0x360   : > { %7610 = vmatprep.subr.bf16.mxu1 %v15287_v39  ;;  %v8180_v26 = vrot.slane %v8179_v13, 1  ;;  %v8418_v56 = vrot.slane %v8417_v27, 2  ;;  %v8893_v48 = vsel %vm7863_vm2, %v8816_v8, 4286644096  ;;  %v15288_v17 = vcombine.low %v15283_v14, %v15284_v0 }
 0x361   : > { %v7942_v47 = vpack.i.bf16 %v7941_v43, %v7941_v43  ;;  %v8656_v61 = vrot.slane %v8655_v6, 4  ;;  %v8895_v42 = vunpack.i.l.bf16 %v8893_v48  ;;  %v8896_v22 = vunpack.i.h.bf16 %v8893_v48  ;;  %v15297_v48 = vld [vmem:[#allocation40_spill] sm:$0xff] }
 0x362   : > { %7439 = vmatpush1.bf16.msra.mxu0 %v15288_v17  ;;  %v15289_v21 = vcombine.low %v13320_v1, %v15286_v33  ;;  %v15292_v34 = vcombine.high %v15290_v57, %v15291_v29  ;;  %v8181_v18 = vmax.f32 %v8179_v13, %v8180_v26  ;;  %v8419_v44 = vmax.f32 %v8417_v27, %v8418_v56  ;;  %v15298_v17 = vld [vmem:[#allocation41_spill] sm:$0xff] }
 0x363   : > { %v9133_v4 = vsel %vm7863_vm2, %v9056_v32, 4286644096  ;;  %v7854_v52 = vsel %vm12112_vm14, %v13477_v10, 0  ;;  %v15294_v51 = vcombine.high %v13340_v46, %v15293_v16  ;;  %v8657_v14 = vmax.f32 %v8655_v6, %v8656_v61 }
 0x364   : > { %7611 = vmatpush1.bf16.msra.mxu1 %v15289_v21  ;;  %7440 = vmatprep.subr.bf16.mxu0 %v15292_v34  ;;  %v8897_v0 = vmax.f32 %v8895_v42, %v8896_v22  ;;  %v9135_v1 = vunpack.i.l.bf16 %v9133_v4  ;;  %v9136_v5 = vunpack.i.h.bf16 %v9133_v4  ;;  %v8182_v43 = vpack.i.bf16 %v8181_v18, %v8181_v18  ;;  %v15301_v34 = vld [vmem:[#allocation43_spill] sm:$0xff] }
 0x365   : > { %7612 = vmatprep.subr.bf16.mxu1 %v15294_v51  ;;  %v8420_v33 = vrot.slane %v8419_v44, 1  ;;  %v7957_v39 = vsel %vm7863_vm2, %v7854_v52, 4286644096  ;;  %v8096_v13 = vsel %vm12119_vm15, %v13477_v10, 0  ;;  %v15295_v27 = vcombine.low %v15290_v57, %v15291_v29  ;;  %v15300_v29 = vld [vmem:[#allocation42_spill] sm:$0xff] }
 0x366   : > { %v8658_v8 = vrot.slane %v8657_v14, 2  ;;  %v8898_v32 = vrot.slane %v8897_v0, 4  ;;  %v9137_v26 = vmax.f32 %v9135_v1, %v9136_v5  ;;  %v7959_v56 = vunpack.i.l.bf16 %v7957_v39 }
 0x367   : > { %7441 = vmatpush1.bf16.msra.mxu0 %v15295_v27  ;;  %v15296_v6 = vcombine.low %v13340_v46, %v15293_v16  ;;  %v15299_v61 = vcombine.high %v15297_v48, %v15298_v17  ;;  %v8421_v42 = vmax.f32 %v8419_v44, %v8420_v33  ;;  %v9283_v22 = vsel %vm12470_vm9, %v7942_v47, %v8182_v43  ;;  %v15306_v27 = vld [vmem:[#allocation13_spill] sm:$0xff] }
 0x368   : > { %v7960_v21 = vunpack.i.h.bf16 %v7957_v39  ;;  %v8197_v57 = vsel %vm7863_vm2, %v8096_v13, 4286644096  ;;  %v15302_v18 = vcombine.high %v15300_v29, %v15301_v34  ;;  %v8659_v4 = vmax.f32 %v8657_v14, %v8658_v8 }
 0x369   : > { %7613 = vmatpush1.bf16.msra.mxu1 %v15296_v6  ;;  %7442 = vmatprep.subr.bf16.mxu0 %v15299_v61  ;;  %v8899_v52 = vmax.f32 %v8897_v0, %v8898_v32  ;;  %v9138_v51 = vrot.slane %v9137_v26, 4  ;;  %v8199_v46 = vunpack.i.l.bf16 %v8197_v57  ;;  %v8422_v16 = vpack.i.bf16 %v8421_v42, %v8421_v42  ;;  %v15305_v0 = vld [vmem:[#allocation44_spill] sm:$0xff] }
 0x36a   : > { %7614 = vmatprep.subr.bf16.mxu1 %v15302_v18  ;;  %v7961_v1 = vmax.f32 %v7959_v56, %v7960_v21  ;;  %v8200_v5 = vunpack.i.h.bf16 %v8197_v57  ;;  %v8336_v44 = vsel %vm12126_vm0, %v13477_v10, 0  ;;  %v15303_v47 = vcombine.low %v15297_v48, %v15298_v17  ;;  %v15308_v48 = vld [vmem:[#allocation14_spill] sm:$0xff]  ;;  %v15309_v17 = vld [vmem:[#allocation15_spill] sm:$0xff] }
 0x36b   : > { %v8660_v43 = vrot.slane %v8659_v4, 1  ;;  %v8900_v33 = vrot.slane %v8899_v52, 2  ;;  %v9139_v39 = vmax.f32 %v9137_v26, %v9138_v51  ;;  %v8437_v13 = vsel %vm7863_vm2, %v8336_v44, 4286644096 }
 0x36c   : > { %7443 = vmatpush1.bf16.msra.mxu0 %v15303_v47  ;;  %v15304_v14 = vcombine.low %v15300_v29, %v15301_v34  ;;  %v15307_v8 = vcombine.high %v15305_v0, %v15306_v27  ;;  %v9317_v32 = vsel %vm9275_vm5, %v9283_v22, %v8422_v16  ;;  %v7962_v56 = vrot.slane %v7961_v1, 4 }
 0x36d   : > { %v8201_v6 = vmax.f32 %v8199_v46, %v8200_v5  ;;  %v8439_v61 = vunpack.i.l.bf16 %v8437_v13  ;;  %v15310_v42 = vcombine.high %v15308_v48, %v15309_v17  ;;  %v8661_v26 = vmax.f32 %v8659_v4, %v8660_v43 }
 0x36e   : > { %7615 = vmatpush1.bf16.msra.mxu1 %v15304_v14  ;;  %7444 = vmatprep.subr.bf16.mxu0 %v15307_v8  ;;  %v8901_v21 = vmax.f32 %v8899_v52, %v8900_v33  ;;  %v9140_v57 = vrot.slane %v9139_v39, 2  ;;  %v8440_v18 = vunpack.i.h.bf16 %v8437_v13  ;;  %v7963_v51 = vmax.f32 %v7961_v1, %v7962_v56 }
 0x36f   : > { %7616 = vmatprep.subr.bf16.mxu1 %v15310_v42  ;;  %v8202_v29 = vrot.slane %v8201_v6, 4  ;;  %v8576_v34 = vsel %vm12133_vm1, %v13477_v10, 0  ;;  %v8818_v22 = vsel %vm12200_vm3, %v13477_v10, 0  ;;  %v15311_v46 = vcombine.low %v15305_v0, %v15306_v27 }
 0x370   : > { %v8662_v16 = vpack.i.bf16 %v8661_v26, %v8661_v26  ;;  %v8902_v5 = vrot.slane %v8901_v21, 1  ;;  %v9141_v4 = vmax.f32 %v9139_v39, %v9140_v57  ;;  %v8441_v52 = vmax.f32 %v8439_v61, %v8440_v18 }
 0x371   : > { %7445 = vmatpush1.bf16.msra.mxu0 %v15311_v46  ;;  %v15312_v1 = vcombine.low %v15308_v48, %v15309_v17  ;;  %v15313_v44 = vcombine.high %v13423_v35, %v13426_v55  ;;  %v7964_v47 = vrot.slane %v7963_v51, 2  ;;  %v8203_v43 = vmax.f32 %v8201_v6, %v8202_v29  ;;  %v15318_v46 = vld [vmem:[#allocation45_spill] sm:$0xff] }
 0x372   : > { %v8677_v33 = vsel %vm7863_vm2, %v8576_v34, 4286644096  ;;  %v8919_v13 = vsel %vm7863_vm2, %v8818_v22, 4286644096  ;;  %v15314_v14 = vcombine.high %v13439_v9, %v13442_v50  ;;  %v8903_v39 = vmax.f32 %v8901_v21, %v8902_v5 }
 0x373   : > { %7617 = vmatpush1.bf16.msra.mxu1 %v15312_v1  ;;  %7446 = vmatprep.subr.bf16.mxu0 %v15313_v44  ;;  %v9142_v0 = vrot.slane %v9141_v4, 1  ;;  %v9367_v27 = vsel %vm12524_vm12, %v9317_v32, %v8662_v16  ;;  %v8442_v8 = vrot.slane %v8441_v52, 4  ;;  %v7965_v56 = vmax.f32 %v7963_v51, %v7964_v47 }
 0x374   : > { %7618 = vmatprep.subr.bf16.mxu1 %v15314_v14  ;;  %v8204_v61 = vrot.slane %v8203_v43, 2  ;;  %v8679_v48 = vunpack.i.l.bf16 %v8677_v33  ;;  %v8680_v17 = vunpack.i.h.bf16 %v8677_v33  ;;  %v15315_v6 = vcombine.low %v13423_v35, %v13426_v55  ;;  %v15322_v14 = vld [vmem:[#allocation46_spill] sm:$0xff] }
 0x375   : > { %v8904_v42 = vpack.i.bf16 %v8903_v39, %v8903_v39  ;;  %v9143_v26 = vmax.f32 %v9141_v4, %v9142_v0  ;;  %v8443_v57 = vmax.f32 %v8441_v52, %v8442_v8  ;;  %v8921_v18 = vunpack.i.l.bf16 %v8919_v13 }
 0x376   : > { %7447 = vmatpush1.bf16.msra.mxu0 %v15315_v6  ;;  %v15316_v21 = vcombine.low %v13439_v9, %v13442_v50  ;;  %v15317_v32 = vcombine.high %v13524_v38, %v13527_v41  ;;  %v7966_v51 = vrot.slane %v7965_v56, 1  ;;  %v8205_v29 = vmax.f32 %v8203_v43, %v8204_v61  ;;  %v393_v6 = vld [vmem:[%s11094_s9 + $0x578] sm:$0xff] }
 0x377   : > { %v8681_v34 = vmax.f32 %v8679_v48, %v8680_v17  ;;  %v8922_v22 = vunpack.i.h.bf16 %v8919_v13  ;;  %v15319_v35 = vcombine.high %v13536_v54, %v15318_v46  ;;  %v9144_v55 = vpack.i.bf16 %v9143_v26, %v9143_v26  ;;  %v385_v17 = vld [vmem:[%s11094_s9 + $0x538] sm:$0xff] }
 0x378   : > { %7619 = vmatpush1.bf16.msra.mxu1 %v15316_v21  ;;  %7448 = vmatprep.subr.bf16.mxu0 %v15317_v32  ;;  %v9401_v16 = vsel %vm9359_vm7, %v9367_v27, %v8904_v42  ;;  %v8444_v5 = vrot.slane %v8443_v57, 2  ;;  %v9058_v9 = vsel %vm12239_vm4, %v13477_v10, 0  ;;  %v7967_v50 = vmax.f32 %v7965_v56, %v7966_v51  ;;  %v408_v21 = vld [vmem:[%s11094_s9 + $0x5f0] sm:$0xff] }
 0x379   : > { %7620 = vmatprep.subr.bf16.mxu1 %v15319_v35  ;;  %v8206_v4 = vrot.slane %v8205_v29, 1  ;;  %v8682_v52 = vrot.slane %v8681_v34, 4  ;;  %v8923_v1 = vmax.f32 %v8921_v18, %v8922_v22  ;;  %v15320_v44 = vcombine.low %v13524_v38, %v13527_v41  ;;  %v400_v18 = vld [vmem:[%s11094_s9 + $0x5b0] sm:$0xff] }
 0x37a   : > { %v8673_v47 = vrot.slane %v13740_v59, 1  ;;  %v9451_v43 = vsel %vm12568_vm13, %v9401_v16, %v9144_v55  ;;  %v8445_v33 = vmax.f32 %v8443_v57, %v8444_v5  ;;  %v9159_v13 = vsel %vm7863_vm2, %v9058_v9, 4286644096  ;;  %v15329_v35 = vld [vmem:[#allocation19_spill] sm:$0xff]  ;;  %v15330_v55 = vld [vmem:[#allocation20_spill] sm:$0xff] }
 0x37b   : > { %7449 = vmatpush1.bf16.msra.mxu0 %v15320_v44  ;;  %v15321_v10 = vcombine.low %v13536_v54, %v15318_v46  ;;  %v15323_v39 = vcombine.high %v13546_v20, %v15322_v14  ;;  %v8435_v38 = vpack.i.bf16 %v13757_v62, %v13757_v62  ;;  %v10682_v41 = vcombine.low %v13728_v25, %v9451_v43 }
 0x37c   : > { %v8207_v0 = vmax.f32 %v8205_v29, %v8206_v4  ;;  %v8683_v27 = vmax.f32 %v8681_v34, %v8682_v52  ;;  %v15324_v8 = vcombine.high %v13561_v40, %v13564_v63  ;;  %v8446_v56 = vrot.slane %v8445_v33, 1  ;;  %v401_v4 = vld [vmem:[%s11094_s9 + $0x5b8] sm:$0xff] }
 0x37d   : > { %7621 = vmatpush1.bf16.msra.mxu1 %v15321_v10  ;;  %7450 = vmatprep.subr.bf16.mxu0 %v15323_v39  ;;  %v8924_v54 = vrot.slane %v8923_v1, 4  ;;  %v9161_v61 = vunpack.i.l.bf16 %v9159_v13  ;;  %v9162_v48 = vunpack.i.h.bf16 %v9159_v13  ;;  %v9154_v62 = vmax.f32 %v13735_v19, %v9153_v11  ;;  %9512 = vst [vmem:[%s12736_s23 + $0x10] sm:$0x77] %v10682_v41  ;;  %v15327_v19 = vld [vmem:[#allocation47_spill] sm:$0xff]  ;;  %v409_v52 = vld [vmem:[%s11094_s9 + $0x5f8] sm:$0xff] }
 0x37e   : > { %7622 = vmatprep.subr.bf16.mxu1 %v15324_v8  ;;  %v7968_v25 = vpack.i.bf16 %v7967_v50, %v7967_v50  ;;  %v8208_v42 = vpack.i.bf16 %v8207_v0, %v8207_v0  ;;  %v8684_v26 = vrot.slane %v8683_v27, 2  ;;  %v15325_v57 = vcombine.low %v13546_v20, %v15322_v14  ;;  %v424_v39 = vld [vmem:[%s11094_s9 + $0x670] sm:$0xff] }
 0x37f   : > { %v8447_v32 = vmax.f32 %v8445_v33, %v8446_v56  ;;  %v8925_v51 = vmax.f32 %v8923_v1, %v8924_v54  ;;  %v9163_v29 = vmax.f32 %v9161_v61, %v9162_v48  ;;  %v15326_v34 = vcombine.low %v13561_v40, %v13564_v63  ;;  %v417_v61 = vld [vmem:[%s11094_s9 + $0x638] sm:$0xff] }
 0x380   : > { %7451 = vmatpush1.bf16.msra.mxu0 %v15325_v57  ;;  %v15328_v11 = vcombine.high %v13579_v45, %v15327_v19  ;;  %v8674_v22 = vmax.f32 %v13740_v59, %v8673_v47  ;;  %v8915_v20 = vrot.slane %v13752_v60, 1  ;;  %v8685_v46 = vmax.f32 %v8683_v27, %v8684_v26  ;;  %v425_v48 = vld [vmem:[%s11094_s9 + $0x678] sm:$0xff] }
 0x381   : > { %7623 = vmatpush1.bf16.msra.mxu1 %v15326_v34  ;;  %v15331_v16 = vcombine.high %v15329_v35, %v15330_v55  ;;  %v9825_v5 = vcombine.high %v385_v17, %v393_v6  ;;  %v8926_v9 = vrot.slane %v8925_v51, 2  ;;  %v9164_v50 = vrot.slane %v9163_v29, 4 }
 0x382   : > { %7452 = vmatprep.subr.bf16.mxu0 %v15328_v11  ;;  %v9824_v40 = vcombine.low %v385_v17, %v393_v6  ;;  %v9839_v63 = vcombine.high %v400_v18, %v408_v21  ;;  %v9155_v1 = vrot.slane %v9154_v62, 1  ;;  %v9321_v59 = vsel %vm9275_vm5, %v13744_v2, %v8435_v38  ;;  %v416_v2 = vld [vmem:[%s11094_s9 + $0x630] sm:$0xff] }
 0x383   : > { %7624 = vmatprep.subr.bf16.mxu1 %v15331_v16  ;;  %v8448_v44 = vpack.i.bf16 %v8447_v32, %v8447_v32  ;;  %v8686_v47 = vrot.slane %v8685_v46, 1  ;;  %v15332_v43 = vcombine.low %v13579_v45, %v15327_v19  ;;  %v8927_v33 = vmax.f32 %v8925_v51, %v8926_v9  ;;  %v456_v16 = vld [vmem:[%s11094_s9 + $0x770] sm:$0xff] }
 0x384   : > { %v9165_v13 = vmax.f32 %v9163_v29, %v9164_v50  ;;  %v9285_v10 = vsel %vm12470_vm9, %v7968_v25, %v8208_v42  ;;  %v15333_v14 = vcombine.low %v15329_v35, %v15330_v55  ;;  %v8675_v38 = vpack.i.bf16 %v8674_v22, %v8674_v22  ;;  %v433_v29 = vld [vmem:[%s11094_s9 + $0x6b8] sm:$0xff]  ;;  %v448_v55 = vld [vmem:[%s11094_s9 + $0x730] sm:$0xff] }
 0x385   : > { %7453 = vmatpush1.bf16.msra.mxu0 %v15332_v43  ;;  %v8916_v45 = vmax.f32 %v13752_v60, %v8915_v20  ;;  %v8687_v41 = vmax.f32 %v8685_v46, %v8686_v47  ;;  %v9841_v0 = vcombine.high %v401_v4, %v409_v52  ;;  %v8928_v27 = vrot.slane %v8927_v33, 1  ;;  %v449_v50 = vld [vmem:[%s11094_s9 + $0x738] sm:$0xff]  ;;  %v464_v47 = vld [vmem:[%s11094_s9 + $0x7b0] sm:$0xff] }
 0x386   : > { %7625 = vmatpush1.bf16.msra.mxu1 %v15333_v14  ;;  %7454 = vmatprep.subr.bf16.mxu0 %v9823_v53  ;;  %v9166_v8 = vrot.slane %v9165_v13, 2  ;;  %v9838_v56 = vcombine.low %v400_v18, %v408_v21  ;;  %v9840_v54 = vcombine.low %v401_v4, %v409_v52  ;;  %v9156_v17 = vmax.f32 %v9154_v62, %v9155_v1  ;;  %v432_v18 = vld [vmem:[%s11094_s9 + $0x6b0] sm:$0xff] }
 0x387   : > { %7626 = vmatprep.subr.bf16.mxu1 %v9825_v5  ;;  %v9368_v53 = vsel %vm12524_vm12, %v9321_v59, %v8675_v38  ;;  %v9325_v6 = vsel %vm9275_vm5, %v9285_v10, %v8448_v44  ;;  %v9855_v60 = vcombine.high %v416_v2, %v424_v39  ;;  %v8688_v25 = vpack.i.bf16 %v8687_v41, %v8687_v41  ;;  %v440_v21 = vld [vmem:[%s11094_s9 + $0x6f0] sm:$0xff]  ;;  %v481_v41 = vld [vmem:[%s11094_s9 + $0x838] sm:$0xff] }
 0x388   : > { %v8929_v42 = vmax.f32 %v8927_v33, %v8928_v27  ;;  %v9167_v26 = vmax.f32 %v9165_v13, %v9166_v8  ;;  %v8917_v57 = vpack.i.bf16 %v8916_v45, %v8916_v45  ;;  %v9857_v62 = vcombine.high %v417_v61, %v425_v48  ;;  %v472_v43 = vld [vmem:[%s11094_s9 + $0x7f0] sm:$0xff]  ;;  %v465_v33 = vld [vmem:[%s11094_s9 + $0x7b8] sm:$0xff] }
 0x389   : > { %7455 = vmatpush1.bf16.msra.mxu0 %v9822_v28  ;;  %v9369_v51 = vsel %vm12524_vm12, %v9325_v6, %v8688_v25  ;;  %v9854_v34 = vcombine.low %v416_v2, %v424_v39  ;;  %v9856_v19 = vcombine.low %v417_v61, %v425_v48  ;;  %v9157_v11 = vpack.i.bf16 %v9156_v17, %v9156_v17  ;;  %v473_v13 = vld [vmem:[%s11094_s9 + $0x7f8] sm:$0xff]  ;;  %v480_v38 = vld [vmem:[%s11094_s9 + $0x830] sm:$0xff] }
 0x38a   : > { %7627 = vmatpush1.bf16.msra.mxu1 %v9824_v40  ;;  %7456 = vmatprep.subr.bf16.mxu0 %v9839_v63  ;;  %v9168_v32 = vrot.slane %v9167_v26, 1  ;;  %v9405_v30 = vsel %vm9359_vm7, %v9368_v53, %v8917_v57  ;;  %v8930_v28 = vpack.i.bf16 %v8929_v42, %v8929_v42  ;;  %v9871_v20 = vcombine.high %v432_v18, %v440_v21  ;;  %v457_v40 = vld [vmem:[%s11094_s9 + $0x778] sm:$0xff]  ;;  %v488_v45 = vld [vmem:[%s11094_s9 + $0x870] sm:$0xff] }
 0x38b   : > { %7628 = vmatprep.subr.bf16.mxu1 %v9841_v0  ;;  %v9873_v35 = vcombine.high %v433_v29, %v441_v24  ;;  %v9452_v5 = vsel %vm12568_vm13, %v9405_v30, %v9157_v11  ;;  %v9870_v63 = vcombine.low %v432_v18, %v440_v21  ;;  %v9872_v52 = vcombine.low %v433_v29, %v441_v24  ;;  %v489_v0 = vld [vmem:[%s11094_s9 + $0x878] sm:$0xff]  ;;  %v496_v61 = vld [vmem:[%s11094_s9 + $0x8b0] sm:$0xff] }
 0x38c   : > { %v9169_v22 = vmax.f32 %v9167_v26, %v9168_v32  ;;  %v9409_v46 = vsel %vm9359_vm7, %v9369_v51, %v8930_v28  ;;  %v9887_v1 = vcombine.high %v448_v55, %v456_v16  ;;  %v9889_v44 = vcombine.high %v449_v50, %v457_v40  ;;  %v504_v48 = vld [vmem:[%s11094_s9 + $0x8f0] sm:$0xff]  ;;  %v497_v17 = vld [vmem:[%s11094_s9 + $0x8b8] sm:$0xff] }
 0x38d   : > { %7457 = vmatpush1.bf16.msra.mxu0 %v9838_v56  ;;  %v9886_v10 = vcombine.low %v448_v55, %v456_v16  ;;  %v9888_v14 = vcombine.low %v449_v50, %v457_v40  ;;  %v9903_v2 = vcombine.high %v464_v47, %v472_v43  ;;  %v9905_v39 = vcombine.high %v465_v33, %v473_v13  ;;  %v505_v53 = vld [vmem:[%s11094_s9 + $0x8f8] sm:$0xff]  ;;  %v512_v26 = vld [vmem:[%s11094_s9 + $0x930] sm:$0xff] }
 0x38e   : > { %7629 = vmatpush1.bf16.msra.mxu1 %v9840_v54  ;;  %7458 = vmatprep.subr.bf16.mxu0 %v9855_v60  ;;  %v9170_v9 = vpack.i.bf16 %v9169_v22, %v9169_v22  ;;  %v9902_v27 = vcombine.low %v464_v47, %v472_v43  ;;  %v9904_v8 = vcombine.low %v465_v33, %v473_v13  ;;  %v520_v57 = vld [vmem:[%s11094_s9 + $0x970] sm:$0xff]  ;;  %v513_v18 = vld [vmem:[%s11094_s9 + $0x938] sm:$0xff] }
 0x38f   : > { %7630 = vmatprep.subr.bf16.mxu1 %v9857_v62  ;;  %v9919_v56 = vcombine.high %v480_v38, %v488_v45  ;;  %v9921_v54 = vcombine.high %v481_v41, %v489_v0  ;;  %v9918_v6 = vcombine.low %v480_v38, %v488_v45  ;;  %v9920_v60 = vcombine.low %v481_v41, %v489_v0  ;;  %v15334_v62 = vld [vmem:[#allocation6_spill] sm:$0xff]  ;;  %v521_v21 = vld [vmem:[%s11094_s9 + $0x978] sm:$0xff]  ;;  %v528_v30 = vld [vmem:[%s11094_s9 + $0x9b0] sm:$0xff] }
 0x390   : > { %v9453_v4 = vsel %vm12568_vm13, %v9409_v46, %v9170_v9  ;;  %v9935_v25 = vcombine.high %v496_v61, %v504_v48  ;;  %v9937_v42 = vcombine.high %v497_v17, %v505_v53  ;;  %v9934_v32 = vcombine.low %v496_v61, %v504_v48  ;;  %v536_v28 = vld [vmem:[%s11094_s9 + $0x9f0] sm:$0xff]  ;;  %v537_v11 = vld [vmem:[%s11094_s9 + $0x9f8] sm:$0xff] }
 0x391   : > { %7459 = vmatpush1.bf16.msra.mxu0 %v9854_v34  ;;  %v10683_v59 = vcombine.low %v9452_v5, %v9453_v4  ;;  %v9936_v51 = vcombine.low %v497_v17, %v505_v53  ;;  %v9951_v29 = vcombine.high %v512_v26, %v520_v57  ;;  %v9953_v24 = vcombine.high %v513_v18, %v521_v21  ;;  %v15335_v34 = vld [vmem:[#allocation7_spill] sm:$0xff]  ;;  %v545_v5 = vld [vmem:[%s11094_s9 + $0xa38] sm:$0xff] }
 0x392   : > { %7631 = vmatpush1.bf16.msra.mxu1 %v9856_v19  ;;  %7460 = vmatprep.subr.bf16.mxu0 %v9871_v20  ;;  %v529_v19 = vld [vmem:[%s11094_s9 + $0x9b8] sm:$0xff]  ;;  %v9950_v22 = vcombine.low %v512_v26, %v520_v57  ;;  %v9952_v20 = vcombine.low %v513_v18, %v521_v21  ;;  %v9967_v46 = vcombine.high %v528_v30, %v536_v28  ;;  %v544_v55 = vld [vmem:[%s11094_s9 + $0xa30] sm:$0xff] }
 0x393   : > { %7632 = vmatprep.subr.bf16.mxu1 %v9873_v35  ;;  %9513 = vst [vmem:[%s12736_s23 + $0x18] sm:$0x77] %v10683_v59  ;;  %v9969_v35 = vcombine.high %v529_v19, %v537_v11  ;;  %v552_v16 = vld [vmem:[%s11094_s9 + $0xa70] sm:$0xff]  ;;  %v553_v9 = vld [vmem:[%s11094_s9 + $0xa78] sm:$0xff]  ;;  %v9966_v50 = vcombine.low %v528_v30, %v536_v28  ;;  %v9968_v40 = vcombine.low %v529_v19, %v537_v11 }
 0x394   : > { %v9985_v4 = vcombine.high %v545_v5, %v553_v9  ;;  %v561_v59 = vld [vmem:[%s11094_s9 + $0xab8] sm:$0xff]  ;;  %v9982_v47 = vcombine.low %v544_v55, %v552_v16  ;;  %v9984_v43 = vcombine.low %v545_v5, %v553_v9  ;;  %v624_v21 = vld [vmem:[%s11094_s9 + $0xcb0] sm:$0xff] }
 0x395   : > { %7461 = vmatpush1.bf16.msra.mxu0 %v9870_v63  ;;  %v9983_v63 = vcombine.high %v544_v55, %v552_v16  ;;  %v640_v19 = vld [vmem:[%s11094_s9 + $0xd30] sm:$0xff] }
 0x396   : > { %7633 = vmatpush1.bf16.msra.mxu1 %v9872_v52  ;;  %7462 = vmatprep.subr.bf16.mxu0 %v9887_v1  ;;  %v560_v52 = vld [vmem:[%s11094_s9 + $0xab0] sm:$0xff] }
 0x397   : > { %7634 = vmatprep.subr.bf16.mxu1 %v9889_v44  ;;  %v568_v1 = vld [vmem:[%s11094_s9 + $0xaf0] sm:$0xff]  ;;  %v569_v44 = vld [vmem:[%s11094_s9 + $0xaf8] sm:$0xff] }
 0x398   : > { %v9999_v33 = vcombine.high %v560_v52, %v568_v1  ;;  %v10001_v13 = vcombine.high %v561_v59, %v569_v44  ;;  %v9998_v38 = vcombine.low %v560_v52, %v568_v1  ;;  %v10000_v45 = vcombine.low %v561_v59, %v569_v44  ;;  %v648_v11 = vld [vmem:[%s11094_s9 + $0xd70] sm:$0xff] }
 0x399   : > { %7463 = vmatpush1.bf16.msra.mxu0 %v9886_v10  ;;  %v576_v10 = vld [vmem:[%s11094_s9 + $0xb30] sm:$0xff]  ;;  %v10079_v55 = vcombine.high %v640_v19, %v648_v11 }
 0x39a   : > { %7635 = vmatpush1.bf16.msra.mxu1 %v9888_v14  ;;  %7464 = vmatprep.subr.bf16.mxu0 %v9903_v2  ;;  %v584_v14 = vld [vmem:[%s11094_s9 + $0xb70] sm:$0xff]  ;;  %v577_v2 = vld [vmem:[%s11094_s9 + $0xb38] sm:$0xff] }
 0x39b   : > { %7636 = vmatprep.subr.bf16.mxu1 %v9905_v39  ;;  %v585_v39 = vld [vmem:[%s11094_s9 + $0xb78] sm:$0xff]  ;;  %v10015_v41 = vcombine.high %v576_v10, %v584_v14  ;;  %v10014_v61 = vcombine.low %v576_v10, %v584_v14  ;;  %v656_v5 = vld [vmem:[%s11094_s9 + $0xdb0] sm:$0xff] }
 0x39c   : > { %v10017_v0 = vcombine.high %v577_v2, %v585_v39  ;;  %v10016_v48 = vcombine.low %v577_v2, %v585_v39  ;;  %v664_v9 = vld [vmem:[%s11094_s9 + $0xdf0] sm:$0xff] }
 0x39d   : > { %7465 = vmatpush1.bf16.msra.mxu0 %v9902_v27  ;;  %v592_v27 = vld [vmem:[%s11094_s9 + $0xbb0] sm:$0xff]  ;;  %v10095_v52 = vcombine.high %v656_v5, %v664_v9 }
 0x39e   : > { %7637 = vmatpush1.bf16.msra.mxu1 %v9904_v8  ;;  %7477 = vmatprep.subr.bf16.mxu0 %v9919_v56  ;;  %v600_v8 = vld [vmem:[%s11094_s9 + $0xbf0] sm:$0xff]  ;;  %v593_v56 = vld [vmem:[%s11094_s9 + $0xbb8] sm:$0xff] }
 0x39f   : > { %7649 = vmatprep.subr.bf16.mxu1 %v9921_v54  ;;  %v601_v54 = vld [vmem:[%s11094_s9 + $0xbf8] sm:$0xff]  ;;  %v10031_v17 = vcombine.high %v592_v27, %v600_v8  ;;  %v10030_v26 = vcombine.low %v592_v27, %v600_v8  ;;  %v672_v59 = vld [vmem:[%s11094_s9 + $0xe30] sm:$0xff] }
 0x3a0   : > { %7467 = vmatmul.mubr.bf16.vlgmr.msra.gmra.mrb[12].mxu0 %v15334_v62  ;;  %v10033_v53 = vcombine.high %v593_v56, %v601_v54  ;;  %v10032_v57 = vcombine.low %v593_v56, %v601_v54  ;;  %v680_v44 = vld [vmem:[%s11094_s9 + $0xe70] sm:$0xff] }
 0x3a1   : > { %7478 = vmatpush1.bf16.msra.mxu0 %v9918_v6  ;;  %7639 = vmatmul.mubr.bf16.vlgmr.msra.gmra.mrb[12].mxu1 %v15334_v62  ;;  %v608_v6 = vld [vmem:[%s11094_s9 + $0xc30] sm:$0xff]  ;;  %v10111_v10 = vcombine.high %v672_v59, %v680_v44 }
 0x3a2   : > { %7650 = vmatpush1.bf16.msra.mxu1 %v9920_v60  ;;  %7479 = vmatprep.subr.bf16.mxu0 %v9935_v25  ;;  %v616_v60 = vld [vmem:[%s11094_s9 + $0xc70] sm:$0xff]  ;;  %v609_v25 = vld [vmem:[%s11094_s9 + $0xc38] sm:$0xff] }
 0x3a3   : > { %7651 = vmatprep.subr.bf16.mxu1 %v9937_v42  ;;  %7509 = vmatprep.mubr.bf16.mxu0 %v15335_v34  ;;  %v617_v42 = vld [vmem:[%s11094_s9 + $0xc78] sm:$0xff]  ;;  %v10047_v62 = vcombine.high %v608_v6, %v616_v60  ;;  %v688_v2 = vld [vmem:[%s11094_s9 + $0xeb0] sm:$0xff] }
 0x3a4   : > { %7681 = vmatprep.mubr.bf16.mxu1 %v15335_v34  ;;  %v10049_v18 = vcombine.high %v609_v25, %v617_v42  ;;  %v10048_v30 = vcombine.low %v609_v25, %v617_v42  ;;  %v696_v39 = vld [vmem:[%s11094_s9 + $0xef0] sm:$0xff] }
 0x3a5   : > { %7480 = vmatpush1.bf16.msra.mxu0 %v9934_v32  ;;  %v632_v32 = vld [vmem:[%s11094_s9 + $0xcf0] sm:$0xff]  ;;  %v10127_v27 = vcombine.high %v688_v2, %v696_v39 }
 0x3a6   : > { %7652 = vmatpush1.bf16.msra.mxu1 %v9936_v51  ;;  %7481 = vmatprep.subr.bf16.mxu0 %v9951_v29  ;;  %v625_v51 = vld [vmem:[%s11094_s9 + $0xcb8] sm:$0xff]  ;;  %v10063_v28 = vcombine.high %v624_v21, %v632_v32  ;;  %v704_v56 = vld [vmem:[%s11094_s9 + $0xf30] sm:$0xff] }
 0x3a7   : > { %7653 = vmatprep.subr.bf16.mxu1 %v9953_v24  ;;  %v633_v29 = vld [vmem:[%s11094_s9 + $0xcf8] sm:$0xff]  ;;  %v10046_v24 = vcombine.low %v608_v6, %v616_v60  ;;  %v712_v54 = vld [vmem:[%s11094_s9 + $0xf70] sm:$0xff] }
 0x3a8   : > { %v10065_v34 = vcombine.high %v625_v51, %v633_v29  ;;  %v10143_v6 = vcombine.high %v704_v56, %v712_v54  ;;  %v720_v25 = vld [vmem:[%s11094_s9 + $0xfb0] sm:$0xff] }
 0x3a9   : > { %7482 = vmatpush1.bf16.msra.mxu0 %v9950_v22  ;;  %v641_v22 = vld [vmem:[%s11094_s9 + $0xd38] sm:$0xff]  ;;  %v728_v42 = vld [vmem:[%s11094_s9 + $0xff0] sm:$0xff] }
 0x3aa   : > { %7654 = vmatpush1.bf16.msra.mxu1 %v9952_v20  ;;  %7483 = vmatprep.subr.bf16.mxu0 %v9967_v46  ;;  %v649_v20 = vld [vmem:[%s11094_s9 + $0xd78] sm:$0xff]  ;;  %v10062_v46 = vcombine.low %v624_v21, %v632_v32  ;;  %v10159_v21 = vcombine.high %v720_v25, %v728_v42 }
 0x3ab   : > { %7655 = vmatprep.subr.bf16.mxu1 %v9969_v35  ;;  %v10064_v35 = vcombine.low %v625_v51, %v633_v29  ;;  %v10081_v16 = vcombine.high %v641_v22, %v649_v20  ;;  %v736_v51 = vld [vmem:[%s11094_s9 + $0x1030] sm:$0xff] }
 0x3ac   : > { %v744_v29 = vld [vmem:[%s11094_s9 + $0x1070] sm:$0xff] }
 0x3ad   : > { %7484 = vmatpush1.bf16.msra.mxu0 %v9966_v50  ;;  %v657_v50 = vld [vmem:[%s11094_s9 + $0xdb8] sm:$0xff] }
 0x3ae   : > { %7656 = vmatpush1.bf16.msra.mxu1 %v9968_v40  ;;  %7485 = vmatprep.subr.bf16.mxu0 %v9983_v63  ;;  %v665_v40 = vld [vmem:[%s11094_s9 + $0xdf8] sm:$0xff]  ;;  %v10078_v63 = vcombine.low %v640_v19, %v648_v11  ;;  %v10175_v19 = vcombine.high %v736_v51, %v744_v29 }
 0x3af   : > { %7657 = vmatprep.subr.bf16.mxu1 %v9985_v4  ;;  %v10080_v4 = vcombine.low %v641_v22, %v649_v20  ;;  %v10097_v1 = vcombine.high %v657_v50, %v665_v40  ;;  %v752_v22 = vld [vmem:[%s11094_s9 + $0x10b0] sm:$0xff] }
 0x3b0   : > { %v760_v20 = vld [vmem:[%s11094_s9 + $0x10f0] sm:$0xff] }
 0x3b1   : > { %7486 = vmatpush1.bf16.msra.mxu0 %v9982_v47  ;;  %v673_v47 = vld [vmem:[%s11094_s9 + $0xe38] sm:$0xff] }
 0x3b2   : > { %7658 = vmatpush1.bf16.msra.mxu1 %v9984_v43  ;;  %7487 = vmatprep.subr.bf16.mxu0 %v9999_v33  ;;  %v681_v43 = vld [vmem:[%s11094_s9 + $0xe78] sm:$0xff]  ;;  %v10094_v33 = vcombine.low %v656_v5, %v664_v9  ;;  %v10191_v5 = vcombine.high %v752_v22, %v760_v20 }
 0x3b3   : > { %7659 = vmatprep.subr.bf16.mxu1 %v10001_v13  ;;  %v10096_v13 = vcombine.low %v657_v50, %v665_v40  ;;  %v10113_v14 = vcombine.high %v673_v47, %v681_v43  ;;  %v768_v50 = vld [vmem:[%s11094_s9 + $0x1130] sm:$0xff] }
 0x3b4   : > { %v776_v40 = vld [vmem:[%s11094_s9 + $0x1170] sm:$0xff] }
 0x3b5   : > { %7488 = vmatpush1.bf16.msra.mxu0 %v9998_v38  ;;  %v689_v38 = vld [vmem:[%s11094_s9 + $0xeb8] sm:$0xff] }
 0x3b6   : > { %7660 = vmatpush1.bf16.msra.mxu1 %v10000_v45  ;;  %7489 = vmatprep.subr.bf16.mxu0 %v10015_v41  ;;  %v697_v45 = vld [vmem:[%s11094_s9 + $0xef8] sm:$0xff]  ;;  %v10110_v41 = vcombine.low %v672_v59, %v680_v44  ;;  %v10207_v44 = vcombine.high %v768_v50, %v776_v40 }
 0x3b7   : > { %7661 = vmatprep.subr.bf16.mxu1 %v10017_v0  ;;  %v10112_v0 = vcombine.low %v673_v47, %v681_v43  ;;  %v10129_v8 = vcombine.high %v689_v38, %v697_v45  ;;  %v784_v43 = vld [vmem:[%s11094_s9 + $0x11b0] sm:$0xff] }
 0x3b9   : > { %7490 = vmatpush1.bf16.msra.mxu0 %v10014_v61  ;;  %v705_v61 = vld [vmem:[%s11094_s9 + $0xf38] sm:$0xff] }
 0x3ba   : > { %7662 = vmatpush1.bf16.msra.mxu1 %v10016_v48  ;;  %7491 = vmatprep.subr.bf16.mxu0 %v10031_v17  ;;  %v713_v48 = vld [vmem:[%s11094_s9 + $0xf78] sm:$0xff]  ;;  %v10126_v17 = vcombine.low %v688_v2, %v696_v39  ;;  %v10206_v2 = vcombine.low %v768_v50, %v776_v40 }
 0x3bb   : > { %7663 = vmatprep.subr.bf16.mxu1 %v10033_v53  ;;  %v10128_v53 = vcombine.low %v689_v38, %v697_v45  ;;  %v10145_v60 = vcombine.high %v705_v61, %v713_v48 }
 0x3bd   : > { %7492 = vmatpush1.bf16.msra.mxu0 %v10030_v26  ;;  %v721_v26 = vld [vmem:[%s11094_s9 + $0xfb8] sm:$0xff] }
 0x3be   : > { %7664 = vmatpush1.bf16.msra.mxu1 %v10032_v57  ;;  %7493 = vmatprep.subr.bf16.mxu0 %v10047_v62  ;;  %v729_v57 = vld [vmem:[%s11094_s9 + $0xff8] sm:$0xff]  ;;  %v10142_v62 = vcombine.low %v704_v56, %v712_v54 }
 0x3bf   : > { %7665 = vmatprep.subr.bf16.mxu1 %v10049_v18  ;;  %v10144_v18 = vcombine.low %v705_v61, %v713_v48  ;;  %v10161_v32 = vcombine.high %v721_v26, %v729_v57 }
 0x3c1   : > { %7494 = vmatpush1.bf16.msra.mxu0 %v10046_v24  ;;  %v737_v24 = vld [vmem:[%s11094_s9 + $0x1038] sm:$0xff] }
 0x3c2   : > { %7666 = vmatpush1.bf16.msra.mxu1 %v10048_v30  ;;  %7495 = vmatprep.subr.bf16.mxu0 %v10063_v28  ;;  %v745_v30 = vld [vmem:[%s11094_s9 + $0x1078] sm:$0xff]  ;;  %v10158_v28 = vcombine.low %v720_v25, %v728_v42 }
 0x3c3   : > { %7667 = vmatprep.subr.bf16.mxu1 %v10065_v34  ;;  %v10160_v34 = vcombine.low %v721_v26, %v729_v57  ;;  %v10177_v11 = vcombine.high %v737_v24, %v745_v30 }
 0x3c5   : > { %7496 = vmatpush1.bf16.msra.mxu0 %v10062_v46  ;;  %v753_v46 = vld [vmem:[%s11094_s9 + $0x10b8] sm:$0xff] }
 0x3c6   : > { %7668 = vmatpush1.bf16.msra.mxu1 %v10064_v35  ;;  %7497 = vmatprep.subr.bf16.mxu0 %v10079_v55  ;;  %v761_v35 = vld [vmem:[%s11094_s9 + $0x10f8] sm:$0xff]  ;;  %v10174_v55 = vcombine.low %v736_v51, %v744_v29 }
 0x3c7   : > { %7669 = vmatprep.subr.bf16.mxu1 %v10081_v16  ;;  %v10176_v16 = vcombine.low %v737_v24, %v745_v30  ;;  %v10193_v9 = vcombine.high %v753_v46, %v761_v35  ;;  %v10192_v59 = vcombine.low %v753_v46, %v761_v35 }
 0x3c9   : > { %7498 = vmatpush1.bf16.msra.mxu0 %v10078_v63  ;;  %v15336_v63 = vld [vmem:[#allocation8_spill] sm:$0xff] }
 0x3ca   : > { %7670 = vmatpush1.bf16.msra.mxu1 %v10080_v4  ;;  %7499 = vmatprep.subr.bf16.mxu0 %v10095_v52  ;;  %v769_v4 = vld [vmem:[%s11094_s9 + $0x1138] sm:$0xff] }
 0x3cb   : > { %7671 = vmatprep.subr.bf16.mxu1 %v10097_v1  ;;  %v777_v52 = vld [vmem:[%s11094_s9 + $0x1178] sm:$0xff]  ;;  %v10190_v1 = vcombine.low %v752_v22, %v760_v20 }
 0x3cc   : > { %v10209_v47 = vcombine.high %v769_v4, %v777_v52  ;;  %v10208_v39 = vcombine.low %v769_v4, %v777_v52  ;;  %v880_v52 = vld [vmem:[%s11094_s9 + $0x14b0] sm:$0xff] }
 0x3cd   : > { %7500 = vmatpush1.bf16.msra.mxu0 %v10094_v33  ;;  %v792_v33 = vld [vmem:[%s11094_s9 + $0x11f0] sm:$0xff] }
 0x3ce   : > { %7672 = vmatpush1.bf16.msra.mxu1 %v10096_v13  ;;  %7501 = vmatprep.subr.bf16.mxu0 %v10111_v10  ;;  %v15337_v13 = vld [vmem:[#allocation9_spill] sm:$0xff]  ;;  %v785_v10 = vld [vmem:[%s11094_s9 + $0x11b8] sm:$0xff]  ;;  %v10223_v38 = vcombine.high %v784_v43, %v792_v33  ;;  %v10222_v56 = vcombine.low %v784_v43, %v792_v33 }
 0x3cf   : > { %7673 = vmatprep.subr.bf16.mxu1 %v10113_v14  ;;  %v793_v14 = vld [vmem:[%s11094_s9 + $0x11f8] sm:$0xff] }
 0x3d0   : > { %v10225_v45 = vcombine.high %v785_v10, %v793_v14  ;;  %v10224_v54 = vcombine.low %v785_v10, %v793_v14  ;;  %v896_v10 = vld [vmem:[%s11094_s9 + $0x1530] sm:$0xff] }
 0x3d1   : > { %7502 = vmatpush1.bf16.msra.mxu0 %v10110_v41  ;;  %v800_v41 = vld [vmem:[%s11094_s9 + $0x1230] sm:$0xff] }
 0x3d2   : > { %7674 = vmatpush1.bf16.msra.mxu1 %v10112_v0  ;;  %7503 = vmatprep.subr.bf16.mxu0 %v10127_v27  ;;  %v808_v0 = vld [vmem:[%s11094_s9 + $0x1270] sm:$0xff]  ;;  %v801_v27 = vld [vmem:[%s11094_s9 + $0x1238] sm:$0xff] }
 0x3d3   : > { %7675 = vmatprep.subr.bf16.mxu1 %v10129_v8  ;;  %v809_v8 = vld [vmem:[%s11094_s9 + $0x1278] sm:$0xff]  ;;  %v10239_v61 = vcombine.high %v800_v41, %v808_v0  ;;  %v10238_v25 = vcombine.low %v800_v41, %v808_v0  ;;  %v904_v14 = vld [vmem:[%s11094_s9 + $0x1570] sm:$0xff] }
 0x3d4   : > { %v10241_v48 = vcombine.high %v801_v27, %v809_v8  ;;  %v10240_v42 = vcombine.low %v801_v27, %v809_v8  ;;  %v10335_v41 = vcombine.high %v896_v10, %v904_v14  ;;  %v912_v27 = vld [vmem:[%s11094_s9 + $0x15b0] sm:$0xff] }
 0x3d5   : > { %7504 = vmatpush1.bf16.msra.mxu0 %v10126_v17  ;;  %v816_v17 = vld [vmem:[%s11094_s9 + $0x12b0] sm:$0xff] }
 0x3d6   : > { %7676 = vmatpush1.bf16.msra.mxu1 %v10128_v53  ;;  %7505 = vmatprep.subr.bf16.mxu0 %v10143_v6  ;;  %v824_v53 = vld [vmem:[%s11094_s9 + $0x12f0] sm:$0xff]  ;;  %v817_v6 = vld [vmem:[%s11094_s9 + $0x12b8] sm:$0xff] }
 0x3d7   : > { %7677 = vmatprep.subr.bf16.mxu1 %v10145_v60  ;;  %v825_v60 = vld [vmem:[%s11094_s9 + $0x12f8] sm:$0xff]  ;;  %v10255_v26 = vcombine.high %v816_v17, %v824_v53  ;;  %v10254_v51 = vcombine.low %v816_v17, %v824_v53  ;;  %v920_v8 = vld [vmem:[%s11094_s9 + $0x15f0] sm:$0xff] }
 0x3d8   : > { %v10257_v57 = vcombine.high %v817_v6, %v825_v60  ;;  %v10256_v29 = vcombine.low %v817_v6, %v825_v60  ;;  %v10351_v17 = vcombine.high %v912_v27, %v920_v8  ;;  %v928_v6 = vld [vmem:[%s11094_s9 + $0x1630] sm:$0xff] }
 0x3d9   : > { %7506 = vmatpush1.bf16.msra.mxu0 %v10142_v62  ;;  %v832_v62 = vld [vmem:[%s11094_s9 + $0x1330] sm:$0xff] }
 0x3da   : > { %7678 = vmatpush1.bf16.msra.mxu1 %v10144_v18  ;;  %7507 = vmatprep.subr.bf16.mxu0 %v10159_v21  ;;  %v840_v18 = vld [vmem:[%s11094_s9 + $0x1370] sm:$0xff]  ;;  %v833_v21 = vld [vmem:[%s11094_s9 + $0x1338] sm:$0xff] }
 0x3db   : > { %7679 = vmatprep.subr.bf16.mxu1 %v10161_v32  ;;  %v841_v32 = vld [vmem:[%s11094_s9 + $0x1378] sm:$0xff]  ;;  %v10271_v24 = vcombine.high %v832_v62, %v840_v18  ;;  %v10270_v22 = vcombine.low %v832_v62, %v840_v18  ;;  %v936_v60 = vld [vmem:[%s11094_s9 + $0x1670] sm:$0xff] }
 0x3dc   : > { %v10273_v30 = vcombine.high %v833_v21, %v841_v32  ;;  %v10272_v20 = vcombine.low %v833_v21, %v841_v32  ;;  %v10367_v62 = vcombine.high %v928_v6, %v936_v60  ;;  %v944_v21 = vld [vmem:[%s11094_s9 + $0x16b0] sm:$0xff] }
 0x3dd   : > { %7508 = vmatpush1.bf16.msra.mxu0 %v10158_v28  ;;  %v848_v28 = vld [vmem:[%s11094_s9 + $0x13b0] sm:$0xff] }
 0x3de   : > { %7680 = vmatpush1.bf16.msra.mxu1 %v10160_v34  ;;  %7520 = vmatprep.subr.bf16.mxu0 %v10175_v19  ;;  %v856_v34 = vld [vmem:[%s11094_s9 + $0x13f0] sm:$0xff]  ;;  %v849_v19 = vld [vmem:[%s11094_s9 + $0x13b8] sm:$0xff] }
 0x3df   : > { %7692 = vmatprep.subr.bf16.mxu1 %v10177_v11  ;;  %v857_v11 = vld [vmem:[%s11094_s9 + $0x13f8] sm:$0xff]  ;;  %v10287_v46 = vcombine.high %v848_v28, %v856_v34  ;;  %v10286_v50 = vcombine.low %v848_v28, %v856_v34  ;;  %v952_v32 = vld [vmem:[%s11094_s9 + $0x16f0] sm:$0xff] }
 0x3e0   : > { %7510 = vmatmul.mubr.bf16.vlgmr.msra.gmra.mrb[12].mxu0 %v15336_v63  ;;  %v10289_v35 = vcombine.high %v849_v19, %v857_v11  ;;  %v10288_v40 = vcombine.low %v849_v19, %v857_v11  ;;  %v10383_v28 = vcombine.high %v944_v21, %v952_v32  ;;  %v960_v19 = vld [vmem:[%s11094_s9 + $0x1730] sm:$0xff] }
 0x3e1   : > { %7521 = vmatpush1.bf16.msra.mxu0 %v10174_v55  ;;  %7682 = vmatmul.mubr.bf16.vlgmr.msra.gmra.mrb[12].mxu1 %v15336_v63  ;;  %v864_v55 = vld [vmem:[%s11094_s9 + $0x1430] sm:$0xff] }
 0x3e2   : > { %7693 = vmatpush1.bf16.msra.mxu1 %v10176_v16  ;;  %7522 = vmatprep.subr.bf16.mxu0 %v10191_v5  ;;  %v872_v16 = vld [vmem:[%s11094_s9 + $0x1470] sm:$0xff]  ;;  %v865_v5 = vld [vmem:[%s11094_s9 + $0x1438] sm:$0xff] }
 0x3e3   : > { %7694 = vmatprep.subr.bf16.mxu1 %v10193_v9  ;;  %7552 = vmatprep.mubr.bf16.mxu0 %v15337_v13  ;;  %v873_v9 = vld [vmem:[%s11094_s9 + $0x1478] sm:$0xff]  ;;  %v10303_v63 = vcombine.high %v864_v55, %v872_v16  ;;  %v968_v11 = vld [vmem:[%s11094_s9 + $0x1770] sm:$0xff] }
 0x3e4   : > { %7724 = vmatprep.mubr.bf16.mxu1 %v15337_v13  ;;  %v10305_v4 = vcombine.high %v865_v5, %v873_v9  ;;  %v10304_v43 = vcombine.low %v865_v5, %v873_v9  ;;  %v976_v5 = vld [vmem:[%s11094_s9 + $0x17b0] sm:$0xff] }
 0x3e5   : > { %7523 = vmatpush1.bf16.msra.mxu0 %v10190_v1  ;;  %v888_v1 = vld [vmem:[%s11094_s9 + $0x14f0] sm:$0xff] }
 0x3e6   : > { %7695 = vmatpush1.bf16.msra.mxu1 %v10192_v59  ;;  %7524 = vmatprep.subr.bf16.mxu0 %v10207_v44  ;;  %v881_v59 = vld [vmem:[%s11094_s9 + $0x14b8] sm:$0xff]  ;;  %v10319_v33 = vcombine.high %v880_v52, %v888_v1  ;;  %v984_v9 = vld [vmem:[%s11094_s9 + $0x17f0] sm:$0xff] }
 0x3e7   : > { %7696 = vmatprep.subr.bf16.mxu1 %v10209_v47  ;;  %v889_v44 = vld [vmem:[%s11094_s9 + $0x14f8] sm:$0xff]  ;;  %v10302_v47 = vcombine.low %v864_v55, %v872_v16  ;;  %v10399_v55 = vcombine.high %v960_v19, %v968_v11 }
 0x3e8   : > { %v10321_v13 = vcombine.high %v881_v59, %v889_v44 }
 0x3e9   : > { %7525 = vmatpush1.bf16.msra.mxu0 %v10206_v2  ;;  %v897_v2 = vld [vmem:[%s11094_s9 + $0x1538] sm:$0xff] }
 0x3ea   : > { %7697 = vmatpush1.bf16.msra.mxu1 %v10208_v39  ;;  %7526 = vmatprep.subr.bf16.mxu0 %v10223_v38  ;;  %v905_v39 = vld [vmem:[%s11094_s9 + $0x1578] sm:$0xff]  ;;  %v10318_v38 = vcombine.low %v880_v52, %v888_v1  ;;  %v10415_v52 = vcombine.high %v976_v5, %v984_v9 }
 0x3eb   : > { %7698 = vmatprep.subr.bf16.mxu1 %v10225_v45  ;;  %v10320_v45 = vcombine.low %v881_v59, %v889_v44  ;;  %v10337_v0 = vcombine.high %v897_v2, %v905_v39  ;;  %v992_v59 = vld [vmem:[%s11094_s9 + $0x1830] sm:$0xff] }
 0x3ec   : > { %v1000_v44 = vld [vmem:[%s11094_s9 + $0x1870] sm:$0xff] }
 0x3ed   : > { %7527 = vmatpush1.bf16.msra.mxu0 %v10222_v56  ;;  %v913_v56 = vld [vmem:[%s11094_s9 + $0x15b8] sm:$0xff] }
 0x3ee   : > { %7699 = vmatpush1.bf16.msra.mxu1 %v10224_v54  ;;  %7528 = vmatprep.subr.bf16.mxu0 %v10239_v61  ;;  %v921_v54 = vld [vmem:[%s11094_s9 + $0x15f8] sm:$0xff]  ;;  %v10334_v61 = vcombine.low %v896_v10, %v904_v14  ;;  %v10431_v10 = vcombine.high %v992_v59, %v1000_v44 }
 0x3ef   : > { %7700 = vmatprep.subr.bf16.mxu1 %v10241_v48  ;;  %v10336_v48 = vcombine.low %v897_v2, %v905_v39  ;;  %v10353_v53 = vcombine.high %v913_v56, %v921_v54  ;;  %v1008_v2 = vld [vmem:[%s11094_s9 + $0x18b0] sm:$0xff] }
 0x3f0   : > { %v1016_v39 = vld [vmem:[%s11094_s9 + $0x18f0] sm:$0xff] }
 0x3f1   : > { %7529 = vmatpush1.bf16.msra.mxu0 %v10238_v25  ;;  %v929_v25 = vld [vmem:[%s11094_s9 + $0x1638] sm:$0xff] }
 0x3f2   : > { %7701 = vmatpush1.bf16.msra.mxu1 %v10240_v42  ;;  %7530 = vmatprep.subr.bf16.mxu0 %v10255_v26  ;;  %v937_v42 = vld [vmem:[%s11094_s9 + $0x1678] sm:$0xff]  ;;  %v10350_v26 = vcombine.low %v912_v27, %v920_v8  ;;  %v10447_v27 = vcombine.high %v1008_v2, %v1016_v39 }
 0x3f3   : > { %7702 = vmatprep.subr.bf16.mxu1 %v10257_v57  ;;  %v10352_v57 = vcombine.low %v913_v56, %v921_v54  ;;  %v10369_v18 = vcombine.high %v929_v25, %v937_v42  ;;  %v1024_v56 = vld [vmem:[%s11094_s9 + $0x1930] sm:$0xff] }
 0x3f4   : > { %v1032_v54 = vld [vmem:[%s11094_s9 + $0x1970] sm:$0xff] }
 0x3f5   : > { %7531 = vmatpush1.bf16.msra.mxu0 %v10254_v51  ;;  %v945_v51 = vld [vmem:[%s11094_s9 + $0x16b8] sm:$0xff] }
 0x3f6   : > { %7703 = vmatpush1.bf16.msra.mxu1 %v10256_v29  ;;  %7532 = vmatprep.subr.bf16.mxu0 %v10271_v24  ;;  %v953_v29 = vld [vmem:[%s11094_s9 + $0x16f8] sm:$0xff]  ;;  %v10366_v24 = vcombine.low %v928_v6, %v936_v60  ;;  %v10463_v60 = vcombine.high %v1024_v56, %v1032_v54 }
 0x3f7   : > { %7704 = vmatprep.subr.bf16.mxu1 %v10273_v30  ;;  %v10368_v30 = vcombine.low %v929_v25, %v937_v42  ;;  %v10385_v34 = vcombine.high %v945_v51, %v953_v29  ;;  %v1040_v42 = vld [vmem:[%s11094_s9 + $0x19b0] sm:$0xff] }
 0x3f9   : > { %7533 = vmatpush1.bf16.msra.mxu0 %v10270_v22  ;;  %v961_v22 = vld [vmem:[%s11094_s9 + $0x1738] sm:$0xff] }
 0x3fa   : > { %7705 = vmatpush1.bf16.msra.mxu1 %v10272_v20  ;;  %7534 = vmatprep.subr.bf16.mxu0 %v10287_v46  ;;  %v969_v20 = vld [vmem:[%s11094_s9 + $0x1778] sm:$0xff]  ;;  %v10382_v46 = vcombine.low %v944_v21, %v952_v32  ;;  %v10462_v21 = vcombine.low %v1024_v56, %v1032_v54 }
 0x3fb   : > { %7706 = vmatprep.subr.bf16.mxu1 %v10289_v35  ;;  %v10384_v35 = vcombine.low %v945_v51, %v953_v29  ;;  %v10401_v16 = vcombine.high %v961_v22, %v969_v20 }
 0x3fd   : > { %7535 = vmatpush1.bf16.msra.mxu0 %v10286_v50  ;;  %v977_v50 = vld [vmem:[%s11094_s9 + $0x17b8] sm:$0xff] }
 0x3fe   : > { %7707 = vmatpush1.bf16.msra.mxu1 %v10288_v40  ;;  %7536 = vmatprep.subr.bf16.mxu0 %v10303_v63  ;;  %v985_v40 = vld [vmem:[%s11094_s9 + $0x17f8] sm:$0xff]  ;;  %v10398_v63 = vcombine.low %v960_v19, %v968_v11 }
 0x3ff   : > { %7708 = vmatprep.subr.bf16.mxu1 %v10305_v4  ;;  %v10400_v4 = vcombine.low %v961_v22, %v969_v20  ;;  %v10417_v1 = vcombine.high %v977_v50, %v985_v40  ;;  %v14106_v20 = vld [vmem:[%s11094_s9 + $0x1ab0] sm:$0xff] }
 0x401   : > { %7537 = vmatpush1.bf16.msra.mxu0 %v10302_v47  ;;  %v993_v47 = vld [vmem:[%s11094_s9 + $0x1838] sm:$0xff] }
 0x402   : > { %7709 = vmatpush1.bf16.msra.mxu1 %v10304_v43  ;;  %7538 = vmatprep.subr.bf16.mxu0 %v10319_v33  ;;  %v1001_v43 = vld [vmem:[%s11094_s9 + $0x1878] sm:$0xff]  ;;  %v10414_v33 = vcombine.low %v976_v5, %v984_v9  ;;  %v14118_v5 = vld [vmem:[%s11094_s9 + $0x1b30] sm:$0xff] }
 0x403   : > { %7710 = vmatprep.subr.bf16.mxu1 %v10321_v13  ;;  %v10416_v13 = vcombine.low %v977_v50, %v985_v40  ;;  %v10433_v14 = vcombine.high %v993_v47, %v1001_v43  ;;  %v14121_v9 = vld [vmem:[%s11094_s9 + $0x1b70] sm:$0xff]  ;;  %v14124_v50 = vld [vmem:[%s11094_s9 + $0x1b38] sm:$0xff] }
 0x404   : > { %v14127_v40 = vld [vmem:[%s11094_s9 + $0x1b78] sm:$0xff] }
 0x405   : > { %7539 = vmatpush1.bf16.msra.mxu0 %v10318_v38  ;;  %v1009_v38 = vld [vmem:[%s11094_s9 + $0x18b8] sm:$0xff]  ;;  %v10528_v56 = vcombine.low %v14124_v50, %v14127_v40  ;;  %v10529_v54 = vcombine.high %v14124_v50, %v14127_v40 }
 0x406   : > { %7711 = vmatpush1.bf16.msra.mxu1 %v10320_v45  ;;  %7540 = vmatprep.subr.bf16.mxu0 %v10335_v41  ;;  %v1017_v45 = vld [vmem:[%s11094_s9 + $0x18f8] sm:$0xff]  ;;  %v10430_v41 = vcombine.low %v992_v59, %v1000_v44 }
 0x407   : > { %7712 = vmatprep.subr.bf16.mxu1 %v10337_v0  ;;  %v10432_v0 = vcombine.low %v993_v47, %v1001_v43  ;;  %v10449_v8 = vcombine.high %v1009_v38, %v1017_v45  ;;  %v10448_v6 = vcombine.low %v1009_v38, %v1017_v45  ;;  %v14141_v47 = vld [vmem:[%s11094_s9 + $0x1bf8] sm:$0xff]  ;;  %v14144_v43 = vld [vmem:[%s11094_s9 + $0x1c30] sm:$0xff]  ;;  %v10526_v45 = vcombine.low %v14118_v5, %v14121_v9 }
 0x409   : > { %7541 = vmatpush1.bf16.msra.mxu0 %v10334_v61  ;;  %v15338_v61 = vld [vmem:[#allocation10_spill] sm:$0xff] }
 0x40a   : > { %7713 = vmatpush1.bf16.msra.mxu1 %v10336_v48  ;;  %7542 = vmatprep.subr.bf16.mxu0 %v10351_v17  ;;  %v1025_v48 = vld [vmem:[%s11094_s9 + $0x1938] sm:$0xff] }
 0x40b   : > { %7714 = vmatprep.subr.bf16.mxu1 %v10353_v53  ;;  %v1033_v17 = vld [vmem:[%s11094_s9 + $0x1978] sm:$0xff]  ;;  %v10446_v53 = vcombine.low %v1008_v2, %v1016_v39  ;;  %v14158_v2 = vld [vmem:[%s11094_s9 + $0x1cb0] sm:$0xff] }
 0x40c   : > { %v10465_v25 = vcombine.high %v1025_v48, %v1033_v17  ;;  %v10464_v32 = vcombine.low %v1025_v48, %v1033_v17  ;;  %v14186_v17 = vld [vmem:[%s11094_s9 + $0x1d30] sm:$0xff] }
 0x40d   : > { %7543 = vmatpush1.bf16.msra.mxu0 %v10350_v26  ;;  %v1048_v26 = vld [vmem:[%s11094_s9 + $0x19f0] sm:$0xff] }
 0x40e   : > { %7715 = vmatpush1.bf16.msra.mxu1 %v10352_v57  ;;  %7544 = vmatprep.subr.bf16.mxu0 %v10367_v62  ;;  %v15339_v57 = vld [vmem:[#allocation11_spill] sm:$0xff]  ;;  %v1041_v62 = vld [vmem:[%s11094_s9 + $0x19b8] sm:$0xff]  ;;  %v10479_v51 = vcombine.high %v1040_v42, %v1048_v26  ;;  %v10478_v19 = vcombine.low %v1040_v42, %v1048_v26 }
 0x40f   : > { %7716 = vmatprep.subr.bf16.mxu1 %v10369_v18  ;;  %v1049_v18 = vld [vmem:[%s11094_s9 + $0x19f8] sm:$0xff] }
 0x410   : > { %v10481_v29 = vcombine.high %v1041_v62, %v1049_v18  ;;  %v10480_v11 = vcombine.low %v1041_v62, %v1049_v18  ;;  %v14201_v26 = vld [vmem:[%s11094_s9 + $0x1d78] sm:$0xff]  ;;  %v14207_v62 = vld [vmem:[%s11094_s9 + $0x1df0] sm:$0xff] }
 0x411   : > { %7545 = vmatpush1.bf16.msra.mxu0 %v10366_v24  ;;  %v1056_v24 = vld [vmem:[%s11094_s9 + $0x1a30] sm:$0xff] }
 0x412   : > { %7717 = vmatpush1.bf16.msra.mxu1 %v10368_v30  ;;  %7546 = vmatprep.subr.bf16.mxu0 %v10383_v28  ;;  %v1064_v30 = vld [vmem:[%s11094_s9 + $0x1a70] sm:$0xff]  ;;  %v1057_v28 = vld [vmem:[%s11094_s9 + $0x1a38] sm:$0xff] }
 0x413   : > { %7718 = vmatprep.subr.bf16.mxu1 %v10385_v34  ;;  %v1065_v34 = vld [vmem:[%s11094_s9 + $0x1a78] sm:$0xff]  ;;  %v10495_v22 = vcombine.high %v1056_v24, %v1064_v30 }
 0x414   : > { %v10496_v59 = vcombine.low %v1057_v28, %v1065_v34 }
 0x415   : > { %7547 = vmatpush1.bf16.msra.mxu0 %v10382_v46  ;;  %v14109_v46 = vld [vmem:[%s11094_s9 + $0x1af0] sm:$0xff] }
 0x416   : > { %7719 = vmatpush1.bf16.msra.mxu1 %v10384_v35  ;;  %7548 = vmatprep.subr.bf16.mxu0 %v10399_v55  ;;  %v10497_v35 = vcombine.high %v1057_v28, %v1065_v34  ;;  %v14112_v55 = vld [vmem:[%s11094_s9 + $0x1ab8] sm:$0xff]  ;;  %v10511_v44 = vcombine.high %v14106_v20, %v14109_v46  ;;  %v10510_v39 = vcombine.low %v14106_v20, %v14109_v46 }
 0x417   : > { %7720 = vmatprep.subr.bf16.mxu1 %v10401_v16  ;;  %v14115_v16 = vld [vmem:[%s11094_s9 + $0x1af8] sm:$0xff] }
 0x418   : > { %v10512_v38 = vcombine.low %v14112_v55, %v14115_v16 }
 0x419   : > { %7549 = vmatpush1.bf16.msra.mxu0 %v10398_v63  ;;  %v10494_v63 = vcombine.low %v1056_v24, %v1064_v30  ;;  %v14218_v24 = vld [vmem:[%s11094_s9 + $0x1db8] sm:$0xff] }
 0x41a   : > { %7721 = vmatpush1.bf16.msra.mxu1 %v10400_v4  ;;  %7550 = vmatprep.subr.bf16.mxu0 %v10415_v52  ;;  %v14130_v4 = vld [vmem:[%s11094_s9 + $0x1bb0] sm:$0xff]  ;;  %v14221_v30 = vld [vmem:[%s11094_s9 + $0x1df8] sm:$0xff] }
 0x41b   : > { %7722 = vmatprep.subr.bf16.mxu1 %v10417_v1  ;;  %v14133_v52 = vld [vmem:[%s11094_s9 + $0x1bf0] sm:$0xff]  ;;  %v14136_v1 = vld [vmem:[%s11094_s9 + $0x1bb8] sm:$0xff] }
 0x41c   : > { %v10543_v48 = vcombine.high %v14130_v4, %v14133_v52 }
 0x41d   : > { %7551 = vmatpush1.bf16.msra.mxu0 %v10414_v33  ;;  %v14147_v33 = vld [vmem:[%s11094_s9 + $0x1c70] sm:$0xff] }
 0x41e   : > { %7723 = vmatpush1.bf16.msra.mxu1 %v10416_v13  ;;  %7563 = vmatprep.subr.bf16.mxu0 %v10431_v10  ;;  %v10513_v13 = vcombine.high %v14112_v55, %v14115_v16  ;;  %v14152_v10 = vld [vmem:[%s11094_s9 + $0x1c38] sm:$0xff]  ;;  %v10559_v42 = vcombine.high %v14144_v43, %v14147_v33  ;;  %v10608_v16 = vcombine.low %v14218_v24, %v14221_v30 }
 0x41f   : > { %7735 = vmatprep.subr.bf16.mxu1 %v10433_v14  ;;  %v14155_v14 = vld [vmem:[%s11094_s9 + $0x1c78] sm:$0xff] }
 0x420   : > { %7553 = vmatmul.mubr.bf16.vlgmr.msra.gmra.mrb[12].mxu0 %v15338_v61 }
 0x421   : > { %7564 = vmatpush1.bf16.msra.mxu0 %v10430_v41  ;;  %7725 = vmatmul.mubr.bf16.vlgmr.msra.gmra.mrb[12].mxu1 %v15338_v61  ;;  %v10527_v41 = vcombine.high %v14118_v5, %v14121_v9  ;;  %v10542_v61 = vcombine.low %v14130_v4, %v14133_v52  ;;  %v15340_v52 = vcombine.high %v14152_v10, %v14155_v14 }
 0x422   : > { %7736 = vmatpush1.bf16.msra.mxu1 %v10432_v0  ;;  %7565 = vmatprep.subr.bf16.mxu0 %v10447_v27  ;;  %v14169_v0 = vld [vmem:[%s11094_s9 + $0x1cf0] sm:$0xff]  ;;  %v14172_v27 = vld [vmem:[%s11094_s9 + $0x1cb8] sm:$0xff] }
 0x423   : > { %7737 = vmatprep.subr.bf16.mxu1 %v10449_v8  ;;  %7595 = vmatprep.mubr.bf16.mxu0 %v15339_v57  ;;  %v14175_v8 = vld [vmem:[%s11094_s9 + $0x1cf8] sm:$0xff] }
 0x424   : > { %7767 = vmatprep.mubr.bf16.mxu1 %v15339_v57  ;;  %v14204_v57 = vld [vmem:[%s11094_s9 + $0x1db0] sm:$0xff] }
 0x425   : > { %7566 = vmatpush1.bf16.msra.mxu0 %v10446_v53  ;;  %v14189_v53 = vld [vmem:[%s11094_s9 + $0x1d70] sm:$0xff] }
 0x426   : > { %7738 = vmatpush1.bf16.msra.mxu1 %v10448_v6  ;;  %7567 = vmatprep.subr.bf16.mxu0 %v10463_v60  ;;  %v14192_v6 = vld [vmem:[%s11094_s9 + $0x1d38] sm:$0xff]  ;;  %v10544_v60 = vcombine.low %v14136_v1, %v14141_v47 }
 0x427   : > { %7739 = vmatprep.subr.bf16.mxu1 %v10465_v25  ;;  %v10545_v25 = vcombine.high %v14136_v1, %v14141_v47 }
 0x429   : > { %7568 = vmatpush1.bf16.msra.mxu0 %v10462_v21  ;;  %v7253_v18 = vpop.f32.mrb[8].mxu0 }
 0x42a   : > { %7740 = vmatpush1.bf16.msra.mxu1 %v10464_v32  ;;  %7569 = vmatprep.subr.bf16.mxu0 %v10479_v51  ;;  %v7255_v34 = vpop.f32.mrb[9].mxu0  ;;  %v7786_v20 = vmax.f32 %v7253_v18, 0.0  ;;  %v10609_v18 = vcombine.high %v14218_v24, %v14221_v30 }
 0x42b   : > { %7741 = vmatprep.subr.bf16.mxu1 %v10481_v29  ;;  %v7425_v28 = vpop.f32.mrb[8].mxu1 }
 0x42c   : > { %v7427_v46 = vpop.f32.mrb[9].mxu1 }
 0x42d   : > { %7570 = vmatpush1.bf16.msra.mxu0 %v10478_v19  ;;  %v7429_v19 = vpop.f32.mrb[10].mxu1 }
 0x42e   : > { %7742 = vmatpush1.bf16.msra.mxu1 %v10480_v11  ;;  %7571 = vmatprep.subr.bf16.mxu0 %v10495_v22  ;;  %v7787_v22 = vmax.f32 %v7255_v34, 0.0  ;;  %v7804_v29 = vmax.f32 %v7429_v19, 0.0  ;;  %v7431_v32 = vpop.f32.mrb[11].mxu1 }
 0x42f   : > { %7743 = vmatprep.subr.bf16.mxu1 %v10497_v35  ;;  %v7257_v35 = vpop.f32.mrb[10].mxu0  ;;  %v7805_v51 = vmax.f32 %v7431_v32, 0.0 }
 0x430   : > { %v7802_v11 = vmax.f32 %v7257_v35, 0.0 }
 0x431   : > { %7572 = vmatpush1.bf16.msra.mxu0 %v10494_v63  ;;  %v7788_v63 = vmax.f32 %v7425_v28, 0.0 }
 0x432   : > { %7744 = vmatpush1.bf16.msra.mxu1 %v10496_v59  ;;  %7573 = vmatprep.subr.bf16.mxu0 %v10511_v44  ;;  %v14240_v44 = vld [vmem:[%s11094_s9 + $0x1e30] sm:$0xff]  ;;  %v7818_v21 = vpack.c.bf16 %v7802_v11, %v7786_v20 }
 0x433   : > { %7745 = vmatprep.subr.bf16.mxu1 %v10513_v13  ;;  %v14243_v13 = vld [vmem:[%s11094_s9 + $0x1e70] sm:$0xff]  ;;  %v14253_v35 = vpack.c.bf16 %v7804_v29, %v7788_v63 }
 0x434   : > { %v7855_v32 = vsel %vm12112_vm14, %v7818_v21, 0  ;;  %v8097_v28 = vsel %vm12119_vm15, %v7818_v21, 0  ;;  %v8337_v34 = vsel %vm12126_vm0, %v7818_v21, 0  ;;  %v8577_v29 = vsel %vm12133_vm1, %v7818_v21, 0 }
 0x435   : > { %7574 = vmatpush1.bf16.msra.mxu0 %v10510_v39  ;;  %v7259_v39 = vpop.f32.mrb[11].mxu0  ;;  %v7970_v5 = vsel %vm7863_vm2, %v7855_v32, 4286644096  ;;  %v8210_v9 = vsel %vm7863_vm2, %v8097_v28, 4286644096  ;;  %v8819_v50 = vsel %vm12200_vm3, %v7818_v21, 0 }
 0x436   : > { %7746 = vmatpush1.bf16.msra.mxu1 %v10512_v38  ;;  %7575 = vmatprep.subr.bf16.mxu0 %v10527_v41  ;;  %v7803_v59 = vmax.f32 %v7259_v39, 0.0  ;;  %v10623_v38 = vcombine.high %v14240_v44, %v14243_v13  ;;  %v7789_v41 = vmax.f32 %v7427_v46, 0.0  ;;  %v7972_v11 = vunpack.i.l.bf16 %v7970_v5 }
 0x437   : > { %7747 = vmatprep.subr.bf16.mxu1 %v10529_v54  ;;  %v10622_v54 = vcombine.low %v14240_v44, %v14243_v13  ;;  %v8212_v20 = vunpack.i.l.bf16 %v8210_v9  ;;  %v8213_v46 = vunpack.i.h.bf16 %v8210_v9  ;;  %v8690_v39 = vsel %vm7863_vm2, %v8577_v29, 4286644096 }
 0x438   : > { %v14255_v55 = vpack.c.bf16 %v7803_v59, %v7787_v22  ;;  %v14276_v19 = vpack.c.bf16 %v7805_v51, %v7789_v41  ;;  %v7973_v22 = vunpack.i.h.bf16 %v7970_v5  ;;  %v8693_v51 = vunpack.i.h.bf16 %v8690_v39 }
 0x439   : > { %7576 = vmatpush1.bf16.msra.mxu0 %v10526_v45  ;;  %v8450_v45 = vsel %vm7863_vm2, %v8337_v34, 4286644096  ;;  %v8932_v41 = vsel %vm7863_vm2, %v8819_v50, 4286644096  ;;  %v9059_v32 = vsel %vm12239_vm4, %v7818_v21, 0  ;;  %v7857_v4 = vsel %vm12112_vm14, %v14253_v35, 0 }
 0x43a   : > { %7748 = vmatpush1.bf16.msra.mxu1 %v10528_v56  ;;  %7577 = vmatprep.subr.bf16.mxu0 %v10543_v48  ;;  %v8452_v63 = vunpack.i.l.bf16 %v8450_v45  ;;  %v8453_v59 = vunpack.i.h.bf16 %v8450_v45  ;;  %v7974_v40 = vmax.f32 %v7972_v11, %v7973_v22  ;;  %v8214_v56 = vmax.f32 %v8212_v20, %v8213_v46  ;;  %v14317_v50 = vld [vmem:[%s11094_s9 + $0x1e78] sm:$0xff] }
 0x43b   : > { %7749 = vmatprep.subr.bf16.mxu1 %v10545_v25  ;;  %v8692_v48 = vunpack.i.l.bf16 %v8690_v39  ;;  %v9172_v34 = vsel %vm7863_vm2, %v9059_v32, 4286644096  ;;  %v7996_v21 = vsel %vm7863_vm2, %v7857_v4, 4286644096  ;;  %v15341_v29 = vcombine.low %v14144_v43, %v14147_v33  ;;  %v14314_v33 = vld [vmem:[%s11094_s9 + $0x1e38] sm:$0xff]  ;;  %v14326_v4 = vld [vmem:[%s11094_s9 + $0x1eb0] sm:$0xff] }
 0x43c   : > { %v8454_v25 = vmax.f32 %v8452_v63, %v8453_v59  ;;  %v7975_v1 = vrot.slane %v7974_v40, 4  ;;  %v8215_v47 = vrot.slane %v8214_v56, 4  ;;  %v9174_v11 = vunpack.i.l.bf16 %v9172_v34 }
 0x43d   : > { %7578 = vmatpush1.bf16.msra.mxu0 %v10542_v61  ;;  %v8694_v61 = vmax.f32 %v8692_v48, %v8693_v51  ;;  %v15342_v22 = vcombine.low %v14152_v10, %v14155_v14  ;;  %v15343_v20 = vcombine.high %v14158_v2, %v14169_v0  ;;  %v9175_v59 = vunpack.i.h.bf16 %v9172_v34 }
 0x43e   : > { %7750 = vmatpush1.bf16.msra.mxu1 %v10544_v60  ;;  %7579 = vmatprep.subr.bf16.mxu0 %v10559_v42  ;;  %v8934_v60 = vunpack.i.l.bf16 %v8932_v41  ;;  %v8455_v28 = vrot.slane %v8454_v25, 4  ;;  %v8935_v42 = vunpack.i.h.bf16 %v8932_v41  ;;  %v7976_v5 = vmax.f32 %v7974_v40, %v7975_v1 }
 0x43f   : > { %7751 = vmatprep.subr.bf16.mxu1 %v15340_v52  ;;  %v8216_v9 = vmax.f32 %v8214_v56, %v8215_v47  ;;  %v8695_v45 = vrot.slane %v8694_v61, 4  ;;  %v7998_v39 = vunpack.i.l.bf16 %v7996_v21  ;;  %v15344_v43 = vcombine.high %v14172_v27, %v14175_v8  ;;  %v14329_v52 = vld [vmem:[%s11094_s9 + $0x1ef0] sm:$0xff] }
 0x440   : > { %v8456_v46 = vmax.f32 %v8454_v25, %v8455_v28  ;;  %v8936_v63 = vmax.f32 %v8934_v60, %v8935_v42  ;;  %v7977_v10 = vrot.slane %v7976_v5, 2  ;;  %v7999_v56 = vunpack.i.h.bf16 %v7996_v21 }
 0x441   : > { %7580 = vmatpush1.bf16.msra.mxu0 %v15341_v29  ;;  %v8217_v14 = vrot.slane %v8216_v9, 2  ;;  %v8696_v40 = vmax.f32 %v8694_v61, %v8695_v45  ;;  %v9176_v25 = vmax.f32 %v9174_v11, %v9175_v59  ;;  %v8099_v41 = vsel %vm12119_vm15, %v14253_v35, 0  ;;  %v14350_v29 = vld [vmem:[%s11094_s9 + $0x1f30] sm:$0xff] }
 0x442   : > { %7752 = vmatpush1.bf16.msra.mxu1 %v15342_v22  ;;  %7581 = vmatprep.subr.bf16.mxu0 %v15343_v20  ;;  %v8457_v48 = vrot.slane %v8456_v46, 2  ;;  %v8937_v51 = vrot.slane %v8936_v63, 4  ;;  %v15345_v32 = vcombine.low %v14158_v2, %v14169_v0  ;;  %v7978_v1 = vmax.f32 %v7976_v5, %v7977_v10  ;;  %v14340_v0 = vld [vmem:[%s11094_s9 + $0x1eb8] sm:$0xff]  ;;  %v14353_v5 = vld [vmem:[%s11094_s9 + $0x1f70] sm:$0xff] }
 0x443   : > { %7753 = vmatprep.subr.bf16.mxu1 %v15344_v43  ;;  %v8218_v47 = vmax.f32 %v8216_v9, %v8217_v14  ;;  %v15346_v61 = vcombine.low %v14172_v27, %v14175_v8  ;;  %v15347_v60 = vcombine.high %v14186_v17, %v14189_v53  ;;  %v10624_v2 = vcombine.low %v14314_v33, %v14317_v50  ;;  %v14347_v8 = vld [vmem:[%s11094_s9 + $0x1ef8] sm:$0xff] }
 0x444   : > { %v8458_v28 = vmax.f32 %v8456_v46, %v8457_v48  ;;  %v8697_v42 = vrot.slane %v8696_v40, 2  ;;  %v8000_v34 = vmax.f32 %v7998_v39, %v7999_v56  ;;  %v8236_v21 = vsel %vm7863_vm2, %v8099_v41, 4286644096  ;;  %v14368_v10 = vld [vmem:[%s11094_s9 + $0x1f78] sm:$0xff] }
 0x445   : > { %7582 = vmatpush1.bf16.msra.mxu0 %v15345_v32  ;;  %v15348_v27 = vcombine.high %v14192_v6, %v14201_v26  ;;  %v8938_v9 = vmax.f32 %v8936_v63, %v8937_v51  ;;  %v10625_v45 = vcombine.high %v14314_v33, %v14317_v50  ;;  %v10639_v22 = vcombine.high %v14326_v4, %v14329_v52  ;;  %v14365_v63 = vld [vmem:[%s11094_s9 + $0x1f38] sm:$0xff]  ;;  %v14383_v51 = vld [vmem:[%s11094_s9 + $0x1fb0] sm:$0xff] }
 0x446   : > { %7754 = vmatpush1.bf16.msra.mxu1 %v15346_v61  ;;  %7583 = vmatprep.subr.bf16.mxu0 %v15347_v60  ;;  %v7979_v20 = vrot.slane %v7978_v1, 1  ;;  %v8219_v46 = vrot.slane %v8218_v47, 1  ;;  %v9177_v59 = vrot.slane %v9176_v25, 4  ;;  %v8238_v39 = vunpack.i.l.bf16 %v8236_v21  ;;  %v14392_v60 = vld [vmem:[%s11094_s9 + $0x1fb8] sm:$0xff] }
 0x447   : > { %7755 = vmatprep.subr.bf16.mxu1 %v15348_v27  ;;  %v15349_v43 = vcombine.low %v14186_v17, %v14189_v53  ;;  %v15350_v14 = vcombine.low %v14192_v6, %v14201_v26  ;;  %v15351_v56 = vcombine.high %v14204_v57, %v14207_v62  ;;  %v10641_v17 = vcombine.high %v14340_v0, %v14347_v8  ;;  %v14389_v26 = vld [vmem:[%s11094_s9 + $0x1ff0] sm:$0xff]  ;;  %v14395_v27 = vld [vmem:[%s11094_s9 + $0x1ff8] sm:$0xff] }
 0x448   : > { %v8459_v41 = vrot.slane %v8458_v28, 1  ;;  %v8698_v32 = vmax.f32 %v8696_v40, %v8697_v42  ;;  %v8001_v61 = vrot.slane %v8000_v34, 4  ;;  %v8239_v6 = vunpack.i.h.bf16 %v8236_v21 }
 0x449   : > { %7584 = vmatpush1.bf16.msra.mxu0 %v15349_v43  ;;  %v8939_v43 = vrot.slane %v8938_v9, 2  ;;  %v10657_v40 = vcombine.high %v14365_v63, %v14368_v10  ;;  %v7980_v42 = vmax.f32 %v7978_v1, %v7979_v20  ;;  %v8220_v21 = vmax.f32 %v8218_v47, %v8219_v46 }
 0x44a   : > { %7756 = vmatpush1.bf16.msra.mxu1 %v15350_v14  ;;  %7585 = vmatprep.subr.bf16.mxu0 %v15351_v56  ;;  %v10655_v14 = vcombine.high %v14350_v29, %v14353_v5  ;;  %v10656_v56 = vcombine.low %v14365_v63, %v14368_v10  ;;  %v9178_v53 = vmax.f32 %v9176_v25, %v9177_v59  ;;  %v8339_v11 = vsel %vm12126_vm0, %v14253_v35, 0 }
 0x44b   : > { %7757 = vmatprep.subr.bf16.mxu1 %v10609_v18  ;;  %v8240_v18 = vmax.f32 %v8238_v39, %v8239_v6  ;;  %v15352_v48 = vcombine.low %v14204_v57, %v14207_v62  ;;  %v10670_v25 = vcombine.low %v14383_v51, %v14389_v26  ;;  %v10671_v1 = vcombine.high %v14383_v51, %v14389_v26 }
 0x44c   : > { %v10672_v57 = vcombine.low %v14392_v60, %v14395_v27  ;;  %v8460_v62 = vmax.f32 %v8458_v28, %v8459_v41  ;;  %v8699_v47 = vrot.slane %v8698_v32, 1  ;;  %v8002_v20 = vmax.f32 %v8000_v34, %v8001_v61 }
 0x44d   : > { %7586 = vmatpush1.bf16.msra.mxu0 %v15352_v48  ;;  %v8241_v46 = vrot.slane %v8240_v18, 4  ;;  %v8940_v24 = vmax.f32 %v8938_v9, %v8939_v43  ;;  %v8476_v30 = vsel %vm7863_vm2, %v8339_v11, 4286644096  ;;  %v7981_v59 = vpack.i.bf16 %v7980_v42, %v7980_v42 }
 0x44e   : > { %7758 = vmatpush1.bf16.msra.mxu1 %v10608_v16  ;;  %7587 = vmatprep.subr.bf16.mxu0 %v10623_v38  ;;  %v8579_v16 = vsel %vm12133_vm1, %v14253_v35, 0  ;;  %v10673_v38 = vcombine.high %v14392_v60, %v14395_v27  ;;  %v8221_v39 = vpack.i.bf16 %v8220_v21, %v8220_v21  ;;  %v9179_v48 = vrot.slane %v9178_v53, 2 }
 0x44f   : > { %7759 = vmatprep.subr.bf16.mxu1 %v10625_v45  ;;  %v8478_v6 = vunpack.i.l.bf16 %v8476_v30  ;;  %v8242_v28 = vmax.f32 %v8240_v18, %v8241_v46  ;;  %v8479_v34 = vunpack.i.h.bf16 %v8476_v30  ;;  %v8716_v9 = vsel %vm7863_vm2, %v8579_v16, 4286644096 }
 0x450   : > { %v8821_v45 = vsel %vm12200_vm3, %v14253_v35, 0  ;;  %v8461_v11 = vpack.i.bf16 %v8460_v62, %v8460_v62  ;;  %v8700_v41 = vmax.f32 %v8698_v32, %v8699_v47  ;;  %v8003_v61 = vrot.slane %v8002_v20, 2 }
 0x451   : > { %7588 = vmatpush1.bf16.msra.mxu0 %v10622_v54  ;;  %v8718_v43 = vunpack.i.l.bf16 %v8716_v9  ;;  %v8941_v44 = vrot.slane %v8940_v24, 1  ;;  %v8480_v13 = vmax.f32 %v8478_v6, %v8479_v34  ;;  %v8719_v54 = vunpack.i.h.bf16 %v8716_v9 }
 0x452   : > { %7760 = vmatpush1.bf16.msra.mxu1 %v10624_v2  ;;  %7589 = vmatprep.subr.bf16.mxu0 %v10639_v22  ;;  %v8958_v42 = vsel %vm7863_vm2, %v8821_v45, 4286644096  ;;  %v9180_v21 = vmax.f32 %v9178_v53, %v9179_v48  ;;  %v9286_v18 = vsel %vm12470_vm9, %v7981_v59, %v8221_v39  ;;  %v15353_v33 = vcombine.low %v14326_v4, %v14329_v52 }
 0x453   : > { %7761 = vmatprep.subr.bf16.mxu1 %v10641_v17  ;;  %v8960_v46 = vunpack.i.l.bf16 %v8958_v42  ;;  %v8961_v30 = vunpack.i.h.bf16 %v8958_v42  ;;  %v8243_v50 = vrot.slane %v8242_v28, 2  ;;  %v8481_v2 = vrot.slane %v8480_v13, 4 }
 0x454   : > { %v9061_v22 = vsel %vm12239_vm4, %v14253_v35, 0  ;;  %v7856_v17 = vsel %vm12112_vm14, %v14255_v55, 0  ;;  %v15354_v53 = vcombine.low %v14340_v0, %v14347_v8  ;;  %v8701_v32 = vpack.i.bf16 %v8700_v41, %v8700_v41 }
 0x455   : > { %7590 = vmatpush1.bf16.msra.mxu0 %v15353_v33  ;;  %v8720_v62 = vmax.f32 %v8718_v43, %v8719_v54  ;;  %v9198_v4 = vsel %vm7863_vm2, %v9061_v22, 4286644096  ;;  %v7983_v52 = vsel %vm7863_vm2, %v7856_v17, 4286644096  ;;  %v8942_v47 = vmax.f32 %v8940_v24, %v8941_v44 }
 0x456   : > { %7762 = vmatpush1.bf16.msra.mxu1 %v15354_v53  ;;  %7591 = vmatprep.subr.bf16.mxu0 %v10655_v14  ;;  %v9329_v16 = vsel %vm9275_vm5, %v9286_v18, %v8461_v11  ;;  %v8004_v35 = vmax.f32 %v8002_v20, %v8003_v61  ;;  %v8962_v59 = vmax.f32 %v8960_v46, %v8961_v30  ;;  %v9200_v39 = vunpack.i.l.bf16 %v9198_v4 }
 0x457   : > { %7763 = vmatprep.subr.bf16.mxu1 %v10657_v40  ;;  %v9201_v48 = vunpack.i.h.bf16 %v9198_v4  ;;  %v7985_v6 = vunpack.i.l.bf16 %v7983_v52  ;;  %v7986_v34 = vunpack.i.h.bf16 %v7983_v52  ;;  %v15355_v0 = vcombine.low %v14350_v29, %v14353_v5 }
 0x458   : > { %v9181_v8 = vrot.slane %v9180_v21, 1  ;;  %v8244_v14 = vmax.f32 %v8242_v28, %v8243_v50  ;;  %v8482_v9 = vmax.f32 %v8480_v13, %v8481_v2  ;;  %v8098_v40 = vsel %vm12119_vm15, %v14255_v55, 0 }
 0x459   : > { %7592 = vmatpush1.bf16.msra.mxu0 %v15355_v0  ;;  %v8721_v20 = vrot.slane %v8720_v62, 4  ;;  %v7987_v24 = vmax.f32 %v7985_v6, %v7986_v34  ;;  %v8223_v45 = vsel %vm7863_vm2, %v8098_v40, 4286644096  ;;  %v9370_v29 = vsel %vm12524_vm12, %v9329_v16, %v8701_v32 }
 0x45a   : > { %7764 = vmatpush1.bf16.msra.mxu1 %v10656_v56  ;;  %7593 = vmatprep.subr.bf16.mxu0 %v10671_v1  ;;  %v8005_v5 = vrot.slane %v8004_v35, 1  ;;  %v8963_v28 = vrot.slane %v8962_v59, 4  ;;  %v8225_v11 = vunpack.i.l.bf16 %v8223_v45  ;;  %v8943_v41 = vpack.i.bf16 %v8942_v47, %v8942_v47 }
 0x45b   : > { %7765 = vmatprep.subr.bf16.mxu1 %v10673_v38  ;;  %v9202_v61 = vmax.f32 %v9200_v39, %v9201_v48  ;;  %v7988_v43 = vrot.slane %v7987_v24, 4  ;;  %v8226_v44 = vunpack.i.h.bf16 %v8223_v45  ;;  %v9182_v63 = vmax.f32 %v9180_v21, %v9181_v8 }
 0x45c   : > { %v8245_v10 = vrot.slane %v8244_v14, 1  ;;  %v8483_v56 = vrot.slane %v8482_v9, 2  ;;  %v8338_v1 = vsel %vm12126_vm0, %v14255_v55, 0  ;;  %v8722_v38 = vmax.f32 %v8720_v62, %v8721_v20 }
 0x45d   : > { %7594 = vmatpush1.bf16.msra.mxu0 %v10670_v25  ;;  %v7989_v13 = vmax.f32 %v7987_v24, %v7988_v43  ;;  %v8227_v54 = vmax.f32 %v8225_v11, %v8226_v44  ;;  %v8463_v42 = vsel %vm7863_vm2, %v8338_v1, 4286644096  ;;  %v9413_v18 = vsel %vm9359_vm7, %v9370_v29, %v8943_v41 }
 0x45e   : > { %7766 = vmatpush1.bf16.msra.mxu1 %v10672_v57  ;;  %v14478_v51 = vmax.f32 %v8004_v35, %v8005_v5  ;;  %v8964_v26 = vmax.f32 %v8962_v59, %v8963_v28  ;;  %v8465_v25 = vunpack.i.l.bf16 %v8463_v42  ;;  %v9203_v21 = vrot.slane %v9202_v61, 4 }
 0x45f   : > { %v7990_v46 = vrot.slane %v7989_v13, 2  ;;  %v8228_v30 = vrot.slane %v8227_v54, 4  ;;  %v8466_v33 = vunpack.i.h.bf16 %v8463_v42  ;;  %v9183_v60 = vpack.i.bf16 %v9182_v63, %v9182_v63 }
 0x460   : > { %7596 = vmatmul.mubr.bf16.vlgmr.msra.gmra.mrb[12].mxu0 %v15272_v58  ;;  %v14482_v27 = vmax.f32 %v8244_v14, %v8245_v10  ;;  %v14484_v57 = vmax.f32 %v8482_v9, %v8483_v56  ;;  %v8578_v50 = vsel %vm12133_vm1, %v14255_v55, 0  ;;  %v8723_v2 = vrot.slane %v8722_v38, 2 }
 0x461   : > { %7768 = vmatmul.mubr.bf16.vlgmr.msra.gmra.mrb[12].mxu1 %v15272_v58  ;;  %v7991_v22 = vmax.f32 %v7989_v13, %v7990_v46  ;;  %v8229_v17 = vmax.f32 %v8227_v54, %v8228_v30  ;;  %v8467_v53 = vmax.f32 %v8465_v25, %v8466_v33  ;;  %v14491_v32 = vsel %vm12568_vm13, %v9413_v18, %v9183_v60 }
 0x462   : > { %v8007_v58 = vpack.i.bf16 %v14478_v51, %v14478_v51  ;;  %v8965_v62 = vrot.slane %v8964_v26, 2  ;;  %v8703_v4 = vsel %vm7863_vm2, %v8578_v50, 4286644096  ;;  %v14496_v52 = vmax.f32 %v9202_v61, %v9203_v21 }
 0x463   : > { %v7992_v47 = vrot.slane %v7991_v22, 1  ;;  %v8230_v16 = vrot.slane %v8229_v17, 2  ;;  %v8468_v35 = vrot.slane %v8467_v53, 4  ;;  %v8247_v59 = vpack.i.bf16 %v14482_v27, %v14482_v27 }
 0x464   : > { %v8485_v39 = vrot.slane %v14484_v57, 1  ;;  %v8705_v48 = vunpack.i.l.bf16 %v8703_v4  ;;  %v8706_v6 = vunpack.i.h.bf16 %v8703_v4  ;;  %v14501_v34 = vmax.f32 %v8722_v38, %v8723_v2 }
 0x465   : > { %v7993_v0 = vmax.f32 %v7991_v22, %v7992_v47  ;;  %v8231_v8 = vmax.f32 %v8229_v17, %v8230_v16  ;;  %v8469_v14 = vmax.f32 %v8467_v53, %v8468_v35  ;;  %v14503_v9 = vmax.f32 %v8964_v26, %v8965_v62 }
 0x466   : > { %v8707_v40 = vmax.f32 %v8705_v48, %v8706_v6  ;;  %v8820_v20 = vsel %vm12200_vm3, %v14255_v55, 0  ;;  %v9060_v24 = vsel %vm12239_vm4, %v14255_v55, 0  ;;  %v9205_v45 = vrot.slane %v14496_v52, 2 }
 0x467   : > { %v8232_v29 = vrot.slane %v8231_v8, 1  ;;  %v8470_v5 = vrot.slane %v8469_v14, 2  ;;  %v8945_v28 = vsel %vm7863_vm2, %v8820_v20, 4286644096  ;;  %v7994_v11 = vpack.i.bf16 %v7993_v0, %v7993_v0 }
 0x468   : > { %v8708_v41 = vrot.slane %v8707_v40, 4  ;;  %v8947_v61 = vunpack.i.l.bf16 %v8945_v28  ;;  %v8948_v43 = vunpack.i.h.bf16 %v8945_v28  ;;  %v9185_v10 = vsel %vm7863_vm2, %v9060_v24, 4286644096 }
 0x469   : > { %v8233_v44 = vmax.f32 %v8231_v8, %v8232_v29  ;;  %v8471_v63 = vmax.f32 %v8469_v14, %v8470_v5  ;;  %v7858_v56 = vsel %vm12112_vm14, %v14276_v19, 0  ;;  %v9187_v38 = vunpack.i.l.bf16 %v9185_v10 }
 0x46a   : > { %v8709_v1 = vmax.f32 %v8707_v40, %v8708_v41  ;;  %v8949_v55 = vmax.f32 %v8947_v61, %v8948_v43  ;;  %v9188_v13 = vunpack.i.h.bf16 %v9185_v10  ;;  %v8009_v18 = vsel %vm7863_vm2, %v7858_v56, 4286644096 }
 0x46b   : > { %v8234_v54 = vpack.i.bf16 %v8233_v44, %v8233_v44  ;;  %v8472_v42 = vrot.slane %v8471_v63, 1  ;;  %v8100_v26 = vsel %vm12119_vm15, %v14276_v19, 0  ;;  %v8011_v30 = vunpack.i.l.bf16 %v8009_v18 }
 0x46c   : > { %v8710_v25 = vrot.slane %v8709_v1, 2  ;;  %v8950_v21 = vrot.slane %v8949_v55, 4  ;;  %v9189_v46 = vmax.f32 %v9187_v38, %v9188_v13  ;;  %v8012_v50 = vunpack.i.h.bf16 %v8009_v18 }
 0x46d   : > { %v8473_v33 = vmax.f32 %v8471_v63, %v8472_v42  ;;  %v9287_v60 = vsel %vm12470_vm9, %v7994_v11, %v8234_v54  ;;  %v8249_v2 = vsel %vm7863_vm2, %v8100_v26, 4286644096  ;;  %v8340_v35 = vsel %vm12126_vm0, %v14276_v19, 0 }
 0x46e   : > { %v8711_v22 = vmax.f32 %v8709_v1, %v8710_v25  ;;  %v8951_v17 = vmax.f32 %v8949_v55, %v8950_v21  ;;  %v9190_v53 = vrot.slane %v9189_v46, 4  ;;  %v8251_v62 = vunpack.i.l.bf16 %v8249_v2 }
 0x46f   : > { %v8474_v4 = vpack.i.bf16 %v8473_v33, %v8473_v33  ;;  %v8013_v47 = vmax.f32 %v8011_v30, %v8012_v50  ;;  %v8252_v16 = vunpack.i.h.bf16 %v8249_v2  ;;  %v8489_v8 = vsel %vm7863_vm2, %v8340_v35, 4286644096 }
 0x470   : > { %v8712_v48 = vrot.slane %v8711_v22, 1  ;;  %v8952_v6 = vrot.slane %v8951_v17, 2  ;;  %v9191_v0 = vmax.f32 %v9189_v46, %v9190_v53  ;;  %v8491_v24 = vunpack.i.l.bf16 %v8489_v8 }
 0x471   : > { %v9333_v14 = vsel %vm9275_vm5, %v9287_v60, %v8474_v4  ;;  %v8014_v40 = vrot.slane %v8013_v47, 4  ;;  %v8253_v20 = vmax.f32 %v8251_v62, %v8252_v16  ;;  %v8492_v11 = vunpack.i.h.bf16 %v8489_v8 }
 0x472   : > { %v8713_v29 = vmax.f32 %v8711_v22, %v8712_v48  ;;  %v8953_v5 = vmax.f32 %v8951_v17, %v8952_v6  ;;  %v9192_v28 = vrot.slane %v9191_v0, 2  ;;  %v8580_v43 = vsel %vm12133_vm1, %v14276_v19, 0 }
 0x473   : > { %v8015_v41 = vmax.f32 %v8013_v47, %v8014_v40  ;;  %v8254_v61 = vrot.slane %v8253_v20, 4  ;;  %v8822_v44 = vsel %vm12200_vm3, %v14276_v19, 0  ;;  %v8493_v1 = vmax.f32 %v8491_v24, %v8492_v11 }
 0x474   : > { %v8714_v63 = vpack.i.bf16 %v8713_v29, %v8713_v29  ;;  %v8954_v10 = vrot.slane %v8953_v5, 1  ;;  %v9193_v56 = vmax.f32 %v9191_v0, %v9192_v28  ;;  %v8729_v13 = vsel %vm7863_vm2, %v8580_v43, 4286644096 }
 0x475   : > { %v8016_v55 = vrot.slane %v8015_v41, 2  ;;  %v8255_v38 = vmax.f32 %v8253_v20, %v8254_v61  ;;  %v8971_v54 = vsel %vm7863_vm2, %v8822_v44, 4286644096  ;;  %v8494_v25 = vrot.slane %v8493_v1, 4 }
 0x476   : > { %v8955_v42 = vmax.f32 %v8953_v5, %v8954_v10  ;;  %v9194_v18 = vrot.slane %v9193_v56, 1  ;;  %v9371_v26 = vsel %vm12524_vm12, %v9333_v14, %v8714_v63  ;;  %v8731_v30 = vunpack.i.l.bf16 %v8729_v13 }
 0x477   : > { %v8017_v21 = vmax.f32 %v8015_v41, %v8016_v55  ;;  %v8256_v46 = vrot.slane %v8255_v38, 2  ;;  %v8732_v33 = vunpack.i.h.bf16 %v8729_v13  ;;  %v8495_v2 = vmax.f32 %v8493_v1, %v8494_v25 }
 0x478   : > { %v8956_v60 = vpack.i.bf16 %v8955_v42, %v8955_v42  ;;  %v9195_v50 = vmax.f32 %v9193_v56, %v9194_v18  ;;  %v8973_v22 = vunpack.i.l.bf16 %v8971_v54  ;;  %v8974_v4 = vunpack.i.h.bf16 %v8971_v54 }
 0x479   : > { %v8018_v17 = vrot.slane %v8017_v21, 1  ;;  %v8257_v53 = vmax.f32 %v8255_v38, %v8256_v46  ;;  %v8733_v62 = vmax.f32 %v8731_v30, %v8732_v33  ;;  %v8496_v35 = vrot.slane %v8495_v2, 2 }
 0x47a   : > { %v9196_v47 = vpack.i.bf16 %v9195_v50, %v9195_v50  ;;  %v9417_v16 = vsel %vm9359_vm7, %v9371_v26, %v8956_v60  ;;  %v9062_v48 = vsel %vm12239_vm4, %v14276_v19, 0  ;;  %v8975_v14 = vmax.f32 %v8973_v22, %v8974_v4 }
 0x47b   : > { %v8019_v6 = vmax.f32 %v8017_v21, %v8018_v17  ;;  %v8258_v0 = vrot.slane %v8257_v53, 1  ;;  %v8734_v8 = vrot.slane %v8733_v62, 4  ;;  %v8486_v40 = vmax.f32 %v14484_v57, %v8485_v39 }
 0x47c   : > { %v9455_v20 = vsel %vm12568_vm13, %v9417_v16, %v9196_v47  ;;  %v8497_v24 = vmax.f32 %v8495_v2, %v8496_v35  ;;  %v9211_v29 = vsel %vm7863_vm2, %v9062_v48, 4286644096  ;;  %v8725_v5 = vrot.slane %v14501_v34, 1 }
 0x47d   : > { %v10684_v28 = vcombine.low %v14491_v32, %v9455_v20  ;;  %v8259_v19 = vmax.f32 %v8257_v53, %v8258_v0  ;;  %v8735_v11 = vmax.f32 %v8733_v62, %v8734_v8  ;;  %v8976_v61 = vrot.slane %v8975_v14, 4 }
 0x47e   : > { %v8498_v41 = vrot.slane %v8497_v24, 1  ;;  %v9213_v43 = vunpack.i.l.bf16 %v9211_v29  ;;  %v9214_v44 = vunpack.i.h.bf16 %v9211_v29  ;;  %v9206_v57 = vmax.f32 %v14496_v52, %v9205_v45 }
 0x47f   : > { %9514 = vst [vmem:[%s12736_s23 + $0x20] sm:$0x77] %v10684_v28  ;;  %v8020_v39 = vpack.i.bf16 %v8019_v6, %v8019_v6  ;;  %v8736_v63 = vrot.slane %v8735_v11, 2  ;;  %v8260_v10 = vpack.i.bf16 %v8259_v19, %v8259_v19  ;;  %v8977_v1 = vmax.f32 %v8975_v14, %v8976_v61 }
 0x480   : > { %v8499_v56 = vmax.f32 %v8497_v24, %v8498_v41  ;;  %v9215_v55 = vmax.f32 %v9213_v43, %v9214_v44  ;;  %v8487_v38 = vpack.i.bf16 %v8486_v40, %v8486_v40  ;;  %v8967_v32 = vrot.slane %v14503_v9, 1 }
 0x481   : > { %v8737_v13 = vmax.f32 %v8735_v11, %v8736_v63  ;;  %v8726_v54 = vmax.f32 %v14501_v34, %v8725_v5  ;;  %v9288_v52 = vsel %vm12470_vm9, %v8007_v58, %v8247_v59  ;;  %v8978_v45 = vrot.slane %v8977_v1, 2 }
 0x482   : > { %v9216_v42 = vrot.slane %v9215_v55, 4  ;;  %v9207_v18 = vrot.slane %v9206_v57, 1  ;;  %v8500_v26 = vpack.i.bf16 %v8499_v56, %v8499_v56  ;;  %v9289_v30 = vsel %vm12470_vm9, %v8020_v39, %v8260_v10 }
 0x483   : > { %v8738_v25 = vrot.slane %v8737_v13, 1  ;;  %v8979_v21 = vmax.f32 %v8977_v1, %v8978_v45  ;;  %v8968_v34 = vmax.f32 %v14503_v9, %v8967_v32  ;;  %v9337_v27 = vsel %vm9275_vm5, %v9288_v52, %v8487_v38 }
 0x484   : > { %v9217_v46 = vmax.f32 %v9215_v55, %v9216_v42  ;;  %v8727_v60 = vpack.i.bf16 %v8726_v54, %v8726_v54  ;;  %v9208_v2 = vmax.f32 %v9206_v57, %v9207_v18  ;;  %v9341_v58 = vsel %vm9275_vm5, %v9289_v30, %v8500_v26 }
 0x485   : > { %v8739_v33 = vmax.f32 %v8737_v13, %v8738_v25  ;;  %v8980_v51 = vrot.slane %v8979_v21, 1  ;;  %v8969_v62 = vpack.i.bf16 %v8968_v34, %v8968_v34 }
 0x486   : > { %v9218_v50 = vrot.slane %v9217_v46, 2  ;;  %v9372_v59 = vsel %vm12524_vm12, %v9337_v27, %v8727_v60  ;;  %v9209_v35 = vpack.i.bf16 %v9208_v2, %v9208_v2 }
 0x487   : > { %v8740_v22 = vpack.i.bf16 %v8739_v33, %v8739_v33  ;;  %v8981_v17 = vmax.f32 %v8979_v21, %v8980_v51  ;;  %v9421_v47 = vsel %vm9359_vm7, %v9372_v59, %v8969_v62 }
 0x488   : > { %v9219_v53 = vmax.f32 %v9217_v46, %v9218_v50  ;;  %v9456_v0 = vsel %vm12568_vm13, %v9421_v47, %v9209_v35 }
 0x489   : > { %v9373_v9 = vsel %vm12524_vm12, %v9341_v58, %v8740_v22  ;;  %v8982_v16 = vpack.i.bf16 %v8981_v17, %v8981_v17 }
 0x48a   : > { %v9220_v4 = vrot.slane %v9219_v53, 1 }
 0x48b   : > { %v9425_v6 = vsel %vm9359_vm7, %v9373_v9, %v8982_v16 }
 0x48c   : > { %v9221_v48 = vmax.f32 %v9219_v53, %v9220_v4 }
 0x48e   : > { %v9222_v8 = vpack.i.bf16 %v9221_v48, %v9221_v48 }
 0x490   : > { %v9457_v14 = vsel %vm12568_vm13, %v9425_v6, %v9222_v8 }
 0x491   : > { %v10685_v40 = vcombine.low %v9456_v0, %v9457_v14 }
 0x493   : > { %9515 = vst [vmem:[%s12736_s23 + $0x28] sm:$0x77] %v10685_v40 }
 0x533   : > { %v7597_v20 = vpop.f32.mrb[12].mxu0 }
 0x534   : > { %v7769_v24 = vpop.f32.mrb[12].mxu1  ;;  %v7599_v29 = vpop.f32.mrb[13].mxu0  ;;  %v7790_v19 = vmax.f32 %v7597_v20, 0.0 }
 0x535   : > { %v7771_v5 = vpop.f32.mrb[13].mxu1  ;;  %v7601_v28 = vpop.f32.mrb[14].mxu0  ;;  %v7792_v43 = vmax.f32 %v7769_v24, 0.0  ;;  %v7791_v44 = vmax.f32 %v7599_v29, 0.0 }
 0x536   : > { %v7806_v11 = vmax.f32 %v7601_v28, 0.0  ;;  %v7773_v41 = vpop.f32.mrb[14].mxu1  ;;  %v7603_v61 = vpop.f32.mrb[15].mxu0  ;;  %v7793_v1 = vmax.f32 %v7771_v5, 0.0 }
 0x537   : > { %v7808_v57 = vmax.f32 %v7773_v41, 0.0  ;;  %v7807_v39 = vmax.f32 %v7603_v61, 0.0  ;;  %v7775_v63 = vpop.f32.mrb[15].mxu1 }
 0x538   : > { %v7822_v10 = vpack.c.bf16 %v7806_v11, %v7790_v19  ;;  %v7809_v56 = vmax.f32 %v7775_v63, 0.0 }
 0x539   : > { %v14581_v55 = vpack.c.bf16 %v7808_v57, %v7792_v43  ;;  %v14583_v38 = vpack.c.bf16 %v7807_v39, %v7791_v44 }
 0x53a   : > { %v7859_v32 = vsel %vm12112_vm14, %v7822_v10, 0  ;;  %v8101_v13 = vsel %vm12119_vm15, %v7822_v10, 0  ;;  %v8341_v54 = vsel %vm12126_vm0, %v7822_v10, 0  ;;  %v8581_v52 = vsel %vm12133_vm1, %v7822_v10, 0 }
 0x53b   : > { %v8022_v45 = vsel %vm7863_vm2, %v7859_v32, 4286644096  ;;  %v8262_v42 = vsel %vm7863_vm2, %v8101_v13, 4286644096  ;;  %v8502_v18 = vsel %vm7863_vm2, %v8341_v54, 4286644096  ;;  %v14596_v26 = vpack.c.bf16 %v7809_v56, %v7793_v1 }
 0x53c   : > { %v8024_v25 = vunpack.i.l.bf16 %v8022_v45  ;;  %v8025_v21 = vunpack.i.h.bf16 %v8022_v45  ;;  %v8264_v46 = vunpack.i.l.bf16 %v8262_v42  ;;  %v8265_v30 = vunpack.i.h.bf16 %v8262_v42 }
 0x53d   : > { %v8504_v34 = vunpack.i.l.bf16 %v8502_v18  ;;  %v8505_v27 = vunpack.i.h.bf16 %v8502_v18  ;;  %v8742_v33 = vsel %vm7863_vm2, %v8581_v52, 4286644096  ;;  %v8823_v60 = vsel %vm12200_vm3, %v7822_v10, 0 }
 0x53e   : > { %v8026_v51 = vmax.f32 %v8024_v25, %v8025_v21  ;;  %v8266_v50 = vmax.f32 %v8264_v46, %v8265_v30  ;;  %v8744_v2 = vunpack.i.l.bf16 %v8742_v33  ;;  %v8745_v58 = vunpack.i.h.bf16 %v8742_v33 }
 0x53f   : > { %v8506_v59 = vmax.f32 %v8504_v34, %v8505_v27  ;;  %v8984_v22 = vsel %vm7863_vm2, %v8823_v60, 4286644096  ;;  %v9063_v17 = vsel %vm12239_vm4, %v7822_v10, 0  ;;  %v7861_v53 = vsel %vm12112_vm14, %v14581_v55, 0 }
 0x540   : > { %v8027_v62 = vrot.slane %v8026_v51, 4  ;;  %v8267_v4 = vrot.slane %v8266_v50, 4  ;;  %v8746_v9 = vmax.f32 %v8744_v2, %v8745_v58  ;;  %v8986_v47 = vunpack.i.l.bf16 %v8984_v22 }
 0x541   : > { %v8507_v16 = vrot.slane %v8506_v59, 4  ;;  %v8987_v35 = vunpack.i.h.bf16 %v8984_v22  ;;  %v9224_v48 = vsel %vm7863_vm2, %v9063_v17, 4286644096  ;;  %v8048_v6 = vsel %vm7863_vm2, %v7861_v53, 4286644096 }
 0x542   : > { %v8028_v0 = vmax.f32 %v8026_v51, %v8027_v62  ;;  %v8268_v8 = vmax.f32 %v8266_v50, %v8267_v4  ;;  %v8747_v14 = vrot.slane %v8746_v9, 4  ;;  %v9226_v40 = vunpack.i.l.bf16 %v9224_v48 }
 0x543   : > { %v8508_v20 = vmax.f32 %v8506_v59, %v8507_v16  ;;  %v8988_v24 = vmax.f32 %v8986_v47, %v8987_v35  ;;  %v9227_v29 = vunpack.i.h.bf16 %v9224_v48  ;;  %v8050_v5 = vunpack.i.l.bf16 %v8048_v6 }
 0x544   : > { %v8029_v28 = vrot.slane %v8028_v0, 2  ;;  %v8269_v19 = vrot.slane %v8268_v8, 2  ;;  %v8748_v11 = vmax.f32 %v8746_v9, %v8747_v14  ;;  %v8051_v41 = vunpack.i.h.bf16 %v8048_v6 }
 0x545   : > { %v8509_v61 = vrot.slane %v8508_v20, 2  ;;  %v8989_v43 = vrot.slane %v8988_v24, 4  ;;  %v9228_v44 = vmax.f32 %v9226_v40, %v9227_v29  ;;  %v8103_v57 = vsel %vm12119_vm15, %v14581_v55, 0 }
 0x546   : > { %v8030_v39 = vmax.f32 %v8028_v0, %v8029_v28  ;;  %v8270_v63 = vmax.f32 %v8268_v8, %v8269_v19  ;;  %v8749_v56 = vrot.slane %v8748_v11, 2  ;;  %v8052_v1 = vmax.f32 %v8050_v5, %v8051_v41 }
 0x547   : > { %v8510_v10 = vmax.f32 %v8508_v20, %v8509_v61  ;;  %v8288_v32 = vsel %vm7863_vm2, %v8103_v57, 4286644096  ;;  %v8990_v13 = vmax.f32 %v8988_v24, %v8989_v43  ;;  %v9229_v45 = vrot.slane %v9228_v44, 4 }
 0x548   : > { %v8031_v54 = vrot.slane %v8030_v39, 1  ;;  %v8271_v52 = vrot.slane %v8270_v63, 1  ;;  %v8290_v42 = vunpack.i.l.bf16 %v8288_v32  ;;  %v8750_v25 = vmax.f32 %v8748_v11, %v8749_v56 }
 0x549   : > { %v8511_v18 = vrot.slane %v8510_v10, 1  ;;  %v8053_v21 = vrot.slane %v8052_v1, 4  ;;  %v8291_v46 = vunpack.i.h.bf16 %v8288_v32  ;;  %v8991_v30 = vrot.slane %v8990_v13, 2 }
 0x54a   : > { %v8032_v34 = vmax.f32 %v8030_v39, %v8031_v54  ;;  %v8272_v27 = vmax.f32 %v8270_v63, %v8271_v52  ;;  %v9230_v33 = vmax.f32 %v9228_v44, %v9229_v45  ;;  %v8343_v51 = vsel %vm12126_vm0, %v14581_v55, 0 }
 0x54b   : > { %v8292_v60 = vmax.f32 %v8290_v42, %v8291_v46  ;;  %v8512_v50 = vmax.f32 %v8510_v10, %v8511_v18  ;;  %v8751_v2 = vrot.slane %v8750_v25, 1  ;;  %v8054_v58 = vmax.f32 %v8052_v1, %v8053_v21 }
 0x54c   : > { %v8992_v22 = vmax.f32 %v8990_v13, %v8991_v30  ;;  %v8528_v17 = vsel %vm7863_vm2, %v8343_v51, 4286644096  ;;  %v8583_v53 = vsel %vm12133_vm1, %v14581_v55, 0  ;;  %v8033_v62 = vpack.i.bf16 %v8032_v34, %v8032_v34 }
 0x54d   : > { %v8293_v59 = vrot.slane %v8292_v60, 4  ;;  %v8273_v4 = vpack.i.bf16 %v8272_v27, %v8272_v27  ;;  %v9231_v9 = vrot.slane %v9230_v33, 2  ;;  %v8530_v47 = vunpack.i.l.bf16 %v8528_v17 }
 0x54e   : > { %v8531_v35 = vunpack.i.h.bf16 %v8528_v17  ;;  %v8768_v48 = vsel %vm7863_vm2, %v8583_v53, 4286644096  ;;  %v8825_v6 = vsel %vm12200_vm3, %v14581_v55, 0  ;;  %v8513_v0 = vpack.i.bf16 %v8512_v50, %v8512_v50 }
 0x54f   : > { %v8294_v16 = vmax.f32 %v8292_v60, %v8293_v59  ;;  %v8752_v8 = vmax.f32 %v8750_v25, %v8751_v2  ;;  %v8055_v14 = vrot.slane %v8054_v58, 2  ;;  %v8770_v40 = vunpack.i.l.bf16 %v8768_v48 }
 0x550   : > { %v8993_v20 = vrot.slane %v8992_v22, 1  ;;  %v8532_v24 = vmax.f32 %v8530_v47, %v8531_v35  ;;  %v8771_v29 = vunpack.i.h.bf16 %v8768_v48  ;;  %v9010_v5 = vsel %vm7863_vm2, %v8825_v6, 4286644096 }
 0x551   : > { %v9232_v28 = vmax.f32 %v9230_v33, %v9231_v9  ;;  %v9290_v19 = vsel %vm12470_vm9, %v8033_v62, %v8273_v4  ;;  %v9012_v11 = vunpack.i.l.bf16 %v9010_v5  ;;  %v9013_v41 = vunpack.i.h.bf16 %v9010_v5 }
 0x552   : > { %v8295_v61 = vrot.slane %v8294_v16, 2  ;;  %v8533_v43 = vrot.slane %v8532_v24, 4  ;;  %v9065_v44 = vsel %vm12239_vm4, %v14581_v55, 0  ;;  %v7860_v57 = vsel %vm12112_vm14, %v14583_v38, 0 }
 0x553   : > { %v8753_v39 = vpack.i.bf16 %v8752_v8, %v8752_v8  ;;  %v8772_v63 = vmax.f32 %v8770_v40, %v8771_v29  ;;  %v9250_v10 = vsel %vm7863_vm2, %v9065_v44, 4286644096  ;;  %v8035_v56 = vsel %vm7863_vm2, %v7860_v57, 4286644096 }
 0x554   : > { %v8994_v1 = vmax.f32 %v8992_v22, %v8993_v20  ;;  %v9345_v32 = vsel %vm9275_vm5, %v9290_v19, %v8513_v0  ;;  %v8056_v13 = vmax.f32 %v8054_v58, %v8055_v14  ;;  %v9014_v54 = vmax.f32 %v9012_v11, %v9013_v41 }
 0x555   : > { %v9252_v52 = vunpack.i.l.bf16 %v9250_v10  ;;  %v9253_v45 = vunpack.i.h.bf16 %v9250_v10  ;;  %v8037_v42 = vunpack.i.l.bf16 %v8035_v56  ;;  %v8038_v18 = vunpack.i.h.bf16 %v8035_v56 }
 0x556   : > { %v9233_v55 = vrot.slane %v9232_v28, 1  ;;  %v8296_v25 = vmax.f32 %v8294_v16, %v8295_v61  ;;  %v8534_v21 = vmax.f32 %v8532_v24, %v8533_v43  ;;  %v8102_v46 = vsel %vm12119_vm15, %v14583_v38, 0 }
 0x557   : > { %v8773_v30 = vrot.slane %v8772_v63, 4  ;;  %v8039_v34 = vmax.f32 %v8037_v42, %v8038_v18  ;;  %v8275_v27 = vsel %vm7863_vm2, %v8102_v46, 4286644096  ;;  %v9374_v33 = vsel %vm12524_vm12, %v9345_v32, %v8753_v39 }
 0x558   : > { %v8057_v60 = vrot.slane %v8056_v13, 1  ;;  %v9015_v51 = vrot.slane %v9014_v54, 4  ;;  %v8277_v50 = vunpack.i.l.bf16 %v8275_v27  ;;  %v8995_v2 = vpack.i.bf16 %v8994_v1, %v8994_v1 }
 0x559   : > { %v9254_v58 = vmax.f32 %v9252_v52, %v9253_v45  ;;  %v8040_v59 = vrot.slane %v8039_v34, 4  ;;  %v8278_v22 = vunpack.i.h.bf16 %v8275_v27  ;;  %v9234_v17 = vmax.f32 %v9232_v28, %v9233_v55 }
 0x55a   : > { %v8297_v53 = vrot.slane %v8296_v25, 1  ;;  %v8535_v62 = vrot.slane %v8534_v21, 2  ;;  %v8342_v4 = vsel %vm12126_vm0, %v14583_v38, 0  ;;  %v8774_v9 = vmax.f32 %v8772_v63, %v8773_v30 }
 0x55b   : > { %v8041_v47 = vmax.f32 %v8039_v34, %v8040_v59  ;;  %v8279_v16 = vmax.f32 %v8277_v50, %v8278_v22  ;;  %v8515_v35 = vsel %vm7863_vm2, %v8342_v4, 4286644096  ;;  %v9429_v48 = vsel %vm9359_vm7, %v9374_v33, %v8995_v2 }
 0x55c   : > { %v14647_v6 = vmax.f32 %v8056_v13, %v8057_v60  ;;  %v9016_v0 = vmax.f32 %v9014_v54, %v9015_v51  ;;  %v8517_v8 = vunpack.i.l.bf16 %v8515_v35  ;;  %v9255_v14 = vrot.slane %v9254_v58, 4 }
 0x55d   : > { %v8042_v40 = vrot.slane %v8041_v47, 2  ;;  %v8280_v20 = vrot.slane %v8279_v16, 4  ;;  %v8518_v24 = vunpack.i.h.bf16 %v8515_v35  ;;  %v9235_v29 = vpack.i.bf16 %v9234_v17, %v9234_v17 }
 0x55e   : > { %v14649_v5 = vmax.f32 %v8296_v25, %v8297_v53  ;;  %v14651_v28 = vmax.f32 %v8534_v21, %v8535_v62  ;;  %v8582_v19 = vsel %vm12133_vm1, %v14583_v38, 0  ;;  %v8775_v11 = vrot.slane %v8774_v9, 2 }
 0x55f   : > { %v8043_v41 = vmax.f32 %v8041_v47, %v8042_v40  ;;  %v8281_v61 = vmax.f32 %v8279_v16, %v8280_v20  ;;  %v8519_v43 = vmax.f32 %v8517_v8, %v8518_v24  ;;  %v14658_v44 = vsel %vm12568_vm13, %v9429_v48, %v9235_v29 }
 0x560   : > { %v8059_v57 = vpack.i.bf16 %v14647_v6, %v14647_v6  ;;  %v9017_v39 = vrot.slane %v9016_v0, 2  ;;  %v8755_v63 = vsel %vm7863_vm2, %v8582_v19, 4286644096  ;;  %v14663_v10 = vmax.f32 %v9254_v58, %v9255_v14 }
 0x561   : > { %v8044_v56 = vrot.slane %v8043_v41, 1  ;;  %v8282_v1 = vrot.slane %v8281_v61, 2  ;;  %v8520_v32 = vrot.slane %v8519_v43, 4  ;;  %v8299_v13 = vpack.i.bf16 %v14649_v5, %v14649_v5 }
 0x562   : > { %v8537_v54 = vrot.slane %v14651_v28, 1  ;;  %v8757_v52 = vunpack.i.l.bf16 %v8755_v63  ;;  %v8758_v45 = vunpack.i.h.bf16 %v8755_v63  ;;  %v14668_v42 = vmax.f32 %v8774_v9, %v8775_v11 }
 0x563   : > { %v8045_v18 = vmax.f32 %v8043_v41, %v8044_v56  ;;  %v8283_v55 = vmax.f32 %v8281_v61, %v8282_v1  ;;  %v8521_v25 = vmax.f32 %v8519_v43, %v8520_v32  ;;  %v14670_v21 = vmax.f32 %v9016_v0, %v9017_v39 }
 0x564   : > { %v8759_v46 = vmax.f32 %v8757_v52, %v8758_v45  ;;  %v8824_v30 = vsel %vm12200_vm3, %v14583_v38, 0  ;;  %v9064_v34 = vsel %vm12239_vm4, %v14583_v38, 0  ;;  %v9257_v27 = vrot.slane %v14663_v10, 2 }
 0x565   : > { %v8284_v33 = vrot.slane %v8283_v55, 1  ;;  %v8522_v60 = vrot.slane %v8521_v25, 2  ;;  %v8997_v51 = vsel %vm7863_vm2, %v8824_v30, 4286644096  ;;  %v8046_v50 = vpack.i.bf16 %v8045_v18, %v8045_v18 }
 0x566   : > { %v8760_v2 = vrot.slane %v8759_v46, 4  ;;  %v8999_v58 = vunpack.i.l.bf16 %v8997_v51  ;;  %v9000_v59 = vunpack.i.h.bf16 %v8997_v51  ;;  %v9237_v53 = vsel %vm7863_vm2, %v9064_v34, 4286644096 }
 0x567   : > { %v8285_v22 = vmax.f32 %v8283_v55, %v8284_v33  ;;  %v8523_v17 = vmax.f32 %v8521_v25, %v8522_v60  ;;  %v7862_v62 = vsel %vm12112_vm14, %v14596_v26, 0  ;;  %v9239_v9 = vunpack.i.l.bf16 %v9237_v53 }
 0x568   : > { %v8761_v4 = vmax.f32 %v8759_v46, %v8760_v2  ;;  %v9001_v38 = vmax.f32 %v8999_v58, %v9000_v59  ;;  %v9240_v47 = vunpack.i.h.bf16 %v9237_v53  ;;  %v8061_v48 = vsel %vm7863_vm2, %v7862_v62, 4286644096 }
 0x569   : > { %v8286_v16 = vpack.i.bf16 %v8285_v22, %v8285_v22  ;;  %v8524_v35 = vrot.slane %v8523_v17, 1  ;;  %v8104_v0 = vsel %vm12119_vm15, %v14596_v26, 0  ;;  %v8063_v20 = vunpack.i.l.bf16 %v8061_v48 }
 0x56a   : > { %v8762_v8 = vrot.slane %v8761_v4, 2  ;;  %v9002_v14 = vrot.slane %v9001_v38, 4  ;;  %v9241_v40 = vmax.f32 %v9239_v9, %v9240_v47  ;;  %v8064_v29 = vunpack.i.h.bf16 %v8061_v48 }
 0x56b   : > { %v8525_v24 = vmax.f32 %v8523_v17, %v8524_v35  ;;  %v9291_v37 = vsel %vm12470_vm9, %v8046_v50, %v8286_v16  ;;  %v8301_v19 = vsel %vm7863_vm2, %v8104_v0, 4286644096  ;;  %v8344_v23 = vsel %vm12126_vm0, %v14596_v26, 0 }
 0x56c   : > { %v8763_v11 = vmax.f32 %v8761_v4, %v8762_v8  ;;  %v9003_v41 = vmax.f32 %v9001_v38, %v9002_v14  ;;  %v9242_v61 = vrot.slane %v9241_v40, 4  ;;  %v8303_v43 = vunpack.i.l.bf16 %v8301_v19 }
 0x56d   : > { %v8526_v39 = vpack.i.bf16 %v8525_v24, %v8525_v24  ;;  %v8065_v63 = vmax.f32 %v8063_v20, %v8064_v29  ;;  %v8304_v56 = vunpack.i.h.bf16 %v8301_v19  ;;  %v8541_v45 = vsel %vm7863_vm2, %v8344_v23, 4286644096 }
 0x56e   : > { %v8764_v1 = vrot.slane %v8763_v11, 1  ;;  %v9004_v32 = vrot.slane %v9003_v41, 2  ;;  %v9243_v52 = vmax.f32 %v9241_v40, %v9242_v61  ;;  %v8543_v46 = vunpack.i.l.bf16 %v8541_v45 }
 0x56f   : > { %v9349_v18 = vsel %vm9275_vm5, %v9291_v37, %v8526_v39  ;;  %v8066_v55 = vrot.slane %v8065_v63, 4  ;;  %v8305_v25 = vmax.f32 %v8303_v43, %v8304_v56  ;;  %v8544_v60 = vunpack.i.h.bf16 %v8541_v45 }
 0x570   : > { %v8765_v30 = vmax.f32 %v8763_v11, %v8764_v1  ;;  %v9005_v34 = vmax.f32 %v9003_v41, %v9004_v32  ;;  %v9244_v33 = vrot.slane %v9243_v52, 2  ;;  %v8584_v3 = vsel %vm12133_vm1, %v14596_v26, 0 }
 0x571   : > { %v8067_v51 = vmax.f32 %v8065_v63, %v8066_v55  ;;  %v8306_v50 = vrot.slane %v8305_v25, 4  ;;  %v8826_v2 = vsel %vm12200_vm3, %v14596_v26, 0  ;;  %v8545_v17 = vmax.f32 %v8543_v46, %v8544_v60 }
 0x572   : > { %v8766_v58 = vpack.i.bf16 %v8765_v30, %v8765_v30  ;;  %v9006_v59 = vrot.slane %v9005_v34, 1  ;;  %v9245_v22 = vmax.f32 %v9243_v52, %v9244_v33  ;;  %v8781_v4 = vsel %vm7863_vm2, %v8584_v3, 4286644096 }
 0x573   : > { %v8068_v53 = vrot.slane %v8067_v51, 2  ;;  %v8307_v62 = vmax.f32 %v8305_v25, %v8306_v50  ;;  %v9023_v38 = vsel %vm7863_vm2, %v8826_v2, 4286644096  ;;  %v8546_v16 = vrot.slane %v8545_v17, 4 }
 0x574   : > { %v9007_v9 = vmax.f32 %v9005_v34, %v9006_v59  ;;  %v9246_v47 = vrot.slane %v9245_v22, 1  ;;  %v9375_v7 = vsel %vm12524_vm12, %v9349_v18, %v8766_v58  ;;  %v8783_v49 = vunpack.i.l.bf16 %v8781_v4 }
 0x575   : > { %v8069_v35 = vmax.f32 %v8067_v51, %v8068_v53  ;;  %v8308_v48 = vrot.slane %v8307_v62, 2  ;;  %v8784_v0 = vunpack.i.h.bf16 %v8781_v4  ;;  %v8547_v40 = vmax.f32 %v8545_v17, %v8546_v16 }
 0x576   : > { %v9008_v8 = vpack.i.bf16 %v9007_v9, %v9007_v9  ;;  %v9247_v14 = vmax.f32 %v9245_v22, %v9246_v47  ;;  %v9025_v20 = vunpack.i.l.bf16 %v9023_v38  ;;  %v9026_v19 = vunpack.i.h.bf16 %v9023_v38 }
 0x577   : > { %v8070_v24 = vrot.slane %v8069_v35, 1  ;;  %v8309_v37 = vmax.f32 %v8307_v62, %v8308_v48  ;;  %v8785_v29 = vmax.f32 %v8783_v49, %v8784_v0  ;;  %v8548_v61 = vrot.slane %v8547_v40, 2 }
 0x578   : > { %v9248_v11 = vpack.i.bf16 %v9247_v14, %v9247_v14  ;;  %v9433_v41 = vsel %vm9359_vm7, %v9375_v7, %v9008_v8  ;;  %v9066_v43 = vsel %vm12239_vm4, %v14596_v26, 0  ;;  %v9027_v23 = vmax.f32 %v9025_v20, %v9026_v19 }
 0x579   : > { %v8071_v39 = vmax.f32 %v8069_v35, %v8070_v24  ;;  %v8310_v63 = vrot.slane %v8309_v37, 1  ;;  %v8786_v56 = vrot.slane %v8785_v29, 4  ;;  %v8538_v1 = vmax.f32 %v14651_v28, %v8537_v54 }
 0x57a   : > { %v9459_v32 = vsel %vm12568_vm13, %v9433_v41, %v9248_v11  ;;  %v8549_v52 = vmax.f32 %v8547_v40, %v8548_v61  ;;  %v9263_v45 = vsel %vm7863_vm2, %v9066_v43, 4286644096  ;;  %v8777_v18 = vrot.slane %v14668_v42, 1 }
 0x57b   : > { %v10686_v31 = vcombine.low %v14658_v44, %v9459_v32  ;;  %v8311_v26 = vmax.f32 %v8309_v37, %v8310_v63  ;;  %v8787_v55 = vmax.f32 %v8785_v29, %v8786_v56  ;;  %v9028_v46 = vrot.slane %v9027_v23, 4 }
 0x57c   : > { %v8550_v25 = vrot.slane %v8549_v52, 1  ;;  %v9265_v30 = vunpack.i.l.bf16 %v9263_v45  ;;  %v9266_v34 = vunpack.i.h.bf16 %v9263_v45  ;;  %v9258_v28 = vmax.f32 %v14663_v10, %v9257_v27 }
 0x57d   : > { %9516 = vst [vmem:[%s12736_s23 + $0x30] sm:$0x77] %v10686_v31  ;;  %v8072_v54 = vpack.i.bf16 %v8071_v39, %v8071_v39  ;;  %v8788_v33 = vrot.slane %v8787_v55, 2  ;;  %v8312_v60 = vpack.i.bf16 %v8311_v26, %v8311_v26  ;;  %v9029_v50 = vmax.f32 %v9027_v23, %v9028_v46 }
 0x57e   : > { %v8551_v51 = vmax.f32 %v8549_v52, %v8550_v25  ;;  %v9267_v3 = vmax.f32 %v9265_v30, %v9266_v34  ;;  %v8539_v2 = vpack.i.bf16 %v8538_v1, %v8538_v1  ;;  %v9019_v44 = vrot.slane %v14670_v21, 1 }
 0x57f   : > { %v8789_v58 = vmax.f32 %v8787_v55, %v8788_v33  ;;  %v8778_v59 = vmax.f32 %v14668_v42, %v8777_v18  ;;  %v9292_v10 = vsel %vm12470_vm9, %v8059_v57, %v8299_v13  ;;  %v9030_v27 = vrot.slane %v9029_v50, 2 }
 0x580   : > { %v9268_v22 = vrot.slane %v9267_v3, 4  ;;  %v9259_v17 = vrot.slane %v9258_v28, 1  ;;  %v8552_v53 = vpack.i.bf16 %v8551_v51, %v8551_v51  ;;  %v9293_v9 = vsel %vm12470_vm9, %v8072_v54, %v8312_v60 }
 0x581   : > { %v8790_v62 = vrot.slane %v8789_v58, 1  ;;  %v9031_v4 = vmax.f32 %v9029_v50, %v9030_v27  ;;  %v9020_v42 = vmax.f32 %v14670_v21, %v9019_v44  ;;  %v9353_v5 = vsel %vm9275_vm5, %v9292_v10, %v8539_v2 }
 0x582   : > { %v9269_v38 = vmax.f32 %v9267_v3, %v9268_v22  ;;  %v8779_v7 = vpack.i.bf16 %v8778_v59, %v8778_v59  ;;  %v9260_v35 = vmax.f32 %v9258_v28, %v9259_v17  ;;  %v9357_v57 = vsel %vm9275_vm5, %v9293_v9, %v8552_v53 }
 0x583   : > { %v8791_v47 = vmax.f32 %v8789_v58, %v8790_v62  ;;  %v9032_v6 = vrot.slane %v9031_v4, 1  ;;  %v9021_v36 = vpack.i.bf16 %v9020_v42, %v9020_v42 }
 0x584   : > { %v9270_v16 = vrot.slane %v9269_v38, 2  ;;  %v9376_v13 = vsel %vm12524_vm12, %v9353_v5, %v8779_v7  ;;  %v9261_v20 = vpack.i.bf16 %v9260_v35, %v9260_v35 }
 0x585   : > { %v8792_v48 = vpack.i.bf16 %v8791_v47, %v8791_v47  ;;  %v9033_v49 = vmax.f32 %v9031_v4, %v9032_v6  ;;  %v9437_v14 = vsel %vm9359_vm7, %v9376_v13, %v9021_v36 }
 0x586   : > { %v9271_v0 = vmax.f32 %v9269_v38, %v9270_v16  ;;  %v9460_v29 = vsel %vm12568_vm13, %v9437_v14, %v9261_v20 }
 0x587   : > { %v9377_v21 = vsel %vm12524_vm12, %v9357_v57, %v8792_v48  ;;  %v9034_v40 = vpack.i.bf16 %v9033_v49, %v9033_v49 }
 0x588   : > { %v9272_v8 = vrot.slane %v9271_v0, 1 }
 0x589   : > { %v9441_v37 = vsel %vm9359_vm7, %v9377_v21, %v9034_v40 }
 0x58a   : > { %v9273_v24 = vmax.f32 %v9271_v0, %v9272_v8 }
 0x58c   : > { %v9274_v19 = vpack.i.bf16 %v9273_v24, %v9273_v24 }
 0x58e   : > { %v9461_v11 = vsel %vm12568_vm13, %v9441_v37, %v9274_v19 }
 0x58f   : > { %v10687_v41 = vcombine.low %v9460_v29, %v9461_v11 }
 0x591   : > { %9517 = vst [vmem:[%s12736_s23 + $0x38] sm:$0x77] %v10687_v41 }
 0x592 PF: > { %s15_s16 = sadd.s32 1, %s10960_s16   ;;  %s15356_s9 = smov %s10936_s10 }
 0x593   : > { %p12_p5 = scmp.ge.s32.totalorder %s15_s16, 8   ;;  %s15357_s10 = smov %s10940_s11 }
 0x594   : > { %s15358_s11 = smov %s11048_s27  ;;  %s15359_s12 = smov %s10952_s14 }
 0x595   : > { %s15360_s13 = smov %s10956_s15  ;;  %s15361_s14 = smov %s15364_s18 }
 0x596   : > { %s15362_s15 = smov %s15368_s19  ;;  %14 = sbr.rel (!%p12_p5) target bundleno = 5 (0x5), region = 71 }
 0x59d   :  { %9547 = vsyncpa [#allocation3], 1 }
 0x59e   :  { %9549 = vsyncpa [#allocation3 + $0x1], 1 }

</bundles_post_ra>
